<compile_context>
chip_gen: v5e
topology: v5e:2x2
jax: 0.10.0
libtpu: 0.0.40
codegen_flags: <defaults>
</compile_context>

<pallas_src>
import functools

import jax
import jax.numpy as jnp
from jax import lax
from jax.experimental import pallas as pl
from jax.experimental.pallas import tpu as pltpu

ODE_UNFOLDS = 4      # LTC(..., ode_unfolds=4)
LTC_EPS = 1e-8       # LTCCell epsilon
LN_EPS = 1e-5        # torch.nn.LayerNorm default eps


def _softplus(z):
    # implicit_param_constraints=True in ncps LTC -> softplus on gleak/cm/w/sensory_w
    return jnp.maximum(z, 0.0) + jnp.log(1.0 + jnp.exp(-jnp.abs(z)))


def _tile_lanes(a, n):
    """Replicate a (S, H) tensor n times along the lane axis via 2-way concats."""
    if n == 1:
        return a
    out = a
    built = 1
    while built * 2 <= n:
        out = jnp.concatenate([out, out], axis=1)
        built *= 2
    if built < n:
        out = jnp.concatenate([out, _tile_lanes(a, n - built)], axis=1)
    return out


def ltc_forward_kernel(
    x_sp_ref,                            # (I, T*B*H) presyn repack: [i,(t*B+b)*H+d]=x[b,t,i]
    input_w_ref, input_b_ref,            # (I, 1)     affine input mapping (columns)
    sensory_mu_ref, sensory_sigma_ref,   # (I, H)
    sensory_w_ref, sensory_erev_ref,     # (I, H)
    mu_ref, sigma_ref, w_ref, erev_ref,  # (H, H)
    gleak_ref, vleak_ref, cm_ref,        # (1, H)
    output_w_ref, output_b_ref,          # (1, H)     affine output mapping
    ln_gamma_ref, ln_beta_ref,           # (1, H)     LayerNorm params
    fc_wT_ref,                           # (H, O)     Linear weight, pre-transposed
    fc_b_ref,                            # (1, O)
    out_ref,                             # (B, O)
    *, batch, t_steps,
):
    B = batch
    T = t_steps
    H = mu_ref.shape[0]
    BH = B * H
    TB = T * B

    # ------------------------------------------------------------------
    # One-time packed parameter prep (all hoisted out of both loops).
    # sigmoid(z) = 0.5 * tanh(z / 2) + 0.5   (EUP tanh instead of exp+divide)
    # ------------------------------------------------------------------
    # Recurrent synapses: z/2 = v*(sigma/2) - mu*sigma/2, packed to (H, B*H).
    sigma = sigma_ref[...]
    mu = mu_ref[...]
    w_pos = _softplus(w_ref[...])
    erev = erev_ref[...]
    A_r = _tile_lanes(0.5 * sigma, B)                      # (H, B*H)
    C_r = _tile_lanes(-0.5 * mu * sigma, B)                # (H, B*H)
    Wn_r = _tile_lanes(w_pos * erev, B)                    # (H, B*H)
    Wd_r = _tile_lanes(w_pos, B)                           # (H, B*H)

    # Sensory synapses with the affine input mapping folded in exactly:
    #   ((x*iw + ib) - mu) * sigma = x*(iw*sigma) + (ib - mu)*sigma
    # Packed to (I, T*B*H) so the whole sequence is processed in one pass.
    s_sigma = sensory_sigma_ref[...]
    s_mu = sensory_mu_ref[...]
    s_w_pos = _softplus(sensory_w_ref[...])
    s_erev = sensory_erev_ref[...]
    iw = input_w_ref[...]                                  # (I, 1)
    ib = input_b_ref[...]                                  # (I, 1)
    A_s = _tile_lanes(0.5 * iw * s_sigma, TB)              # (I, T*B*H)
    C_s = _tile_lanes(0.5 * (ib - s_mu) * s_sigma, TB)     # (I, T*B*H)
    Wn_s = _tile_lanes(s_w_pos * s_erev, TB)               # (I, T*B*H)
    Wd_s = _tile_lanes(s_w_pos, TB)                        # (I, T*B*H)

    gleak = _softplus(gleak_ref[...])                      # (1, H)
    # elapsed_time == 1.0 in the LTC wrapper loop -> cm_t = softplus(cm)*ode_unfolds
    cm_t = _softplus(cm_ref[...]) * float(ODE_UNFOLDS)     # (1, H)
    cm_row = _tile_lanes(cm_t, B)                          # (1, B*H)
    num_const = _tile_lanes(gleak * vleak_ref[...], TB)    # (1, T*B*H)
    den_const = _tile_lanes(cm_t + gleak + LTC_EPS, TB)    # (1, T*B*H)

    # ------------------------------------------------------------------
    # Sensory path for ALL timesteps at once (state-independent): one lane-
    # dense tanh + two sublane reduces over an (I, T*B*H) tile.
    # ------------------------------------------------------------------
    s_all = 0.5 * jnp.tanh(x_sp_ref[...] * A_s + C_s) + 0.5           # (I, T*B*H)
    base_num_all = jnp.sum(s_all * Wn_s, axis=0, keepdims=True) + num_const  # (1, T*B*H)
    base_den_all = jnp.sum(s_all * Wd_s, axis=0, keepdims=True) + den_const  # (1, T*B*H)

    # ------------------------------------------------------------------
    # Recurrent loop.  State kept in packed row layout (1, B*H):
    #   v_row[0, b*H + d] = v[b, d]
    # Loops are static & short (T=8, unfolds=4) -> fully unrolled at trace time.
    # ------------------------------------------------------------------
    v_row = jnp.zeros((1, BH), dtype=jnp.float32)
    for t in range(T):
        bn = base_num_all[:, t * BH:(t + 1) * BH]          # (1, B*H) static slice
        bd = base_den_all[:, t * BH:(t + 1) * BH]
        for _ in range(ODE_UNFOLDS):
            # presynaptic broadcast: v_p[s, b*H + d] = v[b, s]
            v_bh = jnp.concatenate(
                [v_row[:, b * H:(b + 1) * H] for b in range(B)], axis=0)   # (B, H)
            p3 = jnp.broadcast_to(v_bh[:, :, None], (B, H, H))
            v_p = jnp.concatenate([p3[b] for b in range(B)], axis=1)       # (H, B*H)

            s_r = 0.5 * jnp.tanh(v_p * A_r + C_r) + 0.5                    # sigmoid
            w_num = jnp.sum(s_r * Wn_r, axis=0, keepdims=True)             # (1, B*H)
            w_den = jnp.sum(s_r * Wd_r, axis=0, keepdims=True)             # (1, B*H)

            num = w_num + bn + cm_row * v_row
            den = w_den + bd                       # already includes cm_t+gleak+eps
            r = pl.reciprocal(den, approx=True)
            r = r * (2.0 - den * r)                # one Newton step -> ~f32 accuracy
            v_row = num * r

    # ltc_out[:, -1, :] == output mapping of the final state
    # (motor_size == state_size for FullyConnected wiring, so no slicing).
    v_final = jnp.concatenate(
        [v_row[:, b * H:(b + 1) * H] for b in range(B)], axis=0)           # (B, H)
    last_hidden = v_final * output_w_ref[...] + output_b_ref[...]

    # LayerNorm over the hidden dim (biased variance, eps=1e-5), rsqrt on EUP.
    mean = jnp.mean(last_hidden, axis=-1, keepdims=True)
    var = jnp.mean(jnp.square(last_hidden - mean), axis=-1, keepdims=True)
    normed = (last_hidden - mean) * lax.rsqrt(var + LN_EPS)
    normed = normed * ln_gamma_ref[...] + ln_beta_ref[...]

    # Dropout: identity in eval/inference mode.
    # Final Linear head on the MXU.
    out_ref[...] = (
        jnp.dot(normed, fc_wT_ref[...], preferred_element_type=jnp.float32)
        + fc_b_ref[...]
    )


def enhanced_navigation_ltc(x, params):
    """Forward pass of EnhancedNavigationLTC. x: (B, T, I) float32."""
    B, T, I = x.shape
    H = params["mu"].shape[0]
    O = params["fc_b"].shape[0]

    x_f = x.astype(jnp.float32)
    # Lane-dense presynaptic repack of the whole input sequence (layout plumbing
    # only; no compute hoisted):  x_sp[i, (t*B + b)*H + d] = x[b, t, i].
    x_itb = jnp.transpose(x_f, (2, 1, 0))                                  # (I, T, B)
    x_sp = jnp.broadcast_to(x_itb[:, :, :, None], (I, T, B, H)).reshape(I, T * B * H)

    def row(v):  # 1-D param -> (1, N)
        return v.reshape(1, -1).astype(jnp.float32)

    def col(v):  # 1-D param -> (N, 1)
        return v.reshape(-1, 1).astype(jnp.float32)

    args = (
        x_sp,
        col(params["input_w"]), col(params["input_b"]),
        params["sensory_mu"].astype(jnp.float32),
        params["sensory_sigma"].astype(jnp.float32),
        params["sensory_w"].astype(jnp.float32),
        params["sensory_erev"].astype(jnp.float32),
        params["mu"].astype(jnp.float32),
        params["sigma"].astype(jnp.float32),
        params["w"].astype(jnp.float32),
        params["erev"].astype(jnp.float32),
        row(params["gleak"]), row(params["vleak"]), row(params["cm"]),
        row(params["output_w"]), row(params["output_b"]),
        row(params["ln_gamma"]), row(params["ln_beta"]),
        params["fc_w"].T.astype(jnp.float32),        # (H, O)
        row(params["fc_b"]),
    )

    kernel = functools.partial(ltc_forward_kernel, batch=B, t_steps=T)

    # TODO(synk): for v7x a batch grid axis with dimension_semantics=("parallel",)
    # would shard sequences across the 2 TensorCores; at B=2 it conflicts with
    # the lane packing, so the kernel stays gridless here.
    vmem_spec = pl.BlockSpec(memory_space=pltpu.MemorySpace.VMEM)
    return pl.pallas_call(
        kernel,
        out_shape=jax.ShapeDtypeStruct((B, O), jnp.float32),
        in_specs=[vmem_spec] * len(args),
        out_specs=vmem_spec,
    )(*args)


def init_params(key, input_size, hidden_size, output_size):
    """Deterministic synthetic parameters matching ncps LTCCell init ranges."""
    I, H, O = input_size, hidden_size, output_size
    ks = jax.random.split(key, 13)
    u = jax.random.uniform
    p = {}
    p["gleak"] = u(ks[0], (H,), minval=0.001, maxval=1.0)
    p["vleak"] = u(ks[1], (H,), minval=-0.2, maxval=0.2)
    p["cm"] = u(ks[2], (H,), minval=0.4, maxval=0.6)
    p["sigma"] = u(ks[3], (H, H), minval=3.0, maxval=8.0)
    p["mu"] = u(ks[4], (H, H), minval=0.3, maxval=0.8)
    p["w"] = u(ks[5], (H, H), minval=0.001, maxval=1.0)
    p["erev"] = jnp.where(u(ks[6], (H, H)) < 2.0 / 3.0, 1.0, -1.0)
    p["sensory_sigma"] = u(ks[7], (I, H), minval=3.0, maxval=8.0)
    p["sensory_mu"] = u(ks[8], (I, H), minval=0.3, maxval=0.8)
    p["sensory_w"] = u(ks[9], (I, H), minval=0.001, maxval=1.0)
    p["sensory_erev"] = jnp.where(u(ks[10], (I, H)) < 2.0 / 3.0, 1.0, -1.0)
    p["input_w"] = jnp.ones((I,))
    p["input_b"] = jnp.zeros((I,))
    p["output_w"] = jnp.ones((H,))
    p["output_b"] = jnp.zeros((H,))
    p["ln_gamma"] = jnp.ones((H,))
    p["ln_beta"] = jnp.zeros((H,))
    bound = 1.0 / (H ** 0.5)
    p["fc_w"] = u(ks[11], (O, H), minval=-bound, maxval=bound)
    p["fc_b"] = u(ks[12], (O,), minval=-bound, maxval=bound)
    return {k: v.astype(jnp.float32) for k, v in p.items()}


def reference_forward(x, p):
    """Pure-JAX mirror of the PyTorch forward for a correctness check."""
    B, T, I = x.shape
    H = p["mu"].shape[0]
    sensory_w_pos = jax.nn.softplus(p["sensory_w"])
    w_pos = jax.nn.softplus(p["w"])
    gleak = jax.nn.softplus(p["gleak"])
    cm_t = jax.nn.softplus(p["cm"]) * float(ODE_UNFOLDS)
    v = jnp.zeros((B, H), jnp.float32)
    for t in range(T):
        xt = x[:, t, :] * p["input_w"] + p["input_b"]
        s = sensory_w_pos * jax.nn.sigmoid(
            (xt[:, :, None] - p["sensory_mu"]) * p["sensory_sigma"])
        wns = jnp.sum(s * p["sensory_erev"], axis=1)
        wds = jnp.sum(s, axis=1)
        for _ in range(ODE_UNFOLDS):
            wa = w_pos * jax.nn.sigmoid((v[:, :, None] - p["mu"]) * p["sigma"])
            wn = jnp.sum(wa * p["erev"], axis=1) + wns
            wd = jnp.sum(wa, axis=1) + wds
            v = (cm_t * v + gleak * p["vleak"] + wn) / (cm_t + gleak + wd + LTC_EPS)
    last = v * p["output_w"] + p["output_b"]
    mean = jnp.mean(last, axis=-1, keepdims=True)
    var = jnp.mean((last - mean) ** 2, axis=-1, keepdims=True)
    nrm = (last - mean) / jnp.sqrt(var + LN_EPS) * p["ln_gamma"] + p["ln_beta"]
    return nrm @ p["fc_w"].T + p["fc_b"]


if __name__ == "__main__":
    # Small shapes consistent with the module's (batch, seq, input) forward.
    B, T, I, H, O = 2, 8, 16, 32, 15
    key = jax.random.PRNGKey(0)
    kx, kp = jax.random.split(key)
    x = jax.random.normal(kx, (B, T, I), dtype=jnp.float32)
    params = init_params(kp, I, H, O)

    out = enhanced_navigation_ltc(x, params)
    out = jax.block_until_ready(out)

    ref = reference_forward(x, params)
    assert out.shape == (B, O)
    assert bool(jnp.all(jnp.isfinite(out)))
    assert bool(jnp.allclose(out, ref, atol=2e-3, rtol=2e-3)), "mismatch vs JAX reference"
    print("KERNEL_OK")
</pallas_src>

<mosaic_0001>
module attributes {stable_mosaic.version = 11 : i64} {
  func.func @ltc_forward_kernel(%arg0: memref<16x512xf32, #tpu.memory_space<vmem>>, %arg1: memref<16x1xf32, #tpu.memory_space<vmem>>, %arg2: memref<16x1xf32, #tpu.memory_space<vmem>>, %arg3: memref<16x32xf32, #tpu.memory_space<vmem>>, %arg4: memref<16x32xf32, #tpu.memory_space<vmem>>, %arg5: memref<16x32xf32, #tpu.memory_space<vmem>>, %arg6: memref<16x32xf32, #tpu.memory_space<vmem>>, %arg7: memref<32x32xf32, #tpu.memory_space<vmem>>, %arg8: memref<32x32xf32, #tpu.memory_space<vmem>>, %arg9: memref<32x32xf32, #tpu.memory_space<vmem>>, %arg10: memref<32x32xf32, #tpu.memory_space<vmem>>, %arg11: memref<1x32xf32, #tpu.memory_space<vmem>>, %arg12: memref<1x32xf32, #tpu.memory_space<vmem>>, %arg13: memref<1x32xf32, #tpu.memory_space<vmem>>, %arg14: memref<1x32xf32, #tpu.memory_space<vmem>>, %arg15: memref<1x32xf32, #tpu.memory_space<vmem>>, %arg16: memref<1x32xf32, #tpu.memory_space<vmem>>, %arg17: memref<1x32xf32, #tpu.memory_space<vmem>>, %arg18: memref<32x15xf32, #tpu.memory_space<vmem>>, %arg19: memref<1x15xf32, #tpu.memory_space<vmem>>, %arg20: memref<2x15xf32, #tpu.memory_space<vmem>>) attributes {dimension_semantics = [], scalar_prefetch = 0 : i64, scratch_operands = 0 : i64, tpu.core_type = #tpu.core_type<tc>} {
    %c0 = arith.constant 0 : index
    %c0_0 = arith.constant 0 : index
    %0 = vector.load %arg8[%c0, %c0_0] : memref<32x32xf32, #tpu.memory_space<vmem>>, vector<32x32xf32>
    %c0_1 = arith.constant 0 : index
    %c0_2 = arith.constant 0 : index
    %1 = vector.load %arg7[%c0_1, %c0_2] : memref<32x32xf32, #tpu.memory_space<vmem>>, vector<32x32xf32>
    %c0_3 = arith.constant 0 : index
    %c0_4 = arith.constant 0 : index
    %2 = vector.load %arg9[%c0_3, %c0_4] : memref<32x32xf32, #tpu.memory_space<vmem>>, vector<32x32xf32>
    %cst = arith.constant 0.000000e+00 : f32
    %3 = vector.broadcast %cst : f32 to vector<32x32xf32>
    %4 = arith.maximumf %2, %3 : vector<32x32xf32>
    %5 = math.absf %2 : vector<32x32xf32>
    %cst_5 = arith.constant 0.000000e+00 : f32
    %6 = vector.broadcast %cst_5 : f32 to vector<32x32xf32>
    %7 = arith.subf %6, %5 : vector<32x32xf32>
    %8 = math.exp %7 : vector<32x32xf32>
    %cst_6 = arith.constant 1.000000e+00 : f32
    %9 = vector.broadcast %cst_6 : f32 to vector<32x32xf32>
    %10 = arith.addf %9, %8 : vector<32x32xf32>
    %11 = math.log %10 : vector<32x32xf32>
    %12 = arith.addf %4, %11 : vector<32x32xf32>
    %c0_7 = arith.constant 0 : index
    %c0_8 = arith.constant 0 : index
    %13 = vector.load %arg10[%c0_7, %c0_8] : memref<32x32xf32, #tpu.memory_space<vmem>>, vector<32x32xf32>
    %cst_9 = arith.constant 5.000000e-01 : f32
    %14 = vector.broadcast %cst_9 : f32 to vector<32x32xf32>
    %15 = arith.mulf %14, %0 : vector<32x32xf32>
    %16 = tpu.concatenate %15, %15 in 1 : vector<32x32xf32>, vector<32x32xf32> -> vector<32x64xf32>
    %cst_10 = arith.constant -5.000000e-01 : f32
    %17 = vector.broadcast %cst_10 : f32 to vector<32x32xf32>
    %18 = arith.mulf %17, %1 : vector<32x32xf32>
    %19 = arith.mulf %18, %0 : vector<32x32xf32>
    %20 = tpu.concatenate %19, %19 in 1 : vector<32x32xf32>, vector<32x32xf32> -> vector<32x64xf32>
    %21 = arith.mulf %12, %13 : vector<32x32xf32>
    %22 = tpu.concatenate %21, %21 in 1 : vector<32x32xf32>, vector<32x32xf32> -> vector<32x64xf32>
    %23 = tpu.concatenate %12, %12 in 1 : vector<32x32xf32>, vector<32x32xf32> -> vector<32x64xf32>
    %c0_11 = arith.constant 0 : index
    %c0_12 = arith.constant 0 : index
    %24 = vector.load %arg4[%c0_11, %c0_12] : memref<16x32xf32, #tpu.memory_space<vmem>>, vector<16x32xf32>
    %c0_13 = arith.constant 0 : index
    %c0_14 = arith.constant 0 : index
    %25 = vector.load %arg3[%c0_13, %c0_14] : memref<16x32xf32, #tpu.memory_space<vmem>>, vector<16x32xf32>
    %c0_15 = arith.constant 0 : index
    %c0_16 = arith.constant 0 : index
    %26 = vector.load %arg5[%c0_15, %c0_16] : memref<16x32xf32, #tpu.memory_space<vmem>>, vector<16x32xf32>
    %cst_17 = arith.constant 0.000000e+00 : f32
    %27 = vector.broadcast %cst_17 : f32 to vector<16x32xf32>
    %28 = arith.maximumf %26, %27 : vector<16x32xf32>
    %29 = math.absf %26 : vector<16x32xf32>
    %cst_18 = arith.constant 0.000000e+00 : f32
    %30 = vector.broadcast %cst_18 : f32 to vector<16x32xf32>
    %31 = arith.subf %30, %29 : vector<16x32xf32>
    %32 = math.exp %31 : vector<16x32xf32>
    %cst_19 = arith.constant 1.000000e+00 : f32
    %33 = vector.broadcast %cst_19 : f32 to vector<16x32xf32>
    %34 = arith.addf %33, %32 : vector<16x32xf32>
    %35 = math.log %34 : vector<16x32xf32>
    %36 = arith.addf %28, %35 : vector<16x32xf32>
    %c0_20 = arith.constant 0 : index
    %c0_21 = arith.constant 0 : index
    %37 = vector.load %arg6[%c0_20, %c0_21] : memref<16x32xf32, #tpu.memory_space<vmem>>, vector<16x32xf32>
    %c0_22 = arith.constant 0 : index
    %c0_23 = arith.constant 0 : index
    %38 = vector.load %arg1[%c0_22, %c0_23] : memref<16x1xf32, #tpu.memory_space<vmem>>, vector<16x1xf32>
    %c0_24 = arith.constant 0 : index
    %c0_25 = arith.constant 0 : index
    %39 = vector.load %arg2[%c0_24, %c0_25] : memref<16x1xf32, #tpu.memory_space<vmem>>, vector<16x1xf32>
    %cst_26 = arith.constant 5.000000e-01 : f32
    %40 = vector.broadcast %cst_26 : f32 to vector<16x1xf32>
    %41 = arith.mulf %40, %38 : vector<16x1xf32>
    %42 = vector.broadcast %41 : vector<16x1xf32> to vector<16x32xf32>
    %43 = arith.mulf %42, %24 : vector<16x32xf32>
    %44 = tpu.concatenate %43, %43 in 1 : vector<16x32xf32>, vector<16x32xf32> -> vector<16x64xf32>
    %45 = tpu.concatenate %44, %44 in 1 : vector<16x64xf32>, vector<16x64xf32> -> vector<16x128xf32>
    %46 = tpu.concatenate %45, %45 in 1 : vector<16x128xf32>, vector<16x128xf32> -> vector<16x256xf32>
    %47 = tpu.concatenate %46, %46 in 1 : vector<16x256xf32>, vector<16x256xf32> -> vector<16x512xf32>
    %48 = vector.broadcast %39 : vector<16x1xf32> to vector<16x32xf32>
    %49 = arith.subf %48, %25 : vector<16x32xf32>
    %cst_27 = arith.constant 5.000000e-01 : f32
    %50 = vector.broadcast %cst_27 : f32 to vector<16x32xf32>
    %51 = arith.mulf %50, %49 : vector<16x32xf32>
    %52 = arith.mulf %51, %24 : vector<16x32xf32>
    %53 = tpu.concatenate %52, %52 in 1 : vector<16x32xf32>, vector<16x32xf32> -> vector<16x64xf32>
    %54 = tpu.concatenate %53, %53 in 1 : vector<16x64xf32>, vector<16x64xf32> -> vector<16x128xf32>
    %55 = tpu.concatenate %54, %54 in 1 : vector<16x128xf32>, vector<16x128xf32> -> vector<16x256xf32>
    %56 = tpu.concatenate %55, %55 in 1 : vector<16x256xf32>, vector<16x256xf32> -> vector<16x512xf32>
    %57 = arith.mulf %36, %37 : vector<16x32xf32>
    %58 = tpu.concatenate %57, %57 in 1 : vector<16x32xf32>, vector<16x32xf32> -> vector<16x64xf32>
    %59 = tpu.concatenate %58, %58 in 1 : vector<16x64xf32>, vector<16x64xf32> -> vector<16x128xf32>
    %60 = tpu.concatenate %59, %59 in 1 : vector<16x128xf32>, vector<16x128xf32> -> vector<16x256xf32>
    %61 = tpu.concatenate %60, %60 in 1 : vector<16x256xf32>, vector<16x256xf32> -> vector<16x512xf32>
    %62 = tpu.concatenate %36, %36 in 1 : vector<16x32xf32>, vector<16x32xf32> -> vector<16x64xf32>
    %63 = tpu.concatenate %62, %62 in 1 : vector<16x64xf32>, vector<16x64xf32> -> vector<16x128xf32>
    %64 = tpu.concatenate %63, %63 in 1 : vector<16x128xf32>, vector<16x128xf32> -> vector<16x256xf32>
    %65 = tpu.concatenate %64, %64 in 1 : vector<16x256xf32>, vector<16x256xf32> -> vector<16x512xf32>
    %c0_28 = arith.constant 0 : index
    %c0_29 = arith.constant 0 : index
    %66 = vector.load %arg11[%c0_28, %c0_29] : memref<1x32xf32, #tpu.memory_space<vmem>>, vector<1x32xf32>
    %cst_30 = arith.constant 0.000000e+00 : f32
    %67 = vector.broadcast %cst_30 : f32 to vector<1x32xf32>
    %68 = arith.maximumf %66, %67 : vector<1x32xf32>
    %69 = math.absf %66 : vector<1x32xf32>
    %cst_31 = arith.constant 0.000000e+00 : f32
    %70 = vector.broadcast %cst_31 : f32 to vector<1x32xf32>
    %71 = arith.subf %70, %69 : vector<1x32xf32>
    %72 = math.exp %71 : vector<1x32xf32>
    %cst_32 = arith.constant 1.000000e+00 : f32
    %73 = vector.broadcast %cst_32 : f32 to vector<1x32xf32>
    %74 = arith.addf %73, %72 : vector<1x32xf32>
    %75 = math.log %74 : vector<1x32xf32>
    %76 = arith.addf %68, %75 : vector<1x32xf32>
    %c0_33 = arith.constant 0 : index
    %c0_34 = arith.constant 0 : index
    %77 = vector.load %arg13[%c0_33, %c0_34] : memref<1x32xf32, #tpu.memory_space<vmem>>, vector<1x32xf32>
    %cst_35 = arith.constant 0.000000e+00 : f32
    %78 = vector.broadcast %cst_35 : f32 to vector<1x32xf32>
    %79 = arith.maximumf %77, %78 : vector<1x32xf32>
    %80 = math.absf %77 : vector<1x32xf32>
    %cst_36 = arith.constant 0.000000e+00 : f32
    %81 = vector.broadcast %cst_36 : f32 to vector<1x32xf32>
    %82 = arith.subf %81, %80 : vector<1x32xf32>
    %83 = math.exp %82 : vector<1x32xf32>
    %cst_37 = arith.constant 1.000000e+00 : f32
    %84 = vector.broadcast %cst_37 : f32 to vector<1x32xf32>
    %85 = arith.addf %84, %83 : vector<1x32xf32>
    %86 = math.log %85 : vector<1x32xf32>
    %87 = arith.addf %79, %86 : vector<1x32xf32>
    %cst_38 = arith.constant 4.000000e+00 : f32
    %88 = vector.broadcast %cst_38 : f32 to vector<1x32xf32>
    %89 = arith.mulf %87, %88 : vector<1x32xf32>
    %90 = tpu.concatenate %89, %89 in 1 : vector<1x32xf32>, vector<1x32xf32> -> vector<1x64xf32>
    %c0_39 = arith.constant 0 : index
    %c0_40 = arith.constant 0 : index
    %91 = vector.load %arg12[%c0_39, %c0_40] : memref<1x32xf32, #tpu.memory_space<vmem>>, vector<1x32xf32>
    %92 = arith.mulf %76, %91 : vector<1x32xf32>
    %93 = tpu.concatenate %92, %92 in 1 : vector<1x32xf32>, vector<1x32xf32> -> vector<1x64xf32>
    %94 = tpu.concatenate %93, %93 in 1 : vector<1x64xf32>, vector<1x64xf32> -> vector<1x128xf32>
    %95 = tpu.concatenate %94, %94 in 1 : vector<1x128xf32>, vector<1x128xf32> -> vector<1x256xf32>
    %96 = tpu.concatenate %95, %95 in 1 : vector<1x256xf32>, vector<1x256xf32> -> vector<1x512xf32>
    %97 = arith.addf %89, %76 : vector<1x32xf32>
    %cst_41 = arith.constant 9.99999993E-9 : f32
    %98 = vector.broadcast %cst_41 : f32 to vector<1x32xf32>
    %99 = arith.addf %97, %98 : vector<1x32xf32>
    %100 = tpu.concatenate %99, %99 in 1 : vector<1x32xf32>, vector<1x32xf32> -> vector<1x64xf32>
    %101 = tpu.concatenate %100, %100 in 1 : vector<1x64xf32>, vector<1x64xf32> -> vector<1x128xf32>
    %102 = tpu.concatenate %101, %101 in 1 : vector<1x128xf32>, vector<1x128xf32> -> vector<1x256xf32>
    %103 = tpu.concatenate %102, %102 in 1 : vector<1x256xf32>, vector<1x256xf32> -> vector<1x512xf32>
    %c0_42 = arith.constant 0 : index
    %c0_43 = arith.constant 0 : index
    %104 = vector.load %arg0[%c0_42, %c0_43] : memref<16x512xf32, #tpu.memory_space<vmem>>, vector<16x512xf32>
    %105 = arith.mulf %104, %47 : vector<16x512xf32>
    %106 = arith.addf %105, %56 : vector<16x512xf32>
    %107 = math.tanh %106 : vector<16x512xf32>
    %cst_44 = arith.constant 5.000000e-01 : f32
    %108 = vector.broadcast %cst_44 : f32 to vector<16x512xf32>
    %109 = arith.mulf %108, %107 : vector<16x512xf32>
    %cst_45 = arith.constant 5.000000e-01 : f32
    %110 = vector.broadcast %cst_45 : f32 to vector<16x512xf32>
    %111 = arith.addf %109, %110 : vector<16x512xf32>
    %112 = arith.mulf %111, %61 : vector<16x512xf32>
    %cst_46 = arith.constant dense<0.000000e+00> : vector<512xf32>
    %113 = vector.multi_reduction <add>, %112, %cst_46 [0] : vector<16x512xf32> to vector<512xf32>
    %114 = vector.shape_cast %113 : vector<512xf32> to vector<1x512xf32>
    %115 = arith.addf %114, %96 : vector<1x512xf32>
    %116 = arith.mulf %111, %65 : vector<16x512xf32>
    %cst_47 = arith.constant dense<0.000000e+00> : vector<512xf32>
    %117 = vector.multi_reduction <add>, %116, %cst_47 [0] : vector<16x512xf32> to vector<512xf32>
    %118 = vector.shape_cast %117 : vector<512xf32> to vector<1x512xf32>
    %119 = arith.addf %118, %103 : vector<1x512xf32>
    %cst_48 = arith.constant 0.000000e+00 : f32
    %120 = vector.broadcast %cst_48 : f32 to vector<1x64xf32>
    %121 = vector.extract_strided_slice %115 {offsets = [0, 0], sizes = [1, 64], strides = [1, 1]} : vector<1x512xf32> to vector<1x64xf32>
    %122 = vector.extract_strided_slice %119 {offsets = [0, 0], sizes = [1, 64], strides = [1, 1]} : vector<1x512xf32> to vector<1x64xf32>
    %123 = vector.extract_strided_slice %120 {offsets = [0, 0], sizes = [1, 32], strides = [1, 1]} : vector<1x64xf32> to vector<1x32xf32>
    %124 = vector.extract_strided_slice %120 {offsets = [0, 32], sizes = [1, 32], strides = [1, 1]} : vector<1x64xf32> to vector<1x32xf32>
    %125 = tpu.concatenate %123, %124 in 0 : vector<1x32xf32>, vector<1x32xf32> -> vector<2x32xf32>
    %126 = vector.shape_cast %125 : vector<2x32xf32> to vector<2x32x1xf32>
    %127 = vector.shape_cast %126 : vector<2x32x1xf32> to vector<2x32x1xf32>
    %128 = vector.broadcast %127 : vector<2x32x1xf32> to vector<2x32x32xf32>
    %129 = vector.extract_strided_slice %128 {offsets = [0, 0, 0], sizes = [1, 32, 32], strides = [1, 1, 1]} : vector<2x32x32xf32> to vector<1x32x32xf32>
    %130 = vector.shape_cast %129 : vector<1x32x32xf32> to vector<32x32xf32>
    %131 = vector.extract_strided_slice %128 {offsets = [1, 0, 0], sizes = [1, 32, 32], strides = [1, 1, 1]} : vector<2x32x32xf32> to vector<1x32x32xf32>
    %132 = vector.shape_cast %131 : vector<1x32x32xf32> to vector<32x32xf32>
    %133 = tpu.concatenate %130, %132 in 1 : vector<32x32xf32>, vector<32x32xf32> -> vector<32x64xf32>
    %134 = arith.mulf %133, %16 : vector<32x64xf32>
    %135 = arith.addf %134, %20 : vector<32x64xf32>
    %136 = math.tanh %135 : vector<32x64xf32>
    %cst_49 = arith.constant 5.000000e-01 : f32
    %137 = vector.broadcast %cst_49 : f32 to vector<32x64xf32>
    %138 = arith.mulf %137, %136 : vector<32x64xf32>
    %cst_50 = arith.constant 5.000000e-01 : f32
    %139 = vector.broadcast %cst_50 : f32 to vector<32x64xf32>
    %140 = arith.addf %138, %139 : vector<32x64xf32>
    %141 = arith.mulf %140, %22 : vector<32x64xf32>
    %cst_51 = arith.constant dense<0.000000e+00> : vector<64xf32>
    %142 = vector.multi_reduction <add>, %141, %cst_51 [0] : vector<32x64xf32> to vector<64xf32>
    %143 = vector.shape_cast %142 : vector<64xf32> to vector<1x64xf32>
    %144 = arith.mulf %140, %23 : vector<32x64xf32>
    %cst_52 = arith.constant dense<0.000000e+00> : vector<64xf32>
    %145 = vector.multi_reduction <add>, %144, %cst_52 [0] : vector<32x64xf32> to vector<64xf32>
    %146 = vector.shape_cast %145 : vector<64xf32> to vector<1x64xf32>
    %147 = arith.addf %143, %121 : vector<1x64xf32>
    %148 = arith.mulf %90, %120 : vector<1x64xf32>
    %149 = arith.addf %147, %148 : vector<1x64xf32>
    %150 = arith.addf %146, %122 : vector<1x64xf32>
    %151 = tpu.reciprocal %150 {approx = true} : vector<1x64xf32> -> vector<1x64xf32>
    %152 = arith.mulf %150, %151 : vector<1x64xf32>
    %cst_53 = arith.constant 2.000000e+00 : f32
    %153 = vector.broadcast %cst_53 : f32 to vector<1x64xf32>
    %154 = arith.subf %153, %152 : vector<1x64xf32>
    %155 = arith.mulf %151, %154 : vector<1x64xf32>
    %156 = arith.mulf %149, %155 : vector<1x64xf32>
    %157 = vector.extract_strided_slice %156 {offsets = [0, 0], sizes = [1, 32], strides = [1, 1]} : vector<1x64xf32> to vector<1x32xf32>
    %158 = vector.extract_strided_slice %156 {offsets = [0, 32], sizes = [1, 32], strides = [1, 1]} : vector<1x64xf32> to vector<1x32xf32>
    %159 = tpu.concatenate %157, %158 in 0 : vector<1x32xf32>, vector<1x32xf32> -> vector<2x32xf32>
    %160 = vector.shape_cast %159 : vector<2x32xf32> to vector<2x32x1xf32>
    %161 = vector.shape_cast %160 : vector<2x32x1xf32> to vector<2x32x1xf32>
    %162 = vector.broadcast %161 : vector<2x32x1xf32> to vector<2x32x32xf32>
    %163 = vector.extract_strided_slice %162 {offsets = [0, 0, 0], sizes = [1, 32, 32], strides = [1, 1, 1]} : vector<2x32x32xf32> to vector<1x32x32xf32>
    %164 = vector.shape_cast %163 : vector<1x32x32xf32> to vector<32x32xf32>
    %165 = vector.extract_strided_slice %162 {offsets = [1, 0, 0], sizes = [1, 32, 32], strides = [1, 1, 1]} : vector<2x32x32xf32> to vector<1x32x32xf32>
    %166 = vector.shape_cast %165 : vector<1x32x32xf32> to vector<32x32xf32>
    %167 = tpu.concatenate %164, %166 in 1 : vector<32x32xf32>, vector<32x32xf32> -> vector<32x64xf32>
    %168 = arith.mulf %167, %16 : vector<32x64xf32>
    %169 = arith.addf %168, %20 : vector<32x64xf32>
    %170 = math.tanh %169 : vector<32x64xf32>
    %cst_54 = arith.constant 5.000000e-01 : f32
    %171 = vector.broadcast %cst_54 : f32 to vector<32x64xf32>
    %172 = arith.mulf %171, %170 : vector<32x64xf32>
    %cst_55 = arith.constant 5.000000e-01 : f32
    %173 = vector.broadcast %cst_55 : f32 to vector<32x64xf32>
    %174 = arith.addf %172, %173 : vector<32x64xf32>
    %175 = arith.mulf %174, %22 : vector<32x64xf32>
    %cst_56 = arith.constant dense<0.000000e+00> : vector<64xf32>
    %176 = vector.multi_reduction <add>, %175, %cst_56 [0] : vector<32x64xf32> to vector<64xf32>
    %177 = vector.shape_cast %176 : vector<64xf32> to vector<1x64xf32>
    %178 = arith.mulf %174, %23 : vector<32x64xf32>
    %cst_57 = arith.constant dense<0.000000e+00> : vector<64xf32>
    %179 = vector.multi_reduction <add>, %178, %cst_57 [0] : vector<32x64xf32> to vector<64xf32>
    %180 = vector.shape_cast %179 : vector<64xf32> to vector<1x64xf32>
    %181 = arith.addf %177, %121 : vector<1x64xf32>
    %182 = arith.mulf %90, %156 : vector<1x64xf32>
    %183 = arith.addf %181, %182 : vector<1x64xf32>
    %184 = arith.addf %180, %122 : vector<1x64xf32>
    %185 = tpu.reciprocal %184 {approx = true} : vector<1x64xf32> -> vector<1x64xf32>
    %186 = arith.mulf %184, %185 : vector<1x64xf32>
    %cst_58 = arith.constant 2.000000e+00 : f32
    %187 = vector.broadcast %cst_58 : f32 to vector<1x64xf32>
    %188 = arith.subf %187, %186 : vector<1x64xf32>
    %189 = arith.mulf %185, %188 : vector<1x64xf32>
    %190 = arith.mulf %183, %189 : vector<1x64xf32>
    %191 = vector.extract_strided_slice %190 {offsets = [0, 0], sizes = [1, 32], strides = [1, 1]} : vector<1x64xf32> to vector<1x32xf32>
    %192 = vector.extract_strided_slice %190 {offsets = [0, 32], sizes = [1, 32], strides = [1, 1]} : vector<1x64xf32> to vector<1x32xf32>
    %193 = tpu.concatenate %191, %192 in 0 : vector<1x32xf32>, vector<1x32xf32> -> vector<2x32xf32>
    %194 = vector.shape_cast %193 : vector<2x32xf32> to vector<2x32x1xf32>
    %195 = vector.shape_cast %194 : vector<2x32x1xf32> to vector<2x32x1xf32>
    %196 = vector.broadcast %195 : vector<2x32x1xf32> to vector<2x32x32xf32>
    %197 = vector.extract_strided_slice %196 {offsets = [0, 0, 0], sizes = [1, 32, 32], strides = [1, 1, 1]} : vector<2x32x32xf32> to vector<1x32x32xf32>
    %198 = vector.shape_cast %197 : vector<1x32x32xf32> to vector<32x32xf32>
    %199 = vector.extract_strided_slice %196 {offsets = [1, 0, 0], sizes = [1, 32, 32], strides = [1, 1, 1]} : vector<2x32x32xf32> to vector<1x32x32xf32>
    %200 = vector.shape_cast %199 : vector<1x32x32xf32> to vector<32x32xf32>
    %201 = tpu.concatenate %198, %200 in 1 : vector<32x32xf32>, vector<32x32xf32> -> vector<32x64xf32>
    %202 = arith.mulf %201, %16 : vector<32x64xf32>
    %203 = arith.addf %202, %20 : vector<32x64xf32>
    %204 = math.tanh %203 : vector<32x64xf32>
    %cst_59 = arith.constant 5.000000e-01 : f32
    %205 = vector.broadcast %cst_59 : f32 to vector<32x64xf32>
    %206 = arith.mulf %205, %204 : vector<32x64xf32>
    %cst_60 = arith.constant 5.000000e-01 : f32
    %207 = vector.broadcast %cst_60 : f32 to vector<32x64xf32>
    %208 = arith.addf %206, %207 : vector<32x64xf32>
    %209 = arith.mulf %208, %22 : vector<32x64xf32>
    %cst_61 = arith.constant dense<0.000000e+00> : vector<64xf32>
    %210 = vector.multi_reduction <add>, %209, %cst_61 [0] : vector<32x64xf32> to vector<64xf32>
    %211 = vector.shape_cast %210 : vector<64xf32> to vector<1x64xf32>
    %212 = arith.mulf %208, %23 : vector<32x64xf32>
    %cst_62 = arith.constant dense<0.000000e+00> : vector<64xf32>
    %213 = vector.multi_reduction <add>, %212, %cst_62 [0] : vector<32x64xf32> to vector<64xf32>
    %214 = vector.shape_cast %213 : vector<64xf32> to vector<1x64xf32>
    %215 = arith.addf %211, %121 : vector<1x64xf32>
    %216 = arith.mulf %90, %190 : vector<1x64xf32>
    %217 = arith.addf %215, %216 : vector<1x64xf32>
    %218 = arith.addf %214, %122 : vector<1x64xf32>
    %219 = tpu.reciprocal %218 {approx = true} : vector<1x64xf32> -> vector<1x64xf32>
    %220 = arith.mulf %218, %219 : vector<1x64xf32>
    %cst_63 = arith.constant 2.000000e+00 : f32
    %221 = vector.broadcast %cst_63 : f32 to vector<1x64xf32>
    %222 = arith.subf %221, %220 : vector<1x64xf32>
    %223 = arith.mulf %219, %222 : vector<1x64xf32>
    %224 = arith.mulf %217, %223 : vector<1x64xf32>
    %225 = vector.extract_strided_slice %224 {offsets = [0, 0], sizes = [1, 32], strides = [1, 1]} : vector<1x64xf32> to vector<1x32xf32>
    %226 = vector.extract_strided_slice %224 {offsets = [0, 32], sizes = [1, 32], strides = [1, 1]} : vector<1x64xf32> to vector<1x32xf32>
    %227 = tpu.concatenate %225, %226 in 0 : vector<1x32xf32>, vector<1x32xf32> -> vector<2x32xf32>
    %228 = vector.shape_cast %227 : vector<2x32xf32> to vector<2x32x1xf32>
    %229 = vector.shape_cast %228 : vector<2x32x1xf32> to vector<2x32x1xf32>
    %230 = vector.broadcast %229 : vector<2x32x1xf32> to vector<2x32x32xf32>
    %231 = vector.extract_strided_slice %230 {offsets = [0, 0, 0], sizes = [1, 32, 32], strides = [1, 1, 1]} : vector<2x32x32xf32> to vector<1x32x32xf32>
    %232 = vector.shape_cast %231 : vector<1x32x32xf32> to vector<32x32xf32>
    %233 = vector.extract_strided_slice %230 {offsets = [1, 0, 0], sizes = [1, 32, 32], strides = [1, 1, 1]} : vector<2x32x32xf32> to vector<1x32x32xf32>
    %234 = vector.shape_cast %233 : vector<1x32x32xf32> to vector<32x32xf32>
    %235 = tpu.concatenate %232, %234 in 1 : vector<32x32xf32>, vector<32x32xf32> -> vector<32x64xf32>
    %236 = arith.mulf %235, %16 : vector<32x64xf32>
    %237 = arith.addf %236, %20 : vector<32x64xf32>
    %238 = math.tanh %237 : vector<32x64xf32>
    %cst_64 = arith.constant 5.000000e-01 : f32
    %239 = vector.broadcast %cst_64 : f32 to vector<32x64xf32>
    %240 = arith.mulf %239, %238 : vector<32x64xf32>
    %cst_65 = arith.constant 5.000000e-01 : f32
    %241 = vector.broadcast %cst_65 : f32 to vector<32x64xf32>
    %242 = arith.addf %240, %241 : vector<32x64xf32>
    %243 = arith.mulf %242, %22 : vector<32x64xf32>
    %cst_66 = arith.constant dense<0.000000e+00> : vector<64xf32>
    %244 = vector.multi_reduction <add>, %243, %cst_66 [0] : vector<32x64xf32> to vector<64xf32>
    %245 = vector.shape_cast %244 : vector<64xf32> to vector<1x64xf32>
    %246 = arith.mulf %242, %23 : vector<32x64xf32>
    %cst_67 = arith.constant dense<0.000000e+00> : vector<64xf32>
    %247 = vector.multi_reduction <add>, %246, %cst_67 [0] : vector<32x64xf32> to vector<64xf32>
    %248 = vector.shape_cast %247 : vector<64xf32> to vector<1x64xf32>
    %249 = arith.addf %245, %121 : vector<1x64xf32>
    %250 = arith.mulf %90, %224 : vector<1x64xf32>
    %251 = arith.addf %249, %250 : vector<1x64xf32>
    %252 = arith.addf %248, %122 : vector<1x64xf32>
    %253 = tpu.reciprocal %252 {approx = true} : vector<1x64xf32> -> vector<1x64xf32>
    %254 = arith.mulf %252, %253 : vector<1x64xf32>
    %cst_68 = arith.constant 2.000000e+00 : f32
    %255 = vector.broadcast %cst_68 : f32 to vector<1x64xf32>
    %256 = arith.subf %255, %254 : vector<1x64xf32>
    %257 = arith.mulf %253, %256 : vector<1x64xf32>
    %258 = arith.mulf %251, %257 : vector<1x64xf32>
    %259 = vector.extract_strided_slice %115 {offsets = [0, 64], sizes = [1, 64], strides = [1, 1]} : vector<1x512xf32> to vector<1x64xf32>
    %260 = vector.extract_strided_slice %119 {offsets = [0, 64], sizes = [1, 64], strides = [1, 1]} : vector<1x512xf32> to vector<1x64xf32>
    %261 = vector.extract_strided_slice %258 {offsets = [0, 0], sizes = [1, 32], strides = [1, 1]} : vector<1x64xf32> to vector<1x32xf32>
    %262 = vector.extract_strided_slice %258 {offsets = [0, 32], sizes = [1, 32], strides = [1, 1]} : vector<1x64xf32> to vector<1x32xf32>
    %263 = tpu.concatenate %261, %262 in 0 : vector<1x32xf32>, vector<1x32xf32> -> vector<2x32xf32>
    %264 = vector.shape_cast %263 : vector<2x32xf32> to vector<2x32x1xf32>
    %265 = vector.shape_cast %264 : vector<2x32x1xf32> to vector<2x32x1xf32>
    %266 = vector.broadcast %265 : vector<2x32x1xf32> to vector<2x32x32xf32>
    %267 = vector.extract_strided_slice %266 {offsets = [0, 0, 0], sizes = [1, 32, 32], strides = [1, 1, 1]} : vector<2x32x32xf32> to vector<1x32x32xf32>
    %268 = vector.shape_cast %267 : vector<1x32x32xf32> to vector<32x32xf32>
    %269 = vector.extract_strided_slice %266 {offsets = [1, 0, 0], sizes = [1, 32, 32], strides = [1, 1, 1]} : vector<2x32x32xf32> to vector<1x32x32xf32>
    %270 = vector.shape_cast %269 : vector<1x32x32xf32> to vector<32x32xf32>
    %271 = tpu.concatenate %268, %270 in 1 : vector<32x32xf32>, vector<32x32xf32> -> vector<32x64xf32>
    %272 = arith.mulf %271, %16 : vector<32x64xf32>
    %273 = arith.addf %272, %20 : vector<32x64xf32>
    %274 = math.tanh %273 : vector<32x64xf32>
    %cst_69 = arith.constant 5.000000e-01 : f32
    %275 = vector.broadcast %cst_69 : f32 to vector<32x64xf32>
    %276 = arith.mulf %275, %274 : vector<32x64xf32>
    %cst_70 = arith.constant 5.000000e-01 : f32
    %277 = vector.broadcast %cst_70 : f32 to vector<32x64xf32>
    %278 = arith.addf %276, %277 : vector<32x64xf32>
    %279 = arith.mulf %278, %22 : vector<32x64xf32>
    %cst_71 = arith.constant dense<0.000000e+00> : vector<64xf32>
    %280 = vector.multi_reduction <add>, %279, %cst_71 [0] : vector<32x64xf32> to vector<64xf32>
    %281 = vector.shape_cast %280 : vector<64xf32> to vector<1x64xf32>
    %282 = arith.mulf %278, %23 : vector<32x64xf32>
    %cst_72 = arith.constant dense<0.000000e+00> : vector<64xf32>
    %283 = vector.multi_reduction <add>, %282, %cst_72 [0] : vector<32x64xf32> to vector<64xf32>
    %284 = vector.shape_cast %283 : vector<64xf32> to vector<1x64xf32>
    %285 = arith.addf %281, %259 : vector<1x64xf32>
    %286 = arith.mulf %90, %258 : vector<1x64xf32>
    %287 = arith.addf %285, %286 : vector<1x64xf32>
    %288 = arith.addf %284, %260 : vector<1x64xf32>
    %289 = tpu.reciprocal %288 {approx = true} : vector<1x64xf32> -> vector<1x64xf32>
    %290 = arith.mulf %288, %289 : vector<1x64xf32>
    %cst_73 = arith.constant 2.000000e+00 : f32
    %291 = vector.broadcast %cst_73 : f32 to vector<1x64xf32>
    %292 = arith.subf %291, %290 : vector<1x64xf32>
    %293 = arith.mulf %289, %292 : vector<1x64xf32>
    %294 = arith.mulf %287, %293 : vector<1x64xf32>
    %295 = vector.extract_strided_slice %294 {offsets = [0, 0], sizes = [1, 32], strides = [1, 1]} : vector<1x64xf32> to vector<1x32xf32>
    %296 = vector.extract_strided_slice %294 {offsets = [0, 32], sizes = [1, 32], strides = [1, 1]} : vector<1x64xf32> to vector<1x32xf32>
    %297 = tpu.concatenate %295, %296 in 0 : vector<1x32xf32>, vector<1x32xf32> -> vector<2x32xf32>
    %298 = vector.shape_cast %297 : vector<2x32xf32> to vector<2x32x1xf32>
    %299 = vector.shape_cast %298 : vector<2x32x1xf32> to vector<2x32x1xf32>
    %300 = vector.broadcast %299 : vector<2x32x1xf32> to vector<2x32x32xf32>
    %301 = vector.extract_strided_slice %300 {offsets = [0, 0, 0], sizes = [1, 32, 32], strides = [1, 1, 1]} : vector<2x32x32xf32> to vector<1x32x32xf32>
    %302 = vector.shape_cast %301 : vector<1x32x32xf32> to vector<32x32xf32>
    %303 = vector.extract_strided_slice %300 {offsets = [1, 0, 0], sizes = [1, 32, 32], strides = [1, 1, 1]} : vector<2x32x32xf32> to vector<1x32x32xf32>
    %304 = vector.shape_cast %303 : vector<1x32x32xf32> to vector<32x32xf32>
    %305 = tpu.concatenate %302, %304 in 1 : vector<32x32xf32>, vector<32x32xf32> -> vector<32x64xf32>
    %306 = arith.mulf %305, %16 : vector<32x64xf32>
    %307 = arith.addf %306, %20 : vector<32x64xf32>
    %308 = math.tanh %307 : vector<32x64xf32>
    %cst_74 = arith.constant 5.000000e-01 : f32
    %309 = vector.broadcast %cst_74 : f32 to vector<32x64xf32>
    %310 = arith.mulf %309, %308 : vector<32x64xf32>
    %cst_75 = arith.constant 5.000000e-01 : f32
    %311 = vector.broadcast %cst_75 : f32 to vector<32x64xf32>
    %312 = arith.addf %310, %311 : vector<32x64xf32>
    %313 = arith.mulf %312, %22 : vector<32x64xf32>
    %cst_76 = arith.constant dense<0.000000e+00> : vector<64xf32>
    %314 = vector.multi_reduction <add>, %313, %cst_76 [0] : vector<32x64xf32> to vector<64xf32>
    %315 = vector.shape_cast %314 : vector<64xf32> to vector<1x64xf32>
    %316 = arith.mulf %312, %23 : vector<32x64xf32>
    %cst_77 = arith.constant dense<0.000000e+00> : vector<64xf32>
    %317 = vector.multi_reduction <add>, %316, %cst_77 [0] : vector<32x64xf32> to vector<64xf32>
    %318 = vector.shape_cast %317 : vector<64xf32> to vector<1x64xf32>
    %319 = arith.addf %315, %259 : vector<1x64xf32>
    %320 = arith.mulf %90, %294 : vector<1x64xf32>
    %321 = arith.addf %319, %320 : vector<1x64xf32>
    %322 = arith.addf %318, %260 : vector<1x64xf32>
    %323 = tpu.reciprocal %322 {approx = true} : vector<1x64xf32> -> vector<1x64xf32>
    %324 = arith.mulf %322, %323 : vector<1x64xf32>
    %cst_78 = arith.constant 2.000000e+00 : f32
    %325 = vector.broadcast %cst_78 : f32 to vector<1x64xf32>
    %326 = arith.subf %325, %324 : vector<1x64xf32>
    %327 = arith.mulf %323, %326 : vector<1x64xf32>
    %328 = arith.mulf %321, %327 : vector<1x64xf32>
    %329 = vector.extract_strided_slice %328 {offsets = [0, 0], sizes = [1, 32], strides = [1, 1]} : vector<1x64xf32> to vector<1x32xf32>
    %330 = vector.extract_strided_slice %328 {offsets = [0, 32], sizes = [1, 32], strides = [1, 1]} : vector<1x64xf32> to vector<1x32xf32>
    %331 = tpu.concatenate %329, %330 in 0 : vector<1x32xf32>, vector<1x32xf32> -> vector<2x32xf32>
    %332 = vector.shape_cast %331 : vector<2x32xf32> to vector<2x32x1xf32>
    %333 = vector.shape_cast %332 : vector<2x32x1xf32> to vector<2x32x1xf32>
    %334 = vector.broadcast %333 : vector<2x32x1xf32> to vector<2x32x32xf32>
    %335 = vector.extract_strided_slice %334 {offsets = [0, 0, 0], sizes = [1, 32, 32], strides = [1, 1, 1]} : vector<2x32x32xf32> to vector<1x32x32xf32>
    %336 = vector.shape_cast %335 : vector<1x32x32xf32> to vector<32x32xf32>
    %337 = vector.extract_strided_slice %334 {offsets = [1, 0, 0], sizes = [1, 32, 32], strides = [1, 1, 1]} : vector<2x32x32xf32> to vector<1x32x32xf32>
    %338 = vector.shape_cast %337 : vector<1x32x32xf32> to vector<32x32xf32>
    %339 = tpu.concatenate %336, %338 in 1 : vector<32x32xf32>, vector<32x32xf32> -> vector<32x64xf32>
    %340 = arith.mulf %339, %16 : vector<32x64xf32>
    %341 = arith.addf %340, %20 : vector<32x64xf32>
    %342 = math.tanh %341 : vector<32x64xf32>
    %cst_79 = arith.constant 5.000000e-01 : f32
    %343 = vector.broadcast %cst_79 : f32 to vector<32x64xf32>
    %344 = arith.mulf %343, %342 : vector<32x64xf32>
    %cst_80 = arith.constant 5.000000e-01 : f32
    %345 = vector.broadcast %cst_80 : f32 to vector<32x64xf32>
    %346 = arith.addf %344, %345 : vector<32x64xf32>
    %347 = arith.mulf %346, %22 : vector<32x64xf32>
    %cst_81 = arith.constant dense<0.000000e+00> : vector<64xf32>
    %348 = vector.multi_reduction <add>, %347, %cst_81 [0] : vector<32x64xf32> to vector<64xf32>
    %349 = vector.shape_cast %348 : vector<64xf32> to vector<1x64xf32>
    %350 = arith.mulf %346, %23 : vector<32x64xf32>
    %cst_82 = arith.constant dense<0.000000e+00> : vector<64xf32>
    %351 = vector.multi_reduction <add>, %350, %cst_82 [0] : vector<32x64xf32> to vector<64xf32>
    %352 = vector.shape_cast %351 : vector<64xf32> to vector<1x64xf32>
    %353 = arith.addf %349, %259 : vector<1x64xf32>
    %354 = arith.mulf %90, %328 : vector<1x64xf32>
    %355 = arith.addf %353, %354 : vector<1x64xf32>
    %356 = arith.addf %352, %260 : vector<1x64xf32>
    %357 = tpu.reciprocal %356 {approx = true} : vector<1x64xf32> -> vector<1x64xf32>
    %358 = arith.mulf %356, %357 : vector<1x64xf32>
    %cst_83 = arith.constant 2.000000e+00 : f32
    %359 = vector.broadcast %cst_83 : f32 to vector<1x64xf32>
    %360 = arith.subf %359, %358 : vector<1x64xf32>
    %361 = arith.mulf %357, %360 : vector<1x64xf32>
    %362 = arith.mulf %355, %361 : vector<1x64xf32>
    %363 = vector.extract_strided_slice %362 {offsets = [0, 0], sizes = [1, 32], strides = [1, 1]} : vector<1x64xf32> to vector<1x32xf32>
    %364 = vector.extract_strided_slice %362 {offsets = [0, 32], sizes = [1, 32], strides = [1, 1]} : vector<1x64xf32> to vector<1x32xf32>
    %365 = tpu.concatenate %363, %364 in 0 : vector<1x32xf32>, vector<1x32xf32> -> vector<2x32xf32>
    %366 = vector.shape_cast %365 : vector<2x32xf32> to vector<2x32x1xf32>
    %367 = vector.shape_cast %366 : vector<2x32x1xf32> to vector<2x32x1xf32>
    %368 = vector.broadcast %367 : vector<2x32x1xf32> to vector<2x32x32xf32>
    %369 = vector.extract_strided_slice %368 {offsets = [0, 0, 0], sizes = [1, 32, 32], strides = [1, 1, 1]} : vector<2x32x32xf32> to vector<1x32x32xf32>
    %370 = vector.shape_cast %369 : vector<1x32x32xf32> to vector<32x32xf32>
    %371 = vector.extract_strided_slice %368 {offsets = [1, 0, 0], sizes = [1, 32, 32], strides = [1, 1, 1]} : vector<2x32x32xf32> to vector<1x32x32xf32>
    %372 = vector.shape_cast %371 : vector<1x32x32xf32> to vector<32x32xf32>
    %373 = tpu.concatenate %370, %372 in 1 : vector<32x32xf32>, vector<32x32xf32> -> vector<32x64xf32>
    %374 = arith.mulf %373, %16 : vector<32x64xf32>
    %375 = arith.addf %374, %20 : vector<32x64xf32>
    %376 = math.tanh %375 : vector<32x64xf32>
    %cst_84 = arith.constant 5.000000e-01 : f32
    %377 = vector.broadcast %cst_84 : f32 to vector<32x64xf32>
    %378 = arith.mulf %377, %376 : vector<32x64xf32>
    %cst_85 = arith.constant 5.000000e-01 : f32
    %379 = vector.broadcast %cst_85 : f32 to vector<32x64xf32>
    %380 = arith.addf %378, %379 : vector<32x64xf32>
    %381 = arith.mulf %380, %22 : vector<32x64xf32>
    %cst_86 = arith.constant dense<0.000000e+00> : vector<64xf32>
    %382 = vector.multi_reduction <add>, %381, %cst_86 [0] : vector<32x64xf32> to vector<64xf32>
    %383 = vector.shape_cast %382 : vector<64xf32> to vector<1x64xf32>
    %384 = arith.mulf %380, %23 : vector<32x64xf32>
    %cst_87 = arith.constant dense<0.000000e+00> : vector<64xf32>
    %385 = vector.multi_reduction <add>, %384, %cst_87 [0] : vector<32x64xf32> to vector<64xf32>
    %386 = vector.shape_cast %385 : vector<64xf32> to vector<1x64xf32>
    %387 = arith.addf %383, %259 : vector<1x64xf32>
    %388 = arith.mulf %90, %362 : vector<1x64xf32>
    %389 = arith.addf %387, %388 : vector<1x64xf32>
    %390 = arith.addf %386, %260 : vector<1x64xf32>
    %391 = tpu.reciprocal %390 {approx = true} : vector<1x64xf32> -> vector<1x64xf32>
    %392 = arith.mulf %390, %391 : vector<1x64xf32>
    %cst_88 = arith.constant 2.000000e+00 : f32
    %393 = vector.broadcast %cst_88 : f32 to vector<1x64xf32>
    %394 = arith.subf %393, %392 : vector<1x64xf32>
    %395 = arith.mulf %391, %394 : vector<1x64xf32>
    %396 = arith.mulf %389, %395 : vector<1x64xf32>
    %397 = vector.extract_strided_slice %115 {offsets = [0, 128], sizes = [1, 64], strides = [1, 1]} : vector<1x512xf32> to vector<1x64xf32>
    %398 = vector.extract_strided_slice %119 {offsets = [0, 128], sizes = [1, 64], strides = [1, 1]} : vector<1x512xf32> to vector<1x64xf32>
    %399 = vector.extract_strided_slice %396 {offsets = [0, 0], sizes = [1, 32], strides = [1, 1]} : vector<1x64xf32> to vector<1x32xf32>
    %400 = vector.extract_strided_slice %396 {offsets = [0, 32], sizes = [1, 32], strides = [1, 1]} : vector<1x64xf32> to vector<1x32xf32>
    %401 = tpu.concatenate %399, %400 in 0 : vector<1x32xf32>, vector<1x32xf32> -> vector<2x32xf32>
    %402 = vector.shape_cast %401 : vector<2x32xf32> to vector<2x32x1xf32>
    %403 = vector.shape_cast %402 : vector<2x32x1xf32> to vector<2x32x1xf32>
    %404 = vector.broadcast %403 : vector<2x32x1xf32> to vector<2x32x32xf32>
    %405 = vector.extract_strided_slice %404 {offsets = [0, 0, 0], sizes = [1, 32, 32], strides = [1, 1, 1]} : vector<2x32x32xf32> to vector<1x32x32xf32>
    %406 = vector.shape_cast %405 : vector<1x32x32xf32> to vector<32x32xf32>
    %407 = vector.extract_strided_slice %404 {offsets = [1, 0, 0], sizes = [1, 32, 32], strides = [1, 1, 1]} : vector<2x32x32xf32> to vector<1x32x32xf32>
    %408 = vector.shape_cast %407 : vector<1x32x32xf32> to vector<32x32xf32>
    %409 = tpu.concatenate %406, %408 in 1 : vector<32x32xf32>, vector<32x32xf32> -> vector<32x64xf32>
    %410 = arith.mulf %409, %16 : vector<32x64xf32>
    %411 = arith.addf %410, %20 : vector<32x64xf32>
    %412 = math.tanh %411 : vector<32x64xf32>
    %cst_89 = arith.constant 5.000000e-01 : f32
    %413 = vector.broadcast %cst_89 : f32 to vector<32x64xf32>
    %414 = arith.mulf %413, %412 : vector<32x64xf32>
    %cst_90 = arith.constant 5.000000e-01 : f32
    %415 = vector.broadcast %cst_90 : f32 to vector<32x64xf32>
    %416 = arith.addf %414, %415 : vector<32x64xf32>
    %417 = arith.mulf %416, %22 : vector<32x64xf32>
    %cst_91 = arith.constant dense<0.000000e+00> : vector<64xf32>
    %418 = vector.multi_reduction <add>, %417, %cst_91 [0] : vector<32x64xf32> to vector<64xf32>
    %419 = vector.shape_cast %418 : vector<64xf32> to vector<1x64xf32>
    %420 = arith.mulf %416, %23 : vector<32x64xf32>
    %cst_92 = arith.constant dense<0.000000e+00> : vector<64xf32>
    %421 = vector.multi_reduction <add>, %420, %cst_92 [0] : vector<32x64xf32> to vector<64xf32>
    %422 = vector.shape_cast %421 : vector<64xf32> to vector<1x64xf32>
    %423 = arith.addf %419, %397 : vector<1x64xf32>
    %424 = arith.mulf %90, %396 : vector<1x64xf32>
    %425 = arith.addf %423, %424 : vector<1x64xf32>
    %426 = arith.addf %422, %398 : vector<1x64xf32>
    %427 = tpu.reciprocal %426 {approx = true} : vector<1x64xf32> -> vector<1x64xf32>
    %428 = arith.mulf %426, %427 : vector<1x64xf32>
    %cst_93 = arith.constant 2.000000e+00 : f32
    %429 = vector.broadcast %cst_93 : f32 to vector<1x64xf32>
    %430 = arith.subf %429, %428 : vector<1x64xf32>
    %431 = arith.mulf %427, %430 : vector<1x64xf32>
    %432 = arith.mulf %425, %431 : vector<1x64xf32>
    %433 = vector.extract_strided_slice %432 {offsets = [0, 0], sizes = [1, 32], strides = [1, 1]} : vector<1x64xf32> to vector<1x32xf32>
    %434 = vector.extract_strided_slice %432 {offsets = [0, 32], sizes = [1, 32], strides = [1, 1]} : vector<1x64xf32> to vector<1x32xf32>
    %435 = tpu.concatenate %433, %434 in 0 : vector<1x32xf32>, vector<1x32xf32> -> vector<2x32xf32>
    %436 = vector.shape_cast %435 : vector<2x32xf32> to vector<2x32x1xf32>
    %437 = vector.shape_cast %436 : vector<2x32x1xf32> to vector<2x32x1xf32>
    %438 = vector.broadcast %437 : vector<2x32x1xf32> to vector<2x32x32xf32>
    %439 = vector.extract_strided_slice %438 {offsets = [0, 0, 0], sizes = [1, 32, 32], strides = [1, 1, 1]} : vector<2x32x32xf32> to vector<1x32x32xf32>
    %440 = vector.shape_cast %439 : vector<1x32x32xf32> to vector<32x32xf32>
    %441 = vector.extract_strided_slice %438 {offsets = [1, 0, 0], sizes = [1, 32, 32], strides = [1, 1, 1]} : vector<2x32x32xf32> to vector<1x32x32xf32>
    %442 = vector.shape_cast %441 : vector<1x32x32xf32> to vector<32x32xf32>
    %443 = tpu.concatenate %440, %442 in 1 : vector<32x32xf32>, vector<32x32xf32> -> vector<32x64xf32>
    %444 = arith.mulf %443, %16 : vector<32x64xf32>
    %445 = arith.addf %444, %20 : vector<32x64xf32>
    %446 = math.tanh %445 : vector<32x64xf32>
    %cst_94 = arith.constant 5.000000e-01 : f32
    %447 = vector.broadcast %cst_94 : f32 to vector<32x64xf32>
    %448 = arith.mulf %447, %446 : vector<32x64xf32>
    %cst_95 = arith.constant 5.000000e-01 : f32
    %449 = vector.broadcast %cst_95 : f32 to vector<32x64xf32>
    %450 = arith.addf %448, %449 : vector<32x64xf32>
    %451 = arith.mulf %450, %22 : vector<32x64xf32>
    %cst_96 = arith.constant dense<0.000000e+00> : vector<64xf32>
    %452 = vector.multi_reduction <add>, %451, %cst_96 [0] : vector<32x64xf32> to vector<64xf32>
    %453 = vector.shape_cast %452 : vector<64xf32> to vector<1x64xf32>
    %454 = arith.mulf %450, %23 : vector<32x64xf32>
    %cst_97 = arith.constant dense<0.000000e+00> : vector<64xf32>
    %455 = vector.multi_reduction <add>, %454, %cst_97 [0] : vector<32x64xf32> to vector<64xf32>
    %456 = vector.shape_cast %455 : vector<64xf32> to vector<1x64xf32>
    %457 = arith.addf %453, %397 : vector<1x64xf32>
    %458 = arith.mulf %90, %432 : vector<1x64xf32>
    %459 = arith.addf %457, %458 : vector<1x64xf32>
    %460 = arith.addf %456, %398 : vector<1x64xf32>
    %461 = tpu.reciprocal %460 {approx = true} : vector<1x64xf32> -> vector<1x64xf32>
    %462 = arith.mulf %460, %461 : vector<1x64xf32>
    %cst_98 = arith.constant 2.000000e+00 : f32
    %463 = vector.broadcast %cst_98 : f32 to vector<1x64xf32>
    %464 = arith.subf %463, %462 : vector<1x64xf32>
    %465 = arith.mulf %461, %464 : vector<1x64xf32>
    %466 = arith.mulf %459, %465 : vector<1x64xf32>
    %467 = vector.extract_strided_slice %466 {offsets = [0, 0], sizes = [1, 32], strides = [1, 1]} : vector<1x64xf32> to vector<1x32xf32>
    %468 = vector.extract_strided_slice %466 {offsets = [0, 32], sizes = [1, 32], strides = [1, 1]} : vector<1x64xf32> to vector<1x32xf32>
    %469 = tpu.concatenate %467, %468 in 0 : vector<1x32xf32>, vector<1x32xf32> -> vector<2x32xf32>
    %470 = vector.shape_cast %469 : vector<2x32xf32> to vector<2x32x1xf32>
    %471 = vector.shape_cast %470 : vector<2x32x1xf32> to vector<2x32x1xf32>
    %472 = vector.broadcast %471 : vector<2x32x1xf32> to vector<2x32x32xf32>
    %473 = vector.extract_strided_slice %472 {offsets = [0, 0, 0], sizes = [1, 32, 32], strides = [1, 1, 1]} : vector<2x32x32xf32> to vector<1x32x32xf32>
    %474 = vector.shape_cast %473 : vector<1x32x32xf32> to vector<32x32xf32>
    %475 = vector.extract_strided_slice %472 {offsets = [1, 0, 0], sizes = [1, 32, 32], strides = [1, 1, 1]} : vector<2x32x32xf32> to vector<1x32x32xf32>
    %476 = vector.shape_cast %475 : vector<1x32x32xf32> to vector<32x32xf32>
    %477 = tpu.concatenate %474, %476 in 1 : vector<32x32xf32>, vector<32x32xf32> -> vector<32x64xf32>
    %478 = arith.mulf %477, %16 : vector<32x64xf32>
    %479 = arith.addf %478, %20 : vector<32x64xf32>
    %480 = math.tanh %479 : vector<32x64xf32>
    %cst_99 = arith.constant 5.000000e-01 : f32
    %481 = vector.broadcast %cst_99 : f32 to vector<32x64xf32>
    %482 = arith.mulf %481, %480 : vector<32x64xf32>
    %cst_100 = arith.constant 5.000000e-01 : f32
    %483 = vector.broadcast %cst_100 : f32 to vector<32x64xf32>
    %484 = arith.addf %482, %483 : vector<32x64xf32>
    %485 = arith.mulf %484, %22 : vector<32x64xf32>
    %cst_101 = arith.constant dense<0.000000e+00> : vector<64xf32>
    %486 = vector.multi_reduction <add>, %485, %cst_101 [0] : vector<32x64xf32> to vector<64xf32>
    %487 = vector.shape_cast %486 : vector<64xf32> to vector<1x64xf32>
    %488 = arith.mulf %484, %23 : vector<32x64xf32>
    %cst_102 = arith.constant dense<0.000000e+00> : vector<64xf32>
    %489 = vector.multi_reduction <add>, %488, %cst_102 [0] : vector<32x64xf32> to vector<64xf32>
    %490 = vector.shape_cast %489 : vector<64xf32> to vector<1x64xf32>
    %491 = arith.addf %487, %397 : vector<1x64xf32>
    %492 = arith.mulf %90, %466 : vector<1x64xf32>
    %493 = arith.addf %491, %492 : vector<1x64xf32>
    %494 = arith.addf %490, %398 : vector<1x64xf32>
    %495 = tpu.reciprocal %494 {approx = true} : vector<1x64xf32> -> vector<1x64xf32>
    %496 = arith.mulf %494, %495 : vector<1x64xf32>
    %cst_103 = arith.constant 2.000000e+00 : f32
    %497 = vector.broadcast %cst_103 : f32 to vector<1x64xf32>
    %498 = arith.subf %497, %496 : vector<1x64xf32>
    %499 = arith.mulf %495, %498 : vector<1x64xf32>
    %500 = arith.mulf %493, %499 : vector<1x64xf32>
    %501 = vector.extract_strided_slice %500 {offsets = [0, 0], sizes = [1, 32], strides = [1, 1]} : vector<1x64xf32> to vector<1x32xf32>
    %502 = vector.extract_strided_slice %500 {offsets = [0, 32], sizes = [1, 32], strides = [1, 1]} : vector<1x64xf32> to vector<1x32xf32>
    %503 = tpu.concatenate %501, %502 in 0 : vector<1x32xf32>, vector<1x32xf32> -> vector<2x32xf32>
    %504 = vector.shape_cast %503 : vector<2x32xf32> to vector<2x32x1xf32>
    %505 = vector.shape_cast %504 : vector<2x32x1xf32> to vector<2x32x1xf32>
    %506 = vector.broadcast %505 : vector<2x32x1xf32> to vector<2x32x32xf32>
    %507 = vector.extract_strided_slice %506 {offsets = [0, 0, 0], sizes = [1, 32, 32], strides = [1, 1, 1]} : vector<2x32x32xf32> to vector<1x32x32xf32>
    %508 = vector.shape_cast %507 : vector<1x32x32xf32> to vector<32x32xf32>
    %509 = vector.extract_strided_slice %506 {offsets = [1, 0, 0], sizes = [1, 32, 32], strides = [1, 1, 1]} : vector<2x32x32xf32> to vector<1x32x32xf32>
    %510 = vector.shape_cast %509 : vector<1x32x32xf32> to vector<32x32xf32>
    %511 = tpu.concatenate %508, %510 in 1 : vector<32x32xf32>, vector<32x32xf32> -> vector<32x64xf32>
    %512 = arith.mulf %511, %16 : vector<32x64xf32>
    %513 = arith.addf %512, %20 : vector<32x64xf32>
    %514 = math.tanh %513 : vector<32x64xf32>
    %cst_104 = arith.constant 5.000000e-01 : f32
    %515 = vector.broadcast %cst_104 : f32 to vector<32x64xf32>
    %516 = arith.mulf %515, %514 : vector<32x64xf32>
    %cst_105 = arith.constant 5.000000e-01 : f32
    %517 = vector.broadcast %cst_105 : f32 to vector<32x64xf32>
    %518 = arith.addf %516, %517 : vector<32x64xf32>
    %519 = arith.mulf %518, %22 : vector<32x64xf32>
    %cst_106 = arith.constant dense<0.000000e+00> : vector<64xf32>
    %520 = vector.multi_reduction <add>, %519, %cst_106 [0] : vector<32x64xf32> to vector<64xf32>
    %521 = vector.shape_cast %520 : vector<64xf32> to vector<1x64xf32>
    %522 = arith.mulf %518, %23 : vector<32x64xf32>
    %cst_107 = arith.constant dense<0.000000e+00> : vector<64xf32>
    %523 = vector.multi_reduction <add>, %522, %cst_107 [0] : vector<32x64xf32> to vector<64xf32>
    %524 = vector.shape_cast %523 : vector<64xf32> to vector<1x64xf32>
    %525 = arith.addf %521, %397 : vector<1x64xf32>
    %526 = arith.mulf %90, %500 : vector<1x64xf32>
    %527 = arith.addf %525, %526 : vector<1x64xf32>
    %528 = arith.addf %524, %398 : vector<1x64xf32>
    %529 = tpu.reciprocal %528 {approx = true} : vector<1x64xf32> -> vector<1x64xf32>
    %530 = arith.mulf %528, %529 : vector<1x64xf32>
    %cst_108 = arith.constant 2.000000e+00 : f32
    %531 = vector.broadcast %cst_108 : f32 to vector<1x64xf32>
    %532 = arith.subf %531, %530 : vector<1x64xf32>
    %533 = arith.mulf %529, %532 : vector<1x64xf32>
    %534 = arith.mulf %527, %533 : vector<1x64xf32>
    %535 = vector.extract_strided_slice %115 {offsets = [0, 192], sizes = [1, 64], strides = [1, 1]} : vector<1x512xf32> to vector<1x64xf32>
    %536 = vector.extract_strided_slice %119 {offsets = [0, 192], sizes = [1, 64], strides = [1, 1]} : vector<1x512xf32> to vector<1x64xf32>
    %537 = vector.extract_strided_slice %534 {offsets = [0, 0], sizes = [1, 32], strides = [1, 1]} : vector<1x64xf32> to vector<1x32xf32>
    %538 = vector.extract_strided_slice %534 {offsets = [0, 32], sizes = [1, 32], strides = [1, 1]} : vector<1x64xf32> to vector<1x32xf32>
    %539 = tpu.concatenate %537, %538 in 0 : vector<1x32xf32>, vector<1x32xf32> -> vector<2x32xf32>
    %540 = vector.shape_cast %539 : vector<2x32xf32> to vector<2x32x1xf32>
    %541 = vector.shape_cast %540 : vector<2x32x1xf32> to vector<2x32x1xf32>
    %542 = vector.broadcast %541 : vector<2x32x1xf32> to vector<2x32x32xf32>
    %543 = vector.extract_strided_slice %542 {offsets = [0, 0, 0], sizes = [1, 32, 32], strides = [1, 1, 1]} : vector<2x32x32xf32> to vector<1x32x32xf32>
    %544 = vector.shape_cast %543 : vector<1x32x32xf32> to vector<32x32xf32>
    %545 = vector.extract_strided_slice %542 {offsets = [1, 0, 0], sizes = [1, 32, 32], strides = [1, 1, 1]} : vector<2x32x32xf32> to vector<1x32x32xf32>
    %546 = vector.shape_cast %545 : vector<1x32x32xf32> to vector<32x32xf32>
    %547 = tpu.concatenate %544, %546 in 1 : vector<32x32xf32>, vector<32x32xf32> -> vector<32x64xf32>
    %548 = arith.mulf %547, %16 : vector<32x64xf32>
    %549 = arith.addf %548, %20 : vector<32x64xf32>
    %550 = math.tanh %549 : vector<32x64xf32>
    %cst_109 = arith.constant 5.000000e-01 : f32
    %551 = vector.broadcast %cst_109 : f32 to vector<32x64xf32>
    %552 = arith.mulf %551, %550 : vector<32x64xf32>
    %cst_110 = arith.constant 5.000000e-01 : f32
    %553 = vector.broadcast %cst_110 : f32 to vector<32x64xf32>
    %554 = arith.addf %552, %553 : vector<32x64xf32>
    %555 = arith.mulf %554, %22 : vector<32x64xf32>
    %cst_111 = arith.constant dense<0.000000e+00> : vector<64xf32>
    %556 = vector.multi_reduction <add>, %555, %cst_111 [0] : vector<32x64xf32> to vector<64xf32>
    %557 = vector.shape_cast %556 : vector<64xf32> to vector<1x64xf32>
    %558 = arith.mulf %554, %23 : vector<32x64xf32>
    %cst_112 = arith.constant dense<0.000000e+00> : vector<64xf32>
    %559 = vector.multi_reduction <add>, %558, %cst_112 [0] : vector<32x64xf32> to vector<64xf32>
    %560 = vector.shape_cast %559 : vector<64xf32> to vector<1x64xf32>
    %561 = arith.addf %557, %535 : vector<1x64xf32>
    %562 = arith.mulf %90, %534 : vector<1x64xf32>
    %563 = arith.addf %561, %562 : vector<1x64xf32>
    %564 = arith.addf %560, %536 : vector<1x64xf32>
    %565 = tpu.reciprocal %564 {approx = true} : vector<1x64xf32> -> vector<1x64xf32>
    %566 = arith.mulf %564, %565 : vector<1x64xf32>
    %cst_113 = arith.constant 2.000000e+00 : f32
    %567 = vector.broadcast %cst_113 : f32 to vector<1x64xf32>
    %568 = arith.subf %567, %566 : vector<1x64xf32>
    %569 = arith.mulf %565, %568 : vector<1x64xf32>
    %570 = arith.mulf %563, %569 : vector<1x64xf32>
    %571 = vector.extract_strided_slice %570 {offsets = [0, 0], sizes = [1, 32], strides = [1, 1]} : vector<1x64xf32> to vector<1x32xf32>
    %572 = vector.extract_strided_slice %570 {offsets = [0, 32], sizes = [1, 32], strides = [1, 1]} : vector<1x64xf32> to vector<1x32xf32>
    %573 = tpu.concatenate %571, %572 in 0 : vector<1x32xf32>, vector<1x32xf32> -> vector<2x32xf32>
    %574 = vector.shape_cast %573 : vector<2x32xf32> to vector<2x32x1xf32>
    %575 = vector.shape_cast %574 : vector<2x32x1xf32> to vector<2x32x1xf32>
    %576 = vector.broadcast %575 : vector<2x32x1xf32> to vector<2x32x32xf32>
    %577 = vector.extract_strided_slice %576 {offsets = [0, 0, 0], sizes = [1, 32, 32], strides = [1, 1, 1]} : vector<2x32x32xf32> to vector<1x32x32xf32>
    %578 = vector.shape_cast %577 : vector<1x32x32xf32> to vector<32x32xf32>
    %579 = vector.extract_strided_slice %576 {offsets = [1, 0, 0], sizes = [1, 32, 32], strides = [1, 1, 1]} : vector<2x32x32xf32> to vector<1x32x32xf32>
    %580 = vector.shape_cast %579 : vector<1x32x32xf32> to vector<32x32xf32>
    %581 = tpu.concatenate %578, %580 in 1 : vector<32x32xf32>, vector<32x32xf32> -> vector<32x64xf32>
    %582 = arith.mulf %581, %16 : vector<32x64xf32>
    %583 = arith.addf %582, %20 : vector<32x64xf32>
    %584 = math.tanh %583 : vector<32x64xf32>
    %cst_114 = arith.constant 5.000000e-01 : f32
    %585 = vector.broadcast %cst_114 : f32 to vector<32x64xf32>
    %586 = arith.mulf %585, %584 : vector<32x64xf32>
    %cst_115 = arith.constant 5.000000e-01 : f32
    %587 = vector.broadcast %cst_115 : f32 to vector<32x64xf32>
    %588 = arith.addf %586, %587 : vector<32x64xf32>
    %589 = arith.mulf %588, %22 : vector<32x64xf32>
    %cst_116 = arith.constant dense<0.000000e+00> : vector<64xf32>
    %590 = vector.multi_reduction <add>, %589, %cst_116 [0] : vector<32x64xf32> to vector<64xf32>
    %591 = vector.shape_cast %590 : vector<64xf32> to vector<1x64xf32>
    %592 = arith.mulf %588, %23 : vector<32x64xf32>
    %cst_117 = arith.constant dense<0.000000e+00> : vector<64xf32>
    %593 = vector.multi_reduction <add>, %592, %cst_117 [0] : vector<32x64xf32> to vector<64xf32>
    %594 = vector.shape_cast %593 : vector<64xf32> to vector<1x64xf32>
    %595 = arith.addf %591, %535 : vector<1x64xf32>
    %596 = arith.mulf %90, %570 : vector<1x64xf32>
    %597 = arith.addf %595, %596 : vector<1x64xf32>
    %598 = arith.addf %594, %536 : vector<1x64xf32>
    %599 = tpu.reciprocal %598 {approx = true} : vector<1x64xf32> -> vector<1x64xf32>
    %600 = arith.mulf %598, %599 : vector<1x64xf32>
    %cst_118 = arith.constant 2.000000e+00 : f32
    %601 = vector.broadcast %cst_118 : f32 to vector<1x64xf32>
    %602 = arith.subf %601, %600 : vector<1x64xf32>
    %603 = arith.mulf %599, %602 : vector<1x64xf32>
    %604 = arith.mulf %597, %603 : vector<1x64xf32>
    %605 = vector.extract_strided_slice %604 {offsets = [0, 0], sizes = [1, 32], strides = [1, 1]} : vector<1x64xf32> to vector<1x32xf32>
    %606 = vector.extract_strided_slice %604 {offsets = [0, 32], sizes = [1, 32], strides = [1, 1]} : vector<1x64xf32> to vector<1x32xf32>
    %607 = tpu.concatenate %605, %606 in 0 : vector<1x32xf32>, vector<1x32xf32> -> vector<2x32xf32>
    %608 = vector.shape_cast %607 : vector<2x32xf32> to vector<2x32x1xf32>
    %609 = vector.shape_cast %608 : vector<2x32x1xf32> to vector<2x32x1xf32>
    %610 = vector.broadcast %609 : vector<2x32x1xf32> to vector<2x32x32xf32>
    %611 = vector.extract_strided_slice %610 {offsets = [0, 0, 0], sizes = [1, 32, 32], strides = [1, 1, 1]} : vector<2x32x32xf32> to vector<1x32x32xf32>
    %612 = vector.shape_cast %611 : vector<1x32x32xf32> to vector<32x32xf32>
    %613 = vector.extract_strided_slice %610 {offsets = [1, 0, 0], sizes = [1, 32, 32], strides = [1, 1, 1]} : vector<2x32x32xf32> to vector<1x32x32xf32>
    %614 = vector.shape_cast %613 : vector<1x32x32xf32> to vector<32x32xf32>
    %615 = tpu.concatenate %612, %614 in 1 : vector<32x32xf32>, vector<32x32xf32> -> vector<32x64xf32>
    %616 = arith.mulf %615, %16 : vector<32x64xf32>
    %617 = arith.addf %616, %20 : vector<32x64xf32>
    %618 = math.tanh %617 : vector<32x64xf32>
    %cst_119 = arith.constant 5.000000e-01 : f32
    %619 = vector.broadcast %cst_119 : f32 to vector<32x64xf32>
    %620 = arith.mulf %619, %618 : vector<32x64xf32>
    %cst_120 = arith.constant 5.000000e-01 : f32
    %621 = vector.broadcast %cst_120 : f32 to vector<32x64xf32>
    %622 = arith.addf %620, %621 : vector<32x64xf32>
    %623 = arith.mulf %622, %22 : vector<32x64xf32>
    %cst_121 = arith.constant dense<0.000000e+00> : vector<64xf32>
    %624 = vector.multi_reduction <add>, %623, %cst_121 [0] : vector<32x64xf32> to vector<64xf32>
    %625 = vector.shape_cast %624 : vector<64xf32> to vector<1x64xf32>
    %626 = arith.mulf %622, %23 : vector<32x64xf32>
    %cst_122 = arith.constant dense<0.000000e+00> : vector<64xf32>
    %627 = vector.multi_reduction <add>, %626, %cst_122 [0] : vector<32x64xf32> to vector<64xf32>
    %628 = vector.shape_cast %627 : vector<64xf32> to vector<1x64xf32>
    %629 = arith.addf %625, %535 : vector<1x64xf32>
    %630 = arith.mulf %90, %604 : vector<1x64xf32>
    %631 = arith.addf %629, %630 : vector<1x64xf32>
    %632 = arith.addf %628, %536 : vector<1x64xf32>
    %633 = tpu.reciprocal %632 {approx = true} : vector<1x64xf32> -> vector<1x64xf32>
    %634 = arith.mulf %632, %633 : vector<1x64xf32>
    %cst_123 = arith.constant 2.000000e+00 : f32
    %635 = vector.broadcast %cst_123 : f32 to vector<1x64xf32>
    %636 = arith.subf %635, %634 : vector<1x64xf32>
    %637 = arith.mulf %633, %636 : vector<1x64xf32>
    %638 = arith.mulf %631, %637 : vector<1x64xf32>
    %639 = vector.extract_strided_slice %638 {offsets = [0, 0], sizes = [1, 32], strides = [1, 1]} : vector<1x64xf32> to vector<1x32xf32>
    %640 = vector.extract_strided_slice %638 {offsets = [0, 32], sizes = [1, 32], strides = [1, 1]} : vector<1x64xf32> to vector<1x32xf32>
    %641 = tpu.concatenate %639, %640 in 0 : vector<1x32xf32>, vector<1x32xf32> -> vector<2x32xf32>
    %642 = vector.shape_cast %641 : vector<2x32xf32> to vector<2x32x1xf32>
    %643 = vector.shape_cast %642 : vector<2x32x1xf32> to vector<2x32x1xf32>
    %644 = vector.broadcast %643 : vector<2x32x1xf32> to vector<2x32x32xf32>
    %645 = vector.extract_strided_slice %644 {offsets = [0, 0, 0], sizes = [1, 32, 32], strides = [1, 1, 1]} : vector<2x32x32xf32> to vector<1x32x32xf32>
    %646 = vector.shape_cast %645 : vector<1x32x32xf32> to vector<32x32xf32>
    %647 = vector.extract_strided_slice %644 {offsets = [1, 0, 0], sizes = [1, 32, 32], strides = [1, 1, 1]} : vector<2x32x32xf32> to vector<1x32x32xf32>
    %648 = vector.shape_cast %647 : vector<1x32x32xf32> to vector<32x32xf32>
    %649 = tpu.concatenate %646, %648 in 1 : vector<32x32xf32>, vector<32x32xf32> -> vector<32x64xf32>
    %650 = arith.mulf %649, %16 : vector<32x64xf32>
    %651 = arith.addf %650, %20 : vector<32x64xf32>
    %652 = math.tanh %651 : vector<32x64xf32>
    %cst_124 = arith.constant 5.000000e-01 : f32
    %653 = vector.broadcast %cst_124 : f32 to vector<32x64xf32>
    %654 = arith.mulf %653, %652 : vector<32x64xf32>
    %cst_125 = arith.constant 5.000000e-01 : f32
    %655 = vector.broadcast %cst_125 : f32 to vector<32x64xf32>
    %656 = arith.addf %654, %655 : vector<32x64xf32>
    %657 = arith.mulf %656, %22 : vector<32x64xf32>
    %cst_126 = arith.constant dense<0.000000e+00> : vector<64xf32>
    %658 = vector.multi_reduction <add>, %657, %cst_126 [0] : vector<32x64xf32> to vector<64xf32>
    %659 = vector.shape_cast %658 : vector<64xf32> to vector<1x64xf32>
    %660 = arith.mulf %656, %23 : vector<32x64xf32>
    %cst_127 = arith.constant dense<0.000000e+00> : vector<64xf32>
    %661 = vector.multi_reduction <add>, %660, %cst_127 [0] : vector<32x64xf32> to vector<64xf32>
    %662 = vector.shape_cast %661 : vector<64xf32> to vector<1x64xf32>
    %663 = arith.addf %659, %535 : vector<1x64xf32>
    %664 = arith.mulf %90, %638 : vector<1x64xf32>
    %665 = arith.addf %663, %664 : vector<1x64xf32>
    %666 = arith.addf %662, %536 : vector<1x64xf32>
    %667 = tpu.reciprocal %666 {approx = true} : vector<1x64xf32> -> vector<1x64xf32>
    %668 = arith.mulf %666, %667 : vector<1x64xf32>
    %cst_128 = arith.constant 2.000000e+00 : f32
    %669 = vector.broadcast %cst_128 : f32 to vector<1x64xf32>
    %670 = arith.subf %669, %668 : vector<1x64xf32>
    %671 = arith.mulf %667, %670 : vector<1x64xf32>
    %672 = arith.mulf %665, %671 : vector<1x64xf32>
    %673 = vector.extract_strided_slice %115 {offsets = [0, 256], sizes = [1, 64], strides = [1, 1]} : vector<1x512xf32> to vector<1x64xf32>
    %674 = vector.extract_strided_slice %119 {offsets = [0, 256], sizes = [1, 64], strides = [1, 1]} : vector<1x512xf32> to vector<1x64xf32>
    %675 = vector.extract_strided_slice %672 {offsets = [0, 0], sizes = [1, 32], strides = [1, 1]} : vector<1x64xf32> to vector<1x32xf32>
    %676 = vector.extract_strided_slice %672 {offsets = [0, 32], sizes = [1, 32], strides = [1, 1]} : vector<1x64xf32> to vector<1x32xf32>
    %677 = tpu.concatenate %675, %676 in 0 : vector<1x32xf32>, vector<1x32xf32> -> vector<2x32xf32>
    %678 = vector.shape_cast %677 : vector<2x32xf32> to vector<2x32x1xf32>
    %679 = vector.shape_cast %678 : vector<2x32x1xf32> to vector<2x32x1xf32>
    %680 = vector.broadcast %679 : vector<2x32x1xf32> to vector<2x32x32xf32>
    %681 = vector.extract_strided_slice %680 {offsets = [0, 0, 0], sizes = [1, 32, 32], strides = [1, 1, 1]} : vector<2x32x32xf32> to vector<1x32x32xf32>
    %682 = vector.shape_cast %681 : vector<1x32x32xf32> to vector<32x32xf32>
    %683 = vector.extract_strided_slice %680 {offsets = [1, 0, 0], sizes = [1, 32, 32], strides = [1, 1, 1]} : vector<2x32x32xf32> to vector<1x32x32xf32>
    %684 = vector.shape_cast %683 : vector<1x32x32xf32> to vector<32x32xf32>
    %685 = tpu.concatenate %682, %684 in 1 : vector<32x32xf32>, vector<32x32xf32> -> vector<32x64xf32>
    %686 = arith.mulf %685, %16 : vector<32x64xf32>
    %687 = arith.addf %686, %20 : vector<32x64xf32>
    %688 = math.tanh %687 : vector<32x64xf32>
    %cst_129 = arith.constant 5.000000e-01 : f32
    %689 = vector.broadcast %cst_129 : f32 to vector<32x64xf32>
    %690 = arith.mulf %689, %688 : vector<32x64xf32>
    %cst_130 = arith.constant 5.000000e-01 : f32
    %691 = vector.broadcast %cst_130 : f32 to vector<32x64xf32>
    %692 = arith.addf %690, %691 : vector<32x64xf32>
    %693 = arith.mulf %692, %22 : vector<32x64xf32>
    %cst_131 = arith.constant dense<0.000000e+00> : vector<64xf32>
    %694 = vector.multi_reduction <add>, %693, %cst_131 [0] : vector<32x64xf32> to vector<64xf32>
    %695 = vector.shape_cast %694 : vector<64xf32> to vector<1x64xf32>
    %696 = arith.mulf %692, %23 : vector<32x64xf32>
    %cst_132 = arith.constant dense<0.000000e+00> : vector<64xf32>
    %697 = vector.multi_reduction <add>, %696, %cst_132 [0] : vector<32x64xf32> to vector<64xf32>
    %698 = vector.shape_cast %697 : vector<64xf32> to vector<1x64xf32>
    %699 = arith.addf %695, %673 : vector<1x64xf32>
    %700 = arith.mulf %90, %672 : vector<1x64xf32>
    %701 = arith.addf %699, %700 : vector<1x64xf32>
    %702 = arith.addf %698, %674 : vector<1x64xf32>
    %703 = tpu.reciprocal %702 {approx = true} : vector<1x64xf32> -> vector<1x64xf32>
    %704 = arith.mulf %702, %703 : vector<1x64xf32>
    %cst_133 = arith.constant 2.000000e+00 : f32
    %705 = vector.broadcast %cst_133 : f32 to vector<1x64xf32>
    %706 = arith.subf %705, %704 : vector<1x64xf32>
    %707 = arith.mulf %703, %706 : vector<1x64xf32>
    %708 = arith.mulf %701, %707 : vector<1x64xf32>
    %709 = vector.extract_strided_slice %708 {offsets = [0, 0], sizes = [1, 32], strides = [1, 1]} : vector<1x64xf32> to vector<1x32xf32>
    %710 = vector.extract_strided_slice %708 {offsets = [0, 32], sizes = [1, 32], strides = [1, 1]} : vector<1x64xf32> to vector<1x32xf32>
    %711 = tpu.concatenate %709, %710 in 0 : vector<1x32xf32>, vector<1x32xf32> -> vector<2x32xf32>
    %712 = vector.shape_cast %711 : vector<2x32xf32> to vector<2x32x1xf32>
    %713 = vector.shape_cast %712 : vector<2x32x1xf32> to vector<2x32x1xf32>
    %714 = vector.broadcast %713 : vector<2x32x1xf32> to vector<2x32x32xf32>
    %715 = vector.extract_strided_slice %714 {offsets = [0, 0, 0], sizes = [1, 32, 32], strides = [1, 1, 1]} : vector<2x32x32xf32> to vector<1x32x32xf32>
    %716 = vector.shape_cast %715 : vector<1x32x32xf32> to vector<32x32xf32>
    %717 = vector.extract_strided_slice %714 {offsets = [1, 0, 0], sizes = [1, 32, 32], strides = [1, 1, 1]} : vector<2x32x32xf32> to vector<1x32x32xf32>
    %718 = vector.shape_cast %717 : vector<1x32x32xf32> to vector<32x32xf32>
    %719 = tpu.concatenate %716, %718 in 1 : vector<32x32xf32>, vector<32x32xf32> -> vector<32x64xf32>
    %720 = arith.mulf %719, %16 : vector<32x64xf32>
    %721 = arith.addf %720, %20 : vector<32x64xf32>
    %722 = math.tanh %721 : vector<32x64xf32>
    %cst_134 = arith.constant 5.000000e-01 : f32
    %723 = vector.broadcast %cst_134 : f32 to vector<32x64xf32>
    %724 = arith.mulf %723, %722 : vector<32x64xf32>
    %cst_135 = arith.constant 5.000000e-01 : f32
    %725 = vector.broadcast %cst_135 : f32 to vector<32x64xf32>
    %726 = arith.addf %724, %725 : vector<32x64xf32>
    %727 = arith.mulf %726, %22 : vector<32x64xf32>
    %cst_136 = arith.constant dense<0.000000e+00> : vector<64xf32>
    %728 = vector.multi_reduction <add>, %727, %cst_136 [0] : vector<32x64xf32> to vector<64xf32>
    %729 = vector.shape_cast %728 : vector<64xf32> to vector<1x64xf32>
    %730 = arith.mulf %726, %23 : vector<32x64xf32>
    %cst_137 = arith.constant dense<0.000000e+00> : vector<64xf32>
    %731 = vector.multi_reduction <add>, %730, %cst_137 [0] : vector<32x64xf32> to vector<64xf32>
    %732 = vector.shape_cast %731 : vector<64xf32> to vector<1x64xf32>
    %733 = arith.addf %729, %673 : vector<1x64xf32>
    %734 = arith.mulf %90, %708 : vector<1x64xf32>
    %735 = arith.addf %733, %734 : vector<1x64xf32>
    %736 = arith.addf %732, %674 : vector<1x64xf32>
    %737 = tpu.reciprocal %736 {approx = true} : vector<1x64xf32> -> vector<1x64xf32>
    %738 = arith.mulf %736, %737 : vector<1x64xf32>
    %cst_138 = arith.constant 2.000000e+00 : f32
    %739 = vector.broadcast %cst_138 : f32 to vector<1x64xf32>
    %740 = arith.subf %739, %738 : vector<1x64xf32>
    %741 = arith.mulf %737, %740 : vector<1x64xf32>
    %742 = arith.mulf %735, %741 : vector<1x64xf32>
    %743 = vector.extract_strided_slice %742 {offsets = [0, 0], sizes = [1, 32], strides = [1, 1]} : vector<1x64xf32> to vector<1x32xf32>
    %744 = vector.extract_strided_slice %742 {offsets = [0, 32], sizes = [1, 32], strides = [1, 1]} : vector<1x64xf32> to vector<1x32xf32>
    %745 = tpu.concatenate %743, %744 in 0 : vector<1x32xf32>, vector<1x32xf32> -> vector<2x32xf32>
    %746 = vector.shape_cast %745 : vector<2x32xf32> to vector<2x32x1xf32>
    %747 = vector.shape_cast %746 : vector<2x32x1xf32> to vector<2x32x1xf32>
    %748 = vector.broadcast %747 : vector<2x32x1xf32> to vector<2x32x32xf32>
    %749 = vector.extract_strided_slice %748 {offsets = [0, 0, 0], sizes = [1, 32, 32], strides = [1, 1, 1]} : vector<2x32x32xf32> to vector<1x32x32xf32>
    %750 = vector.shape_cast %749 : vector<1x32x32xf32> to vector<32x32xf32>
    %751 = vector.extract_strided_slice %748 {offsets = [1, 0, 0], sizes = [1, 32, 32], strides = [1, 1, 1]} : vector<2x32x32xf32> to vector<1x32x32xf32>
    %752 = vector.shape_cast %751 : vector<1x32x32xf32> to vector<32x32xf32>
    %753 = tpu.concatenate %750, %752 in 1 : vector<32x32xf32>, vector<32x32xf32> -> vector<32x64xf32>
    %754 = arith.mulf %753, %16 : vector<32x64xf32>
    %755 = arith.addf %754, %20 : vector<32x64xf32>
    %756 = math.tanh %755 : vector<32x64xf32>
    %cst_139 = arith.constant 5.000000e-01 : f32
    %757 = vector.broadcast %cst_139 : f32 to vector<32x64xf32>
    %758 = arith.mulf %757, %756 : vector<32x64xf32>
    %cst_140 = arith.constant 5.000000e-01 : f32
    %759 = vector.broadcast %cst_140 : f32 to vector<32x64xf32>
    %760 = arith.addf %758, %759 : vector<32x64xf32>
    %761 = arith.mulf %760, %22 : vector<32x64xf32>
    %cst_141 = arith.constant dense<0.000000e+00> : vector<64xf32>
    %762 = vector.multi_reduction <add>, %761, %cst_141 [0] : vector<32x64xf32> to vector<64xf32>
    %763 = vector.shape_cast %762 : vector<64xf32> to vector<1x64xf32>
    %764 = arith.mulf %760, %23 : vector<32x64xf32>
    %cst_142 = arith.constant dense<0.000000e+00> : vector<64xf32>
    %765 = vector.multi_reduction <add>, %764, %cst_142 [0] : vector<32x64xf32> to vector<64xf32>
    %766 = vector.shape_cast %765 : vector<64xf32> to vector<1x64xf32>
    %767 = arith.addf %763, %673 : vector<1x64xf32>
    %768 = arith.mulf %90, %742 : vector<1x64xf32>
    %769 = arith.addf %767, %768 : vector<1x64xf32>
    %770 = arith.addf %766, %674 : vector<1x64xf32>
    %771 = tpu.reciprocal %770 {approx = true} : vector<1x64xf32> -> vector<1x64xf32>
    %772 = arith.mulf %770, %771 : vector<1x64xf32>
    %cst_143 = arith.constant 2.000000e+00 : f32
    %773 = vector.broadcast %cst_143 : f32 to vector<1x64xf32>
    %774 = arith.subf %773, %772 : vector<1x64xf32>
    %775 = arith.mulf %771, %774 : vector<1x64xf32>
    %776 = arith.mulf %769, %775 : vector<1x64xf32>
    %777 = vector.extract_strided_slice %776 {offsets = [0, 0], sizes = [1, 32], strides = [1, 1]} : vector<1x64xf32> to vector<1x32xf32>
    %778 = vector.extract_strided_slice %776 {offsets = [0, 32], sizes = [1, 32], strides = [1, 1]} : vector<1x64xf32> to vector<1x32xf32>
    %779 = tpu.concatenate %777, %778 in 0 : vector<1x32xf32>, vector<1x32xf32> -> vector<2x32xf32>
    %780 = vector.shape_cast %779 : vector<2x32xf32> to vector<2x32x1xf32>
    %781 = vector.shape_cast %780 : vector<2x32x1xf32> to vector<2x32x1xf32>
    %782 = vector.broadcast %781 : vector<2x32x1xf32> to vector<2x32x32xf32>
    %783 = vector.extract_strided_slice %782 {offsets = [0, 0, 0], sizes = [1, 32, 32], strides = [1, 1, 1]} : vector<2x32x32xf32> to vector<1x32x32xf32>
    %784 = vector.shape_cast %783 : vector<1x32x32xf32> to vector<32x32xf32>
    %785 = vector.extract_strided_slice %782 {offsets = [1, 0, 0], sizes = [1, 32, 32], strides = [1, 1, 1]} : vector<2x32x32xf32> to vector<1x32x32xf32>
    %786 = vector.shape_cast %785 : vector<1x32x32xf32> to vector<32x32xf32>
    %787 = tpu.concatenate %784, %786 in 1 : vector<32x32xf32>, vector<32x32xf32> -> vector<32x64xf32>
    %788 = arith.mulf %787, %16 : vector<32x64xf32>
    %789 = arith.addf %788, %20 : vector<32x64xf32>
    %790 = math.tanh %789 : vector<32x64xf32>
    %cst_144 = arith.constant 5.000000e-01 : f32
    %791 = vector.broadcast %cst_144 : f32 to vector<32x64xf32>
    %792 = arith.mulf %791, %790 : vector<32x64xf32>
    %cst_145 = arith.constant 5.000000e-01 : f32
    %793 = vector.broadcast %cst_145 : f32 to vector<32x64xf32>
    %794 = arith.addf %792, %793 : vector<32x64xf32>
    %795 = arith.mulf %794, %22 : vector<32x64xf32>
    %cst_146 = arith.constant dense<0.000000e+00> : vector<64xf32>
    %796 = vector.multi_reduction <add>, %795, %cst_146 [0] : vector<32x64xf32> to vector<64xf32>
    %797 = vector.shape_cast %796 : vector<64xf32> to vector<1x64xf32>
    %798 = arith.mulf %794, %23 : vector<32x64xf32>
    %cst_147 = arith.constant dense<0.000000e+00> : vector<64xf32>
    %799 = vector.multi_reduction <add>, %798, %cst_147 [0] : vector<32x64xf32> to vector<64xf32>
    %800 = vector.shape_cast %799 : vector<64xf32> to vector<1x64xf32>
    %801 = arith.addf %797, %673 : vector<1x64xf32>
    %802 = arith.mulf %90, %776 : vector<1x64xf32>
    %803 = arith.addf %801, %802 : vector<1x64xf32>
    %804 = arith.addf %800, %674 : vector<1x64xf32>
    %805 = tpu.reciprocal %804 {approx = true} : vector<1x64xf32> -> vector<1x64xf32>
    %806 = arith.mulf %804, %805 : vector<1x64xf32>
    %cst_148 = arith.constant 2.000000e+00 : f32
    %807 = vector.broadcast %cst_148 : f32 to vector<1x64xf32>
    %808 = arith.subf %807, %806 : vector<1x64xf32>
    %809 = arith.mulf %805, %808 : vector<1x64xf32>
    %810 = arith.mulf %803, %809 : vector<1x64xf32>
    %811 = vector.extract_strided_slice %115 {offsets = [0, 320], sizes = [1, 64], strides = [1, 1]} : vector<1x512xf32> to vector<1x64xf32>
    %812 = vector.extract_strided_slice %119 {offsets = [0, 320], sizes = [1, 64], strides = [1, 1]} : vector<1x512xf32> to vector<1x64xf32>
    %813 = vector.extract_strided_slice %810 {offsets = [0, 0], sizes = [1, 32], strides = [1, 1]} : vector<1x64xf32> to vector<1x32xf32>
    %814 = vector.extract_strided_slice %810 {offsets = [0, 32], sizes = [1, 32], strides = [1, 1]} : vector<1x64xf32> to vector<1x32xf32>
    %815 = tpu.concatenate %813, %814 in 0 : vector<1x32xf32>, vector<1x32xf32> -> vector<2x32xf32>
    %816 = vector.shape_cast %815 : vector<2x32xf32> to vector<2x32x1xf32>
    %817 = vector.shape_cast %816 : vector<2x32x1xf32> to vector<2x32x1xf32>
    %818 = vector.broadcast %817 : vector<2x32x1xf32> to vector<2x32x32xf32>
    %819 = vector.extract_strided_slice %818 {offsets = [0, 0, 0], sizes = [1, 32, 32], strides = [1, 1, 1]} : vector<2x32x32xf32> to vector<1x32x32xf32>
    %820 = vector.shape_cast %819 : vector<1x32x32xf32> to vector<32x32xf32>
    %821 = vector.extract_strided_slice %818 {offsets = [1, 0, 0], sizes = [1, 32, 32], strides = [1, 1, 1]} : vector<2x32x32xf32> to vector<1x32x32xf32>
    %822 = vector.shape_cast %821 : vector<1x32x32xf32> to vector<32x32xf32>
    %823 = tpu.concatenate %820, %822 in 1 : vector<32x32xf32>, vector<32x32xf32> -> vector<32x64xf32>
    %824 = arith.mulf %823, %16 : vector<32x64xf32>
    %825 = arith.addf %824, %20 : vector<32x64xf32>
    %826 = math.tanh %825 : vector<32x64xf32>
    %cst_149 = arith.constant 5.000000e-01 : f32
    %827 = vector.broadcast %cst_149 : f32 to vector<32x64xf32>
    %828 = arith.mulf %827, %826 : vector<32x64xf32>
    %cst_150 = arith.constant 5.000000e-01 : f32
    %829 = vector.broadcast %cst_150 : f32 to vector<32x64xf32>
    %830 = arith.addf %828, %829 : vector<32x64xf32>
    %831 = arith.mulf %830, %22 : vector<32x64xf32>
    %cst_151 = arith.constant dense<0.000000e+00> : vector<64xf32>
    %832 = vector.multi_reduction <add>, %831, %cst_151 [0] : vector<32x64xf32> to vector<64xf32>
    %833 = vector.shape_cast %832 : vector<64xf32> to vector<1x64xf32>
    %834 = arith.mulf %830, %23 : vector<32x64xf32>
    %cst_152 = arith.constant dense<0.000000e+00> : vector<64xf32>
    %835 = vector.multi_reduction <add>, %834, %cst_152 [0] : vector<32x64xf32> to vector<64xf32>
    %836 = vector.shape_cast %835 : vector<64xf32> to vector<1x64xf32>
    %837 = arith.addf %833, %811 : vector<1x64xf32>
    %838 = arith.mulf %90, %810 : vector<1x64xf32>
    %839 = arith.addf %837, %838 : vector<1x64xf32>
    %840 = arith.addf %836, %812 : vector<1x64xf32>
    %841 = tpu.reciprocal %840 {approx = true} : vector<1x64xf32> -> vector<1x64xf32>
    %842 = arith.mulf %840, %841 : vector<1x64xf32>
    %cst_153 = arith.constant 2.000000e+00 : f32
    %843 = vector.broadcast %cst_153 : f32 to vector<1x64xf32>
    %844 = arith.subf %843, %842 : vector<1x64xf32>
    %845 = arith.mulf %841, %844 : vector<1x64xf32>
    %846 = arith.mulf %839, %845 : vector<1x64xf32>
    %847 = vector.extract_strided_slice %846 {offsets = [0, 0], sizes = [1, 32], strides = [1, 1]} : vector<1x64xf32> to vector<1x32xf32>
    %848 = vector.extract_strided_slice %846 {offsets = [0, 32], sizes = [1, 32], strides = [1, 1]} : vector<1x64xf32> to vector<1x32xf32>
    %849 = tpu.concatenate %847, %848 in 0 : vector<1x32xf32>, vector<1x32xf32> -> vector<2x32xf32>
    %850 = vector.shape_cast %849 : vector<2x32xf32> to vector<2x32x1xf32>
    %851 = vector.shape_cast %850 : vector<2x32x1xf32> to vector<2x32x1xf32>
    %852 = vector.broadcast %851 : vector<2x32x1xf32> to vector<2x32x32xf32>
    %853 = vector.extract_strided_slice %852 {offsets = [0, 0, 0], sizes = [1, 32, 32], strides = [1, 1, 1]} : vector<2x32x32xf32> to vector<1x32x32xf32>
    %854 = vector.shape_cast %853 : vector<1x32x32xf32> to vector<32x32xf32>
    %855 = vector.extract_strided_slice %852 {offsets = [1, 0, 0], sizes = [1, 32, 32], strides = [1, 1, 1]} : vector<2x32x32xf32> to vector<1x32x32xf32>
    %856 = vector.shape_cast %855 : vector<1x32x32xf32> to vector<32x32xf32>
    %857 = tpu.concatenate %854, %856 in 1 : vector<32x32xf32>, vector<32x32xf32> -> vector<32x64xf32>
    %858 = arith.mulf %857, %16 : vector<32x64xf32>
    %859 = arith.addf %858, %20 : vector<32x64xf32>
    %860 = math.tanh %859 : vector<32x64xf32>
    %cst_154 = arith.constant 5.000000e-01 : f32
    %861 = vector.broadcast %cst_154 : f32 to vector<32x64xf32>
    %862 = arith.mulf %861, %860 : vector<32x64xf32>
    %cst_155 = arith.constant 5.000000e-01 : f32
    %863 = vector.broadcast %cst_155 : f32 to vector<32x64xf32>
    %864 = arith.addf %862, %863 : vector<32x64xf32>
    %865 = arith.mulf %864, %22 : vector<32x64xf32>
    %cst_156 = arith.constant dense<0.000000e+00> : vector<64xf32>
    %866 = vector.multi_reduction <add>, %865, %cst_156 [0] : vector<32x64xf32> to vector<64xf32>
    %867 = vector.shape_cast %866 : vector<64xf32> to vector<1x64xf32>
    %868 = arith.mulf %864, %23 : vector<32x64xf32>
    %cst_157 = arith.constant dense<0.000000e+00> : vector<64xf32>
    %869 = vector.multi_reduction <add>, %868, %cst_157 [0] : vector<32x64xf32> to vector<64xf32>
    %870 = vector.shape_cast %869 : vector<64xf32> to vector<1x64xf32>
    %871 = arith.addf %867, %811 : vector<1x64xf32>
    %872 = arith.mulf %90, %846 : vector<1x64xf32>
    %873 = arith.addf %871, %872 : vector<1x64xf32>
    %874 = arith.addf %870, %812 : vector<1x64xf32>
    %875 = tpu.reciprocal %874 {approx = true} : vector<1x64xf32> -> vector<1x64xf32>
    %876 = arith.mulf %874, %875 : vector<1x64xf32>
    %cst_158 = arith.constant 2.000000e+00 : f32
    %877 = vector.broadcast %cst_158 : f32 to vector<1x64xf32>
    %878 = arith.subf %877, %876 : vector<1x64xf32>
    %879 = arith.mulf %875, %878 : vector<1x64xf32>
    %880 = arith.mulf %873, %879 : vector<1x64xf32>
    %881 = vector.extract_strided_slice %880 {offsets = [0, 0], sizes = [1, 32], strides = [1, 1]} : vector<1x64xf32> to vector<1x32xf32>
    %882 = vector.extract_strided_slice %880 {offsets = [0, 32], sizes = [1, 32], strides = [1, 1]} : vector<1x64xf32> to vector<1x32xf32>
    %883 = tpu.concatenate %881, %882 in 0 : vector<1x32xf32>, vector<1x32xf32> -> vector<2x32xf32>
    %884 = vector.shape_cast %883 : vector<2x32xf32> to vector<2x32x1xf32>
    %885 = vector.shape_cast %884 : vector<2x32x1xf32> to vector<2x32x1xf32>
    %886 = vector.broadcast %885 : vector<2x32x1xf32> to vector<2x32x32xf32>
    %887 = vector.extract_strided_slice %886 {offsets = [0, 0, 0], sizes = [1, 32, 32], strides = [1, 1, 1]} : vector<2x32x32xf32> to vector<1x32x32xf32>
    %888 = vector.shape_cast %887 : vector<1x32x32xf32> to vector<32x32xf32>
    %889 = vector.extract_strided_slice %886 {offsets = [1, 0, 0], sizes = [1, 32, 32], strides = [1, 1, 1]} : vector<2x32x32xf32> to vector<1x32x32xf32>
    %890 = vector.shape_cast %889 : vector<1x32x32xf32> to vector<32x32xf32>
    %891 = tpu.concatenate %888, %890 in 1 : vector<32x32xf32>, vector<32x32xf32> -> vector<32x64xf32>
    %892 = arith.mulf %891, %16 : vector<32x64xf32>
    %893 = arith.addf %892, %20 : vector<32x64xf32>
    %894 = math.tanh %893 : vector<32x64xf32>
    %cst_159 = arith.constant 5.000000e-01 : f32
    %895 = vector.broadcast %cst_159 : f32 to vector<32x64xf32>
    %896 = arith.mulf %895, %894 : vector<32x64xf32>
    %cst_160 = arith.constant 5.000000e-01 : f32
    %897 = vector.broadcast %cst_160 : f32 to vector<32x64xf32>
    %898 = arith.addf %896, %897 : vector<32x64xf32>
    %899 = arith.mulf %898, %22 : vector<32x64xf32>
    %cst_161 = arith.constant dense<0.000000e+00> : vector<64xf32>
    %900 = vector.multi_reduction <add>, %899, %cst_161 [0] : vector<32x64xf32> to vector<64xf32>
    %901 = vector.shape_cast %900 : vector<64xf32> to vector<1x64xf32>
    %902 = arith.mulf %898, %23 : vector<32x64xf32>
    %cst_162 = arith.constant dense<0.000000e+00> : vector<64xf32>
    %903 = vector.multi_reduction <add>, %902, %cst_162 [0] : vector<32x64xf32> to vector<64xf32>
    %904 = vector.shape_cast %903 : vector<64xf32> to vector<1x64xf32>
    %905 = arith.addf %901, %811 : vector<1x64xf32>
    %906 = arith.mulf %90, %880 : vector<1x64xf32>
    %907 = arith.addf %905, %906 : vector<1x64xf32>
    %908 = arith.addf %904, %812 : vector<1x64xf32>
    %909 = tpu.reciprocal %908 {approx = true} : vector<1x64xf32> -> vector<1x64xf32>
    %910 = arith.mulf %908, %909 : vector<1x64xf32>
    %cst_163 = arith.constant 2.000000e+00 : f32
    %911 = vector.broadcast %cst_163 : f32 to vector<1x64xf32>
    %912 = arith.subf %911, %910 : vector<1x64xf32>
    %913 = arith.mulf %909, %912 : vector<1x64xf32>
    %914 = arith.mulf %907, %913 : vector<1x64xf32>
    %915 = vector.extract_strided_slice %914 {offsets = [0, 0], sizes = [1, 32], strides = [1, 1]} : vector<1x64xf32> to vector<1x32xf32>
    %916 = vector.extract_strided_slice %914 {offsets = [0, 32], sizes = [1, 32], strides = [1, 1]} : vector<1x64xf32> to vector<1x32xf32>
    %917 = tpu.concatenate %915, %916 in 0 : vector<1x32xf32>, vector<1x32xf32> -> vector<2x32xf32>
    %918 = vector.shape_cast %917 : vector<2x32xf32> to vector<2x32x1xf32>
    %919 = vector.shape_cast %918 : vector<2x32x1xf32> to vector<2x32x1xf32>
    %920 = vector.broadcast %919 : vector<2x32x1xf32> to vector<2x32x32xf32>
    %921 = vector.extract_strided_slice %920 {offsets = [0, 0, 0], sizes = [1, 32, 32], strides = [1, 1, 1]} : vector<2x32x32xf32> to vector<1x32x32xf32>
    %922 = vector.shape_cast %921 : vector<1x32x32xf32> to vector<32x32xf32>
    %923 = vector.extract_strided_slice %920 {offsets = [1, 0, 0], sizes = [1, 32, 32], strides = [1, 1, 1]} : vector<2x32x32xf32> to vector<1x32x32xf32>
    %924 = vector.shape_cast %923 : vector<1x32x32xf32> to vector<32x32xf32>
    %925 = tpu.concatenate %922, %924 in 1 : vector<32x32xf32>, vector<32x32xf32> -> vector<32x64xf32>
    %926 = arith.mulf %925, %16 : vector<32x64xf32>
    %927 = arith.addf %926, %20 : vector<32x64xf32>
    %928 = math.tanh %927 : vector<32x64xf32>
    %cst_164 = arith.constant 5.000000e-01 : f32
    %929 = vector.broadcast %cst_164 : f32 to vector<32x64xf32>
    %930 = arith.mulf %929, %928 : vector<32x64xf32>
    %cst_165 = arith.constant 5.000000e-01 : f32
    %931 = vector.broadcast %cst_165 : f32 to vector<32x64xf32>
    %932 = arith.addf %930, %931 : vector<32x64xf32>
    %933 = arith.mulf %932, %22 : vector<32x64xf32>
    %cst_166 = arith.constant dense<0.000000e+00> : vector<64xf32>
    %934 = vector.multi_reduction <add>, %933, %cst_166 [0] : vector<32x64xf32> to vector<64xf32>
    %935 = vector.shape_cast %934 : vector<64xf32> to vector<1x64xf32>
    %936 = arith.mulf %932, %23 : vector<32x64xf32>
    %cst_167 = arith.constant dense<0.000000e+00> : vector<64xf32>
    %937 = vector.multi_reduction <add>, %936, %cst_167 [0] : vector<32x64xf32> to vector<64xf32>
    %938 = vector.shape_cast %937 : vector<64xf32> to vector<1x64xf32>
    %939 = arith.addf %935, %811 : vector<1x64xf32>
    %940 = arith.mulf %90, %914 : vector<1x64xf32>
    %941 = arith.addf %939, %940 : vector<1x64xf32>
    %942 = arith.addf %938, %812 : vector<1x64xf32>
    %943 = tpu.reciprocal %942 {approx = true} : vector<1x64xf32> -> vector<1x64xf32>
    %944 = arith.mulf %942, %943 : vector<1x64xf32>
    %cst_168 = arith.constant 2.000000e+00 : f32
    %945 = vector.broadcast %cst_168 : f32 to vector<1x64xf32>
    %946 = arith.subf %945, %944 : vector<1x64xf32>
    %947 = arith.mulf %943, %946 : vector<1x64xf32>
    %948 = arith.mulf %941, %947 : vector<1x64xf32>
    %949 = vector.extract_strided_slice %115 {offsets = [0, 384], sizes = [1, 64], strides = [1, 1]} : vector<1x512xf32> to vector<1x64xf32>
    %950 = vector.extract_strided_slice %119 {offsets = [0, 384], sizes = [1, 64], strides = [1, 1]} : vector<1x512xf32> to vector<1x64xf32>
    %951 = vector.extract_strided_slice %948 {offsets = [0, 0], sizes = [1, 32], strides = [1, 1]} : vector<1x64xf32> to vector<1x32xf32>
    %952 = vector.extract_strided_slice %948 {offsets = [0, 32], sizes = [1, 32], strides = [1, 1]} : vector<1x64xf32> to vector<1x32xf32>
    %953 = tpu.concatenate %951, %952 in 0 : vector<1x32xf32>, vector<1x32xf32> -> vector<2x32xf32>
    %954 = vector.shape_cast %953 : vector<2x32xf32> to vector<2x32x1xf32>
    %955 = vector.shape_cast %954 : vector<2x32x1xf32> to vector<2x32x1xf32>
    %956 = vector.broadcast %955 : vector<2x32x1xf32> to vector<2x32x32xf32>
    %957 = vector.extract_strided_slice %956 {offsets = [0, 0, 0], sizes = [1, 32, 32], strides = [1, 1, 1]} : vector<2x32x32xf32> to vector<1x32x32xf32>
    %958 = vector.shape_cast %957 : vector<1x32x32xf32> to vector<32x32xf32>
    %959 = vector.extract_strided_slice %956 {offsets = [1, 0, 0], sizes = [1, 32, 32], strides = [1, 1, 1]} : vector<2x32x32xf32> to vector<1x32x32xf32>
    %960 = vector.shape_cast %959 : vector<1x32x32xf32> to vector<32x32xf32>
    %961 = tpu.concatenate %958, %960 in 1 : vector<32x32xf32>, vector<32x32xf32> -> vector<32x64xf32>
    %962 = arith.mulf %961, %16 : vector<32x64xf32>
    %963 = arith.addf %962, %20 : vector<32x64xf32>
    %964 = math.tanh %963 : vector<32x64xf32>
    %cst_169 = arith.constant 5.000000e-01 : f32
    %965 = vector.broadcast %cst_169 : f32 to vector<32x64xf32>
    %966 = arith.mulf %965, %964 : vector<32x64xf32>
    %cst_170 = arith.constant 5.000000e-01 : f32
    %967 = vector.broadcast %cst_170 : f32 to vector<32x64xf32>
    %968 = arith.addf %966, %967 : vector<32x64xf32>
    %969 = arith.mulf %968, %22 : vector<32x64xf32>
    %cst_171 = arith.constant dense<0.000000e+00> : vector<64xf32>
    %970 = vector.multi_reduction <add>, %969, %cst_171 [0] : vector<32x64xf32> to vector<64xf32>
    %971 = vector.shape_cast %970 : vector<64xf32> to vector<1x64xf32>
    %972 = arith.mulf %968, %23 : vector<32x64xf32>
    %cst_172 = arith.constant dense<0.000000e+00> : vector<64xf32>
    %973 = vector.multi_reduction <add>, %972, %cst_172 [0] : vector<32x64xf32> to vector<64xf32>
    %974 = vector.shape_cast %973 : vector<64xf32> to vector<1x64xf32>
    %975 = arith.addf %971, %949 : vector<1x64xf32>
    %976 = arith.mulf %90, %948 : vector<1x64xf32>
    %977 = arith.addf %975, %976 : vector<1x64xf32>
    %978 = arith.addf %974, %950 : vector<1x64xf32>
    %979 = tpu.reciprocal %978 {approx = true} : vector<1x64xf32> -> vector<1x64xf32>
    %980 = arith.mulf %978, %979 : vector<1x64xf32>
    %cst_173 = arith.constant 2.000000e+00 : f32
    %981 = vector.broadcast %cst_173 : f32 to vector<1x64xf32>
    %982 = arith.subf %981, %980 : vector<1x64xf32>
    %983 = arith.mulf %979, %982 : vector<1x64xf32>
    %984 = arith.mulf %977, %983 : vector<1x64xf32>
    %985 = vector.extract_strided_slice %984 {offsets = [0, 0], sizes = [1, 32], strides = [1, 1]} : vector<1x64xf32> to vector<1x32xf32>
    %986 = vector.extract_strided_slice %984 {offsets = [0, 32], sizes = [1, 32], strides = [1, 1]} : vector<1x64xf32> to vector<1x32xf32>
    %987 = tpu.concatenate %985, %986 in 0 : vector<1x32xf32>, vector<1x32xf32> -> vector<2x32xf32>
    %988 = vector.shape_cast %987 : vector<2x32xf32> to vector<2x32x1xf32>
    %989 = vector.shape_cast %988 : vector<2x32x1xf32> to vector<2x32x1xf32>
    %990 = vector.broadcast %989 : vector<2x32x1xf32> to vector<2x32x32xf32>
    %991 = vector.extract_strided_slice %990 {offsets = [0, 0, 0], sizes = [1, 32, 32], strides = [1, 1, 1]} : vector<2x32x32xf32> to vector<1x32x32xf32>
    %992 = vector.shape_cast %991 : vector<1x32x32xf32> to vector<32x32xf32>
    %993 = vector.extract_strided_slice %990 {offsets = [1, 0, 0], sizes = [1, 32, 32], strides = [1, 1, 1]} : vector<2x32x32xf32> to vector<1x32x32xf32>
    %994 = vector.shape_cast %993 : vector<1x32x32xf32> to vector<32x32xf32>
    %995 = tpu.concatenate %992, %994 in 1 : vector<32x32xf32>, vector<32x32xf32> -> vector<32x64xf32>
    %996 = arith.mulf %995, %16 : vector<32x64xf32>
    %997 = arith.addf %996, %20 : vector<32x64xf32>
    %998 = math.tanh %997 : vector<32x64xf32>
    %cst_174 = arith.constant 5.000000e-01 : f32
    %999 = vector.broadcast %cst_174 : f32 to vector<32x64xf32>
    %1000 = arith.mulf %999, %998 : vector<32x64xf32>
    %cst_175 = arith.constant 5.000000e-01 : f32
    %1001 = vector.broadcast %cst_175 : f32 to vector<32x64xf32>
    %1002 = arith.addf %1000, %1001 : vector<32x64xf32>
    %1003 = arith.mulf %1002, %22 : vector<32x64xf32>
    %cst_176 = arith.constant dense<0.000000e+00> : vector<64xf32>
    %1004 = vector.multi_reduction <add>, %1003, %cst_176 [0] : vector<32x64xf32> to vector<64xf32>
    %1005 = vector.shape_cast %1004 : vector<64xf32> to vector<1x64xf32>
    %1006 = arith.mulf %1002, %23 : vector<32x64xf32>
    %cst_177 = arith.constant dense<0.000000e+00> : vector<64xf32>
    %1007 = vector.multi_reduction <add>, %1006, %cst_177 [0] : vector<32x64xf32> to vector<64xf32>
    %1008 = vector.shape_cast %1007 : vector<64xf32> to vector<1x64xf32>
    %1009 = arith.addf %1005, %949 : vector<1x64xf32>
    %1010 = arith.mulf %90, %984 : vector<1x64xf32>
    %1011 = arith.addf %1009, %1010 : vector<1x64xf32>
    %1012 = arith.addf %1008, %950 : vector<1x64xf32>
    %1013 = tpu.reciprocal %1012 {approx = true} : vector<1x64xf32> -> vector<1x64xf32>
    %1014 = arith.mulf %1012, %1013 : vector<1x64xf32>
    %cst_178 = arith.constant 2.000000e+00 : f32
    %1015 = vector.broadcast %cst_178 : f32 to vector<1x64xf32>
    %1016 = arith.subf %1015, %1014 : vector<1x64xf32>
    %1017 = arith.mulf %1013, %1016 : vector<1x64xf32>
    %1018 = arith.mulf %1011, %1017 : vector<1x64xf32>
    %1019 = vector.extract_strided_slice %1018 {offsets = [0, 0], sizes = [1, 32], strides = [1, 1]} : vector<1x64xf32> to vector<1x32xf32>
    %1020 = vector.extract_strided_slice %1018 {offsets = [0, 32], sizes = [1, 32], strides = [1, 1]} : vector<1x64xf32> to vector<1x32xf32>
    %1021 = tpu.concatenate %1019, %1020 in 0 : vector<1x32xf32>, vector<1x32xf32> -> vector<2x32xf32>
    %1022 = vector.shape_cast %1021 : vector<2x32xf32> to vector<2x32x1xf32>
    %1023 = vector.shape_cast %1022 : vector<2x32x1xf32> to vector<2x32x1xf32>
    %1024 = vector.broadcast %1023 : vector<2x32x1xf32> to vector<2x32x32xf32>
    %1025 = vector.extract_strided_slice %1024 {offsets = [0, 0, 0], sizes = [1, 32, 32], strides = [1, 1, 1]} : vector<2x32x32xf32> to vector<1x32x32xf32>
    %1026 = vector.shape_cast %1025 : vector<1x32x32xf32> to vector<32x32xf32>
    %1027 = vector.extract_strided_slice %1024 {offsets = [1, 0, 0], sizes = [1, 32, 32], strides = [1, 1, 1]} : vector<2x32x32xf32> to vector<1x32x32xf32>
    %1028 = vector.shape_cast %1027 : vector<1x32x32xf32> to vector<32x32xf32>
    %1029 = tpu.concatenate %1026, %1028 in 1 : vector<32x32xf32>, vector<32x32xf32> -> vector<32x64xf32>
    %1030 = arith.mulf %1029, %16 : vector<32x64xf32>
    %1031 = arith.addf %1030, %20 : vector<32x64xf32>
    %1032 = math.tanh %1031 : vector<32x64xf32>
    %cst_179 = arith.constant 5.000000e-01 : f32
    %1033 = vector.broadcast %cst_179 : f32 to vector<32x64xf32>
    %1034 = arith.mulf %1033, %1032 : vector<32x64xf32>
    %cst_180 = arith.constant 5.000000e-01 : f32
    %1035 = vector.broadcast %cst_180 : f32 to vector<32x64xf32>
    %1036 = arith.addf %1034, %1035 : vector<32x64xf32>
    %1037 = arith.mulf %1036, %22 : vector<32x64xf32>
    %cst_181 = arith.constant dense<0.000000e+00> : vector<64xf32>
    %1038 = vector.multi_reduction <add>, %1037, %cst_181 [0] : vector<32x64xf32> to vector<64xf32>
    %1039 = vector.shape_cast %1038 : vector<64xf32> to vector<1x64xf32>
    %1040 = arith.mulf %1036, %23 : vector<32x64xf32>
    %cst_182 = arith.constant dense<0.000000e+00> : vector<64xf32>
    %1041 = vector.multi_reduction <add>, %1040, %cst_182 [0] : vector<32x64xf32> to vector<64xf32>
    %1042 = vector.shape_cast %1041 : vector<64xf32> to vector<1x64xf32>
    %1043 = arith.addf %1039, %949 : vector<1x64xf32>
    %1044 = arith.mulf %90, %1018 : vector<1x64xf32>
    %1045 = arith.addf %1043, %1044 : vector<1x64xf32>
    %1046 = arith.addf %1042, %950 : vector<1x64xf32>
    %1047 = tpu.reciprocal %1046 {approx = true} : vector<1x64xf32> -> vector<1x64xf32>
    %1048 = arith.mulf %1046, %1047 : vector<1x64xf32>
    %cst_183 = arith.constant 2.000000e+00 : f32
    %1049 = vector.broadcast %cst_183 : f32 to vector<1x64xf32>
    %1050 = arith.subf %1049, %1048 : vector<1x64xf32>
    %1051 = arith.mulf %1047, %1050 : vector<1x64xf32>
    %1052 = arith.mulf %1045, %1051 : vector<1x64xf32>
    %1053 = vector.extract_strided_slice %1052 {offsets = [0, 0], sizes = [1, 32], strides = [1, 1]} : vector<1x64xf32> to vector<1x32xf32>
    %1054 = vector.extract_strided_slice %1052 {offsets = [0, 32], sizes = [1, 32], strides = [1, 1]} : vector<1x64xf32> to vector<1x32xf32>
    %1055 = tpu.concatenate %1053, %1054 in 0 : vector<1x32xf32>, vector<1x32xf32> -> vector<2x32xf32>
    %1056 = vector.shape_cast %1055 : vector<2x32xf32> to vector<2x32x1xf32>
    %1057 = vector.shape_cast %1056 : vector<2x32x1xf32> to vector<2x32x1xf32>
    %1058 = vector.broadcast %1057 : vector<2x32x1xf32> to vector<2x32x32xf32>
    %1059 = vector.extract_strided_slice %1058 {offsets = [0, 0, 0], sizes = [1, 32, 32], strides = [1, 1, 1]} : vector<2x32x32xf32> to vector<1x32x32xf32>
    %1060 = vector.shape_cast %1059 : vector<1x32x32xf32> to vector<32x32xf32>
    %1061 = vector.extract_strided_slice %1058 {offsets = [1, 0, 0], sizes = [1, 32, 32], strides = [1, 1, 1]} : vector<2x32x32xf32> to vector<1x32x32xf32>
    %1062 = vector.shape_cast %1061 : vector<1x32x32xf32> to vector<32x32xf32>
    %1063 = tpu.concatenate %1060, %1062 in 1 : vector<32x32xf32>, vector<32x32xf32> -> vector<32x64xf32>
    %1064 = arith.mulf %1063, %16 : vector<32x64xf32>
    %1065 = arith.addf %1064, %20 : vector<32x64xf32>
    %1066 = math.tanh %1065 : vector<32x64xf32>
    %cst_184 = arith.constant 5.000000e-01 : f32
    %1067 = vector.broadcast %cst_184 : f32 to vector<32x64xf32>
    %1068 = arith.mulf %1067, %1066 : vector<32x64xf32>
    %cst_185 = arith.constant 5.000000e-01 : f32
    %1069 = vector.broadcast %cst_185 : f32 to vector<32x64xf32>
    %1070 = arith.addf %1068, %1069 : vector<32x64xf32>
    %1071 = arith.mulf %1070, %22 : vector<32x64xf32>
    %cst_186 = arith.constant dense<0.000000e+00> : vector<64xf32>
    %1072 = vector.multi_reduction <add>, %1071, %cst_186 [0] : vector<32x64xf32> to vector<64xf32>
    %1073 = vector.shape_cast %1072 : vector<64xf32> to vector<1x64xf32>
    %1074 = arith.mulf %1070, %23 : vector<32x64xf32>
    %cst_187 = arith.constant dense<0.000000e+00> : vector<64xf32>
    %1075 = vector.multi_reduction <add>, %1074, %cst_187 [0] : vector<32x64xf32> to vector<64xf32>
    %1076 = vector.shape_cast %1075 : vector<64xf32> to vector<1x64xf32>
    %1077 = arith.addf %1073, %949 : vector<1x64xf32>
    %1078 = arith.mulf %90, %1052 : vector<1x64xf32>
    %1079 = arith.addf %1077, %1078 : vector<1x64xf32>
    %1080 = arith.addf %1076, %950 : vector<1x64xf32>
    %1081 = tpu.reciprocal %1080 {approx = true} : vector<1x64xf32> -> vector<1x64xf32>
    %1082 = arith.mulf %1080, %1081 : vector<1x64xf32>
    %cst_188 = arith.constant 2.000000e+00 : f32
    %1083 = vector.broadcast %cst_188 : f32 to vector<1x64xf32>
    %1084 = arith.subf %1083, %1082 : vector<1x64xf32>
    %1085 = arith.mulf %1081, %1084 : vector<1x64xf32>
    %1086 = arith.mulf %1079, %1085 : vector<1x64xf32>
    %1087 = vector.extract_strided_slice %115 {offsets = [0, 448], sizes = [1, 64], strides = [1, 1]} : vector<1x512xf32> to vector<1x64xf32>
    %1088 = vector.extract_strided_slice %119 {offsets = [0, 448], sizes = [1, 64], strides = [1, 1]} : vector<1x512xf32> to vector<1x64xf32>
    %1089 = vector.extract_strided_slice %1086 {offsets = [0, 0], sizes = [1, 32], strides = [1, 1]} : vector<1x64xf32> to vector<1x32xf32>
    %1090 = vector.extract_strided_slice %1086 {offsets = [0, 32], sizes = [1, 32], strides = [1, 1]} : vector<1x64xf32> to vector<1x32xf32>
    %1091 = tpu.concatenate %1089, %1090 in 0 : vector<1x32xf32>, vector<1x32xf32> -> vector<2x32xf32>
    %1092 = vector.shape_cast %1091 : vector<2x32xf32> to vector<2x32x1xf32>
    %1093 = vector.shape_cast %1092 : vector<2x32x1xf32> to vector<2x32x1xf32>
    %1094 = vector.broadcast %1093 : vector<2x32x1xf32> to vector<2x32x32xf32>
    %1095 = vector.extract_strided_slice %1094 {offsets = [0, 0, 0], sizes = [1, 32, 32], strides = [1, 1, 1]} : vector<2x32x32xf32> to vector<1x32x32xf32>
    %1096 = vector.shape_cast %1095 : vector<1x32x32xf32> to vector<32x32xf32>
    %1097 = vector.extract_strided_slice %1094 {offsets = [1, 0, 0], sizes = [1, 32, 32], strides = [1, 1, 1]} : vector<2x32x32xf32> to vector<1x32x32xf32>
    %1098 = vector.shape_cast %1097 : vector<1x32x32xf32> to vector<32x32xf32>
    %1099 = tpu.concatenate %1096, %1098 in 1 : vector<32x32xf32>, vector<32x32xf32> -> vector<32x64xf32>
    %1100 = arith.mulf %1099, %16 : vector<32x64xf32>
    %1101 = arith.addf %1100, %20 : vector<32x64xf32>
    %1102 = math.tanh %1101 : vector<32x64xf32>
    %cst_189 = arith.constant 5.000000e-01 : f32
    %1103 = vector.broadcast %cst_189 : f32 to vector<32x64xf32>
    %1104 = arith.mulf %1103, %1102 : vector<32x64xf32>
    %cst_190 = arith.constant 5.000000e-01 : f32
    %1105 = vector.broadcast %cst_190 : f32 to vector<32x64xf32>
    %1106 = arith.addf %1104, %1105 : vector<32x64xf32>
    %1107 = arith.mulf %1106, %22 : vector<32x64xf32>
    %cst_191 = arith.constant dense<0.000000e+00> : vector<64xf32>
    %1108 = vector.multi_reduction <add>, %1107, %cst_191 [0] : vector<32x64xf32> to vector<64xf32>
    %1109 = vector.shape_cast %1108 : vector<64xf32> to vector<1x64xf32>
    %1110 = arith.mulf %1106, %23 : vector<32x64xf32>
    %cst_192 = arith.constant dense<0.000000e+00> : vector<64xf32>
    %1111 = vector.multi_reduction <add>, %1110, %cst_192 [0] : vector<32x64xf32> to vector<64xf32>
    %1112 = vector.shape_cast %1111 : vector<64xf32> to vector<1x64xf32>
    %1113 = arith.addf %1109, %1087 : vector<1x64xf32>
    %1114 = arith.mulf %90, %1086 : vector<1x64xf32>
    %1115 = arith.addf %1113, %1114 : vector<1x64xf32>
    %1116 = arith.addf %1112, %1088 : vector<1x64xf32>
    %1117 = tpu.reciprocal %1116 {approx = true} : vector<1x64xf32> -> vector<1x64xf32>
    %1118 = arith.mulf %1116, %1117 : vector<1x64xf32>
    %cst_193 = arith.constant 2.000000e+00 : f32
    %1119 = vector.broadcast %cst_193 : f32 to vector<1x64xf32>
    %1120 = arith.subf %1119, %1118 : vector<1x64xf32>
    %1121 = arith.mulf %1117, %1120 : vector<1x64xf32>
    %1122 = arith.mulf %1115, %1121 : vector<1x64xf32>
    %1123 = vector.extract_strided_slice %1122 {offsets = [0, 0], sizes = [1, 32], strides = [1, 1]} : vector<1x64xf32> to vector<1x32xf32>
    %1124 = vector.extract_strided_slice %1122 {offsets = [0, 32], sizes = [1, 32], strides = [1, 1]} : vector<1x64xf32> to vector<1x32xf32>
    %1125 = tpu.concatenate %1123, %1124 in 0 : vector<1x32xf32>, vector<1x32xf32> -> vector<2x32xf32>
    %1126 = vector.shape_cast %1125 : vector<2x32xf32> to vector<2x32x1xf32>
    %1127 = vector.shape_cast %1126 : vector<2x32x1xf32> to vector<2x32x1xf32>
    %1128 = vector.broadcast %1127 : vector<2x32x1xf32> to vector<2x32x32xf32>
    %1129 = vector.extract_strided_slice %1128 {offsets = [0, 0, 0], sizes = [1, 32, 32], strides = [1, 1, 1]} : vector<2x32x32xf32> to vector<1x32x32xf32>
    %1130 = vector.shape_cast %1129 : vector<1x32x32xf32> to vector<32x32xf32>
    %1131 = vector.extract_strided_slice %1128 {offsets = [1, 0, 0], sizes = [1, 32, 32], strides = [1, 1, 1]} : vector<2x32x32xf32> to vector<1x32x32xf32>
    %1132 = vector.shape_cast %1131 : vector<1x32x32xf32> to vector<32x32xf32>
    %1133 = tpu.concatenate %1130, %1132 in 1 : vector<32x32xf32>, vector<32x32xf32> -> vector<32x64xf32>
    %1134 = arith.mulf %1133, %16 : vector<32x64xf32>
    %1135 = arith.addf %1134, %20 : vector<32x64xf32>
    %1136 = math.tanh %1135 : vector<32x64xf32>
    %cst_194 = arith.constant 5.000000e-01 : f32
    %1137 = vector.broadcast %cst_194 : f32 to vector<32x64xf32>
    %1138 = arith.mulf %1137, %1136 : vector<32x64xf32>
    %cst_195 = arith.constant 5.000000e-01 : f32
    %1139 = vector.broadcast %cst_195 : f32 to vector<32x64xf32>
    %1140 = arith.addf %1138, %1139 : vector<32x64xf32>
    %1141 = arith.mulf %1140, %22 : vector<32x64xf32>
    %cst_196 = arith.constant dense<0.000000e+00> : vector<64xf32>
    %1142 = vector.multi_reduction <add>, %1141, %cst_196 [0] : vector<32x64xf32> to vector<64xf32>
    %1143 = vector.shape_cast %1142 : vector<64xf32> to vector<1x64xf32>
    %1144 = arith.mulf %1140, %23 : vector<32x64xf32>
    %cst_197 = arith.constant dense<0.000000e+00> : vector<64xf32>
    %1145 = vector.multi_reduction <add>, %1144, %cst_197 [0] : vector<32x64xf32> to vector<64xf32>
    %1146 = vector.shape_cast %1145 : vector<64xf32> to vector<1x64xf32>
    %1147 = arith.addf %1143, %1087 : vector<1x64xf32>
    %1148 = arith.mulf %90, %1122 : vector<1x64xf32>
    %1149 = arith.addf %1147, %1148 : vector<1x64xf32>
    %1150 = arith.addf %1146, %1088 : vector<1x64xf32>
    %1151 = tpu.reciprocal %1150 {approx = true} : vector<1x64xf32> -> vector<1x64xf32>
    %1152 = arith.mulf %1150, %1151 : vector<1x64xf32>
    %cst_198 = arith.constant 2.000000e+00 : f32
    %1153 = vector.broadcast %cst_198 : f32 to vector<1x64xf32>
    %1154 = arith.subf %1153, %1152 : vector<1x64xf32>
    %1155 = arith.mulf %1151, %1154 : vector<1x64xf32>
    %1156 = arith.mulf %1149, %1155 : vector<1x64xf32>
    %1157 = vector.extract_strided_slice %1156 {offsets = [0, 0], sizes = [1, 32], strides = [1, 1]} : vector<1x64xf32> to vector<1x32xf32>
    %1158 = vector.extract_strided_slice %1156 {offsets = [0, 32], sizes = [1, 32], strides = [1, 1]} : vector<1x64xf32> to vector<1x32xf32>
    %1159 = tpu.concatenate %1157, %1158 in 0 : vector<1x32xf32>, vector<1x32xf32> -> vector<2x32xf32>
    %1160 = vector.shape_cast %1159 : vector<2x32xf32> to vector<2x32x1xf32>
    %1161 = vector.shape_cast %1160 : vector<2x32x1xf32> to vector<2x32x1xf32>
    %1162 = vector.broadcast %1161 : vector<2x32x1xf32> to vector<2x32x32xf32>
    %1163 = vector.extract_strided_slice %1162 {offsets = [0, 0, 0], sizes = [1, 32, 32], strides = [1, 1, 1]} : vector<2x32x32xf32> to vector<1x32x32xf32>
    %1164 = vector.shape_cast %1163 : vector<1x32x32xf32> to vector<32x32xf32>
    %1165 = vector.extract_strided_slice %1162 {offsets = [1, 0, 0], sizes = [1, 32, 32], strides = [1, 1, 1]} : vector<2x32x32xf32> to vector<1x32x32xf32>
    %1166 = vector.shape_cast %1165 : vector<1x32x32xf32> to vector<32x32xf32>
    %1167 = tpu.concatenate %1164, %1166 in 1 : vector<32x32xf32>, vector<32x32xf32> -> vector<32x64xf32>
    %1168 = arith.mulf %1167, %16 : vector<32x64xf32>
    %1169 = arith.addf %1168, %20 : vector<32x64xf32>
    %1170 = math.tanh %1169 : vector<32x64xf32>
    %cst_199 = arith.constant 5.000000e-01 : f32
    %1171 = vector.broadcast %cst_199 : f32 to vector<32x64xf32>
    %1172 = arith.mulf %1171, %1170 : vector<32x64xf32>
    %cst_200 = arith.constant 5.000000e-01 : f32
    %1173 = vector.broadcast %cst_200 : f32 to vector<32x64xf32>
    %1174 = arith.addf %1172, %1173 : vector<32x64xf32>
    %1175 = arith.mulf %1174, %22 : vector<32x64xf32>
    %cst_201 = arith.constant dense<0.000000e+00> : vector<64xf32>
    %1176 = vector.multi_reduction <add>, %1175, %cst_201 [0] : vector<32x64xf32> to vector<64xf32>
    %1177 = vector.shape_cast %1176 : vector<64xf32> to vector<1x64xf32>
    %1178 = arith.mulf %1174, %23 : vector<32x64xf32>
    %cst_202 = arith.constant dense<0.000000e+00> : vector<64xf32>
    %1179 = vector.multi_reduction <add>, %1178, %cst_202 [0] : vector<32x64xf32> to vector<64xf32>
    %1180 = vector.shape_cast %1179 : vector<64xf32> to vector<1x64xf32>
    %1181 = arith.addf %1177, %1087 : vector<1x64xf32>
    %1182 = arith.mulf %90, %1156 : vector<1x64xf32>
    %1183 = arith.addf %1181, %1182 : vector<1x64xf32>
    %1184 = arith.addf %1180, %1088 : vector<1x64xf32>
    %1185 = tpu.reciprocal %1184 {approx = true} : vector<1x64xf32> -> vector<1x64xf32>
    %1186 = arith.mulf %1184, %1185 : vector<1x64xf32>
    %cst_203 = arith.constant 2.000000e+00 : f32
    %1187 = vector.broadcast %cst_203 : f32 to vector<1x64xf32>
    %1188 = arith.subf %1187, %1186 : vector<1x64xf32>
    %1189 = arith.mulf %1185, %1188 : vector<1x64xf32>
    %1190 = arith.mulf %1183, %1189 : vector<1x64xf32>
    %1191 = vector.extract_strided_slice %1190 {offsets = [0, 0], sizes = [1, 32], strides = [1, 1]} : vector<1x64xf32> to vector<1x32xf32>
    %1192 = vector.extract_strided_slice %1190 {offsets = [0, 32], sizes = [1, 32], strides = [1, 1]} : vector<1x64xf32> to vector<1x32xf32>
    %1193 = tpu.concatenate %1191, %1192 in 0 : vector<1x32xf32>, vector<1x32xf32> -> vector<2x32xf32>
    %1194 = vector.shape_cast %1193 : vector<2x32xf32> to vector<2x32x1xf32>
    %1195 = vector.shape_cast %1194 : vector<2x32x1xf32> to vector<2x32x1xf32>
    %1196 = vector.broadcast %1195 : vector<2x32x1xf32> to vector<2x32x32xf32>
    %1197 = vector.extract_strided_slice %1196 {offsets = [0, 0, 0], sizes = [1, 32, 32], strides = [1, 1, 1]} : vector<2x32x32xf32> to vector<1x32x32xf32>
    %1198 = vector.shape_cast %1197 : vector<1x32x32xf32> to vector<32x32xf32>
    %1199 = vector.extract_strided_slice %1196 {offsets = [1, 0, 0], sizes = [1, 32, 32], strides = [1, 1, 1]} : vector<2x32x32xf32> to vector<1x32x32xf32>
    %1200 = vector.shape_cast %1199 : vector<1x32x32xf32> to vector<32x32xf32>
    %1201 = tpu.concatenate %1198, %1200 in 1 : vector<32x32xf32>, vector<32x32xf32> -> vector<32x64xf32>
    %1202 = arith.mulf %1201, %16 : vector<32x64xf32>
    %1203 = arith.addf %1202, %20 : vector<32x64xf32>
    %1204 = math.tanh %1203 : vector<32x64xf32>
    %cst_204 = arith.constant 5.000000e-01 : f32
    %1205 = vector.broadcast %cst_204 : f32 to vector<32x64xf32>
    %1206 = arith.mulf %1205, %1204 : vector<32x64xf32>
    %cst_205 = arith.constant 5.000000e-01 : f32
    %1207 = vector.broadcast %cst_205 : f32 to vector<32x64xf32>
    %1208 = arith.addf %1206, %1207 : vector<32x64xf32>
    %1209 = arith.mulf %1208, %22 : vector<32x64xf32>
    %cst_206 = arith.constant dense<0.000000e+00> : vector<64xf32>
    %1210 = vector.multi_reduction <add>, %1209, %cst_206 [0] : vector<32x64xf32> to vector<64xf32>
    %1211 = vector.shape_cast %1210 : vector<64xf32> to vector<1x64xf32>
    %1212 = arith.mulf %1208, %23 : vector<32x64xf32>
    %cst_207 = arith.constant dense<0.000000e+00> : vector<64xf32>
    %1213 = vector.multi_reduction <add>, %1212, %cst_207 [0] : vector<32x64xf32> to vector<64xf32>
    %1214 = vector.shape_cast %1213 : vector<64xf32> to vector<1x64xf32>
    %1215 = arith.addf %1211, %1087 : vector<1x64xf32>
    %1216 = arith.mulf %90, %1190 : vector<1x64xf32>
    %1217 = arith.addf %1215, %1216 : vector<1x64xf32>
    %1218 = arith.addf %1214, %1088 : vector<1x64xf32>
    %1219 = tpu.reciprocal %1218 {approx = true} : vector<1x64xf32> -> vector<1x64xf32>
    %1220 = arith.mulf %1218, %1219 : vector<1x64xf32>
    %cst_208 = arith.constant 2.000000e+00 : f32
    %1221 = vector.broadcast %cst_208 : f32 to vector<1x64xf32>
    %1222 = arith.subf %1221, %1220 : vector<1x64xf32>
    %1223 = arith.mulf %1219, %1222 : vector<1x64xf32>
    %1224 = arith.mulf %1217, %1223 : vector<1x64xf32>
    %1225 = vector.extract_strided_slice %1224 {offsets = [0, 0], sizes = [1, 32], strides = [1, 1]} : vector<1x64xf32> to vector<1x32xf32>
    %1226 = vector.extract_strided_slice %1224 {offsets = [0, 32], sizes = [1, 32], strides = [1, 1]} : vector<1x64xf32> to vector<1x32xf32>
    %1227 = tpu.concatenate %1225, %1226 in 0 : vector<1x32xf32>, vector<1x32xf32> -> vector<2x32xf32>
    %c0_209 = arith.constant 0 : index
    %c0_210 = arith.constant 0 : index
    %1228 = vector.load %arg14[%c0_209, %c0_210] : memref<1x32xf32, #tpu.memory_space<vmem>>, vector<1x32xf32>
    %1229 = vector.broadcast %1228 : vector<1x32xf32> to vector<2x32xf32>
    %1230 = arith.mulf %1227, %1229 : vector<2x32xf32>
    %c0_211 = arith.constant 0 : index
    %c0_212 = arith.constant 0 : index
    %1231 = vector.load %arg15[%c0_211, %c0_212] : memref<1x32xf32, #tpu.memory_space<vmem>>, vector<1x32xf32>
    %1232 = vector.broadcast %1231 : vector<1x32xf32> to vector<2x32xf32>
    %1233 = arith.addf %1230, %1232 : vector<2x32xf32>
    %cst_213 = arith.constant dense<0.000000e+00> : vector<2xf32>
    %1234 = vector.multi_reduction <add>, %1233, %cst_213 [1] : vector<2x32xf32> to vector<2xf32>
    %1235 = vector.shape_cast %1234 : vector<2xf32> to vector<2x1xf32>
    %cst_214 = arith.constant 3.200000e+01 : f32
    %1236 = vector.broadcast %cst_214 : f32 to vector<2x1xf32>
    %1237 = arith.divf %1235, %1236 : vector<2x1xf32>
    %1238 = vector.broadcast %1237 : vector<2x1xf32> to vector<2x32xf32>
    %1239 = arith.subf %1233, %1238 : vector<2x32xf32>
    %1240 = arith.mulf %1239, %1239 : vector<2x32xf32>
    %cst_215 = arith.constant dense<0.000000e+00> : vector<2xf32>
    %1241 = vector.multi_reduction <add>, %1240, %cst_215 [1] : vector<2x32xf32> to vector<2xf32>
    %1242 = vector.shape_cast %1241 : vector<2xf32> to vector<2x1xf32>
    %cst_216 = arith.constant 3.200000e+01 : f32
    %1243 = vector.broadcast %cst_216 : f32 to vector<2x1xf32>
    %1244 = arith.divf %1242, %1243 : vector<2x1xf32>
    %1245 = vector.broadcast %1237 : vector<2x1xf32> to vector<2x32xf32>
    %1246 = arith.subf %1233, %1245 : vector<2x32xf32>
    %cst_217 = arith.constant 9.99999974E-6 : f32
    %1247 = vector.broadcast %cst_217 : f32 to vector<2x1xf32>
    %1248 = arith.addf %1244, %1247 : vector<2x1xf32>
    %1249 = math.rsqrt %1248 : vector<2x1xf32>
    %1250 = vector.broadcast %1249 : vector<2x1xf32> to vector<2x32xf32>
    %1251 = arith.mulf %1246, %1250 : vector<2x32xf32>
    %c0_218 = arith.constant 0 : index
    %c0_219 = arith.constant 0 : index
    %1252 = vector.load %arg16[%c0_218, %c0_219] : memref<1x32xf32, #tpu.memory_space<vmem>>, vector<1x32xf32>
    %1253 = vector.broadcast %1252 : vector<1x32xf32> to vector<2x32xf32>
    %1254 = arith.mulf %1251, %1253 : vector<2x32xf32>
    %c0_220 = arith.constant 0 : index
    %c0_221 = arith.constant 0 : index
    %1255 = vector.load %arg17[%c0_220, %c0_221] : memref<1x32xf32, #tpu.memory_space<vmem>>, vector<1x32xf32>
    %1256 = vector.broadcast %1255 : vector<1x32xf32> to vector<2x32xf32>
    %1257 = arith.addf %1254, %1256 : vector<2x32xf32>
    %c0_222 = arith.constant 0 : index
    %c0_223 = arith.constant 0 : index
    %1258 = vector.load %arg18[%c0_222, %c0_223] : memref<32x15xf32, #tpu.memory_space<vmem>>, vector<32x15xf32>
    %cst_224 = arith.constant dense<0.000000e+00> : vector<2x15xf32>
    %1259 = tpu.matmul %1257, %1258, %cst_224 {dimension_numbers = #tpu.dot_dimension_numbers<[1], [0], [0], [1], [0, 0, 1, 1], [], []>} : vector<2x32xf32>, vector<32x15xf32>, vector<2x15xf32> -> vector<2x15xf32>
    %c0_225 = arith.constant 0 : index
    %c0_226 = arith.constant 0 : index
    %1260 = vector.load %arg19[%c0_225, %c0_226] : memref<1x15xf32, #tpu.memory_space<vmem>>, vector<1x15xf32>
    %1261 = vector.broadcast %1260 : vector<1x15xf32> to vector<2x15xf32>
    %1262 = arith.addf %1259, %1261 : vector<2x15xf32>
    %c0_227 = arith.constant 0 : index
    %c0_228 = arith.constant 0 : index
    %1263 = vector.load %arg20[%c0_227, %c0_228] : memref<2x15xf32, #tpu.memory_space<vmem>>, vector<2x15xf32>
    tpu.vector_store %arg20[%c0_227, %c0_228], %1262 {strides = array<i32>} : memref<2x15xf32, #tpu.memory_space<vmem>>, vector<2x15xf32>,
    return
  }
}

</mosaic_0001>

<bundles_post_ra>
// kernel: tpu_custom_call.1
= control target key start
LH: loop header
LB: loop body
LE: loop exit
PB: predicated region body
PF: predicated region fallthrough
CT: control target
= control target key end

     0   :  { %s7697_s0 = inlined_call_operand.vmem [shape: f32[16,512], index: 0, kind: input, shape index: {}]   ;;  %s7698_s1 = inlined_call_operand.vmem [shape: f32[16,1], index: 1, kind: input, shape index: {}]   ;;  %s7699_s2 = inlined_call_operand.vmem [shape: f32[16,1], index: 2, kind: input, shape index: {}]   ;;  %s7700_s3 = inlined_call_operand.hbm [shape: f32[16,32], index: 3, kind: input, shape index: {}]   ;;  %s7701_s4 = inlined_call_operand.hbm [shape: f32[16,32], index: 4, kind: input, shape index: {}]   ;;  %s7702_s5 = inlined_call_operand.hbm [shape: f32[16,32], index: 5, kind: input, shape index: {}]   ;;  %s7703_s6 = inlined_call_operand.hbm [shape: f32[16,32], index: 6, kind: input, shape index: {}]   ;;  %s7704_s7 = inlined_call_operand.hbm [shape: f32[32,32], index: 7, kind: input, shape index: {}]   ;;  %s7705_s8 = inlined_call_operand.hbm [shape: f32[32,32], index: 8, kind: input, shape index: {}]   ;;  %s7706_s9 = inlined_call_operand.hbm [shape: f32[32,32], index: 9, kind: input, shape index: {}]   ;;  %s7707_s10 = inlined_call_operand.hbm [shape: f32[32,32], index: 10, kind: input, shape index: {}]   ;;  %s7708_s11 = inlined_call_operand.vmem [shape: f32[1,32], index: 11, kind: input, shape index: {}]   ;;  %s7709_s12 = inlined_call_operand.vmem [shape: f32[1,32], index: 12, kind: input, shape index: {}]   ;;  %s7710_s13 = inlined_call_operand.vmem [shape: f32[1,32], index: 13, kind: input, shape index: {}]   ;;  %s7711_s14 = inlined_call_operand.vmem [shape: f32[1,32], index: 14, kind: input, shape index: {}]   ;;  %s7712_s15 = inlined_call_operand.vmem [shape: f32[1,32], index: 15, kind: input, shape index: {}]   ;;  %s7713_s16 = inlined_call_operand.vmem [shape: f32[1,32], index: 16, kind: input, shape index: {}]   ;;  %s7714_s17 = inlined_call_operand.vmem [shape: f32[1,32], index: 17, kind: input, shape index: {}]   ;;  %s7715_s18 = inlined_call_operand.vmem [shape: f32[32,15], index: 18, kind: input, shape index: {}]   ;;  %s7716_s19 = inlined_call_operand.vmem [shape: f32[1,15], index: 19, kind: input, shape index: {}]   ;;  %s7717_s20 = inlined_call_operand.hbm [shape: f32[2,15], index: 20, kind: output, shape index: {}]  }
   0x1   :  { %7721 = sst [smem:[#allocation23_spill]] %s7697_s0 }
   0x2   :  { %7722 = sst [smem:[#allocation24_spill]] %s7698_s1 }
   0x3   :  { %7723 = sst [smem:[#allocation25_spill]] %s7699_s2 }
   0x4   :  { %7724 = sst [smem:[#allocation26_spill]] %s7700_s3 }
   0x5   :  { %7725 = sst [smem:[#allocation27_spill]] %s7701_s4 }
   0x6   :  { %25 = vsyncpa [#allocation3], 0 }
   0x7   :  { %26 = vsyncpa [#allocation6], 0 }
   0x8   :  { %27 = vsyncpa [#allocation9], 0 }
   0x9   :  { %28 = vsyncpa [#allocation12], 0 }
   0xa   :  { %29 = vsyncpa [#allocation15], 0 }
   0xb   :  { %30 = vsyncpa [#allocation4], 0  ;;  %s7726_s23 = sld [smem:[#allocation27_spill]]  ;;  %s5618_s2 = smov [#allocation5]  }
   0xc   :  { %s56_s25 = sshll.u32 %s5618_s2, 4  ;;  %s80_s27 = sshll.u32 %s7703_s6, 4  ;;  %s57_s25 = int_to_ptr.vmem [resolvable:$true] %s56_s25  ;;  %s81_s27 = int_to_ptr.hbm [resolvable:$true] %s80_s27 }
   0xd   :  { %s5619_s28 = smov 128   ;;  %s5620_s4 = smov 8  }
   0xe   :  { %s5621_s29 = smov [#allocation8]   ;;  %s106_s1 = sshll.u32 %s7705_s8, 4  ;;  %s107_s1 = int_to_ptr.hbm [resolvable:$true] %s106_s1 }
   0xf   :  { %s82_s30 = sshll.u32 %s5621_s29, 4  ;;  %s5622_s3 = smov [#allocation11]   ;;  %s83_s30 = int_to_ptr.vmem [resolvable:$true] %s82_s30 }
  0x10   :  { %88 = dma.hbm_to_vmem [thread:$0]  %s81_s27, 256, %s83_s30, [#allocation9], %s5619_s28, %s5619_s28, %s5620_s4  }
  0x11   :  { %s54_s24 = sshll.u32 %s7726_s23, 4  ;;  %s7727_s23 = sld [smem:[#allocation26_spill]]  ;;  %s55_s24 = int_to_ptr.hbm [resolvable:$true] %s54_s24 }
  0x12   :  { %62 = dma.hbm_to_vmem [thread:$0]  %s55_s24, 256, %s57_s25, [#allocation6], %s5619_s28, %s5619_s28, %s5620_s4  }
  0x13   :  { %s108_s26 = sshll.u32 %s5622_s3, 4  ;;  %s5623_s24 = smov [#allocation2]   ;;  %s109_s26 = int_to_ptr.vmem [resolvable:$true] %s108_s26 }
  0x14   :  { %114 = dma.hbm_to_vmem [thread:$0]  %s107_s1, 512, %s109_s26, [#allocation12], %s5619_s28, %s5619_s28, %s5620_s4  }
  0x15   :  { %s43_s8 = sshll.u32 %s5623_s24, 4  ;;  %s67_s0 = sshll.u32 %s7702_s5, 4  ;;  %s44_s8 = int_to_ptr.vmem [resolvable:$true] %s43_s8  ;;  %s68_s0 = int_to_ptr.hbm [resolvable:$true] %s67_s0 }
  0x16   :  { %s93_s21 = sshll.u32 %s7704_s7, 4  ;;  %s5624_s6 = smov [#allocation7]   ;;  %s94_s21 = int_to_ptr.hbm [resolvable:$true] %s93_s21 }
  0x17   :  { %s41_s2 = sshll.u32 %s7727_s23, 4  ;;  %s69_s22 = sshll.u32 %s5624_s6, 4  ;;  %s42_s2 = int_to_ptr.hbm [resolvable:$true] %s41_s2  ;;  %s70_s22 = int_to_ptr.vmem [resolvable:$true] %s69_s22 }
  0x18   :  { %49 = dma.hbm_to_vmem [thread:$0]  %s42_s2, 256, %s44_s8, [#allocation3], %s5619_s28, %s5619_s28, %s5620_s4  }
  0x19   :  { %75 = dma.hbm_to_vmem [thread:$0]  %s68_s0, 256, %s70_s22, [#allocation6], %s5619_s28, %s5619_s28, %s5620_s4  }
  0x1a   :  { %s5625_s1 = smov [#allocation10]   ;;  %s119_s26 = sshll.u32 %s7706_s9, 4  ;;  %s120_s26 = int_to_ptr.hbm [resolvable:$true] %s119_s26 }
  0x1b   :  { %s95_s5 = sshll.u32 %s5625_s1, 4  ;;  %s132_s24 = sshll.u32 %s7707_s10, 4  ;;  %s96_s5 = int_to_ptr.vmem [resolvable:$true] %s95_s5  ;;  %s133_s24 = int_to_ptr.hbm [resolvable:$true] %s132_s24 }
  0x1c   :  { %101 = dma.hbm_to_vmem [thread:$0]  %s94_s21, 512, %s96_s5, [#allocation9], %s5619_s28, %s5619_s28, %s5620_s4  }
  0x1d   :  { %s5626_s8 = smov [#allocation13]   ;;  %s5627_s29 = smov [#allocation14]  }
  0x1e   :  { %s121_s25 = sshll.u32 %s5626_s8, 4  ;;  %s134_s9 = sshll.u32 %s5627_s29, 4  ;;  %s122_s25 = int_to_ptr.vmem [resolvable:$true] %s121_s25  ;;  %s135_s9 = int_to_ptr.vmem [resolvable:$true] %s134_s9 }
  0x1f   :  { %127 = dma.hbm_to_vmem [thread:$0]  %s120_s26, 512, %s122_s25, [#allocation12], %s5619_s28, %s5619_s28, %s5620_s4  }
  0x20   :  { %140 = dma.hbm_to_vmem [thread:$0]  %s133_s24, 512, %s135_s9, [#allocation15], %s5619_s28, %s5619_s28, %s5620_s4  }
  0x21   :  { %5606 = dma.done.wait [#allocation3], 256  }
  0x22   :  { %5607 = vsyncadd [#allocation3], 4294967040 }
  0x23   :  { %5608 = dma.done.wait [#allocation6], 512  }
  0x24   :  { %5609 = vsyncadd [#allocation6], 4294966784 }
  0x25   :  { %5610 = dma.done.wait [#allocation9], 768  }
  0x26   :  { %5611 = vsyncadd [#allocation9], 4294966528 }
  0x27   :  { %5612 = dma.done.wait [#allocation12], 1024  }
  0x28   :  { %5613 = vsyncadd [#allocation12], 4294966272 }
  0x29   :  { %5614 = dma.done.wait [#allocation15], 512  }
  0x2a   :  { %5615 = vsyncadd [#allocation15], 4294966784  ;;  %v665_v0 = vlaneseq  ;;  %v5628_v1 = vmov 0   ;;  %s7728_s4 = sld [smem:[#allocation25_spill]]  ;;  %v5800_v7 = vld [vmem:[#allocation11 + $0x8] sm:$0xff]  ;;  %v344_v11 = vld [vmem:[#allocation7] sm:$0xff] }
  0x2b   :  { %4755 = vset.pattern.permute.xlu0 %v5628_v1  ;;  %4756 = vset.pattern.permute.xlu1 %v5628_v1  ;;  %s7729_s30 = sld [smem:[#allocation24_spill]]  ;;  %v5803_v8 = vmul.f32 0.5, %v5800_v7  ;;  %v345_v9 = vld [vmem:[#allocation7 + $0x8] sm:$0xff]  ;;  %s5629_s22 = smov 32   ;;  %v348_v13 = vand.u32 2147483647, %v344_v11 }
  0x2c   :  { %v5788_v2 = vshrl.u32 %v665_v0, 7  ;;  %v349_v10 = vand.u32 2147483647, %v345_v9  ;;  %v483_v14 = vld [vmem:[%s7708_s11] sm:$0x1]  ;;  %v5813_v16 = vld [vmem:[#allocation11 + $0x10] sm:$0xff] }
  0x2d   :  { %253 = vrot.lane.b32.xlu2 %v5803_v8, %s5629_s22  ;;  %v485_v17 = vand.u32 2147483647, %v483_v14  ;;  %v493_v18 = vld [vmem:[%s7710_s13] sm:$0x1]  ;;  %v350_v20 = vsub.f32 0.0, %v348_v13  ;;  %v5822_v25 = vmul.f32 0.5, %v5813_v16 }
  0x2e   :  { %v5791_v3 = vadd.s32 8, %v5788_v2  ;;  %v351_v15 = vsub.f32 0.0, %v349_v10  ;;  %v495_v21 = vand.u32 2147483647, %v493_v18  ;;  %v191_v30 = vld [vmem:[#allocation11] sm:$0xff]  ;;  %v5630_v40 = vmov 0.0  }
  0x2f   :  { %v486_v24 = vsub.f32 0.0, %v485_v17  ;;  %v352_v26 = vmul.f32 1.442695, %v350_v20  ;;  %v5826_v33 = vmul.f32 0.5, %v191_v30  ;;  %v664_v41 = vperm.slane %v5630_v40, 0  ;;  %v364_v58 = vld [vmem:[#allocation8] sm:$0xff] }
  0x30   :  { %4782 = vset.pattern.permute.xlu2 %v5791_v3  ;;  %v368_v4 = vld [vmem:[%s7728_s4] sm:$0xff]  ;;  %v369_v19 = vld [vmem:[%s7728_s4 + $0x8] sm:$0xff]  ;;  %v354_v23 = vmul.f32 1.442695, %v351_v15  ;;  %v496_v27 = vsub.f32 0.0, %v495_v21  ;;  %v689_v42 = vperm.slane %v5630_v40, 1 }
  0x31   :  { %v366_v5 = vld [vmem:[%s7729_s30] sm:$0xff]  ;;  %407 = vperm.xlu0 %4755, %v368_v4   ;;  %v367_v12 = vld [vmem:[%s7729_s30 + $0x8] sm:$0xff]  ;;  %v487_v28 = vmul.f32 1.442695, %v486_v24  ;;  %v347_v43 = vmax.f32 %v345_v9, 0.0  ;;  %v346_v46 = vmax.f32 %v344_v11, 0.0 }
  0x32   :  { %v370_v6 = vmul.f32 0.5, %v366_v5  ;;  %v371_v22 = vmul.f32 0.5, %v367_v12  ;;  %5018 = vpow2.f32 %v354_v23  ;;  %v497_v29 = vmul.f32 1.442695, %v496_v27  ;;  %v365_v61 = vld [vmem:[#allocation8 + $0x8] sm:$0xff]  ;;  %v200_v12 = vld [vmem:[#allocation13 + $0x8] sm:$0xff] }
  0x33   :  { %5020 = vpow2.f32 %v352_v26  ;;  %v5831_v45 = vpack.i.bf16 %v689_v42, %v664_v41  ;;  %v484_v51 = vmax.f32 %v483_v14, 0.0  ;;  %v494_v52 = vmax.f32 %v493_v18, 0.0  ;;  %v342_v14 = vld [vmem:[#allocation2] sm:$0xff]  ;;  %v340_v17 = vld [vmem:[#allocation5] sm:$0xff]  ;;  %v343_v26 = vld [vmem:[#allocation2 + $0x8] sm:$0xff]  ;;  %s7730_s8 = sld [smem:[#allocation23_spill]] }
  0x34   :  { %374 = vperm.xlu1 %4756, %v370_v6   ;;  %5022 = vpow2.f32 %v487_v28  ;;  %v195_v6 = vld [vmem:[#allocation10] sm:$0xff]  ;;  %v5864_v10 = vadd.s32 16, %v5788_v2  ;;  %v208_v13 = vand.u32 2147483647, %v200_v12  ;;  %v341_v28 = vld [vmem:[#allocation5 + $0x8] sm:$0xff]  ;;  %vm263_vm0 = vcmask 261120  }
  0x35   :  { %255 = vrot.lane.b32.xlu2 %v5822_v25, %s5629_s22  ;;  %5024 = vpow2.f32 %v497_v29  ;;  %v268_v9 = vmul.f32 -0.5, %v195_v6  ;;  %v194_v40 = vld [vmem:[#allocation11 + $0x18] sm:$0xff]  ;;  %vm402_vm1 = vcmask 523264   ;;  %s5632_s23 = smov 96   ;;  %vm786_vm2 = vcmask 1040384   ;;  %s5634_s0 = smov [#allocation16]  }
  0x36   :  { %vm4643_vm3 = vcmask 254976   ;;  %s4721_s27 = sshll.u32 %s5634_s0, 4  ;;  %vm4714_vm8 = vcmask 115712   ;;  %s4722_s27 = int_to_ptr.vmem [resolvable:$true] %s4721_s27 }
  0x37   :  { %v5866_v11 = vmul.f32 %v268_v9, %v191_v30  ;;  %v196_v30 = vld [vmem:[#allocation10 + $0x8] sm:$0xff] }
  0x38   :  { %v5019_v31 = vpop.eup %5018 }
  0x39   :  { %412 = vperm.xlu0 %4755, %v369_v19   ;;  %v5021_v32 = vpop.eup %5020  ;;  %v357_v34 = vadd.f32 1.0, %v5019_v31  ;;  %v212_v19 = vsub.f32 0.0, %v208_v13 }
  0x3a   :  { %v5023_v35 = vpop.eup %5022  ;;  %v356_v36 = vadd.f32 1.0, %v5021_v32  ;;  %v199_v32 = vld [vmem:[#allocation13] sm:$0xff] }
  0x3b   :  { %v5025_v37 = vpop.eup %5024  ;;  %5026 = vlog2.f32 %v357_v34  ;;  %v489_v38 = vadd.f32 1.0, %v5023_v35  ;;  %v217_v24 = vmul.f32 1.442695, %v212_v19  ;;  %v239_v19 = vld [vmem:[#allocation14] sm:$0xff] }
  0x3c   :  { %379 = vperm.xlu1 %4756, %v371_v22   ;;  %5028 = vlog2.f32 %v356_v36  ;;  %v499_v39 = vadd.f32 1.0, %v5025_v37  ;;  %v269_v36 = vmul.f32 -0.5, %v196_v30 }
  0x3d   :  { %5030 = vlog2.f32 %v489_v38  ;;  %v207_v38 = vand.u32 2147483647, %v199_v32 }
  0x3e   :  { %5032 = vlog2.f32 %v499_v39  ;;  %v5889_v41 = vmul.f32 %v269_v36, %v5800_v7 }
  0x3f   :  { %5034 = vpow2.f32 %v217_v24  ;;  %v211_v42 = vsub.f32 0.0, %v207_v38 }
  0x41   :  { %v5027_v44 = vpop.eup %5026  ;;  %4763 = vset.pattern.permute.xlu0 %v5864_v10 }
  0x42   :  { %v5029_v47 = vpop.eup %5028  ;;  %v361_v48 = vmul.f32 0.6931472, %v5027_v44  ;;  %v197_v44 = vld [vmem:[#allocation10 + $0x10] sm:$0xff] }
  0x43   :  { %v5031_v49 = vpop.eup %5030  ;;  %v359_v50 = vmul.f32 0.6931472, %v5029_v47  ;;  %v5894_v47 = vmul.f32 0.5, %v194_v40 }
  0x44   :  { %4757 = vset.pattern.permute.xlu1 %v5791_v3  ;;  %v5033_v53 = vpop.eup %5032  ;;  %v5833_v54 = vadd.f32 %v361_v48, %v347_v43  ;;  %v491_v55 = vmul.f32 0.6931472, %v5031_v49  ;;  %v510_v48 = vld [vmem:[%s7709_s12] sm:$0x1]  ;;  %v270_v49 = vmul.f32 -0.5, %v197_v44  ;;  %s5631_s12 = smov 64  }
  0x45   :  { %251 = vrot.lane.b32.xlu1 %v5826_v33, %s5629_s22  ;;  %v5836_v56 = vadd.f32 %v359_v50, %v346_v46  ;;  %v501_v57 = vmul.f32 0.6931472, %v5033_v53  ;;  %v5035_v39 = vpop.eup %5034  ;;  %v5892_v46 = vadd.s32 24, %v5788_v2  ;;  %v215_v50 = vmul.f32 1.442695, %v211_v42 }
  0x46   :  { %467 = vrot.lane.b32.xlu0 %v5833_v54, %s5629_s22  ;;  %v5840_v59 = vadd.f32 %v491_v55, %v484_v51  ;;  %v5852_v1 = vmul.f32 %v365_v61, %v5833_v54  ;;  %v224_v43 = vadd.f32 1.0, %v5035_v39  ;;  %v5908_v51 = vmul.f32 %v270_v49, %v5813_v16  ;;  %v198_v55 = vld [vmem:[#allocation10 + $0x18] sm:$0xff] }
  0x47   :  { %v502_v60 = vadd.f32 %v501_v57, %v494_v52  ;;  %465 = vrot.lane.b32.xlu2 %v5836_v56, %s5629_s22  ;;  %v5845_v62 = vmul.f32 %v364_v58, %v5836_v56  ;;  %v271_v57 = vmul.f32 -0.5, %v198_v55 }
  0x48   :  { %5036 = vlog2.f32 %v224_v43  ;;  %v5905_v7 = vmul.f32 %v510_v48, %v5840_v59 }
  0x49   :  { %v5847_v63 = vmul.f32 4.0, %v502_v60  ;;  %5038 = vpow2.f32 %v215_v50  ;;  %v204_v60 = vmax.f32 %v200_v12, 0.0  ;;  %v5915_v61 = vmul.f32 %v271_v57, %v194_v40 }
  0x4a   :  { %v513_v52 = vperm.slane %v5905_v7, 0  ;;  %v203_v12 = vmax.f32 %v199_v32, 0.0 }
  0x4b   :  { %v523_v0 = vadd.f32 %v5847_v63, %v5840_v59 }
  0x4d   :  { %4759 = vperm.xlu1 %4757, %v5831_v45   ;;  %v5856_v4 = vadd.f32 1e-08, %v523_v0 }
  0x4e   :  { %v5037_v53 = vpop.eup %5036 }
  0x4f   :  { %v526_v5 = vperm.slane %v5856_v4, 0  ;;  %447 = vrot.lane.b32.xlu2 %v5852_v1, %s5629_s22  ;;  %v5039_v58 = vpop.eup %5038  ;;  %v230_v59 = vmul.f32 0.6931472, %v5037_v53 }
  0x50   :  { %v223_v16 = vadd.f32 1.0, %v5039_v58 }
  0x51   :  { %527 = vrot.lane.b32.xlu0 %v526_v5, %s5629_s22  ;;  %v5917_v0 = vadd.f32 %v230_v59, %v204_v60  ;;  %v240_v60 = vld [vmem:[#allocation14 + $0x8] sm:$0xff] }
  0x52   :  { %5040 = vlog2.f32 %v223_v16 }
  0x53   :  { %v5991_v59 = vmul.f32 %v240_v60, %v5917_v0 }
  0x55   :  { %445 = vrot.lane.b32.xlu1 %v5845_v62, %s5629_s22 }
  0x56   :  { %4781 = vset.pattern.permute.xlu1 %v5788_v2 }
  0x58   :  { %v5041_v6 = vpop.eup %5040 }
  0x59   :  { %v228_v13 = vmul.f32 0.6931472, %v5041_v6 }
  0x5d   :  { %280 = vrot.lane.b32.xlu1 %v5866_v11, %s5629_s22 }
  0x87   :  { %v5919_v5 = vpop.permute.xlu2 %253 }
  0x8f   :  { %v5927_v9 = vpop.permute.xlu2 %255 }
  0xa3   :  { %v408_v15 = vpop.permute.xlu0 %407 }
  0xa4   :  { %v415_v18 = vsub.f32 %v408_v15, %v342_v14  ;;  %v5929_v14 = vadd.f32 %v228_v13, %v203_v12 }
  0xa6   :  { %v375_v20 = vpop.permute.xlu1 %374  ;;  %v417_v21 = vmul.f32 0.5, %v415_v18 }
  0xa7   :  { %v5871_v22 = vmul.f32 %v375_v20, %v340_v17  ;;  %v5944_v20 = vmul.f32 %v239_v19, %v5929_v14  ;;  %v241_v19 = vld [vmem:[#allocation14 + $0x10] sm:$0xff] }
  0xa8   :  { %v5873_v23 = vmul.f32 %v417_v21, %v340_v17  ;;  %v466_v17 = vpop.permute.xlu2 %465 }
  0xa9   :  { %386 = vrot.lane.b32.xlu2 %v5871_v22, %s5629_s22  ;;  %v5937_v18 = vsel %vm263_vm0, %v5836_v56, %v466_v17 }
  0xaa   :  { %423 = vrot.lane.b32.xlu0 %v5873_v23, %s5629_s22 }
  0xab   :  { %v413_v27 = vpop.permute.xlu0 %412 }
  0xac   :  { %v416_v29 = vsub.f32 %v413_v27, %v343_v26 }
  0xae   :  { %v380_v31 = vpop.permute.xlu1 %379  ;;  %v418_v34 = vmul.f32 0.5, %v416_v29  ;;  %v201_v29 = vld [vmem:[#allocation13 + $0x10] sm:$0xff] }
  0xaf   :  { %v5879_v35 = vmul.f32 %v380_v31, %v341_v28 }
  0xb0   :  { %v5881_v37 = vmul.f32 %v418_v34, %v341_v28  ;;  %v448_v28 = vpop.permute.xlu2 %447  ;;  %v202_v34 = vld [vmem:[#allocation13 + $0x18] sm:$0xff] }
  0xb1   :  { %388 = vrot.lane.b32.xlu2 %v5879_v35, %s5629_s22  ;;  %v210_v39 = vand.u32 2147483647, %v202_v34  ;;  %v6003_v17 = vsel %vm263_vm0, %v5852_v1, %v448_v28  ;;  %v242_v1 = vld [vmem:[#allocation14 + $0x18] sm:$0xff] }
  0xb2   :  { %4765 = vperm.xlu0 %4763, %v5831_v45   ;;  %425 = vrot.lane.b32.xlu1 %v5881_v37, %s5629_s22 }
  0xb3   :  { %v214_v40 = vsub.f32 0.0, %v210_v39 }
  0xb7   :  { %v5931_v15 = vpop.permute.xlu1 %251 }
  0xb8   :  { %v468_v21 = vpop.permute.xlu0 %467 }
  0xb9   :  { %282 = vrot.lane.b32.xlu2 %v5889_v41, %s5629_s22  ;;  %v5980_v55 = vsel %vm263_vm0, %v5833_v54, %v468_v21 }
  0xba   :  { %4769 = vset.pattern.permute.xlu0 %v5892_v46  ;;  %257 = vrot.lane.b32.xlu1 %v5894_v47, %s5629_s22 }
  0xc1   :  { %284 = vrot.lane.b32.xlu2 %v5908_v51, %s5629_s22 }
  0xc2   :  { %4771 = vperm.xlu0 %4769, %v5831_v45   ;;  %514 = vrot.lane.b32.xlu1 %v513_v52, %s5629_s22 }
  0xc3   :  { %v528_v56 = vpop.permute.xlu0 %527 }
  0xc4   :  { %v5956_v27 = vsel %vm263_vm0, %v5856_v4, %v528_v56 }
  0xc9   :  { %286 = vrot.lane.b32.xlu2 %v5915_v61, %s5629_s22 }
  0xca   :  { %4775 = vset.pattern.permute.xlu0 %v5788_v2  ;;  %326 = vrot.lane.b32.xlu1 %v5917_v0, %s5629_s22 }
  0xd2   :  { %4777 = vperm.xlu0 %4775, %v5831_v45   ;;  %v5941_v45 = vpop.permute.xlu1 %4759 }
  0xda   :  { %324 = vrot.lane.b32.xlu0 %v5929_v14, %s5629_s22  ;;  %v446_v24 = vpop.permute.xlu1 %445 }
  0xdb   :  { %v5950_v26 = vsel %vm263_vm0, %v5845_v62, %v446_v24  ;;  %v209_v62 = vand.u32 2147483647, %v201_v29 }
  0xdd   :  { %v213_v32 = vsub.f32 0.0, %v209_v62 }
  0xdf   :  { %v219_v38 = vmul.f32 1.442695, %v213_v32 }
  0xe1   :  { %5042 = vpow2.f32 %v219_v38 }
  0xe2   :  { %475 = vrot.lane.b32.xlu0 %v5937_v18, %s5631_s12  ;;  %v281_v44 = vpop.permute.xlu1 %280 }
  0xe7   :  { %v5043_v42 = vpop.eup %5042 }
  0xe8   :  { %v225_v43 = vadd.f32 1.0, %v5043_v42  ;;  %v4762_v42 = vunpack.i.h.bf16 %v5941_v45 }
  0xea   :  { %304 = vrot.lane.b32.xlu0 %v5944_v20, %s5629_s22 }
  0xf2   :  { %455 = vrot.lane.b32.xlu0 %v5950_v26, %s5631_s12 }
  0xfa   :  { %532 = vrot.lane.b32.xlu0 %v5956_v27, %s5631_s12 }
 0x103   :  { %v387_v30 = vpop.permute.xlu2 %386 }
 0x104   :  { %v5962_v31 = vsel %vm263_vm0, %v5871_v22, %v387_v30  ;;  %v221_v22 = vmul.f32 1.442695, %v214_v40 }
 0x105   :  { %396 = vrot.lane.b32.xlu1 %v5962_v31, %s5631_s12 }
 0x106   :  { %5044 = vpow2.f32 %v221_v22 }
 0x107   :  { %5046 = vlog2.f32 %v225_v43  ;;  %v4761_v43 = vunpack.i.l.bf16 %v5941_v45  ;;  %v6046_v45 = vsel %vm263_vm0, %v5822_v25, %v5927_v9 }
 0x109   :  { %v715_v60 = vsel %vm263_vm0, %v4761_v43, %v4762_v42 }
 0x10b   :  { %v389_v36 = vpop.permute.xlu2 %388 }
 0x10c   :  { %v5968_v4 = vsel %vm263_vm0, %v5879_v35, %v389_v36  ;;  %v5045_v35 = vpop.eup %5044 }
 0x10d   :  { %398 = vrot.lane.b32.xlu2 %v5968_v4, %s5631_s12  ;;  %v226_v50 = vadd.f32 1.0, %v5045_v35  ;;  %v5047_v52 = vpop.eup %5046 }
 0x10e   :  { %v232_v58 = vmul.f32 0.6931472, %v5047_v52 }
 0x10f   :  { %5048 = vlog2.f32 %v226_v50 }
 0x113   :  { %v283_v62 = vpop.permute.xlu2 %282 }
 0x115   :  { %v5049_v54 = vpop.eup %5048 }
 0x116   :  { %v234_v6 = vmul.f32 0.6931472, %v5049_v54 }
 0x11c   :  { %v424_v48 = vpop.permute.xlu0 %423 }
 0x11d   :  { %v5974_v49 = vsel %vm263_vm0, %v5873_v23, %v424_v48  ;;  %v205_v23 = vmax.f32 %v201_v29, 0.0  ;;  %v505_v29 = vperm.slane %v5847_v63, 0  ;;  %v6033_v48 = vsel %vm263_vm0, %v5826_v33, %v5931_v15 }
 0x11e   :  { %433 = vrot.lane.b32.xlu1 %v5974_v49, %s5631_s12  ;;  %v6050_v33 = vsel %vm263_vm0, %v5866_v11, %v281_v44  ;;  %v6054_v15 = vsel %vm263_vm0, %v5889_v41, %v283_v62 }
 0x11f   :  { %v5993_v16 = vadd.f32 %v232_v58, %v205_v23  ;;  %v6040_v58 = vsel %vm263_vm0, %v5803_v8, %v5919_v5 }
 0x120   :  { %v719_v5 = vmul.f32 %v715_v60, %v6040_v58 }
 0x121   :  { %v6010_v24 = vmul.f32 %v241_v19, %v5993_v16 }
 0x122   :  { %v723_v9 = vadd.f32 %v719_v5, %v6054_v15 }
 0x124   :  { %v426_v53 = vpop.permute.xlu1 %425  ;;  %v4766_v30 = vpop.permute.xlu0 %4765 }
 0x125   :  { %v5984_v57 = vsel %vm263_vm0, %v5881_v37, %v426_v53  ;;  %v206_v37 = vmax.f32 %v202_v34, 0.0  ;;  %v285_v34 = vpop.permute.xlu2 %284  ;;  %v4768_v39 = vunpack.i.h.bf16 %v4766_v30  ;;  %v4767_v40 = vunpack.i.l.bf16 %v4766_v30 }
 0x126   :  { %477 = vrot.lane.b32.xlu1 %v5980_v55, %s5631_s12  ;;  %435 = vrot.lane.b32.xlu2 %v5984_v57, %s5631_s12 }
 0x127   :  { %v5999_v13 = vadd.f32 %v234_v6, %v206_v37  ;;  %v716_v52 = vsel %vm263_vm0, %v4767_v40, %v4768_v39  ;;  %v6061_v37 = vsel %vm263_vm0, %v5908_v51, %v285_v34 }
 0x128   :  { %v720_v54 = vmul.f32 %v716_v52, %v6046_v45 }
 0x129   :  { %v6021_v28 = vmul.f32 %v242_v1, %v5999_v13  ;;  %v543_v1 = vld [vmem:[%s7730_s8 + $0x38] sm:$0xff] }
 0x12a   :  { %v724_v44 = vadd.f32 %v720_v54, %v6061_v37 }
 0x12c   :  { %v258_v12 = vpop.permute.xlu1 %257 }
 0x12d   :  { %v287_v35 = vpop.permute.xlu2 %286  ;;  %v6065_v25 = vsel %vm263_vm0, %v5894_v47, %v258_v12  ;;  %v541_v12 = vld [vmem:[%s7730_s8 + $0x28] sm:$0xff] }
 0x12e   :  { %306 = vrot.lane.b32.xlu1 %v5991_v59, %s5629_s22  ;;  %328 = vrot.lane.b32.xlu2 %v5993_v16, %s5629_s22  ;;  %v6073_v19 = vsel %vm263_vm0, %v5915_v61, %v287_v35 }
 0x134   :  { %v515_v21 = vpop.permute.xlu1 %514 }
 0x135   :  { %v6014_v56 = vsel %vm263_vm0, %v5905_v7, %v515_v21  ;;  %v4772_v7 = vpop.permute.xlu0 %4771  ;;  %v542_v21 = vld [vmem:[%s7730_s8 + $0x30] sm:$0xff] }
 0x136   :  { %457 = vrot.lane.b32.xlu1 %v6003_v17, %s5631_s12  ;;  %330 = vrot.lane.b32.xlu2 %v5999_v13, %s5629_s22  ;;  %v4774_v53 = vunpack.i.h.bf16 %v4772_v7  ;;  %v4773_v23 = vunpack.i.l.bf16 %v4772_v7 }
 0x138   :  { %v717_v11 = vsel %vm263_vm0, %v4773_v23, %v4774_v53 }
 0x139   :  { %v721_v6 = vmul.f32 %v717_v11, %v6065_v25 }
 0x13b   :  { %v725_v47 = vadd.f32 %v721_v6, %v6073_v19  ;;  %v536_v6 = vld [vmem:[%s7730_s8] sm:$0xff] }
 0x13c   :  { %v327_v30 = vpop.permute.xlu1 %326 }
 0x13d   :  { %v6102_v60 = vsel %vm263_vm0, %v5917_v0, %v327_v30 }
 0x13e   :  { %308 = vrot.lane.b32.xlu2 %v6010_v24, %s5629_s22  ;;  %519 = vrot.lane.b32.xlu1 %v6014_v56, %s5631_s12 }
 0x144   :  { %v4778_v32 = vpop.permute.xlu0 %4777 }
 0x145   :  { %v4780_v36 = vunpack.i.h.bf16 %v4778_v32  ;;  %v4779_v38 = vunpack.i.l.bf16 %v4778_v32 }
 0x146   :  { %310 = vrot.lane.b32.xlu2 %v6021_v28, %s5629_s22 }
 0x147   :  { %v714_v22 = vsel %vm263_vm0, %v4779_v38, %v4780_v36 }
 0x148   :  { %v718_v50 = vmul.f32 %v714_v22, %v6033_v48 }
 0x14a   :  { %v722_v8 = vadd.f32 %v718_v50, %v6050_v33 }
 0x14c   :  { %5050 = vtanh.f32 %v722_v8  ;;  %v325_v51 = vpop.permute.xlu0 %324 }
 0x14d   :  { %5052 = vtanh.f32 %v723_v9  ;;  %v6095_v23 = vsel %vm263_vm0, %v5929_v14, %v325_v51 }
 0x14e   :  { %506 = vrot.lane.b32.xlu2 %v505_v29, %s5629_s22  ;;  %5054 = vtanh.f32 %v724_v44 }
 0x14f   :  { %5056 = vtanh.f32 %v725_v47 }
 0x152   :  { %v5051_v29 = vpop.eup %5050 }
 0x153   :  { %v5053_v38 = vpop.eup %5052  ;;  %v730_v39 = vmul.f32 0.5, %v5051_v29 }
 0x154   :  { %v5055_v43 = vpop.eup %5054  ;;  %v731_v35 = vmul.f32 0.5, %v5053_v38  ;;  %v6089_v50 = vpop.permute.xlu0 %475 }
 0x155   :  { %v6091_v52 = vadd.f32 0.5, %v730_v39  ;;  %v5057_v53 = vpop.eup %5056 }
 0x156   :  { %v6104_v5 = vadd.f32 0.5, %v731_v35  ;;  %v733_v0 = vmul.f32 0.5, %v5057_v53 }
 0x157   :  { %v755_v14 = vmul.f32 %v6091_v52, %v6095_v23 }
 0x158   :  { %v756_v44 = vmul.f32 %v6104_v5, %v6102_v60  ;;  %v6134_v29 = vadd.f32 0.5, %v733_v0 }
 0x15c   :  { %v305_v30 = vpop.permute.xlu0 %304 }
 0x167   :  { %v399_v41 = vpop.permute.xlu2 %398 }
 0x168   :  { %v404_v61 = vsel %vm402_vm1, %v5968_v4, %v399_v41  ;;  %v732_v4 = vmul.f32 0.5, %v5055_v43 }
 0x169   :  { %v549_v7 = vmul.f32 %v541_v12, %v404_v61  ;;  %v550_v62 = vmul.f32 %v542_v21, %v404_v61  ;;  %v551_v32 = vmul.f32 %v543_v1, %v404_v61  ;;  %v537_v12 = vld [vmem:[%s7730_s8 + $0x8] sm:$0xff]  ;;  %v538_v21 = vld [vmem:[%s7730_s8 + $0x10] sm:$0xff]  ;;  %v759_v1 = vsel %vm402_vm1, %v755_v14, 0.0 }
 0x16a   :  { %v6110_v9 = vadd.f32 0.5, %v732_v4 }
 0x177   :  { %v397_v54 = vpop.permute.xlu1 %396 }
 0x180   :  { %v436_v34 = vpop.permute.xlu2 %435 }
 0x181   :  { %v440_v36 = vsel %vm402_vm1, %v5984_v57, %v436_v34  ;;  %v540_v57 = vld [vmem:[%s7730_s8 + $0x20] sm:$0xff] }
 0x182   :  { %v557_v40 = vadd.f32 %v549_v7, %v440_v36  ;;  %v558_v22 = vadd.f32 %v550_v62, %v440_v36  ;;  %v559_v42 = vadd.f32 %v551_v32, %v440_v36  ;;  %v548_v41 = vmul.f32 %v540_v57, %v404_v61  ;;  %v539_v61 = vld [vmem:[%s7730_s8 + $0x18] sm:$0xff] }
 0x184   :  { %5058 = vtanh.f32 %v557_v40  ;;  %v556_v51 = vadd.f32 %v548_v41, %v440_v36 }
 0x185   :  { %5060 = vtanh.f32 %v558_v22 }
 0x186   :  { %5062 = vtanh.f32 %v559_v42 }
 0x187   :  { %5064 = vtanh.f32 %v556_v51 }
 0x188   :  { %v329_v8 = vpop.permute.xlu2 %328 }
 0x189   :  { %v6108_v11 = vsel %vm263_vm0, %v5993_v16, %v329_v8  ;;  %v403_v16 = vsel %vm402_vm1, %v5962_v31, %v397_v54  ;;  %v760_v31 = vsel %vm402_vm1, %v756_v44, 0.0 }
 0x18a   :  { %v757_v47 = vmul.f32 %v6110_v9, %v6108_v11  ;;  %v544_v7 = vmul.f32 %v536_v6, %v403_v16  ;;  %v5059_v62 = vpop.eup %5058  ;;  %v545_v32 = vmul.f32 %v537_v12, %v403_v16  ;;  %v546_v34 = vmul.f32 %v538_v21, %v403_v16 }
 0x18b   :  { %v5061_v40 = vpop.eup %5060  ;;  %v761_v22 = vadd.f32 %v760_v31, %v759_v1  ;;  %v547_v42 = vmul.f32 %v539_v61, %v403_v16  ;;  %v573_v44 = vmul.f32 0.5, %v5059_v62  ;;  %v456_v31 = vpop.permute.xlu0 %455 }
 0x18c   :  { %v762_v38 = vsel %vm402_vm1, %v757_v47, 0.0  ;;  %v5063_v4 = vpop.eup %5062  ;;  %v574_v0 = vmul.f32 0.5, %v5061_v40 }
 0x18d   :  { %v763_v41 = vadd.f32 %v762_v38, %v761_v22  ;;  %v575_v16 = vmul.f32 0.5, %v5063_v4  ;;  %v5065_v51 = vpop.eup %5064  ;;  %v6150_v21 = vadd.f32 0.5, %v573_v44 }
 0x18e   :  { %v6152_v1 = vadd.f32 0.5, %v574_v0  ;;  %v461_v0 = vsel %vm402_vm1, %v5950_v26, %v456_v31 }
 0x18f   :  { %v6154_v62 = vadd.f32 0.5, %v575_v16 }
 0x190   :  { %v331_v36 = vpop.permute.xlu2 %330  ;;  %v434_v39 = vpop.permute.xlu1 %433 }
 0x191   :  { %v6139_v43 = vsel %vm263_vm0, %v5999_v13, %v331_v36  ;;  %v439_v35 = vsel %vm402_vm1, %v5974_v49, %v434_v39  ;;  %v6148_v49 = vsel %vm263_vm0, %v5944_v20, %v305_v30 }
 0x192   :  { %v758_v53 = vmul.f32 %v6134_v29, %v6139_v43  ;;  %v552_v57 = vadd.f32 %v544_v7, %v439_v35  ;;  %v553_v54 = vadd.f32 %v545_v32, %v439_v35  ;;  %v554_v8 = vadd.f32 %v546_v34, %v439_v35 }
 0x193   :  { %v555_v14 = vadd.f32 %v547_v42, %v439_v35  ;;  %v572_v7 = vmul.f32 0.5, %v5065_v51  ;;  %v738_v20 = vmul.f32 %v6091_v52, %v6148_v49  ;;  %v481_v35 = vsel %vm402_vm1, %v5937_v18, %v6089_v50 }
 0x194   :  { %5066 = vtanh.f32 %v552_v57  ;;  %v764_v6 = vsel %vm402_vm1, %v758_v53, 0.0 }
 0x195   :  { %5068 = vtanh.f32 %v553_v54  ;;  %v765_v13 = vadd.f32 %v764_v6, %v763_v41  ;;  %v580_v54 = vadd.f32 0.5, %v572_v7 }
 0x196   :  { %5070 = vtanh.f32 %v554_v8  ;;  %v742_v8 = vsel %vm402_vm1, %v738_v20, 0.0 }
 0x197   :  { %5072 = vtanh.f32 %v555_v14  ;;  %v766_v47 = vrot.slane %v765_v13, 4 }
 0x198   :  { %v309_v12 = vpop.permute.xlu2 %308  ;;  %v478_v61 = vpop.permute.xlu1 %477 }
 0x199   :  { %v482_v32 = vsel %vm402_vm1, %v5980_v55, %v478_v61  ;;  %v767_v38 = vadd.f32 %v766_v47, %v765_v13  ;;  %v6168_v52 = vsel %vm263_vm0, %v6010_v24, %v309_v12 }
 0x19a   :  { %v5067_v34 = vpop.eup %5066  ;;  %v629_v30 = vmul.f32 %v6150_v21, %v482_v32  ;;  %v630_v36 = vmul.f32 %v6152_v1, %v482_v32  ;;  %v631_v22 = vmul.f32 %v6154_v62, %v482_v32  ;;  %v628_v18 = vmul.f32 %v580_v54, %v482_v32 }
 0x19b   :  { %v5069_v39 = vpop.eup %5068  ;;  %v568_v40 = vmul.f32 0.5, %v5067_v34  ;;  %v768_v44 = vrot.slane %v767_v38, 2  ;;  %v740_v13 = vmul.f32 %v6110_v9, %v6168_v52 }
 0x19c   :  { %v5071_v42 = vpop.eup %5070  ;;  %v569_v4 = vmul.f32 0.5, %v5069_v39  ;;  %v533_v39 = vpop.permute.xlu0 %532 }
 0x19d   :  { %v5073_v55 = vpop.eup %5072  ;;  %v570_v53 = vmul.f32 0.5, %v5071_v42  ;;  %v576_v57 = vadd.f32 0.5, %v568_v40  ;;  %v769_v9 = vadd.f32 %v768_v44, %v767_v38 }
 0x19e   :  { %v571_v14 = vmul.f32 0.5, %v5073_v55  ;;  %v577_v41 = vadd.f32 0.5, %v569_v4 }
 0x19f   :  { %v578_v6 = vadd.f32 0.5, %v570_v53  ;;  %v624_v16 = vmul.f32 %v576_v57, %v481_v35 }
 0x1a0   :  { %v579_v50 = vadd.f32 0.5, %v571_v14  ;;  %v625_v51 = vmul.f32 %v577_v41, %v481_v35  ;;  %v311_v47 = vpop.permute.xlu2 %310  ;;  %v307_v24 = vpop.permute.xlu1 %306  ;;  %v585_v12 = vmul.f32 %v577_v41, %v461_v0 }
 0x1a1   :  { %v626_v61 = vmul.f32 %v578_v6, %v481_v35  ;;  %v632_v7 = vadd.f32 %v628_v18, %v624_v16  ;;  %v6177_v34 = vsel %vm263_vm0, %v6021_v28, %v311_v47  ;;  %v6181_v26 = vsel %vm263_vm0, %v5991_v59, %v307_v24 }
 0x1a2   :  { %v627_v31 = vmul.f32 %v579_v50, %v481_v35  ;;  %v639_v32 = vadd.f32 %v629_v30, %v625_v51  ;;  %v739_v20 = vmul.f32 %v6104_v5, %v6181_v26  ;;  %v586_v4 = vmul.f32 %v578_v6, %v461_v0 }
 0x1a3   :  { %v633_v40 = vrot.slane %v632_v7, 4  ;;  %v646_v42 = vadd.f32 %v630_v36, %v626_v61  ;;  %v587_v55 = vmul.f32 %v579_v50, %v461_v0  ;;  %v741_v28 = vmul.f32 %v6134_v29, %v6177_v34 }
 0x1a4   :  { %v640_v53 = vrot.slane %v639_v32, 4  ;;  %v653_v14 = vadd.f32 %v631_v22, %v627_v31  ;;  %v743_v41 = vsel %vm402_vm1, %v739_v20, 0.0  ;;  %v535_v30 = vsel %vm402_vm1, %v5956_v27, %v533_v39 }
 0x1a5   :  { %v634_v59 = vadd.f32 %v633_v40, %v632_v7  ;;  %v647_v16 = vrot.slane %v646_v42, 4  ;;  %v744_v35 = vadd.f32 %v743_v41, %v742_v8  ;;  %v745_v36 = vsel %vm402_vm1, %v740_v13, 0.0 }
 0x1a6   :  { %v641_v5 = vadd.f32 %v640_v53, %v639_v32  ;;  %v654_v38 = vrot.slane %v653_v14, 4  ;;  %v584_v6 = vmul.f32 %v576_v57, %v461_v0  ;;  %v747_v51 = vsel %vm402_vm1, %v741_v28, 0.0 }
 0x1a7   :  { %v635_v44 = vrot.slane %v634_v59, 2  ;;  %v648_v18 = vadd.f32 %v647_v16, %v646_v42  ;;  %v770_v47 = vrot.slane %v769_v9, 1  ;;  %v746_v7 = vadd.f32 %v745_v36, %v744_v35 }
 0x1a8   :  { %v642_v50 = vrot.slane %v641_v5, 2  ;;  %v655_v22 = vadd.f32 %v654_v38, %v653_v14  ;;  %v458_v29 = vpop.permute.xlu1 %457 }
 0x1a9   :  { %v636_v24 = vadd.f32 %v635_v44, %v634_v59  ;;  %v649_v61 = vrot.slane %v648_v18, 2  ;;  %v462_v8 = vsel %vm402_vm1, %v6003_v17, %v458_v29 }
 0x1aa   :  { %v643_v27 = vadd.f32 %v642_v50, %v641_v5  ;;  %v656_v31 = vrot.slane %v655_v22, 2  ;;  %v588_v32 = vmul.f32 %v580_v54, %v462_v8  ;;  %v589_v20 = vmul.f32 %v6150_v21, %v462_v8 }
 0x1ab   :  { %v637_v39 = vrot.slane %v636_v24, 1  ;;  %v650_v13 = vadd.f32 %v649_v61, %v648_v18  ;;  %v590_v57 = vmul.f32 %v6152_v1, %v462_v8  ;;  %v591_v0 = vmul.f32 %v6154_v62, %v462_v8 }
 0x1ac   :  { %v644_v40 = vrot.slane %v643_v27, 1  ;;  %v657_v42 = vadd.f32 %v656_v31, %v655_v22  ;;  %v592_v53 = vadd.f32 %v588_v32, %v584_v6  ;;  %v599_v14 = vadd.f32 %v589_v20, %v585_v12 }
 0x1ad   :  { %v638_v28 = vadd.f32 %v637_v39, %v636_v24  ;;  %v651_v41 = vrot.slane %v650_v13, 1  ;;  %v606_v59 = vadd.f32 %v590_v57, %v586_v4  ;;  %v613_v17 = vadd.f32 %v591_v0, %v587_v55 }
 0x1ae   :  { %v645_v16 = vadd.f32 %v644_v40, %v643_v27  ;;  %v658_v35 = vrot.slane %v657_v42, 1  ;;  %v593_v5 = vrot.slane %v592_v53, 4  ;;  %v600_v54 = vrot.slane %v599_v14, 4 }
 0x1af   :  { %v652_v38 = vadd.f32 %v651_v41, %v650_v13  ;;  %v6197_v21 = vadd.f32 %v638_v28, %v535_v30  ;;  %v607_v44 = vrot.slane %v606_v59, 4  ;;  %v614_v18 = vrot.slane %v613_v17, 4  ;;  %v507_v28 = vpop.permute.xlu2 %506 }
 0x1b0   :  { %v659_v1 = vadd.f32 %v658_v35, %v657_v42  ;;  %v6199_v36 = vadd.f32 %v645_v16, %v535_v30  ;;  %v594_v62 = vadd.f32 %v593_v5, %v592_v53  ;;  %v601_v50 = vadd.f32 %v600_v54, %v599_v14  ;;  %v520_v42 = vpop.permute.xlu1 %519 }
 0x1b1   :  { %v6201_v6 = vadd.f32 %v652_v38, %v535_v30  ;;  %v608_v12 = vadd.f32 %v607_v44, %v606_v59  ;;  %v615_v22 = vadd.f32 %v614_v18, %v613_v17  ;;  %v771_v4 = vadd.f32 %v770_v47, %v769_v9 }
 0x1b2   :  { %v6203_v55 = vadd.f32 %v659_v1, %v535_v30  ;;  %v595_v29 = vrot.slane %v594_v62, 2  ;;  %v602_v24 = vrot.slane %v601_v50, 2  ;;  %v748_v61 = vadd.f32 %v747_v51, %v746_v7 }
 0x1b3   :  { %v609_v8 = vrot.slane %v608_v12, 2  ;;  %v616_v27 = vrot.slane %v615_v22, 2  ;;  %v775_v31 = vadd.f32 %v771_v4, %v6197_v21  ;;  %v522_v59 = vsel %vm402_vm1, %v6014_v56, %v520_v42 }
 0x1b4   :  { %v596_v32 = vadd.f32 %v595_v29, %v594_v62  ;;  %v603_v20 = vadd.f32 %v602_v24, %v601_v50  ;;  %v749_v39 = vrot.slane %v748_v61, 4  ;;  %v6216_v38 = vsel %vm263_vm0, %v5847_v63, %v507_v28 }
 0x1b5   :  { %v610_v13 = vadd.f32 %v609_v8, %v608_v12  ;;  %v617_v57 = vadd.f32 %v616_v27, %v615_v22  ;;  %5074 = vrcp.f32 %v775_v31  ;;  %v773_v50 = vmul.f32 0.0, %v6216_v38 }
 0x1b6   :  { %v597_v0 = vrot.slane %v596_v32, 1  ;;  %v604_v40 = vrot.slane %v603_v20, 1  ;;  %v750_v53 = vadd.f32 %v749_v39, %v748_v61 }
 0x1b7   :  { %v611_v9 = vrot.slane %v610_v13, 1  ;;  %v618_v30 = vrot.slane %v617_v57, 1 }
 0x1b8   :  { %v598_v47 = vadd.f32 %v597_v0, %v596_v32  ;;  %v605_v14 = vadd.f32 %v604_v40, %v603_v20  ;;  %v751_v51 = vrot.slane %v750_v53, 2 }
 0x1b9   :  { %v612_v7 = vadd.f32 %v611_v9, %v610_v13  ;;  %v619_v41 = vadd.f32 %v618_v30, %v617_v57 }
 0x1ba   :  { %v6208_v17 = vadd.f32 %v605_v14, %v522_v59  ;;  %v752_v16 = vadd.f32 %v751_v51, %v750_v53  ;;  %v6218_v44 = vadd.f32 %v598_v47, %v522_v59 }
 0x1bb   :  { %v5075_v35 = vpop.eup %5074  ;;  %v6210_v5 = vadd.f32 %v612_v7, %v522_v59  ;;  %v6212_v54 = vadd.f32 %v619_v41, %v522_v59 }
 0x1bc   :  { %v753_v18 = vrot.slane %v752_v16, 1  ;;  %v777_v1 = vmul.f32 %v5075_v35, %v775_v31 }
 0x1be   :  { %v754_v62 = vadd.f32 %v753_v18, %v752_v16  ;;  %v778_v56 = vsub.f32 2.0, %v777_v1 }
 0x1c0   :  { %v772_v12 = vadd.f32 %v754_v62, %v6218_v44  ;;  %v779_v22 = vmul.f32 %v5075_v35, %v778_v56 }
 0x1c2   :  { %v774_v4 = vadd.f32 %v773_v50, %v772_v12 }
 0x1c4   :  { %v6222_v29 = vmul.f32 %v779_v22, %v774_v4 }
 0x1c6   :  { %v782_v24 = vrot.slane %v6222_v29, 7 }
 0x1c8   :  { %783 = vrot.lane.b32.xlu0 %v782_v24, %s5632_s23 }
 0x23a   :  { %v784_v63 = vpop.permute.xlu0 %783 }
 0x23b   :  { %v787_v61 = vsel %vm786_vm2, %v6222_v29, %v784_v63 }
 0x23c   :  { %v788_v8 = vperm.slane %v787_v61, 0  ;;  %v813_v27 = vperm.slane %v787_v61, 1 }
 0x23e   :  { %818 = vperm.xlu0 %4775, %v813_v27   ;;  %799 = vperm.xlu2 %4782, %v788_v8  }
 0x23f   :  { %793 = vperm.xlu1 %4781, %v788_v8  }
 0x246   :  { %4787 = vset.pattern.permute.xlu0 %v5892_v46  ;;  %4784 = vset.pattern.permute.xlu2 %v5864_v10 }
 0x247   :  { %4783 = vset.pattern.permute.xlu1 %v5791_v3 }
 0x24e   :  { %836 = vperm.xlu0 %4787, %v813_v27   ;;  %805 = vperm.xlu2 %4784, %v788_v8  }
 0x24f   :  { %824 = vperm.xlu1 %4783, %v813_v27  }
 0x256   :  { %4786 = vset.pattern.permute.xlu2 %v5892_v46  ;;  %4790 = vset.pattern.permute.xlu0 %v5791_v3 }
 0x257   :  { %4785 = vset.pattern.permute.xlu1 %v5864_v10 }
 0x25e   :  { %811 = vperm.xlu2 %4786, %v788_v8  }
 0x25f   :  { %830 = vperm.xlu1 %4785, %v813_v27  }
 0x266   :  { %4788 = vset.pattern.permute.xlu2 %v5788_v2 }
 0x267   :  { %4789 = vset.pattern.permute.xlu1 %v5791_v3 }
 0x298   :  { %v800_v31 = vpop.permute.xlu2 %799 }
 0x2a8   :  { %v806_v39 = vpop.permute.xlu2 %805 }
 0x2b0   :  { %v819_v20 = vpop.permute.xlu0 %818 }
 0x2b1   :  { %v794_v32 = vpop.permute.xlu1 %793 }
 0x2b2   :  { %v838_v13 = vsel %vm263_vm0, %v794_v32, %v819_v20 }
 0x2b3   :  { %v842_v53 = vmul.f32 %v838_v13, %v6033_v48 }
 0x2b5   :  { %v846_v14 = vadd.f32 %v842_v53, %v6050_v33 }
 0x2b8   :  { %v812_v9 = vpop.permute.xlu2 %811 }
 0x2c0   :  { %v837_v40 = vpop.permute.xlu0 %836 }
 0x2c1   :  { %v825_v57 = vpop.permute.xlu1 %824  ;;  %v841_v30 = vsel %vm263_vm0, %v812_v9, %v837_v40 }
 0x2c2   :  { %v839_v0 = vsel %vm263_vm0, %v800_v31, %v825_v57  ;;  %v845_v28 = vmul.f32 %v841_v30, %v6065_v25 }
 0x2c3   :  { %v843_v42 = vmul.f32 %v839_v0, %v6040_v58 }
 0x2c4   :  { %v849_v51 = vadd.f32 %v845_v28, %v6073_v19 }
 0x2c5   :  { %v847_v47 = vadd.f32 %v843_v42, %v6054_v15 }
 0x2c7   :  { %5076 = vtanh.f32 %v847_v47 }
 0x2c8   :  { %5078 = vtanh.f32 %v846_v14 }
 0x2c9   :  { %5080 = vtanh.f32 %v849_v51 }
 0x2cd   :  { %v5077_v7 = vpop.eup %5076 }
 0x2ce   :  { %v5079_v59 = vpop.eup %5078  ;;  %v855_v18 = vmul.f32 0.5, %v5077_v7 }
 0x2cf   :  { %v854_v1 = vmul.f32 0.5, %v5079_v59  ;;  %v5081_v50 = vpop.eup %5080 }
 0x2d0   :  { %v859_v56 = vadd.f32 0.5, %v855_v18  ;;  %v857_v22 = vmul.f32 0.5, %v5081_v50 }
 0x2d1   :  { %v831_v41 = vpop.permute.xlu1 %830  ;;  %v858_v12 = vadd.f32 0.5, %v854_v1 }
 0x2d2   :  { %v840_v16 = vsel %vm263_vm0, %v806_v39, %v831_v41  ;;  %v863_v4 = vmul.f32 %v859_v56, %v6181_v26  ;;  %v880_v24 = vmul.f32 %v859_v56, %v6102_v60  ;;  %v861_v27 = vadd.f32 0.5, %v857_v22 }
 0x2d3   :  { %v844_v35 = vmul.f32 %v840_v16, %v6046_v45  ;;  %v862_v61 = vmul.f32 %v858_v12, %v6148_v49  ;;  %v879_v8 = vmul.f32 %v858_v12, %v6095_v23 }
 0x2d4   :  { %v867_v32 = vsel %vm402_vm1, %v863_v4, 0.0  ;;  %v884_v20 = vsel %vm402_vm1, %v880_v24, 0.0  ;;  %v865_v0 = vmul.f32 %v861_v27, %v6177_v34  ;;  %v882_v40 = vmul.f32 %v861_v27, %v6139_v43 }
 0x2d5   :  { %v848_v62 = vadd.f32 %v844_v35, %v6061_v37  ;;  %v866_v13 = vsel %vm402_vm1, %v862_v61, 0.0  ;;  %v883_v57 = vsel %vm402_vm1, %v879_v8, 0.0 }
 0x2d6   :  { %v868_v9 = vadd.f32 %v867_v32, %v866_v13  ;;  %v885_v30 = vadd.f32 %v884_v20, %v883_v57  ;;  %v871_v7 = vsel %vm402_vm1, %v865_v0, 0.0  ;;  %v888_v41 = vsel %vm402_vm1, %v882_v40, 0.0 }
 0x2d7   :  { %5082 = vtanh.f32 %v848_v62  ;;  %v897_v20 = vmul.f32 %v6222_v29, %v6216_v38 }
 0x2dd   :  { %v5083_v63 = vpop.eup %5082 }
 0x2de   :  { %v856_v31 = vmul.f32 0.5, %v5083_v63 }
 0x2e0   :  { %v860_v39 = vadd.f32 0.5, %v856_v31 }
 0x2e2   :  { %v864_v42 = vmul.f32 %v860_v39, %v6168_v52  ;;  %v881_v53 = vmul.f32 %v860_v39, %v6108_v11 }
 0x2e4   :  { %v869_v47 = vsel %vm402_vm1, %v864_v42, 0.0  ;;  %v886_v14 = vsel %vm402_vm1, %v881_v53, 0.0 }
 0x2e5   :  { %v870_v28 = vadd.f32 %v869_v47, %v868_v9  ;;  %v887_v51 = vadd.f32 %v886_v14, %v885_v30 }
 0x2e7   :  { %v872_v59 = vadd.f32 %v871_v7, %v870_v28  ;;  %v889_v16 = vadd.f32 %v888_v41, %v887_v51 }
 0x2e9   :  { %v873_v35 = vrot.slane %v872_v59, 4  ;;  %v890_v18 = vrot.slane %v889_v16, 4 }
 0x2eb   :  { %v874_v1 = vadd.f32 %v873_v35, %v872_v59  ;;  %v891_v62 = vadd.f32 %v890_v18, %v889_v16 }
 0x2ed   :  { %v892_v50 = vrot.slane %v891_v62, 2  ;;  %v875_v56 = vrot.slane %v874_v1, 2 }
 0x2ef   :  { %v893_v12 = vadd.f32 %v892_v50, %v891_v62  ;;  %v876_v4 = vadd.f32 %v875_v56, %v874_v1 }
 0x2f1   :  { %v894_v22 = vrot.slane %v893_v12, 1  ;;  %v877_v61 = vrot.slane %v876_v4, 1 }
 0x2f3   :  { %v895_v24 = vadd.f32 %v894_v22, %v893_v12  ;;  %v878_v8 = vadd.f32 %v877_v61, %v876_v4 }
 0x2f5   :  { %v899_v63 = vadd.f32 %v895_v24, %v6197_v21  ;;  %v896_v31 = vadd.f32 %v878_v8, %v6218_v44 }
 0x2f7   :  { %5084 = vrcp.f32 %v899_v63  ;;  %v898_v13 = vadd.f32 %v897_v20, %v896_v31 }
 0x2fd   :  { %v5085_v27 = vpop.eup %5084 }
 0x2fe   :  { %v901_v32 = vmul.f32 %v5085_v27, %v899_v63 }
 0x300   :  { %v902_v39 = vsub.f32 2.0, %v901_v32 }
 0x302   :  { %v903_v57 = vmul.f32 %v5085_v27, %v902_v39 }
 0x304   :  { %v6268_v0 = vmul.f32 %v903_v57, %v898_v13 }
 0x306   :  { %v906_v40 = vrot.slane %v6268_v0, 7 }
 0x308   :  { %907 = vrot.lane.b32.xlu1 %v906_v40, %s5632_s23 }
 0x37a   :  { %v908_v42 = vpop.permute.xlu1 %907 }
 0x37b   :  { %v910_v53 = vsel %vm786_vm2, %v6268_v0, %v908_v42 }
 0x37c   :  { %v911_v9 = vperm.slane %v910_v53, 0  ;;  %v936_v30 = vperm.slane %v910_v53, 1 }
 0x37e   :  { %947 = vperm.xlu0 %4790, %v936_v30   ;;  %922 = vperm.xlu1 %4789, %v911_v9  }
 0x37f   :  { %916 = vperm.xlu2 %4788, %v911_v9  }
 0x386   :  { %4791 = vset.pattern.permute.xlu1 %v5864_v10  ;;  %4797 = vset.pattern.permute.xlu0 %v5788_v2 }
 0x387   :  { %941 = vperm.xlu2 %4788, %v936_v30  }
 0x38e   :  { %928 = vperm.xlu1 %4791, %v911_v9  }
 0x38f   :  { %4792 = vset.pattern.permute.xlu2 %v5864_v10 }
 0x396   :  { %4793 = vset.pattern.permute.xlu1 %v5892_v46 }
 0x397   :  { %953 = vperm.xlu2 %4792, %v936_v30  }
 0x39e   :  { %934 = vperm.xlu1 %4793, %v911_v9  }
 0x39f   :  { %4794 = vset.pattern.permute.xlu2 %v5892_v46 }
 0x3a6   :  { %4795 = vset.pattern.permute.xlu1 %v5788_v2 }
 0x3a7   :  { %959 = vperm.xlu2 %4794, %v936_v30  }
 0x3af   :  { %4796 = vset.pattern.permute.xlu2 %v5791_v3 }
 0x3d9   :  { %v917_v29 = vpop.permute.xlu2 %916 }
 0x3e1   :  { %v942_v47 = vpop.permute.xlu2 %941 }
 0x3e2   :  { %v961_v7 = vsel %vm263_vm0, %v917_v29, %v942_v47 }
 0x3e3   :  { %v965_v35 = vmul.f32 %v961_v7, %v6033_v48 }
 0x3e5   :  { %v969_v50 = vadd.f32 %v965_v35, %v6050_v33 }
 0x3f0   :  { %v923_v14 = vpop.permute.xlu1 %922  ;;  %v948_v28 = vpop.permute.xlu0 %947 }
 0x3f1   :  { %v962_v51 = vsel %vm263_vm0, %v923_v14, %v948_v28  ;;  %v954_v59 = vpop.permute.xlu2 %953 }
 0x3f2   :  { %v966_v41 = vmul.f32 %v962_v51, %v6040_v58 }
 0x3f4   :  { %v970_v62 = vadd.f32 %v966_v41, %v6054_v15 }
 0x3f6   :  { %5086 = vtanh.f32 %v970_v62 }
 0x3f7   :  { %5088 = vtanh.f32 %v969_v50 }
 0x3fc   :  { %v5087_v12 = vpop.eup %5086 }
 0x3fd   :  { %v5089_v22 = vpop.eup %5088  ;;  %v978_v61 = vmul.f32 0.5, %v5087_v12 }
 0x3fe   :  { %v977_v27 = vmul.f32 0.5, %v5089_v22 }
 0x3ff   :  { %v982_v39 = vadd.f32 0.5, %v978_v61 }
 0x400   :  { %v929_v16 = vpop.permute.xlu1 %928  ;;  %v981_v13 = vadd.f32 0.5, %v977_v27 }
 0x401   :  { %v963_v18 = vsel %vm263_vm0, %v929_v16, %v954_v59  ;;  %v960_v24 = vpop.permute.xlu2 %959  ;;  %v986_v40 = vmul.f32 %v982_v39, %v6181_v26  ;;  %v1003_v42 = vmul.f32 %v982_v39, %v6102_v60 }
 0x402   :  { %v967_v1 = vmul.f32 %v963_v18, %v6046_v45  ;;  %v985_v53 = vmul.f32 %v981_v13, %v6148_v49  ;;  %v1002_v9 = vmul.f32 %v981_v13, %v6095_v23 }
 0x403   :  { %v990_v14 = vsel %vm402_vm1, %v986_v40, 0.0  ;;  %v1007_v28 = vsel %vm402_vm1, %v1003_v42, 0.0 }
 0x404   :  { %v971_v56 = vadd.f32 %v967_v1, %v6061_v37  ;;  %v989_v7 = vsel %vm402_vm1, %v985_v53, 0.0  ;;  %v1006_v41 = vsel %vm402_vm1, %v1002_v9, 0.0 }
 0x405   :  { %v991_v18 = vadd.f32 %v990_v14, %v989_v7  ;;  %v1008_v1 = vadd.f32 %v1007_v28, %v1006_v41  ;;  %v1020_v14 = vmul.f32 %v6268_v0, %v6216_v38 }
 0x406   :  { %5090 = vtanh.f32 %v971_v56 }
 0x40c   :  { %v5091_v4 = vpop.eup %5090 }
 0x40d   :  { %v979_v32 = vmul.f32 0.5, %v5091_v4 }
 0x40f   :  { %v983_v57 = vadd.f32 0.5, %v979_v32 }
 0x410   :  { %v935_v63 = vpop.permute.xlu1 %934 }
 0x411   :  { %v964_v8 = vsel %vm263_vm0, %v935_v63, %v960_v24  ;;  %v987_v30 = vmul.f32 %v983_v57, %v6168_v52  ;;  %v1004_v29 = vmul.f32 %v983_v57, %v6108_v11 }
 0x412   :  { %v968_v31 = vmul.f32 %v964_v8, %v6065_v25 }
 0x413   :  { %v992_v59 = vsel %vm402_vm1, %v987_v30, 0.0  ;;  %v1009_v16 = vsel %vm402_vm1, %v1004_v29, 0.0 }
 0x414   :  { %v972_v20 = vadd.f32 %v968_v31, %v6073_v19  ;;  %v993_v56 = vadd.f32 %v992_v59, %v991_v18  ;;  %v1010_v12 = vadd.f32 %v1009_v16, %v1008_v1 }
 0x416   :  { %5092 = vtanh.f32 %v972_v20 }
 0x41c   :  { %v5093_v47 = vpop.eup %5092 }
 0x41d   :  { %v980_v51 = vmul.f32 0.5, %v5093_v47 }
 0x41f   :  { %v984_v35 = vadd.f32 0.5, %v980_v51 }
 0x421   :  { %v988_v62 = vmul.f32 %v984_v35, %v6177_v34  ;;  %v1005_v50 = vmul.f32 %v984_v35, %v6139_v43 }
 0x423   :  { %v994_v22 = vsel %vm402_vm1, %v988_v62, 0.0  ;;  %v1011_v4 = vsel %vm402_vm1, %v1005_v50, 0.0 }
 0x424   :  { %v995_v24 = vadd.f32 %v994_v22, %v993_v56  ;;  %v1012_v63 = vadd.f32 %v1011_v4, %v1010_v12 }
 0x426   :  { %v996_v61 = vrot.slane %v995_v24, 4  ;;  %v1013_v8 = vrot.slane %v1012_v63, 4 }
 0x428   :  { %v997_v27 = vadd.f32 %v996_v61, %v995_v24  ;;  %v1014_v31 = vadd.f32 %v1013_v8, %v1012_v63 }
 0x42a   :  { %v1015_v32 = vrot.slane %v1014_v31, 2  ;;  %v998_v20 = vrot.slane %v997_v27, 2 }
 0x42c   :  { %v1016_v39 = vadd.f32 %v1015_v32, %v1014_v31  ;;  %v999_v57 = vadd.f32 %v998_v20, %v997_v27 }
 0x42e   :  { %v1017_v13 = vrot.slane %v1016_v39, 1  ;;  %v1000_v53 = vrot.slane %v999_v57, 1 }
 0x430   :  { %v1018_v40 = vadd.f32 %v1017_v13, %v1016_v39  ;;  %v1001_v9 = vadd.f32 %v1000_v53, %v999_v57 }
 0x432   :  { %v1022_v42 = vadd.f32 %v1018_v40, %v6197_v21  ;;  %v1019_v29 = vadd.f32 %v1001_v9, %v6218_v44 }
 0x434   :  { %5094 = vrcp.f32 %v1022_v42  ;;  %v1021_v51 = vadd.f32 %v1020_v14, %v1019_v29 }
 0x43a   :  { %v5095_v30 = vpop.eup %5094 }
 0x43b   :  { %v1024_v47 = vmul.f32 %v5095_v30, %v1022_v42 }
 0x43d   :  { %v1025_v28 = vsub.f32 2.0, %v1024_v47 }
 0x43f   :  { %v1026_v7 = vmul.f32 %v5095_v30, %v1025_v28 }
 0x441   :  { %v6313_v41 = vmul.f32 %v1026_v7, %v1021_v51 }
 0x443   :  { %v1029_v59 = vrot.slane %v6313_v41, 7 }
 0x445   :  { %1030 = vrot.lane.b32.xlu0 %v1029_v59, %s5632_s23 }
 0x4b7   :  { %v1031_v16 = vpop.permute.xlu0 %1030 }
 0x4b8   :  { %v1033_v35 = vsel %vm786_vm2, %v6313_v41, %v1031_v16 }
 0x4b9   :  { %v1034_v18 = vperm.slane %v1033_v35, 0  ;;  %v1059_v1 = vperm.slane %v1033_v35, 1 }
 0x4bb   :  { %1064 = vperm.xlu0 %4797, %v1059_v1   ;;  %1045 = vperm.xlu2 %4796, %v1034_v18  }
 0x4bc   :  { %1039 = vperm.xlu1 %4795, %v1034_v18  }
 0x4c3   :  { %4802 = vset.pattern.permute.xlu0 %v5892_v46  ;;  %4799 = vset.pattern.permute.xlu2 %v5864_v10 }
 0x4c4   :  { %4798 = vset.pattern.permute.xlu1 %v5791_v3 }
 0x4cb   :  { %1082 = vperm.xlu0 %4802, %v1059_v1   ;;  %1051 = vperm.xlu2 %4799, %v1034_v18  }
 0x4cc   :  { %1070 = vperm.xlu1 %4798, %v1059_v1  }
 0x4d3   :  { %4801 = vset.pattern.permute.xlu2 %v5892_v46  ;;  %4805 = vset.pattern.permute.xlu0 %v5791_v3 }
 0x4d4   :  { %4800 = vset.pattern.permute.xlu1 %v5864_v10 }
 0x4db   :  { %1057 = vperm.xlu2 %4801, %v1034_v18  }
 0x4dc   :  { %1076 = vperm.xlu1 %4800, %v1059_v1  }
 0x4e3   :  { %4803 = vset.pattern.permute.xlu2 %v5788_v2 }
 0x4e4   :  { %4804 = vset.pattern.permute.xlu1 %v5791_v3 }
 0x515   :  { %v1046_v0 = vpop.permute.xlu2 %1045 }
 0x525   :  { %v1052_v56 = vpop.permute.xlu2 %1051 }
 0x52d   :  { %v1065_v50 = vpop.permute.xlu0 %1064 }
 0x52e   :  { %v1040_v62 = vpop.permute.xlu1 %1039 }
 0x52f   :  { %v1084_v12 = vsel %vm263_vm0, %v1040_v62, %v1065_v50 }
 0x530   :  { %v1088_v61 = vmul.f32 %v1084_v12, %v6033_v48 }
 0x532   :  { %v1092_v32 = vadd.f32 %v1088_v61, %v6050_v33 }
 0x535   :  { %v1058_v8 = vpop.permute.xlu2 %1057 }
 0x53d   :  { %v1083_v24 = vpop.permute.xlu0 %1082 }
 0x53e   :  { %v1071_v22 = vpop.permute.xlu1 %1070  ;;  %v1087_v27 = vsel %vm263_vm0, %v1058_v8, %v1083_v24 }
 0x53f   :  { %v1085_v4 = vsel %vm263_vm0, %v1046_v0, %v1071_v22  ;;  %v1091_v20 = vmul.f32 %v1087_v27, %v6065_v25 }
 0x540   :  { %v1089_v63 = vmul.f32 %v1085_v4, %v6040_v58 }
 0x541   :  { %v1095_v39 = vadd.f32 %v1091_v20, %v6073_v19 }
 0x542   :  { %v1093_v31 = vadd.f32 %v1089_v63, %v6054_v15 }
 0x544   :  { %5096 = vtanh.f32 %v1093_v31 }
 0x545   :  { %5098 = vtanh.f32 %v1092_v32 }
 0x546   :  { %5100 = vtanh.f32 %v1095_v39 }
 0x54a   :  { %v5097_v13 = vpop.eup %5096 }
 0x54b   :  { %v5099_v40 = vpop.eup %5098  ;;  %v1101_v9 = vmul.f32 0.5, %v5097_v13 }
 0x54c   :  { %v1100_v30 = vmul.f32 0.5, %v5099_v40  ;;  %v5101_v47 = vpop.eup %5100 }
 0x54d   :  { %v1105_v14 = vadd.f32 0.5, %v1101_v9  ;;  %v1103_v51 = vmul.f32 0.5, %v5101_v47 }
 0x54e   :  { %v1077_v57 = vpop.permute.xlu1 %1076  ;;  %v1104_v28 = vadd.f32 0.5, %v1100_v30 }
 0x54f   :  { %v1086_v42 = vsel %vm263_vm0, %v1052_v56, %v1077_v57  ;;  %v1109_v7 = vmul.f32 %v1105_v14, %v6181_v26  ;;  %v1126_v59 = vmul.f32 %v1105_v14, %v6102_v60  ;;  %v1107_v1 = vadd.f32 0.5, %v1103_v51 }
 0x550   :  { %v1090_v53 = vmul.f32 %v1086_v42, %v6046_v45  ;;  %v1108_v35 = vmul.f32 %v1104_v28, %v6148_v49  ;;  %v1125_v18 = vmul.f32 %v1104_v28, %v6095_v23 }
 0x551   :  { %v1113_v62 = vsel %vm402_vm1, %v1109_v7, 0.0  ;;  %v1130_v50 = vsel %vm402_vm1, %v1126_v59, 0.0  ;;  %v1111_v4 = vmul.f32 %v1107_v1, %v6177_v34  ;;  %v1128_v24 = vmul.f32 %v1107_v1, %v6139_v43 }
 0x552   :  { %v1094_v29 = vadd.f32 %v1090_v53, %v6061_v37  ;;  %v1112_v12 = vsel %vm402_vm1, %v1108_v35, 0.0  ;;  %v1129_v22 = vsel %vm402_vm1, %v1125_v18, 0.0 }
 0x553   :  { %v1114_v8 = vadd.f32 %v1113_v62, %v1112_v12  ;;  %v1131_v27 = vadd.f32 %v1130_v50, %v1129_v22  ;;  %v1117_v13 = vsel %vm402_vm1, %v1111_v4, 0.0  ;;  %v1134_v57 = vsel %vm402_vm1, %v1128_v24, 0.0 }
 0x554   :  { %5102 = vtanh.f32 %v1094_v29  ;;  %v1143_v50 = vmul.f32 %v6313_v41, %v6216_v38 }
 0x55a   :  { %v5103_v16 = vpop.eup %5102 }
 0x55b   :  { %v1102_v0 = vmul.f32 0.5, %v5103_v16 }
 0x55d   :  { %v1106_v56 = vadd.f32 0.5, %v1102_v0 }
 0x55f   :  { %v1110_v63 = vmul.f32 %v1106_v56, %v6168_v52  ;;  %v1127_v61 = vmul.f32 %v1106_v56, %v6108_v11 }
 0x561   :  { %v1115_v31 = vsel %vm402_vm1, %v1110_v63, 0.0  ;;  %v1132_v32 = vsel %vm402_vm1, %v1127_v61, 0.0 }
 0x562   :  { %v1116_v20 = vadd.f32 %v1115_v31, %v1114_v8  ;;  %v1133_v39 = vadd.f32 %v1132_v32, %v1131_v27 }
 0x564   :  { %v1118_v40 = vadd.f32 %v1117_v13, %v1116_v20  ;;  %v1135_v42 = vadd.f32 %v1134_v57, %v1133_v39 }
 0x566   :  { %v1119_v53 = vrot.slane %v1118_v40, 4  ;;  %v1136_v9 = vrot.slane %v1135_v42, 4 }
 0x568   :  { %v1120_v30 = vadd.f32 %v1119_v53, %v1118_v40  ;;  %v1137_v29 = vadd.f32 %v1136_v9, %v1135_v42 }
 0x56a   :  { %v1138_v47 = vrot.slane %v1137_v29, 2  ;;  %v1121_v14 = vrot.slane %v1120_v30, 2 }
 0x56c   :  { %v1139_v28 = vadd.f32 %v1138_v47, %v1137_v29  ;;  %v1122_v7 = vadd.f32 %v1121_v14, %v1120_v30 }
 0x56e   :  { %v1140_v51 = vrot.slane %v1139_v28, 1  ;;  %v1123_v35 = vrot.slane %v1122_v7, 1 }
 0x570   :  { %v1141_v59 = vadd.f32 %v1140_v51, %v1139_v28  ;;  %v1124_v18 = vadd.f32 %v1123_v35, %v1122_v7 }
 0x572   :  { %v1145_v16 = vadd.f32 %v1141_v59, %v6197_v21  ;;  %v1142_v0 = vadd.f32 %v1124_v18, %v6218_v44 }
 0x574   :  { %5104 = vrcp.f32 %v1145_v16  ;;  %v1144_v12 = vadd.f32 %v1143_v50, %v1142_v0 }
 0x57a   :  { %v5105_v1 = vpop.eup %5104 }
 0x57b   :  { %v1147_v62 = vmul.f32 %v5105_v1, %v1145_v16 }
 0x57d   :  { %v1148_v56 = vsub.f32 2.0, %v1147_v62 }
 0x57f   :  { %v1149_v22 = vmul.f32 %v5105_v1, %v1148_v56 }
 0x581   :  { %v6359_v4 = vmul.f32 %v1149_v22, %v1144_v12 }
 0x583   :  { %v1152_v24 = vrot.slane %v6359_v4, 7 }
 0x585   :  { %1153 = vrot.lane.b32.xlu1 %v1152_v24, %s5632_s23 }
 0x5f7   :  { %v1154_v63 = vpop.permute.xlu1 %1153 }
 0x5f8   :  { %v1156_v61 = vsel %vm786_vm2, %v6359_v4, %v1154_v63 }
 0x5f9   :  { %v1157_v8 = vperm.slane %v1156_v61, 0  ;;  %v1182_v27 = vperm.slane %v1156_v61, 1 }
 0x5fb   :  { %1193 = vperm.xlu0 %4805, %v1182_v27   ;;  %1168 = vperm.xlu1 %4804, %v1157_v8  }
 0x5fc   :  { %1162 = vperm.xlu2 %4803, %v1157_v8  }
 0x603   :  { %1273 = vrot.lane.b32.xlu0 %v6197_v21, %s5631_s12  ;;  %4806 = vset.pattern.permute.xlu1 %v5864_v10 }
 0x604   :  { %1187 = vperm.xlu2 %4803, %v1182_v27   ;;  %4810 = vset.pattern.permute.xlu0 %v5788_v2 }
 0x60b   :  { %1174 = vperm.xlu1 %4806, %v1157_v8  }
 0x60c   :  { %4807 = vset.pattern.permute.xlu2 %v5864_v10 }
 0x613   :  { %4808 = vset.pattern.permute.xlu1 %v5892_v46 }
 0x614   :  { %1199 = vperm.xlu2 %4807, %v1182_v27  }
 0x61b   :  { %1180 = vperm.xlu1 %4808, %v1157_v8  }
 0x61c   :  { %4809 = vset.pattern.permute.xlu2 %v5892_v46 }
 0x623   :  { %1266 = vrot.lane.b32.xlu1 %v6218_v44, %s5631_s12 }
 0x624   :  { %1205 = vperm.xlu2 %4809, %v1182_v27   ;;  %4811 = vset.pattern.permute.xlu1 %v5791_v3 }
 0x62c   :  { %4812 = vset.pattern.permute.xlu2 %v5788_v2 }
 0x656   :  { %v1163_v21 = vpop.permute.xlu2 %1162 }
 0x65e   :  { %v1188_v41 = vpop.permute.xlu2 %1187 }
 0x65f   :  { %v1207_v39 = vsel %vm263_vm0, %v1163_v21, %v1188_v41 }
 0x660   :  { %v1211_v42 = vmul.f32 %v1207_v39, %v6033_v48 }
 0x662   :  { %v1215_v30 = vadd.f32 %v1211_v42, %v6050_v33 }
 0x66d   :  { %v1169_v31 = vpop.permute.xlu1 %1168  ;;  %v1194_v32 = vpop.permute.xlu0 %1193 }
 0x66e   :  { %v1208_v20 = vsel %vm263_vm0, %v1169_v31, %v1194_v32  ;;  %v1200_v57 = vpop.permute.xlu2 %1199 }
 0x66f   :  { %v1212_v13 = vmul.f32 %v1208_v20, %v6040_v58 }
 0x671   :  { %v1216_v9 = vadd.f32 %v1212_v13, %v6054_v15 }
 0x673   :  { %5106 = vtanh.f32 %v1216_v9 }
 0x674   :  { %5108 = vtanh.f32 %v1215_v30 }
 0x679   :  { %v5107_v47 = vpop.eup %5106 }
 0x67a   :  { %v5109_v14 = vpop.eup %5108  ;;  %v1224_v59 = vmul.f32 0.5, %v5107_v47 }
 0x67b   :  { %v1223_v35 = vmul.f32 0.5, %v5109_v14 }
 0x67c   :  { %v1228_v62 = vadd.f32 0.5, %v1224_v59 }
 0x67d   :  { %v1175_v40 = vpop.permute.xlu1 %1174  ;;  %v1227_v50 = vadd.f32 0.5, %v1223_v35 }
 0x67e   :  { %v1209_v44 = vsel %vm263_vm0, %v1175_v40, %v1200_v57  ;;  %v1206_v51 = vpop.permute.xlu2 %1205  ;;  %v1232_v12 = vmul.f32 %v1228_v62, %v6181_v26  ;;  %v1249_v22 = vmul.f32 %v1228_v62, %v6102_v60 }
 0x67f   :  { %v1213_v53 = vmul.f32 %v1209_v44, %v6046_v45  ;;  %v1231_v24 = vmul.f32 %v1227_v50, %v6148_v49  ;;  %v1248_v63 = vmul.f32 %v1227_v50, %v6095_v23 }
 0x680   :  { %v1236_v21 = vsel %vm402_vm1, %v1232_v12, 0.0  ;;  %v1253_v41 = vsel %vm402_vm1, %v1249_v22, 0.0 }
 0x681   :  { %v1217_v29 = vadd.f32 %v1213_v53, %v6061_v37  ;;  %v1235_v32 = vsel %vm402_vm1, %v1231_v24, 0.0  ;;  %v1252_v20 = vsel %vm402_vm1, %v1248_v63, 0.0 }
 0x682   :  { %v1237_v40 = vadd.f32 %v1236_v21, %v1235_v32  ;;  %v1254_v42 = vadd.f32 %v1253_v41, %v1252_v20  ;;  %v1270_v21 = vmul.f32 %v6359_v4, %v6216_v38 }
 0x683   :  { %5110 = vtanh.f32 %v1217_v29 }
 0x689   :  { %v5111_v28 = vpop.eup %5110 }
 0x68a   :  { %v1225_v1 = vmul.f32 0.5, %v5111_v28 }
 0x68c   :  { %v1229_v56 = vadd.f32 0.5, %v1225_v1 }
 0x68d   :  { %v1181_v7 = vpop.permute.xlu1 %1180 }
 0x68e   :  { %v1210_v16 = vsel %vm263_vm0, %v1181_v7, %v1206_v51  ;;  %v1233_v61 = vmul.f32 %v1229_v56, %v6168_v52  ;;  %v1250_v8 = vmul.f32 %v1229_v56, %v6108_v11  ;;  %v6404_v56 = vpop.permute.xlu0 %1273 }
 0x68f   :  { %v1214_v18 = vmul.f32 %v1210_v16, %v6065_v25 }
 0x690   :  { %v1238_v39 = vsel %vm402_vm1, %v1233_v61, 0.0  ;;  %v1255_v13 = vsel %vm402_vm1, %v1250_v8, 0.0 }
 0x691   :  { %v1218_v0 = vadd.f32 %v1214_v18, %v6073_v19  ;;  %v1239_v9 = vadd.f32 %v1238_v39, %v1237_v40  ;;  %v1256_v30 = vadd.f32 %v1255_v13, %v1254_v42 }
 0x693   :  { %5112 = vtanh.f32 %v1218_v0 }
 0x695   :  { %v6407_v61 = vpop.permute.xlu1 %1266 }
 0x699   :  { %v5113_v27 = vpop.eup %5112 }
 0x69a   :  { %v1226_v31 = vmul.f32 0.5, %v5113_v27 }
 0x69c   :  { %v1230_v57 = vadd.f32 0.5, %v1226_v31 }
 0x69e   :  { %v1234_v44 = vmul.f32 %v1230_v57, %v6177_v34  ;;  %v1251_v53 = vmul.f32 %v1230_v57, %v6139_v43 }
 0x6a0   :  { %v1240_v29 = vsel %vm402_vm1, %v1234_v44, 0.0  ;;  %v1257_v47 = vsel %vm402_vm1, %v1251_v53, 0.0 }
 0x6a1   :  { %v1241_v14 = vadd.f32 %v1240_v29, %v1239_v9  ;;  %v1258_v28 = vadd.f32 %v1257_v47, %v1256_v30 }
 0x6a3   :  { %v1242_v51 = vrot.slane %v1241_v14, 4  ;;  %v1259_v7 = vrot.slane %v1258_v28, 4 }
 0x6a5   :  { %v1260_v59 = vadd.f32 %v1259_v7, %v1258_v28  ;;  %v1243_v16 = vadd.f32 %v1242_v51, %v1241_v14 }
 0x6a7   :  { %v1261_v35 = vrot.slane %v1260_v59, 2  ;;  %v1244_v18 = vrot.slane %v1243_v16, 2 }
 0x6a9   :  { %v1262_v1 = vadd.f32 %v1261_v35, %v1260_v59  ;;  %v1245_v62 = vadd.f32 %v1244_v18, %v1243_v16 }
 0x6ab   :  { %v1263_v0 = vrot.slane %v1262_v1, 1  ;;  %v1246_v22 = vrot.slane %v1245_v62, 1 }
 0x6ad   :  { %v1264_v50 = vadd.f32 %v1263_v0, %v1262_v1  ;;  %v1247_v24 = vadd.f32 %v1246_v22, %v1245_v62 }
 0x6af   :  { %v1276_v12 = vadd.f32 %v6404_v56, %v1264_v50  ;;  %v1269_v8 = vadd.f32 %v6407_v61, %v1247_v24 }
 0x6b1   :  { %5114 = vrcp.f32 %v1276_v12  ;;  %v1271_v31 = vadd.f32 %v1270_v21, %v1269_v8 }
 0x6b7   :  { %v5115_v63 = vpop.eup %5114 }
 0x6b8   :  { %v1278_v27 = vmul.f32 %v5115_v63, %v1276_v12 }
 0x6ba   :  { %v1279_v41 = vsub.f32 2.0, %v1278_v27 }
 0x6bc   :  { %v1280_v32 = vmul.f32 %v5115_v63, %v1279_v41 }
 0x6be   :  { %v6412_v20 = vmul.f32 %v1280_v32, %v1271_v31 }
 0x6c0   :  { %v1283_v39 = vrot.slane %v6412_v20, 7 }
 0x6c2   :  { %1284 = vrot.lane.b32.xlu2 %v1283_v39, %s5632_s23 }
 0x71c   :  { %v1285_v13 = vpop.permute.xlu2 %1284 }
 0x71d   :  { %v1287_v57 = vsel %vm786_vm2, %v6412_v20, %v1285_v13 }
 0x71e   :  { %v1288_v40 = vperm.slane %v1287_v57, 0  ;;  %v1313_v42 = vperm.slane %v1287_v57, 1 }
 0x720   :  { %1318 = vperm.xlu2 %4812, %v1313_v42   ;;  %1299 = vperm.xlu1 %4811, %v1288_v40  }
 0x721   :  { %1293 = vperm.xlu0 %4810, %v1288_v40  }
 0x728   :  { %4813 = vset.pattern.permute.xlu2 %v5864_v10  ;;  %1324 = vperm.xlu1 %4811, %v1313_v42  }
 0x729   :  { %4814 = vset.pattern.permute.xlu0 %v5864_v10 }
 0x730   :  { %1305 = vperm.xlu2 %4813, %v1288_v40   ;;  %4815 = vset.pattern.permute.xlu1 %v5892_v46 }
 0x731   :  { %1330 = vperm.xlu0 %4814, %v1313_v42  }
 0x738   :  { %4816 = vset.pattern.permute.xlu2 %v5892_v46  ;;  %1311 = vperm.xlu1 %4815, %v1288_v40  }
 0x739   :  { %4818 = vset.pattern.permute.xlu0 %v5791_v3 }
 0x740   :  { %1336 = vperm.xlu2 %4816, %v1313_v42   ;;  %4819 = vset.pattern.permute.xlu1 %v5788_v2 }
 0x748   :  { %4817 = vset.pattern.permute.xlu2 %v5788_v2 }
 0x77a   :  { %v1319_v53 = vpop.permute.xlu2 %1318 }
 0x78a   :  { %v1306_v7 = vpop.permute.xlu2 %1305 }
 0x792   :  { %v1300_v4 = vpop.permute.xlu1 %1299 }
 0x793   :  { %v1294_v44 = vpop.permute.xlu0 %1293 }
 0x794   :  { %v1338_v9 = vsel %vm263_vm0, %v1294_v44, %v1319_v53 }
 0x795   :  { %v1342_v29 = vmul.f32 %v1338_v9, %v6033_v48 }
 0x797   :  { %v1346_v51 = vadd.f32 %v1342_v29, %v6050_v33 }
 0x79a   :  { %v1325_v30 = vpop.permute.xlu1 %1324  ;;  %v1337_v62 = vpop.permute.xlu2 %1336 }
 0x79b   :  { %v1339_v47 = vsel %vm263_vm0, %v1300_v4, %v1325_v30 }
 0x79c   :  { %v1343_v14 = vmul.f32 %v1339_v47, %v6040_v58 }
 0x79e   :  { %v1347_v28 = vadd.f32 %v1343_v14, %v6054_v15 }
 0x7a0   :  { %5116 = vtanh.f32 %v1347_v28 }
 0x7a1   :  { %5118 = vtanh.f32 %v1346_v51 }
 0x7a3   :  { %v1331_v59 = vpop.permute.xlu0 %1330 }
 0x7a4   :  { %v1340_v16 = vsel %vm263_vm0, %v1306_v7, %v1331_v59 }
 0x7a5   :  { %v1344_v35 = vmul.f32 %v1340_v16, %v6046_v45 }
 0x7a6   :  { %v5117_v1 = vpop.eup %5116 }
 0x7a7   :  { %v1348_v18 = vadd.f32 %v1344_v35, %v6061_v37  ;;  %v5119_v0 = vpop.eup %5118  ;;  %v1355_v12 = vmul.f32 0.5, %v5117_v1 }
 0x7a8   :  { %v1354_v24 = vmul.f32 0.5, %v5119_v0 }
 0x7a9   :  { %5120 = vtanh.f32 %v1348_v18  ;;  %v1359_v21 = vadd.f32 0.5, %v1355_v12 }
 0x7aa   :  { %v1312_v50 = vpop.permute.xlu1 %1311  ;;  %v1358_v41 = vadd.f32 0.5, %v1354_v24 }
 0x7ab   :  { %v1341_v22 = vsel %vm263_vm0, %v1312_v50, %v1337_v62  ;;  %v1363_v39 = vmul.f32 %v1359_v21, %v6181_v26  ;;  %v1380_v13 = vmul.f32 %v1359_v21, %v6102_v60 }
 0x7ac   :  { %v1345_v63 = vmul.f32 %v1341_v22, %v6065_v25  ;;  %v1362_v57 = vmul.f32 %v1358_v41, %v6148_v49  ;;  %v1379_v40 = vmul.f32 %v1358_v41, %v6095_v23 }
 0x7ad   :  { %v1367_v53 = vsel %vm402_vm1, %v1363_v39, 0.0  ;;  %v1384_v9 = vsel %vm402_vm1, %v1380_v13, 0.0 }
 0x7ae   :  { %v1349_v8 = vadd.f32 %v1345_v63, %v6073_v19  ;;  %v1366_v29 = vsel %vm402_vm1, %v1362_v57, 0.0  ;;  %v1383_v47 = vsel %vm402_vm1, %v1379_v40, 0.0 }
 0x7af   :  { %v5121_v27 = vpop.eup %5120  ;;  %v1368_v7 = vadd.f32 %v1367_v53, %v1366_v29  ;;  %v1385_v59 = vadd.f32 %v1384_v9, %v1383_v47  ;;  %v1397_v53 = vmul.f32 %v6412_v20, %v6216_v38 }
 0x7b0   :  { %v1356_v31 = vmul.f32 0.5, %v5121_v27  ;;  %5122 = vtanh.f32 %v1349_v8 }
 0x7b2   :  { %v1360_v32 = vadd.f32 0.5, %v1356_v31 }
 0x7b4   :  { %v1364_v42 = vmul.f32 %v1360_v32, %v6168_v52  ;;  %v1381_v4 = vmul.f32 %v1360_v32, %v6108_v11 }
 0x7b6   :  { %v5123_v44 = vpop.eup %5122  ;;  %v1369_v14 = vsel %vm402_vm1, %v1364_v42, 0.0  ;;  %v1386_v28 = vsel %vm402_vm1, %v1381_v4, 0.0 }
 0x7b7   :  { %v1357_v30 = vmul.f32 0.5, %v5123_v44  ;;  %v1370_v18 = vadd.f32 %v1369_v14, %v1368_v7  ;;  %v1387_v1 = vadd.f32 %v1386_v28, %v1385_v59 }
 0x7b9   :  { %v1361_v51 = vadd.f32 0.5, %v1357_v30 }
 0x7bb   :  { %v1365_v16 = vmul.f32 %v1361_v51, %v6177_v34  ;;  %v1382_v35 = vmul.f32 %v1361_v51, %v6139_v43 }
 0x7bd   :  { %v1371_v0 = vsel %vm402_vm1, %v1365_v16, 0.0  ;;  %v1388_v62 = vsel %vm402_vm1, %v1382_v35, 0.0 }
 0x7be   :  { %v1372_v50 = vadd.f32 %v1371_v0, %v1370_v18  ;;  %v1389_v12 = vadd.f32 %v1388_v62, %v1387_v1 }
 0x7c0   :  { %v1373_v22 = vrot.slane %v1372_v50, 4  ;;  %v1390_v24 = vrot.slane %v1389_v12, 4 }
 0x7c2   :  { %v1374_v63 = vadd.f32 %v1373_v22, %v1372_v50  ;;  %v1391_v8 = vadd.f32 %v1390_v24, %v1389_v12 }
 0x7c4   :  { %v1392_v27 = vrot.slane %v1391_v8, 2  ;;  %v1375_v21 = vrot.slane %v1374_v63, 2 }
 0x7c6   :  { %v1393_v41 = vadd.f32 %v1392_v27, %v1391_v8  ;;  %v1376_v32 = vadd.f32 %v1375_v21, %v1374_v63 }
 0x7c8   :  { %v1394_v31 = vrot.slane %v1393_v41, 1  ;;  %v1377_v57 = vrot.slane %v1376_v32, 1 }
 0x7ca   :  { %v1395_v39 = vadd.f32 %v1394_v31, %v1393_v41  ;;  %v1378_v40 = vadd.f32 %v1377_v57, %v1376_v32 }
 0x7cc   :  { %v1399_v13 = vadd.f32 %v1395_v39, %v6404_v56  ;;  %v1396_v4 = vadd.f32 %v1378_v40, %v6407_v61 }
 0x7ce   :  { %5124 = vrcp.f32 %v1399_v13  ;;  %v1398_v30 = vadd.f32 %v1397_v53, %v1396_v4 }
 0x7d4   :  { %v5125_v42 = vpop.eup %5124 }
 0x7d5   :  { %v1401_v44 = vmul.f32 %v5125_v42, %v1399_v13 }
 0x7d7   :  { %v1402_v9 = vsub.f32 2.0, %v1401_v44 }
 0x7d9   :  { %v1403_v29 = vmul.f32 %v5125_v42, %v1402_v9 }
 0x7db   :  { %v6457_v47 = vmul.f32 %v1403_v29, %v1398_v30 }
 0x7dd   :  { %v1406_v14 = vrot.slane %v6457_v47, 7 }
 0x7df   :  { %1407 = vrot.lane.b32.xlu1 %v1406_v14, %s5632_s23 }
 0x851   :  { %v1408_v28 = vpop.permute.xlu1 %1407 }
 0x852   :  { %v1410_v51 = vsel %vm786_vm2, %v6457_v47, %v1408_v28 }
 0x853   :  { %v1411_v7 = vperm.slane %v1410_v51, 0  ;;  %v1436_v59 = vperm.slane %v1410_v51, 1 }
 0x855   :  { %1441 = vperm.xlu1 %4819, %v1436_v59   ;;  %1422 = vperm.xlu0 %4818, %v1411_v7  }
 0x856   :  { %1416 = vperm.xlu2 %4817, %v1411_v7  }
 0x85d   :  { %4821 = vset.pattern.permute.xlu1 %v5864_v10  ;;  %4823 = vset.pattern.permute.xlu0 %v5892_v46 }
 0x85e   :  { %4820 = vset.pattern.permute.xlu2 %v5791_v3 }
 0x865   :  { %1428 = vperm.xlu1 %4821, %v1411_v7   ;;  %1434 = vperm.xlu0 %4823, %v1411_v7  }
 0x866   :  { %1447 = vperm.xlu2 %4820, %v1436_v59  }
 0x86d   :  { %4824 = vset.pattern.permute.xlu1 %v5892_v46  ;;  %4827 = vset.pattern.permute.xlu0 %v5788_v2 }
 0x86e   :  { %4822 = vset.pattern.permute.xlu2 %v5864_v10 }
 0x875   :  { %1459 = vperm.xlu1 %4824, %v1436_v59  }
 0x876   :  { %1453 = vperm.xlu2 %4822, %v1436_v59  }
 0x87d   :  { %4825 = vset.pattern.permute.xlu1 %v5788_v2 }
 0x87e   :  { %4826 = vset.pattern.permute.xlu2 %v5791_v3 }
 0x8b0   :  { %v1417_v20 = vpop.permute.xlu2 %1416 }
 0x8c0   :  { %v1448_v16 = vpop.permute.xlu2 %1447 }
 0x8c7   :  { %v1442_v35 = vpop.permute.xlu1 %1441  ;;  %v1423_v18 = vpop.permute.xlu0 %1422 }
 0x8c8   :  { %v1461_v1 = vsel %vm263_vm0, %v1417_v20, %v1442_v35  ;;  %v1462_v0 = vsel %vm263_vm0, %v1423_v18, %v1448_v16 }
 0x8c9   :  { %v1465_v62 = vmul.f32 %v1461_v1, %v6033_v48  ;;  %v1466_v50 = vmul.f32 %v1462_v0, %v6040_v58 }
 0x8cb   :  { %v1469_v8 = vadd.f32 %v1465_v62, %v6050_v33  ;;  %v1470_v27 = vadd.f32 %v1466_v50, %v6054_v15 }
 0x8cd   :  { %5126 = vtanh.f32 %v1469_v8 }
 0x8ce   :  { %5128 = vtanh.f32 %v1470_v27 }
 0x8d0   :  { %v1454_v12 = vpop.permute.xlu2 %1453 }
 0x8d3   :  { %v5127_v41 = vpop.eup %5126 }
 0x8d4   :  { %v5129_v31 = vpop.eup %5128  ;;  %v1477_v39 = vmul.f32 0.5, %v5127_v41 }
 0x8d5   :  { %v1478_v40 = vmul.f32 0.5, %v5129_v31 }
 0x8d6   :  { %v1481_v53 = vadd.f32 0.5, %v1477_v39 }
 0x8d7   :  { %v1429_v22 = vpop.permute.xlu1 %1428  ;;  %v1435_v13 = vpop.permute.xlu0 %1434  ;;  %v1482_v30 = vadd.f32 0.5, %v1478_v40 }
 0x8d8   :  { %v1463_v24 = vsel %vm263_vm0, %v1429_v22, %v1454_v12  ;;  %v1485_v14 = vmul.f32 %v1481_v53, %v6148_v49  ;;  %v1502_v28 = vmul.f32 %v1481_v53, %v6095_v23 }
 0x8d9   :  { %v1467_v63 = vmul.f32 %v1463_v24, %v6046_v45  ;;  %v1486_v51 = vmul.f32 %v1482_v30, %v6181_v26  ;;  %v1503_v7 = vmul.f32 %v1482_v30, %v6102_v60 }
 0x8da   :  { %v1489_v35 = vsel %vm402_vm1, %v1485_v14, 0.0  ;;  %v1506_v18 = vsel %vm402_vm1, %v1502_v28, 0.0 }
 0x8db   :  { %v1471_v21 = vadd.f32 %v1467_v63, %v6061_v37  ;;  %v1490_v1 = vsel %vm402_vm1, %v1486_v51, 0.0  ;;  %v1507_v0 = vsel %vm402_vm1, %v1503_v7, 0.0 }
 0x8dc   :  { %v1491_v24 = vadd.f32 %v1490_v1, %v1489_v35  ;;  %v1508_v63 = vadd.f32 %v1507_v0, %v1506_v18  ;;  %v1520_v35 = vmul.f32 %v6457_v47, %v6216_v38 }
 0x8dd   :  { %5130 = vtanh.f32 %v1471_v21 }
 0x8e3   :  { %v5131_v32 = vpop.eup %5130 }
 0x8e4   :  { %v1479_v44 = vmul.f32 0.5, %v5131_v32 }
 0x8e6   :  { %v1483_v29 = vadd.f32 0.5, %v1479_v44 }
 0x8e7   :  { %v1460_v57 = vpop.permute.xlu1 %1459 }
 0x8e8   :  { %v1464_v42 = vsel %vm263_vm0, %v1435_v13, %v1460_v57  ;;  %v1487_v59 = vmul.f32 %v1483_v29, %v6168_v52  ;;  %v1504_v20 = vmul.f32 %v1483_v29, %v6108_v11 }
 0x8e9   :  { %v1468_v4 = vmul.f32 %v1464_v42, %v6065_v25 }
 0x8ea   :  { %v1492_v50 = vsel %vm402_vm1, %v1487_v59, 0.0  ;;  %v1509_v12 = vsel %vm402_vm1, %v1504_v20, 0.0 }
 0x8eb   :  { %v1472_v9 = vadd.f32 %v1468_v4, %v6073_v19  ;;  %v1493_v21 = vadd.f32 %v1492_v50, %v1491_v24  ;;  %v1510_v41 = vadd.f32 %v1509_v12, %v1508_v63 }
 0x8ed   :  { %5132 = vtanh.f32 %v1472_v9 }
 0x8f3   :  { %v5133_v16 = vpop.eup %5132 }
 0x8f4   :  { %v1480_v62 = vmul.f32 0.5, %v5133_v16 }
 0x8f6   :  { %v1484_v22 = vadd.f32 0.5, %v1480_v62 }
 0x8f8   :  { %v1488_v8 = vmul.f32 %v1484_v22, %v6177_v34  ;;  %v1505_v27 = vmul.f32 %v1484_v22, %v6139_v43 }
 0x8fa   :  { %v1494_v31 = vsel %vm402_vm1, %v1488_v8, 0.0  ;;  %v1511_v32 = vsel %vm402_vm1, %v1505_v27, 0.0 }
 0x8fb   :  { %v1495_v39 = vadd.f32 %v1494_v31, %v1493_v21  ;;  %v1512_v13 = vadd.f32 %v1511_v32, %v1510_v41 }
 0x8fd   :  { %v1496_v57 = vrot.slane %v1495_v39, 4  ;;  %v1513_v40 = vrot.slane %v1512_v13, 4 }
 0x8ff   :  { %v1497_v42 = vadd.f32 %v1496_v57, %v1495_v39  ;;  %v1514_v4 = vadd.f32 %v1513_v40, %v1512_v13 }
 0x901   :  { %v1515_v44 = vrot.slane %v1514_v4, 2  ;;  %v1498_v53 = vrot.slane %v1497_v42, 2 }
 0x903   :  { %v1516_v9 = vadd.f32 %v1515_v44, %v1514_v4  ;;  %v1499_v29 = vadd.f32 %v1498_v53, %v1497_v42 }
 0x905   :  { %v1517_v30 = vrot.slane %v1516_v9, 1  ;;  %v1500_v51 = vrot.slane %v1499_v29, 1 }
 0x907   :  { %v1518_v14 = vadd.f32 %v1517_v30, %v1516_v9  ;;  %v1501_v7 = vadd.f32 %v1500_v51, %v1499_v29 }
 0x909   :  { %v1522_v28 = vadd.f32 %v1518_v14, %v6404_v56  ;;  %v1519_v20 = vadd.f32 %v1501_v7, %v6407_v61 }
 0x90b   :  { %5134 = vrcp.f32 %v1522_v28  ;;  %v1521_v1 = vadd.f32 %v1520_v35, %v1519_v20 }
 0x911   :  { %v5135_v59 = vpop.eup %5134 }
 0x912   :  { %v1524_v16 = vmul.f32 %v5135_v59, %v1522_v28 }
 0x914   :  { %v1525_v18 = vsub.f32 2.0, %v1524_v16 }
 0x916   :  { %v1526_v0 = vmul.f32 %v5135_v59, %v1525_v18 }
 0x918   :  { %v6503_v62 = vmul.f32 %v1526_v0, %v1521_v1 }
 0x91a   :  { %v1529_v50 = vrot.slane %v6503_v62, 7 }
 0x91c   :  { %1530 = vrot.lane.b32.xlu2 %v1529_v50, %s5632_s23 }
 0x976   :  { %v1531_v12 = vpop.permute.xlu2 %1530 }
 0x977   :  { %v1533_v22 = vsel %vm786_vm2, %v6503_v62, %v1531_v12 }
 0x978   :  { %v1534_v24 = vperm.slane %v1533_v22, 0  ;;  %v1559_v63 = vperm.slane %v1533_v22, 1 }
 0x97a   :  { %1564 = vperm.xlu0 %4827, %v1559_v63   ;;  %1545 = vperm.xlu2 %4826, %v1534_v24  }
 0x97b   :  { %1539 = vperm.xlu1 %4825, %v1534_v24  }
 0x982   :  { %4832 = vset.pattern.permute.xlu0 %v5892_v46  ;;  %4829 = vset.pattern.permute.xlu2 %v5864_v10 }
 0x983   :  { %4828 = vset.pattern.permute.xlu1 %v5791_v3 }
 0x98a   :  { %1582 = vperm.xlu0 %4832, %v1559_v63   ;;  %1551 = vperm.xlu2 %4829, %v1534_v24  }
 0x98b   :  { %1570 = vperm.xlu1 %4828, %v1559_v63  }
 0x992   :  { %4831 = vset.pattern.permute.xlu2 %v5892_v46  ;;  %4835 = vset.pattern.permute.xlu0 %v5791_v3 }
 0x993   :  { %4830 = vset.pattern.permute.xlu1 %v5864_v10 }
 0x99a   :  { %1557 = vperm.xlu2 %4831, %v1534_v24  }
 0x99b   :  { %1576 = vperm.xlu1 %4830, %v1559_v63  }
 0x9a2   :  { %4833 = vset.pattern.permute.xlu2 %v5788_v2 }
 0x9a3   :  { %4834 = vset.pattern.permute.xlu1 %v5791_v3 }
 0x9d4   :  { %v1546_v47 = vpop.permute.xlu2 %1545 }
 0x9e4   :  { %v1552_v21 = vpop.permute.xlu2 %1551 }
 0x9ec   :  { %v1565_v27 = vpop.permute.xlu0 %1564 }
 0x9ed   :  { %v1540_v8 = vpop.permute.xlu1 %1539 }
 0x9ee   :  { %v1584_v41 = vsel %vm263_vm0, %v1540_v8, %v1565_v27 }
 0x9ef   :  { %v1588_v57 = vmul.f32 %v1584_v41, %v6033_v48 }
 0x9f1   :  { %v1592_v44 = vadd.f32 %v1588_v57, %v6050_v33 }
 0x9f4   :  { %v1558_v40 = vpop.permute.xlu2 %1557 }
 0x9fc   :  { %v1583_v39 = vpop.permute.xlu0 %1582 }
 0x9fd   :  { %v1571_v31 = vpop.permute.xlu1 %1570  ;;  %v1587_v42 = vsel %vm263_vm0, %v1558_v40, %v1583_v39 }
 0x9fe   :  { %v1585_v32 = vsel %vm263_vm0, %v1546_v47, %v1571_v31  ;;  %v1591_v53 = vmul.f32 %v1587_v42, %v6065_v25 }
 0x9ff   :  { %v1589_v13 = vmul.f32 %v1585_v32, %v6040_v58 }
 0xa00   :  { %v1595_v9 = vadd.f32 %v1591_v53, %v6073_v19 }
 0xa01   :  { %v1593_v4 = vadd.f32 %v1589_v13, %v6054_v15 }
 0xa03   :  { %5136 = vtanh.f32 %v1593_v4 }
 0xa04   :  { %5138 = vtanh.f32 %v1592_v44 }
 0xa05   :  { %5140 = vtanh.f32 %v1595_v9 }
 0xa09   :  { %v5137_v30 = vpop.eup %5136 }
 0xa0a   :  { %v5139_v14 = vpop.eup %5138  ;;  %v1601_v7 = vmul.f32 0.5, %v5137_v30 }
 0xa0b   :  { %v1600_v59 = vmul.f32 0.5, %v5139_v14  ;;  %v5141_v16 = vpop.eup %5140 }
 0xa0c   :  { %v1605_v35 = vadd.f32 0.5, %v1601_v7  ;;  %v1603_v1 = vmul.f32 0.5, %v5141_v16 }
 0xa0d   :  { %v1577_v29 = vpop.permute.xlu1 %1576  ;;  %v1604_v18 = vadd.f32 0.5, %v1600_v59 }
 0xa0e   :  { %v1586_v28 = vsel %vm263_vm0, %v1552_v21, %v1577_v29  ;;  %v1609_v0 = vmul.f32 %v1605_v35, %v6181_v26  ;;  %v1626_v50 = vmul.f32 %v1605_v35, %v6102_v60  ;;  %v1607_v63 = vadd.f32 0.5, %v1603_v1 }
 0xa0f   :  { %v1590_v51 = vmul.f32 %v1586_v28, %v6046_v45  ;;  %v1608_v22 = vmul.f32 %v1604_v18, %v6148_v49  ;;  %v1625_v24 = vmul.f32 %v1604_v18, %v6095_v23 }
 0xa10   :  { %v1613_v8 = vsel %vm402_vm1, %v1609_v0, 0.0  ;;  %v1630_v27 = vsel %vm402_vm1, %v1626_v50, 0.0  ;;  %v1611_v32 = vmul.f32 %v1607_v63, %v6177_v34  ;;  %v1628_v39 = vmul.f32 %v1607_v63, %v6139_v43 }
 0xa11   :  { %v1594_v20 = vadd.f32 %v1590_v51, %v6061_v37  ;;  %v1612_v41 = vsel %vm402_vm1, %v1608_v22, 0.0  ;;  %v1629_v31 = vsel %vm402_vm1, %v1625_v24, 0.0 }
 0xa12   :  { %v1614_v40 = vadd.f32 %v1613_v8, %v1612_v41  ;;  %v1631_v42 = vadd.f32 %v1630_v27, %v1629_v31  ;;  %v1617_v30 = vsel %vm402_vm1, %v1611_v32, 0.0  ;;  %v1634_v29 = vsel %vm402_vm1, %v1628_v39, 0.0 }
 0xa13   :  { %5142 = vtanh.f32 %v1594_v20  ;;  %v1643_v27 = vmul.f32 %v6503_v62, %v6216_v38 }
 0xa19   :  { %v5143_v12 = vpop.eup %5142 }
 0xa1a   :  { %v1602_v47 = vmul.f32 0.5, %v5143_v12 }
 0xa1c   :  { %v1606_v21 = vadd.f32 0.5, %v1602_v47 }
 0xa1e   :  { %v1610_v13 = vmul.f32 %v1606_v21, %v6168_v52  ;;  %v1627_v57 = vmul.f32 %v1606_v21, %v6108_v11 }
 0xa20   :  { %v1615_v4 = vsel %vm402_vm1, %v1610_v13, 0.0  ;;  %v1632_v44 = vsel %vm402_vm1, %v1627_v57, 0.0 }
 0xa21   :  { %v1616_v53 = vadd.f32 %v1615_v4, %v1614_v40  ;;  %v1633_v9 = vadd.f32 %v1632_v44, %v1631_v42 }
 0xa23   :  { %v1618_v14 = vadd.f32 %v1617_v30, %v1616_v53  ;;  %v1635_v28 = vadd.f32 %v1634_v29, %v1633_v9 }
 0xa25   :  { %v1619_v51 = vrot.slane %v1618_v14, 4  ;;  %v1636_v7 = vrot.slane %v1635_v28, 4 }
 0xa27   :  { %v1620_v59 = vadd.f32 %v1619_v51, %v1618_v14  ;;  %v1637_v20 = vadd.f32 %v1636_v7, %v1635_v28 }
 0xa29   :  { %v1638_v16 = vrot.slane %v1637_v20, 2  ;;  %v1621_v35 = vrot.slane %v1620_v59, 2 }
 0xa2b   :  { %v1639_v18 = vadd.f32 %v1638_v16, %v1637_v20  ;;  %v1622_v0 = vadd.f32 %v1621_v35, %v1620_v59 }
 0xa2d   :  { %v1640_v1 = vrot.slane %v1639_v18, 1  ;;  %v1623_v22 = vrot.slane %v1622_v0, 1 }
 0xa2f   :  { %v1641_v50 = vadd.f32 %v1640_v1, %v1639_v18  ;;  %v1624_v24 = vadd.f32 %v1623_v22, %v1622_v0 }
 0xa31   :  { %v1645_v12 = vadd.f32 %v1641_v50, %v6404_v56  ;;  %v1642_v47 = vadd.f32 %v1624_v24, %v6407_v61 }
 0xa33   :  { %5144 = vrcp.f32 %v1645_v12  ;;  %v1644_v41 = vadd.f32 %v1643_v27, %v1642_v47 }
 0xa39   :  { %v5145_v63 = vpop.eup %5144 }
 0xa3a   :  { %v1647_v8 = vmul.f32 %v5145_v63, %v1645_v12 }
 0xa3c   :  { %v1648_v21 = vsub.f32 2.0, %v1647_v8 }
 0xa3e   :  { %v1649_v31 = vmul.f32 %v5145_v63, %v1648_v21 }
 0xa40   :  { %v6549_v32 = vmul.f32 %v1649_v31, %v1644_v41 }
 0xa42   :  { %v1652_v39 = vrot.slane %v6549_v32, 7 }
 0xa44   :  { %1653 = vrot.lane.b32.xlu1 %v1652_v39, %s5632_s23 }
 0xab6   :  { %v1654_v56 = vpop.permute.xlu1 %1653 }
 0xab7   :  { %v1656_v13 = vsel %vm786_vm2, %v6549_v32, %v1654_v56 }
 0xab8   :  { %v1657_v57 = vperm.slane %v1656_v13, 0  ;;  %v1682_v40 = vperm.slane %v1656_v13, 1 }
 0xaba   :  { %1693 = vperm.xlu0 %4835, %v1682_v40   ;;  %1668 = vperm.xlu1 %4834, %v1657_v57  }
 0xabb   :  { %1662 = vperm.xlu2 %4833, %v1657_v57  }
 0xac2   :  { %4836 = vset.pattern.permute.xlu1 %v5864_v10  ;;  %4842 = vset.pattern.permute.xlu0 %v5788_v2 }
 0xac3   :  { %1687 = vperm.xlu2 %4833, %v1682_v40  }
 0xaca   :  { %1674 = vperm.xlu1 %4836, %v1657_v57  }
 0xacb   :  { %4837 = vset.pattern.permute.xlu2 %v5864_v10 }
 0xad2   :  { %4838 = vset.pattern.permute.xlu1 %v5892_v46 }
 0xad3   :  { %1699 = vperm.xlu2 %4837, %v1682_v40  }
 0xada   :  { %1680 = vperm.xlu1 %4838, %v1657_v57  }
 0xadb   :  { %4839 = vset.pattern.permute.xlu2 %v5892_v46 }
 0xae2   :  { %4840 = vset.pattern.permute.xlu1 %v5788_v2 }
 0xae3   :  { %1705 = vperm.xlu2 %4839, %v1682_v40  }
 0xaeb   :  { %4841 = vset.pattern.permute.xlu2 %v5791_v3 }
 0xb15   :  { %v1663_v61 = vpop.permute.xlu2 %1662 }
 0xb1d   :  { %v1688_v62 = vpop.permute.xlu2 %1687 }
 0xb1e   :  { %v1707_v53 = vsel %vm263_vm0, %v1663_v61, %v1688_v62 }
 0xb1f   :  { %v1711_v14 = vmul.f32 %v1707_v53, %v6033_v48 }
 0xb21   :  { %v1715_v59 = vadd.f32 %v1711_v14, %v6050_v33 }
 0xb2c   :  { %v1669_v42 = vpop.permute.xlu1 %1668  ;;  %v1694_v4 = vpop.permute.xlu0 %1693 }
 0xb2d   :  { %v1708_v44 = vsel %vm263_vm0, %v1669_v42, %v1694_v4  ;;  %v1700_v30 = vpop.permute.xlu2 %1699 }
 0xb2e   :  { %v1712_v9 = vmul.f32 %v1708_v44, %v6040_v58 }
 0xb30   :  { %v1716_v7 = vadd.f32 %v1712_v9, %v6054_v15 }
 0xb32   :  { %5146 = vtanh.f32 %v1716_v7 }
 0xb33   :  { %5148 = vtanh.f32 %v1715_v59 }
 0xb38   :  { %v5147_v16 = vpop.eup %5146 }
 0xb39   :  { %v5149_v35 = vpop.eup %5148  ;;  %v1724_v50 = vmul.f32 0.5, %v5147_v16 }
 0xb3a   :  { %v1723_v22 = vmul.f32 0.5, %v5149_v35 }
 0xb3b   :  { %v1728_v8 = vadd.f32 0.5, %v1724_v50 }
 0xb3c   :  { %v1675_v29 = vpop.permute.xlu1 %1674  ;;  %v1727_v27 = vadd.f32 0.5, %v1723_v22 }
 0xb3d   :  { %v1709_v28 = vsel %vm263_vm0, %v1675_v29, %v1700_v30  ;;  %v1706_v1 = vpop.permute.xlu2 %1705  ;;  %v1732_v41 = vmul.f32 %v1728_v8, %v6181_v26  ;;  %v1749_v31 = vmul.f32 %v1728_v8, %v6102_v60 }
 0xb3e   :  { %v1713_v51 = vmul.f32 %v1709_v28, %v6046_v45  ;;  %v1731_v39 = vmul.f32 %v1727_v27, %v6148_v49  ;;  %v1748_v56 = vmul.f32 %v1727_v27, %v6095_v23 }
 0xb3f   :  { %v1736_v61 = vsel %vm402_vm1, %v1732_v41, 0.0  ;;  %v1753_v62 = vsel %vm402_vm1, %v1749_v31, 0.0 }
 0xb40   :  { %v1717_v20 = vadd.f32 %v1713_v51, %v6061_v37  ;;  %v1735_v4 = vsel %vm402_vm1, %v1731_v39, 0.0  ;;  %v1752_v44 = vsel %vm402_vm1, %v1748_v56, 0.0 }
 0xb41   :  { %v1737_v29 = vadd.f32 %v1736_v61, %v1735_v4  ;;  %v1754_v14 = vadd.f32 %v1753_v62, %v1752_v44 }
 0xb42   :  { %5150 = vtanh.f32 %v1717_v20 }
 0xb48   :  { %v5151_v18 = vpop.eup %5150 }
 0xb49   :  { %v1725_v63 = vmul.f32 0.5, %v5151_v18 }
 0xb4b   :  { %v1729_v21 = vadd.f32 0.5, %v1725_v63 }
 0xb4c   :  { %v1681_v0 = vpop.permute.xlu1 %1680 }
 0xb4d   :  { %v1710_v12 = vsel %vm263_vm0, %v1681_v0, %v1706_v1  ;;  %v1733_v13 = vmul.f32 %v1729_v21, %v6168_v52  ;;  %v1750_v57 = vmul.f32 %v1729_v21, %v6108_v11 }
 0xb4e   :  { %v1714_v24 = vmul.f32 %v1710_v12, %v6065_v25 }
 0xb4f   :  { %v1738_v53 = vsel %vm402_vm1, %v1733_v13, 0.0  ;;  %v1755_v9 = vsel %vm402_vm1, %v1750_v57, 0.0  ;;  %v1766_v57 = vmul.f32 %v6549_v32, %v6216_v38 }
 0xb50   :  { %v1718_v47 = vadd.f32 %v1714_v24, %v6073_v19  ;;  %v1739_v7 = vadd.f32 %v1738_v53, %v1737_v29  ;;  %v1756_v59 = vadd.f32 %v1755_v9, %v1754_v14 }
 0xb52   :  { %5152 = vtanh.f32 %v1718_v47 }
 0xb58   :  { %v5153_v40 = vpop.eup %5152 }
 0xb59   :  { %v1726_v42 = vmul.f32 0.5, %v5153_v40 }
 0xb5b   :  { %v1730_v30 = vadd.f32 0.5, %v1726_v42 }
 0xb5d   :  { %v1734_v28 = vmul.f32 %v1730_v30, %v6177_v34  ;;  %v1751_v51 = vmul.f32 %v1730_v30, %v6139_v43 }
 0xb5f   :  { %v1740_v20 = vsel %vm402_vm1, %v1734_v28, 0.0  ;;  %v1757_v16 = vsel %vm402_vm1, %v1751_v51, 0.0 }
 0xb60   :  { %v1741_v35 = vadd.f32 %v1740_v20, %v1739_v7  ;;  %v1758_v18 = vadd.f32 %v1757_v16, %v1756_v59 }
 0xb62   :  { %v1742_v1 = vrot.slane %v1741_v35, 4  ;;  %v1759_v0 = vrot.slane %v1758_v18, 4 }
 0xb64   :  { %v1743_v50 = vadd.f32 %v1742_v1, %v1741_v35  ;;  %v1760_v12 = vadd.f32 %v1759_v0, %v1758_v18 }
 0xb66   :  { %v1761_v22 = vrot.slane %v1760_v12, 2  ;;  %v1744_v24 = vrot.slane %v1743_v50, 2 }
 0xb68   :  { %v1762_v63 = vadd.f32 %v1761_v22, %v1760_v12  ;;  %v1745_v8 = vadd.f32 %v1744_v24, %v1743_v50 }
 0xb6a   :  { %v1763_v47 = vrot.slane %v1762_v63, 1  ;;  %v1746_v41 = vrot.slane %v1745_v8, 1 }
 0xb6c   :  { %v1764_v27 = vadd.f32 %v1763_v47, %v1762_v63  ;;  %v1747_v31 = vadd.f32 %v1746_v41, %v1745_v8 }
 0xb6e   :  { %v1768_v21 = vadd.f32 %v1764_v27, %v6199_v36  ;;  %v1765_v56 = vadd.f32 %v1747_v31, %v6208_v17 }
 0xb70   :  { %5154 = vrcp.f32 %v1768_v21  ;;  %v1767_v61 = vadd.f32 %v1766_v57, %v1765_v56 }
 0xb76   :  { %v5155_v39 = vpop.eup %5154 }
 0xb77   :  { %v1770_v13 = vmul.f32 %v5155_v39, %v1768_v21 }
 0xb79   :  { %v1771_v40 = vsub.f32 2.0, %v1770_v13 }
 0xb7b   :  { %v1772_v62 = vmul.f32 %v5155_v39, %v1771_v40 }
 0xb7d   :  { %v6594_v42 = vmul.f32 %v1772_v62, %v1767_v61 }
 0xb7f   :  { %v1775_v4 = vrot.slane %v6594_v42, 7 }
 0xb81   :  { %1776 = vrot.lane.b32.xlu0 %v1775_v4, %s5632_s23 }
 0xbf3   :  { %v1777_v44 = vpop.permute.xlu0 %1776 }
 0xbf4   :  { %v1779_v53 = vsel %vm786_vm2, %v6594_v42, %v1777_v44 }
 0xbf5   :  { %v1780_v9 = vperm.slane %v1779_v53, 0  ;;  %v1805_v30 = vperm.slane %v1779_v53, 1 }
 0xbf7   :  { %1810 = vperm.xlu0 %4842, %v1805_v30   ;;  %1791 = vperm.xlu2 %4841, %v1780_v9  }
 0xbf8   :  { %1785 = vperm.xlu1 %4840, %v1780_v9  }
 0xbff   :  { %4847 = vset.pattern.permute.xlu0 %v5892_v46  ;;  %4844 = vset.pattern.permute.xlu2 %v5864_v10 }
 0xc00   :  { %4843 = vset.pattern.permute.xlu1 %v5791_v3 }
 0xc07   :  { %1828 = vperm.xlu0 %4847, %v1805_v30   ;;  %1797 = vperm.xlu2 %4844, %v1780_v9  }
 0xc08   :  { %1816 = vperm.xlu1 %4843, %v1805_v30  }
 0xc0f   :  { %4846 = vset.pattern.permute.xlu2 %v5892_v46  ;;  %4850 = vset.pattern.permute.xlu0 %v5791_v3 }
 0xc10   :  { %4845 = vset.pattern.permute.xlu1 %v5864_v10 }
 0xc17   :  { %1803 = vperm.xlu2 %4846, %v1780_v9  }
 0xc18   :  { %1822 = vperm.xlu1 %4845, %v1805_v30  }
 0xc1f   :  { %4848 = vset.pattern.permute.xlu2 %v5788_v2 }
 0xc20   :  { %4849 = vset.pattern.permute.xlu1 %v5791_v3 }
 0xc51   :  { %v1792_v32 = vpop.permute.xlu2 %1791 }
 0xc61   :  { %v1798_v28 = vpop.permute.xlu2 %1797 }
 0xc69   :  { %v1811_v14 = vpop.permute.xlu0 %1810 }
 0xc6a   :  { %v1786_v29 = vpop.permute.xlu1 %1785 }
 0xc6b   :  { %v1830_v51 = vsel %vm263_vm0, %v1786_v29, %v1811_v14 }
 0xc6c   :  { %v1834_v35 = vmul.f32 %v1830_v51, %v6033_v48 }
 0xc6e   :  { %v1838_v50 = vadd.f32 %v1834_v35, %v6050_v33 }
 0xc71   :  { %v1804_v18 = vpop.permute.xlu2 %1803 }
 0xc79   :  { %v1829_v20 = vpop.permute.xlu0 %1828 }
 0xc7a   :  { %v1817_v7 = vpop.permute.xlu1 %1816  ;;  %v1833_v1 = vsel %vm263_vm0, %v1804_v18, %v1829_v20 }
 0xc7b   :  { %v1831_v59 = vsel %vm263_vm0, %v1792_v32, %v1817_v7  ;;  %v1837_v12 = vmul.f32 %v1833_v1, %v6065_v25 }
 0xc7c   :  { %v1835_v16 = vmul.f32 %v1831_v59, %v6040_v58 }
 0xc7d   :  { %v1841_v22 = vadd.f32 %v1837_v12, %v6073_v19 }
 0xc7e   :  { %v1839_v0 = vadd.f32 %v1835_v16, %v6054_v15 }
 0xc80   :  { %5156 = vtanh.f32 %v1839_v0 }
 0xc81   :  { %5158 = vtanh.f32 %v1838_v50 }
 0xc82   :  { %5160 = vtanh.f32 %v1841_v22 }
 0xc86   :  { %v5157_v24 = vpop.eup %5156 }
 0xc87   :  { %v5159_v47 = vpop.eup %5158  ;;  %v1847_v21 = vmul.f32 0.5, %v5157_v24 }
 0xc88   :  { %v1846_v41 = vmul.f32 0.5, %v5159_v47  ;;  %v5161_v39 = vpop.eup %5160 }
 0xc89   :  { %v1851_v56 = vadd.f32 0.5, %v1847_v21  ;;  %v1849_v57 = vmul.f32 0.5, %v5161_v39 }
 0xc8a   :  { %v1823_v63 = vpop.permute.xlu1 %1822  ;;  %v1850_v13 = vadd.f32 0.5, %v1846_v41 }
 0xc8b   :  { %v1832_v8 = vsel %vm263_vm0, %v1798_v28, %v1823_v63  ;;  %v1855_v40 = vmul.f32 %v1851_v56, %v6181_v26  ;;  %v1872_v61 = vmul.f32 %v1851_v56, %v6102_v60  ;;  %v1853_v53 = vadd.f32 0.5, %v1849_v57 }
 0xc8c   :  { %v1836_v27 = vmul.f32 %v1832_v8, %v6046_v45  ;;  %v1854_v4 = vmul.f32 %v1850_v13, %v6148_v49  ;;  %v1871_v44 = vmul.f32 %v1850_v13, %v6095_v23 }
 0xc8d   :  { %v1859_v30 = vsel %vm402_vm1, %v1855_v40, 0.0  ;;  %v1876_v32 = vsel %vm402_vm1, %v1872_v61, 0.0  ;;  %v1857_v51 = vmul.f32 %v1853_v53, %v6177_v34  ;;  %v1874_v7 = vmul.f32 %v1853_v53, %v6139_v43 }
 0xc8e   :  { %v1840_v31 = vadd.f32 %v1836_v27, %v6061_v37  ;;  %v1858_v14 = vsel %vm402_vm1, %v1854_v4, 0.0  ;;  %v1875_v28 = vsel %vm402_vm1, %v1871_v44, 0.0 }
 0xc8f   :  { %v1860_v16 = vadd.f32 %v1859_v30, %v1858_v14  ;;  %v1877_v35 = vadd.f32 %v1876_v32, %v1875_v28  ;;  %v1863_v12 = vsel %vm402_vm1, %v1857_v51, 0.0  ;;  %v1880_v22 = vsel %vm402_vm1, %v1874_v7, 0.0 }
 0xc90   :  { %5162 = vtanh.f32 %v1840_v31 }
 0xc96   :  { %v5163_v62 = vpop.eup %5162 }
 0xc97   :  { %v1848_v9 = vmul.f32 0.5, %v5163_v62 }
 0xc99   :  { %v1852_v29 = vadd.f32 0.5, %v1848_v9  ;;  %v1889_v9 = vmul.f32 %v6594_v42, %v6216_v38 }
 0xc9b   :  { %v1856_v59 = vmul.f32 %v1852_v29, %v6168_v52  ;;  %v1873_v20 = vmul.f32 %v1852_v29, %v6108_v11 }
 0xc9d   :  { %v1861_v18 = vsel %vm402_vm1, %v1856_v59, 0.0  ;;  %v1878_v1 = vsel %vm402_vm1, %v1873_v20, 0.0 }
 0xc9e   :  { %v1862_v0 = vadd.f32 %v1861_v18, %v1860_v16  ;;  %v1879_v50 = vadd.f32 %v1878_v1, %v1877_v35 }
 0xca0   :  { %v1864_v24 = vadd.f32 %v1863_v12, %v1862_v0  ;;  %v1881_v63 = vadd.f32 %v1880_v22, %v1879_v50 }
 0xca2   :  { %v1865_v47 = vrot.slane %v1864_v24, 4  ;;  %v1882_v8 = vrot.slane %v1881_v63, 4 }
 0xca4   :  { %v1866_v27 = vadd.f32 %v1865_v47, %v1864_v24  ;;  %v1883_v21 = vadd.f32 %v1882_v8, %v1881_v63 }
 0xca6   :  { %v1884_v41 = vrot.slane %v1883_v21, 2  ;;  %v1867_v31 = vrot.slane %v1866_v27, 2 }
 0xca8   :  { %v1885_v39 = vadd.f32 %v1884_v41, %v1883_v21  ;;  %v1868_v13 = vadd.f32 %v1867_v31, %v1866_v27 }
 0xcaa   :  { %v1886_v56 = vrot.slane %v1885_v39, 1  ;;  %v1869_v61 = vrot.slane %v1868_v13, 1 }
 0xcac   :  { %v1887_v57 = vadd.f32 %v1886_v56, %v1885_v39  ;;  %v1870_v62 = vadd.f32 %v1869_v61, %v1868_v13 }
 0xcae   :  { %v1891_v40 = vadd.f32 %v1887_v57, %v6199_v36  ;;  %v1888_v44 = vadd.f32 %v1870_v62, %v6208_v17 }
 0xcb0   :  { %5164 = vrcp.f32 %v1891_v40  ;;  %v1890_v32 = vadd.f32 %v1889_v9, %v1888_v44 }
 0xcb6   :  { %v5165_v4 = vpop.eup %5164 }
 0xcb7   :  { %v1893_v53 = vmul.f32 %v5165_v4, %v1891_v40 }
 0xcb9   :  { %v1894_v30 = vsub.f32 2.0, %v1893_v53 }
 0xcbb   :  { %v1895_v29 = vmul.f32 %v5165_v4, %v1894_v30 }
 0xcbd   :  { %v6640_v14 = vmul.f32 %v1895_v29, %v1890_v32 }
 0xcbf   :  { %v1898_v28 = vrot.slane %v6640_v14, 7 }
 0xcc1   :  { %1899 = vrot.lane.b32.xlu1 %v1898_v28, %s5632_s23 }
 0xd33   :  { %v1900_v51 = vpop.permute.xlu1 %1899 }
 0xd34   :  { %v1902_v7 = vsel %vm786_vm2, %v6640_v14, %v1900_v51 }
 0xd35   :  { %v1903_v59 = vperm.slane %v1902_v7, 0  ;;  %v1928_v20 = vperm.slane %v1902_v7, 1 }
 0xd37   :  { %1939 = vperm.xlu0 %4850, %v1928_v20   ;;  %1914 = vperm.xlu1 %4849, %v1903_v59  }
 0xd38   :  { %1908 = vperm.xlu2 %4848, %v1903_v59  }
 0xd3f   :  { %4851 = vset.pattern.permute.xlu1 %v5864_v10  ;;  %4857 = vset.pattern.permute.xlu0 %v5788_v2 }
 0xd40   :  { %1933 = vperm.xlu2 %4848, %v1928_v20  }
 0xd47   :  { %1920 = vperm.xlu1 %4851, %v1903_v59  }
 0xd48   :  { %4852 = vset.pattern.permute.xlu2 %v5864_v10 }
 0xd4f   :  { %4853 = vset.pattern.permute.xlu1 %v5892_v46 }
 0xd50   :  { %1945 = vperm.xlu2 %4852, %v1928_v20  }
 0xd57   :  { %1926 = vperm.xlu1 %4853, %v1903_v59  }
 0xd58   :  { %4854 = vset.pattern.permute.xlu2 %v5892_v46 }
 0xd5f   :  { %4855 = vset.pattern.permute.xlu1 %v5788_v2 }
 0xd60   :  { %1951 = vperm.xlu2 %4854, %v1928_v20  }
 0xd68   :  { %4856 = vset.pattern.permute.xlu2 %v5791_v3 }
 0xd92   :  { %v1909_v42 = vpop.permute.xlu2 %1908 }
 0xd9a   :  { %v1934_v16 = vpop.permute.xlu2 %1933 }
 0xd9b   :  { %v1953_v0 = vsel %vm263_vm0, %v1909_v42, %v1934_v16 }
 0xd9c   :  { %v1957_v24 = vmul.f32 %v1953_v0, %v6033_v48 }
 0xd9e   :  { %v1961_v27 = vadd.f32 %v1957_v24, %v6050_v33 }
 0xda9   :  { %v1915_v35 = vpop.permute.xlu1 %1914  ;;  %v1940_v18 = vpop.permute.xlu0 %1939 }
 0xdaa   :  { %v1954_v1 = vsel %vm263_vm0, %v1915_v35, %v1940_v18  ;;  %v1946_v12 = vpop.permute.xlu2 %1945 }
 0xdab   :  { %v1958_v50 = vmul.f32 %v1954_v1, %v6040_v58 }
 0xdad   :  { %v1962_v8 = vadd.f32 %v1958_v50, %v6054_v15 }
 0xdaf   :  { %5166 = vtanh.f32 %v1962_v8 }
 0xdb0   :  { %5168 = vtanh.f32 %v1961_v27 }
 0xdb5   :  { %v5167_v41 = vpop.eup %5166 }
 0xdb6   :  { %v5169_v31 = vpop.eup %5168  ;;  %v1970_v57 = vmul.f32 0.5, %v5167_v41 }
 0xdb7   :  { %v1969_v61 = vmul.f32 0.5, %v5169_v31 }
 0xdb8   :  { %v1974_v53 = vadd.f32 0.5, %v1970_v57 }
 0xdb9   :  { %v1921_v22 = vpop.permute.xlu1 %1920  ;;  %v1973_v9 = vadd.f32 0.5, %v1969_v61 }
 0xdba   :  { %v1955_v63 = vsel %vm263_vm0, %v1921_v22, %v1946_v12  ;;  %v1952_v56 = vpop.permute.xlu2 %1951  ;;  %v1978_v32 = vmul.f32 %v1974_v53, %v6181_v26  ;;  %v1995_v29 = vmul.f32 %v1974_v53, %v6102_v60 }
 0xdbb   :  { %v1959_v47 = vmul.f32 %v1955_v63, %v6046_v45  ;;  %v1977_v28 = vmul.f32 %v1973_v9, %v6148_v49  ;;  %v1994_v51 = vmul.f32 %v1973_v9, %v6095_v23 }
 0xdbc   :  { %v1982_v42 = vsel %vm402_vm1, %v1978_v32, 0.0  ;;  %v1999_v16 = vsel %vm402_vm1, %v1995_v29, 0.0 }
 0xdbd   :  { %v1963_v21 = vadd.f32 %v1959_v47, %v6061_v37  ;;  %v1981_v18 = vsel %vm402_vm1, %v1977_v28, 0.0  ;;  %v1998_v1 = vsel %vm402_vm1, %v1994_v51, 0.0 }
 0xdbe   :  { %v1983_v22 = vadd.f32 %v1982_v42, %v1981_v18  ;;  %v2000_v24 = vadd.f32 %v1999_v16, %v1998_v1 }
 0xdbf   :  { %5170 = vtanh.f32 %v1963_v21 }
 0xdc5   :  { %v5171_v39 = vpop.eup %5170 }
 0xdc6   :  { %v1971_v4 = vmul.f32 0.5, %v5171_v39 }
 0xdc8   :  { %v1975_v30 = vadd.f32 0.5, %v1971_v4 }
 0xdc9   :  { %v1927_v13 = vpop.permute.xlu1 %1926 }
 0xdca   :  { %v1956_v40 = vsel %vm263_vm0, %v1927_v13, %v1952_v56  ;;  %v1979_v7 = vmul.f32 %v1975_v30, %v6168_v52  ;;  %v1996_v59 = vmul.f32 %v1975_v30, %v6108_v11 }
 0xdcb   :  { %v1960_v62 = vmul.f32 %v1956_v40, %v6065_v25 }
 0xdcc   :  { %v1984_v0 = vsel %vm402_vm1, %v1979_v7, 0.0  ;;  %v2001_v50 = vsel %vm402_vm1, %v1996_v59, 0.0  ;;  %v2012_v59 = vmul.f32 %v6640_v14, %v6216_v38 }
 0xdcd   :  { %v1964_v44 = vadd.f32 %v1960_v62, %v6073_v19  ;;  %v1985_v8 = vadd.f32 %v1984_v0, %v1983_v22  ;;  %v2002_v27 = vadd.f32 %v2001_v50, %v2000_v24 }
 0xdcf   :  { %5172 = vtanh.f32 %v1964_v44 }
 0xdd5   :  { %v5173_v20 = vpop.eup %5172 }
 0xdd6   :  { %v1972_v35 = vmul.f32 0.5, %v5173_v20 }
 0xdd8   :  { %v1976_v12 = vadd.f32 0.5, %v1972_v35 }
 0xdda   :  { %v1980_v63 = vmul.f32 %v1976_v12, %v6177_v34  ;;  %v1997_v47 = vmul.f32 %v1976_v12, %v6139_v43 }
 0xddc   :  { %v1986_v21 = vsel %vm402_vm1, %v1980_v63, 0.0  ;;  %v2003_v41 = vsel %vm402_vm1, %v1997_v47, 0.0 }
 0xddd   :  { %v1987_v31 = vadd.f32 %v1986_v21, %v1985_v8  ;;  %v2004_v39 = vadd.f32 %v2003_v41, %v2002_v27 }
 0xddf   :  { %v1988_v56 = vrot.slane %v1987_v31, 4  ;;  %v2005_v13 = vrot.slane %v2004_v39, 4 }
 0xde1   :  { %v1989_v57 = vadd.f32 %v1988_v56, %v1987_v31  ;;  %v2006_v40 = vadd.f32 %v2005_v13, %v2004_v39 }
 0xde3   :  { %v2007_v61 = vrot.slane %v2006_v40, 2  ;;  %v1990_v62 = vrot.slane %v1989_v57, 2 }
 0xde5   :  { %v2008_v4 = vadd.f32 %v2007_v61, %v2006_v40  ;;  %v1991_v53 = vadd.f32 %v1990_v62, %v1989_v57 }
 0xde7   :  { %v2009_v44 = vrot.slane %v2008_v4, 1  ;;  %v1992_v32 = vrot.slane %v1991_v53, 1 }
 0xde9   :  { %v2010_v9 = vadd.f32 %v2009_v44, %v2008_v4  ;;  %v1993_v29 = vadd.f32 %v1992_v32, %v1991_v53 }
 0xdeb   :  { %v2014_v30 = vadd.f32 %v2010_v9, %v6199_v36  ;;  %v2011_v51 = vadd.f32 %v1993_v29, %v6208_v17 }
 0xded   :  { %5174 = vrcp.f32 %v2014_v30  ;;  %v2013_v42 = vadd.f32 %v2012_v59, %v2011_v51 }
 0xdf3   :  { %v5175_v28 = vpop.eup %5174 }
 0xdf4   :  { %v2016_v7 = vmul.f32 %v5175_v28, %v2014_v30 }
 0xdf6   :  { %v2017_v20 = vsub.f32 2.0, %v2016_v7 }
 0xdf8   :  { %v2018_v16 = vmul.f32 %v5175_v28, %v2017_v20 }
 0xdfa   :  { %v6685_v35 = vmul.f32 %v2018_v16, %v2013_v42 }
 0xdfc   :  { %v2021_v18 = vrot.slane %v6685_v35, 7 }
 0xdfe   :  { %2022 = vrot.lane.b32.xlu0 %v2021_v18, %s5632_s23 }
 0xe70   :  { %v2023_v1 = vpop.permute.xlu0 %2022 }
 0xe71   :  { %v2025_v0 = vsel %vm786_vm2, %v6685_v35, %v2023_v1 }
 0xe72   :  { %v2026_v50 = vperm.slane %v2025_v0, 0  ;;  %v2051_v12 = vperm.slane %v2025_v0, 1 }
 0xe74   :  { %2056 = vperm.xlu0 %4857, %v2051_v12   ;;  %2037 = vperm.xlu2 %4856, %v2026_v50  }
 0xe75   :  { %2031 = vperm.xlu1 %4855, %v2026_v50  }
 0xe7c   :  { %4862 = vset.pattern.permute.xlu0 %v5892_v46  ;;  %4859 = vset.pattern.permute.xlu2 %v5864_v10 }
 0xe7d   :  { %4858 = vset.pattern.permute.xlu1 %v5791_v3 }
 0xe84   :  { %2074 = vperm.xlu0 %4862, %v2051_v12   ;;  %2043 = vperm.xlu2 %4859, %v2026_v50  }
 0xe85   :  { %2062 = vperm.xlu1 %4858, %v2051_v12  }
 0xe8c   :  { %4861 = vset.pattern.permute.xlu2 %v5892_v46  ;;  %4865 = vset.pattern.permute.xlu0 %v5791_v3 }
 0xe8d   :  { %4860 = vset.pattern.permute.xlu1 %v5864_v10 }
 0xe94   :  { %2049 = vperm.xlu2 %4861, %v2026_v50  }
 0xe95   :  { %2068 = vperm.xlu1 %4860, %v2051_v12  }
 0xe9c   :  { %4863 = vset.pattern.permute.xlu2 %v5788_v2 }
 0xe9d   :  { %4864 = vset.pattern.permute.xlu1 %v5791_v3 }
 0xece   :  { %v2038_v14 = vpop.permute.xlu2 %2037 }
 0xede   :  { %v2044_v63 = vpop.permute.xlu2 %2043 }
 0xee6   :  { %v2057_v24 = vpop.permute.xlu0 %2056 }
 0xee7   :  { %v2032_v22 = vpop.permute.xlu1 %2031 }
 0xee8   :  { %v2076_v47 = vsel %vm263_vm0, %v2032_v22, %v2057_v24 }
 0xee9   :  { %v2080_v31 = vmul.f32 %v2076_v47, %v6033_v48 }
 0xeeb   :  { %v2084_v57 = vadd.f32 %v2080_v31, %v6050_v33 }
 0xeee   :  { %v2050_v39 = vpop.permute.xlu2 %2049 }
 0xef6   :  { %v2075_v21 = vpop.permute.xlu0 %2074 }
 0xef7   :  { %v2063_v8 = vpop.permute.xlu1 %2062  ;;  %v2079_v56 = vsel %vm263_vm0, %v2050_v39, %v2075_v21 }
 0xef8   :  { %v2077_v27 = vsel %vm263_vm0, %v2038_v14, %v2063_v8  ;;  %v2083_v40 = vmul.f32 %v2079_v56, %v6065_v25 }
 0xef9   :  { %v2081_v41 = vmul.f32 %v2077_v27, %v6040_v58 }
 0xefa   :  { %v2087_v61 = vadd.f32 %v2083_v40, %v6073_v19 }
 0xefb   :  { %v2085_v13 = vadd.f32 %v2081_v41, %v6054_v15 }
 0xefd   :  { %5176 = vtanh.f32 %v2085_v13 }
 0xefe   :  { %5178 = vtanh.f32 %v2084_v57 }
 0xeff   :  { %5180 = vtanh.f32 %v2087_v61 }
 0xf03   :  { %v5177_v62 = vpop.eup %5176 }
 0xf04   :  { %v5179_v44 = vpop.eup %5178  ;;  %v2093_v30 = vmul.f32 0.5, %v5177_v62 }
 0xf05   :  { %v2092_v32 = vmul.f32 0.5, %v5179_v44  ;;  %v5181_v28 = vpop.eup %5180 }
 0xf06   :  { %v2097_v51 = vadd.f32 0.5, %v2093_v30  ;;  %v2095_v59 = vmul.f32 0.5, %v5181_v28 }
 0xf07   :  { %v2069_v4 = vpop.permute.xlu1 %2068  ;;  %v2096_v7 = vadd.f32 0.5, %v2092_v32 }
 0xf08   :  { %v2078_v53 = vsel %vm263_vm0, %v2044_v63, %v2069_v4  ;;  %v2101_v20 = vmul.f32 %v2097_v51, %v6181_v26  ;;  %v2118_v42 = vmul.f32 %v2097_v51, %v6102_v60  ;;  %v2099_v0 = vadd.f32 0.5, %v2095_v59 }
 0xf09   :  { %v2082_v9 = vmul.f32 %v2078_v53, %v6046_v45  ;;  %v2100_v18 = vmul.f32 %v2096_v7, %v6148_v49  ;;  %v2117_v1 = vmul.f32 %v2096_v7, %v6095_v23 }
 0xf0a   :  { %v2105_v12 = vsel %vm402_vm1, %v2101_v20, 0.0  ;;  %v2122_v14 = vsel %vm402_vm1, %v2118_v42, 0.0  ;;  %v2103_v47 = vmul.f32 %v2099_v0, %v6177_v34  ;;  %v2120_v8 = vmul.f32 %v2099_v0, %v6139_v43 }
 0xf0b   :  { %v2086_v29 = vadd.f32 %v2082_v9, %v6061_v37  ;;  %v2104_v24 = vsel %vm402_vm1, %v2100_v18, 0.0  ;;  %v2121_v63 = vsel %vm402_vm1, %v2117_v1, 0.0 }
 0xf0c   :  { %v2106_v41 = vadd.f32 %v2105_v12, %v2104_v24  ;;  %v2123_v31 = vadd.f32 %v2122_v14, %v2121_v63  ;;  %v2109_v40 = vsel %vm402_vm1, %v2103_v47, 0.0  ;;  %v2126_v61 = vsel %vm402_vm1, %v2120_v8, 0.0 }
 0xf0d   :  { %5182 = vtanh.f32 %v2086_v29 }
 0xf13   :  { %v5183_v16 = vpop.eup %5182 }
 0xf14   :  { %v2094_v50 = vmul.f32 0.5, %v5183_v16 }
 0xf16   :  { %v2098_v22 = vadd.f32 0.5, %v2094_v50  ;;  %v2135_v50 = vmul.f32 %v6685_v35, %v6216_v38 }
 0xf18   :  { %v2102_v27 = vmul.f32 %v2098_v22, %v6168_v52  ;;  %v2119_v21 = vmul.f32 %v2098_v22, %v6108_v11 }
 0xf1a   :  { %v2107_v39 = vsel %vm402_vm1, %v2102_v27, 0.0  ;;  %v2124_v56 = vsel %vm402_vm1, %v2119_v21, 0.0 }
 0xf1b   :  { %v2108_v13 = vadd.f32 %v2107_v39, %v2106_v41  ;;  %v2125_v57 = vadd.f32 %v2124_v56, %v2123_v31 }
 0xf1d   :  { %v2110_v62 = vadd.f32 %v2109_v40, %v2108_v13  ;;  %v2127_v4 = vadd.f32 %v2126_v61, %v2125_v57 }
 0xf1f   :  { %v2111_v44 = vrot.slane %v2110_v62, 4  ;;  %v2128_v53 = vrot.slane %v2127_v4, 4 }
 0xf21   :  { %v2112_v9 = vadd.f32 %v2111_v44, %v2110_v62  ;;  %v2129_v30 = vadd.f32 %v2128_v53, %v2127_v4 }
 0xf23   :  { %v2130_v32 = vrot.slane %v2129_v30, 2  ;;  %v2113_v29 = vrot.slane %v2112_v9, 2 }
 0xf25   :  { %v2131_v28 = vadd.f32 %v2130_v32, %v2129_v30  ;;  %v2114_v7 = vadd.f32 %v2113_v29, %v2112_v9 }
 0xf27   :  { %v2132_v51 = vrot.slane %v2131_v28, 1  ;;  %v2115_v42 = vrot.slane %v2114_v7, 1 }
 0xf29   :  { %v2133_v59 = vadd.f32 %v2132_v51, %v2131_v28  ;;  %v2116_v16 = vadd.f32 %v2115_v42, %v2114_v7 }
 0xf2b   :  { %v2137_v20 = vadd.f32 %v2133_v59, %v6199_v36  ;;  %v2134_v1 = vadd.f32 %v2116_v16, %v6208_v17 }
 0xf2d   :  { %5184 = vrcp.f32 %v2137_v20  ;;  %v2136_v14 = vadd.f32 %v2135_v50, %v2134_v1 }
 0xf33   :  { %v5185_v18 = vpop.eup %5184 }
 0xf34   :  { %v2139_v0 = vmul.f32 %v5185_v18, %v2137_v20 }
 0xf36   :  { %v2140_v12 = vsub.f32 2.0, %v2139_v0 }
 0xf38   :  { %v2141_v22 = vmul.f32 %v5185_v18, %v2140_v12 }
 0xf3a   :  { %v6731_v24 = vmul.f32 %v2141_v22, %v2136_v14 }
 0xf3c   :  { %v2144_v63 = vrot.slane %v6731_v24, 7 }
 0xf3e   :  { %2145 = vrot.lane.b32.xlu1 %v2144_v63, %s5632_s23 }
 0xfb0   :  { %v2146_v47 = vpop.permute.xlu1 %2145 }
 0xfb1   :  { %v2148_v8 = vsel %vm786_vm2, %v6731_v24, %v2146_v47 }
 0xfb2   :  { %v2149_v27 = vperm.slane %v2148_v8, 0  ;;  %v2174_v21 = vperm.slane %v2148_v8, 1 }
 0xfb4   :  { %2185 = vperm.xlu0 %4865, %v2174_v21   ;;  %2160 = vperm.xlu1 %4864, %v2149_v27  }
 0xfb5   :  { %2154 = vperm.xlu2 %4863, %v2149_v27  }
 0xfbc   :  { %2265 = vrot.lane.b32.xlu0 %v6199_v36, %s5631_s12  ;;  %4866 = vset.pattern.permute.xlu1 %v5864_v10 }
 0xfbd   :  { %2179 = vperm.xlu2 %4863, %v2174_v21   ;;  %4870 = vset.pattern.permute.xlu0 %v5788_v2 }
 0xfc4   :  { %2166 = vperm.xlu1 %4866, %v2149_v27  }
 0xfc5   :  { %4867 = vset.pattern.permute.xlu2 %v5864_v10 }
 0xfcc   :  { %4868 = vset.pattern.permute.xlu1 %v5892_v46 }
 0xfcd   :  { %2191 = vperm.xlu2 %4867, %v2174_v21  }
 0xfd4   :  { %2172 = vperm.xlu1 %4868, %v2149_v27  }
 0xfd5   :  { %4869 = vset.pattern.permute.xlu2 %v5892_v46 }
 0xfdc   :  { %2258 = vrot.lane.b32.xlu1 %v6208_v17, %s5631_s12 }
 0xfdd   :  { %2197 = vperm.xlu2 %4869, %v2174_v21   ;;  %4871 = vset.pattern.permute.xlu1 %v5791_v3 }
 0xfe5   :  { %4872 = vset.pattern.permute.xlu2 %v5788_v2 }
0x100f   :  { %v2155_v36 = vpop.permute.xlu2 %2154 }
0x1017   :  { %v2180_v35 = vpop.permute.xlu2 %2179 }
0x1018   :  { %v2199_v56 = vsel %vm263_vm0, %v2155_v36, %v2180_v35 }
0x1019   :  { %v2203_v61 = vmul.f32 %v2199_v56, %v6033_v48 }
0x101b   :  { %v2207_v44 = vadd.f32 %v2203_v61, %v6050_v33 }
0x1026   :  { %v2161_v41 = vpop.permute.xlu1 %2160  ;;  %v2186_v31 = vpop.permute.xlu0 %2185 }
0x1027   :  { %v2200_v39 = vsel %vm263_vm0, %v2161_v41, %v2186_v31  ;;  %v2192_v57 = vpop.permute.xlu2 %2191 }
0x1028   :  { %v2204_v13 = vmul.f32 %v2200_v39, %v6040_v58 }
0x102a   :  { %v2208_v4 = vadd.f32 %v2204_v13, %v6054_v15 }
0x102c   :  { %5186 = vtanh.f32 %v2208_v4 }
0x102d   :  { %5188 = vtanh.f32 %v2207_v44 }
0x1032   :  { %v5187_v9 = vpop.eup %5186 }
0x1033   :  { %v5189_v30 = vpop.eup %5188  ;;  %v2216_v51 = vmul.f32 0.5, %v5187_v9 }
0x1034   :  { %v2215_v59 = vmul.f32 0.5, %v5189_v30 }
0x1035   :  { %v2220_v18 = vadd.f32 0.5, %v2216_v51 }
0x1036   :  { %v2167_v40 = vpop.permute.xlu1 %2166  ;;  %v2219_v1 = vadd.f32 0.5, %v2215_v59 }
0x1037   :  { %v2201_v17 = vsel %vm263_vm0, %v2167_v40, %v2192_v57  ;;  %v2198_v29 = vpop.permute.xlu2 %2197  ;;  %v2224_v50 = vmul.f32 %v2220_v18, %v6181_v26  ;;  %v2241_v12 = vmul.f32 %v2220_v18, %v6102_v60  ;;  %v6776_v18 = vpop.permute.xlu0 %2265 }
0x1038   :  { %v2205_v62 = vmul.f32 %v2201_v17, %v6046_v45  ;;  %v2223_v14 = vmul.f32 %v2219_v1, %v6148_v49  ;;  %v2240_v22 = vmul.f32 %v2219_v1, %v6095_v23 }
0x1039   :  { %v2228_v27 = vsel %vm402_vm1, %v2224_v50, 0.0  ;;  %v2245_v21 = vsel %vm402_vm1, %v2241_v12, 0.0 }
0x103a   :  { %v2209_v53 = vadd.f32 %v2205_v62, %v6061_v37  ;;  %v2227_v35 = vsel %vm402_vm1, %v2223_v14, 0.0  ;;  %v2244_v41 = vsel %vm402_vm1, %v2240_v22, 0.0 }
0x103b   :  { %v2229_v13 = vadd.f32 %v2228_v27, %v2227_v35  ;;  %v2246_v57 = vadd.f32 %v2245_v21, %v2244_v41 }
0x103c   :  { %5190 = vtanh.f32 %v2209_v53 }
0x1042   :  { %v5191_v32 = vpop.eup %5190 }
0x1043   :  { %v2217_v42 = vmul.f32 0.5, %v5191_v32 }
0x1045   :  { %v2221_v0 = vadd.f32 0.5, %v2217_v42 }
0x1046   :  { %v2173_v28 = vpop.permute.xlu1 %2172 }
0x1047   :  { %v2202_v7 = vsel %vm263_vm0, %v2173_v28, %v2198_v29  ;;  %v2225_v63 = vmul.f32 %v2221_v0, %v6168_v52  ;;  %v2242_v47 = vmul.f32 %v2221_v0, %v6108_v11 }
0x1048   :  { %v2206_v20 = vmul.f32 %v2202_v7, %v6065_v25 }
0x1049   :  { %v2230_v31 = vsel %vm402_vm1, %v2225_v63, 0.0  ;;  %v2247_v39 = vsel %vm402_vm1, %v2242_v47, 0.0  ;;  %v2262_v47 = vmul.f32 %v6731_v24, %v6216_v38 }
0x104a   :  { %v2210_v16 = vadd.f32 %v2206_v20, %v6073_v19  ;;  %v2231_v17 = vadd.f32 %v2230_v31, %v2229_v13  ;;  %v2248_v62 = vadd.f32 %v2247_v39, %v2246_v57 }
0x104c   :  { %5192 = vtanh.f32 %v2210_v16 }
0x104e   :  { %v6779_v14 = vpop.permute.xlu1 %2258 }
0x1052   :  { %v5193_v8 = vpop.eup %5192 }
0x1053   :  { %v2218_v36 = vmul.f32 0.5, %v5193_v8 }
0x1055   :  { %v2222_v56 = vadd.f32 0.5, %v2218_v36 }
0x1057   :  { %v2226_v40 = vmul.f32 %v2222_v56, %v6177_v34  ;;  %v2243_v61 = vmul.f32 %v2222_v56, %v6139_v43 }
0x1059   :  { %v2232_v4 = vsel %vm402_vm1, %v2226_v40, 0.0  ;;  %v2249_v44 = vsel %vm402_vm1, %v2243_v61, 0.0 }
0x105a   :  { %v2233_v53 = vadd.f32 %v2232_v4, %v2231_v17  ;;  %v2250_v9 = vadd.f32 %v2249_v44, %v2248_v62 }
0x105c   :  { %v2234_v30 = vrot.slane %v2233_v53, 4  ;;  %v2251_v32 = vrot.slane %v2250_v9, 4 }
0x105e   :  { %v2252_v29 = vadd.f32 %v2251_v32, %v2250_v9  ;;  %v2235_v28 = vadd.f32 %v2234_v30, %v2233_v53 }
0x1060   :  { %v2253_v51 = vrot.slane %v2252_v29, 2  ;;  %v2236_v7 = vrot.slane %v2235_v28, 2 }
0x1062   :  { %v2254_v59 = vadd.f32 %v2253_v51, %v2252_v29  ;;  %v2237_v42 = vadd.f32 %v2236_v7, %v2235_v28 }
0x1064   :  { %v2255_v20 = vrot.slane %v2254_v59, 1  ;;  %v2238_v0 = vrot.slane %v2237_v42, 1 }
0x1066   :  { %v2256_v16 = vadd.f32 %v2255_v20, %v2254_v59  ;;  %v2239_v50 = vadd.f32 %v2238_v0, %v2237_v42 }
0x1068   :  { %v2268_v1 = vadd.f32 %v6776_v18, %v2256_v16  ;;  %v2261_v22 = vadd.f32 %v6779_v14, %v2239_v50 }
0x106a   :  { %5194 = vrcp.f32 %v2268_v1  ;;  %v2263_v27 = vadd.f32 %v2262_v47, %v2261_v22 }
0x1070   :  { %v5195_v12 = vpop.eup %5194 }
0x1071   :  { %v2270_v63 = vmul.f32 %v5195_v12, %v2268_v1 }
0x1073   :  { %v2271_v8 = vsub.f32 2.0, %v2270_v63 }
0x1075   :  { %v2272_v21 = vmul.f32 %v5195_v12, %v2271_v8 }
0x1077   :  { %v6784_v36 = vmul.f32 %v2272_v21, %v2263_v27 }
0x1079   :  { %v2275_v35 = vrot.slane %v6784_v36, 7 }
0x107b   :  { %2276 = vrot.lane.b32.xlu2 %v2275_v35, %s5632_s23 }
0x10d5   :  { %v2277_v41 = vpop.permute.xlu2 %2276 }
0x10d6   :  { %v2279_v31 = vsel %vm786_vm2, %v6784_v36, %v2277_v41 }
0x10d7   :  { %v2280_v39 = vperm.slane %v2279_v31, 0  ;;  %v2305_v56 = vperm.slane %v2279_v31, 1 }
0x10d9   :  { %2310 = vperm.xlu2 %4872, %v2305_v56   ;;  %2291 = vperm.xlu1 %4871, %v2280_v39  }
0x10da   :  { %2285 = vperm.xlu0 %4870, %v2280_v39  }
0x10e1   :  { %4873 = vset.pattern.permute.xlu2 %v5864_v10  ;;  %2316 = vperm.xlu1 %4871, %v2305_v56  }
0x10e2   :  { %4874 = vset.pattern.permute.xlu0 %v5864_v10 }
0x10e9   :  { %2297 = vperm.xlu2 %4873, %v2280_v39   ;;  %4875 = vset.pattern.permute.xlu1 %v5892_v46 }
0x10ea   :  { %2322 = vperm.xlu0 %4874, %v2305_v56  }
0x10f1   :  { %4876 = vset.pattern.permute.xlu2 %v5892_v46  ;;  %2303 = vperm.xlu1 %4875, %v2280_v39  }
0x10f2   :  { %4878 = vset.pattern.permute.xlu0 %v5791_v3 }
0x10f9   :  { %2328 = vperm.xlu2 %4876, %v2305_v56   ;;  %4879 = vset.pattern.permute.xlu1 %v5788_v2 }
0x1101   :  { %4877 = vset.pattern.permute.xlu2 %v5788_v2 }
0x1133   :  { %v2311_v57 = vpop.permute.xlu2 %2310 }
0x1143   :  { %v2298_v9 = vpop.permute.xlu2 %2297 }
0x114b   :  { %v2292_v24 = vpop.permute.xlu1 %2291 }
0x114c   :  { %v2286_v13 = vpop.permute.xlu0 %2285 }
0x114d   :  { %v2330_v40 = vsel %vm263_vm0, %v2286_v13, %v2311_v57 }
0x114e   :  { %v2334_v17 = vmul.f32 %v2330_v40, %v6033_v48 }
0x1150   :  { %v2338_v53 = vadd.f32 %v2334_v17, %v6050_v33 }
0x1153   :  { %v2317_v61 = vpop.permute.xlu1 %2316  ;;  %v2329_v59 = vpop.permute.xlu2 %2328 }
0x1154   :  { %v2331_v62 = vsel %vm263_vm0, %v2292_v24, %v2317_v61 }
0x1155   :  { %v2335_v4 = vmul.f32 %v2331_v62, %v6040_v58 }
0x1157   :  { %v2339_v44 = vadd.f32 %v2335_v4, %v6054_v15 }
0x1159   :  { %5196 = vtanh.f32 %v2339_v44 }
0x115a   :  { %5198 = vtanh.f32 %v2338_v53 }
0x115c   :  { %v2323_v30 = vpop.permute.xlu0 %2322 }
0x115d   :  { %v2332_v32 = vsel %vm263_vm0, %v2298_v9, %v2323_v30 }
0x115e   :  { %v2336_v29 = vmul.f32 %v2332_v32, %v6046_v45 }
0x115f   :  { %v5197_v51 = vpop.eup %5196 }
0x1160   :  { %v2340_v28 = vadd.f32 %v2336_v29, %v6061_v37  ;;  %v5199_v7 = vpop.eup %5198  ;;  %v2347_v42 = vmul.f32 0.5, %v5197_v51 }
0x1161   :  { %v2346_v1 = vmul.f32 0.5, %v5199_v7 }
0x1162   :  { %5200 = vtanh.f32 %v2340_v28  ;;  %v2351_v22 = vadd.f32 0.5, %v2347_v42 }
0x1163   :  { %v2304_v20 = vpop.permute.xlu1 %2303  ;;  %v2350_v63 = vadd.f32 0.5, %v2346_v1 }
0x1164   :  { %v2333_v16 = vsel %vm263_vm0, %v2304_v20, %v2329_v59  ;;  %v2355_v27 = vmul.f32 %v2351_v22, %v6181_v26  ;;  %v2372_v21 = vmul.f32 %v2351_v22, %v6102_v60 }
0x1165   :  { %v2337_v0 = vmul.f32 %v2333_v16, %v6065_v25  ;;  %v2354_v35 = vmul.f32 %v2350_v63, %v6148_v49  ;;  %v2371_v41 = vmul.f32 %v2350_v63, %v6095_v23 }
0x1166   :  { %v2359_v24 = vsel %vm402_vm1, %v2355_v27, 0.0  ;;  %v2376_v13 = vsel %vm402_vm1, %v2372_v21, 0.0 }
0x1167   :  { %v2341_v50 = vadd.f32 %v2337_v0, %v6073_v19  ;;  %v2358_v40 = vsel %vm402_vm1, %v2354_v35, 0.0  ;;  %v2375_v61 = vsel %vm402_vm1, %v2371_v41, 0.0 }
0x1168   :  { %v5201_v12 = vpop.eup %5200  ;;  %v2360_v44 = vadd.f32 %v2359_v24, %v2358_v40  ;;  %v2377_v53 = vadd.f32 %v2376_v13, %v2375_v61 }
0x1169   :  { %v2348_v47 = vmul.f32 0.5, %v5201_v12  ;;  %5202 = vtanh.f32 %v2341_v50 }
0x116b   :  { %v2352_v8 = vadd.f32 0.5, %v2348_v47 }
0x116d   :  { %v2356_v31 = vmul.f32 %v2352_v8, %v6168_v52  ;;  %v2373_v39 = vmul.f32 %v2352_v8, %v6108_v11 }
0x116f   :  { %v5203_v56 = vpop.eup %5202  ;;  %v2361_v17 = vsel %vm402_vm1, %v2356_v31, 0.0  ;;  %v2378_v62 = vsel %vm402_vm1, %v2373_v39, 0.0  ;;  %v2389_v39 = vmul.f32 %v6784_v36, %v6216_v38 }
0x1170   :  { %v2349_v57 = vmul.f32 0.5, %v5203_v56  ;;  %v2362_v32 = vadd.f32 %v2361_v17, %v2360_v44  ;;  %v2379_v29 = vadd.f32 %v2378_v62, %v2377_v53 }
0x1172   :  { %v2353_v4 = vadd.f32 0.5, %v2349_v57 }
0x1174   :  { %v2357_v9 = vmul.f32 %v2353_v4, %v6177_v34  ;;  %v2374_v30 = vmul.f32 %v2353_v4, %v6139_v43 }
0x1176   :  { %v2363_v28 = vsel %vm402_vm1, %v2357_v9, 0.0  ;;  %v2380_v51 = vsel %vm402_vm1, %v2374_v30, 0.0 }
0x1177   :  { %v2364_v7 = vadd.f32 %v2363_v28, %v2362_v32  ;;  %v2381_v59 = vadd.f32 %v2380_v51, %v2379_v29 }
0x1179   :  { %v2365_v20 = vrot.slane %v2364_v7, 4  ;;  %v2382_v42 = vrot.slane %v2381_v59, 4 }
0x117b   :  { %v2366_v16 = vadd.f32 %v2365_v20, %v2364_v7  ;;  %v2383_v1 = vadd.f32 %v2382_v42, %v2381_v59 }
0x117d   :  { %v2384_v0 = vrot.slane %v2383_v1, 2  ;;  %v2367_v50 = vrot.slane %v2366_v16, 2 }
0x117f   :  { %v2385_v12 = vadd.f32 %v2384_v0, %v2383_v1  ;;  %v2368_v63 = vadd.f32 %v2367_v50, %v2366_v16 }
0x1181   :  { %v2386_v22 = vrot.slane %v2385_v12, 1  ;;  %v2369_v27 = vrot.slane %v2368_v63, 1 }
0x1183   :  { %v2387_v47 = vadd.f32 %v2386_v22, %v2385_v12  ;;  %v2370_v21 = vadd.f32 %v2369_v27, %v2368_v63 }
0x1185   :  { %v2391_v8 = vadd.f32 %v2387_v47, %v6776_v18  ;;  %v2388_v41 = vadd.f32 %v2370_v21, %v6779_v14 }
0x1187   :  { %5204 = vrcp.f32 %v2391_v8  ;;  %v2390_v24 = vadd.f32 %v2389_v39, %v2388_v41 }
0x118d   :  { %v5205_v35 = vpop.eup %5204 }
0x118e   :  { %v2393_v31 = vmul.f32 %v5205_v35, %v2391_v8 }
0x1190   :  { %v2394_v56 = vsub.f32 2.0, %v2393_v31 }
0x1192   :  { %v2395_v13 = vmul.f32 %v5205_v35, %v2394_v56 }
0x1194   :  { %v6829_v57 = vmul.f32 %v2395_v13, %v2390_v24 }
0x1196   :  { %v2398_v40 = vrot.slane %v6829_v57, 7 }
0x1198   :  { %2399 = vrot.lane.b32.xlu1 %v2398_v40, %s5632_s23 }
0x120a   :  { %v2400_v61 = vpop.permute.xlu1 %2399 }
0x120b   :  { %v2402_v17 = vsel %vm786_vm2, %v6829_v57, %v2400_v61 }
0x120c   :  { %v2403_v62 = vperm.slane %v2402_v17, 0  ;;  %v2428_v4 = vperm.slane %v2402_v17, 1 }
0x120e   :  { %2433 = vperm.xlu1 %4879, %v2428_v4   ;;  %2414 = vperm.xlu0 %4878, %v2403_v62  }
0x120f   :  { %2408 = vperm.xlu2 %4877, %v2403_v62  }
0x1216   :  { %4881 = vset.pattern.permute.xlu1 %v5864_v10  ;;  %4883 = vset.pattern.permute.xlu0 %v5892_v46 }
0x1217   :  { %4880 = vset.pattern.permute.xlu2 %v5791_v3 }
0x121e   :  { %2420 = vperm.xlu1 %4881, %v2403_v62   ;;  %2426 = vperm.xlu0 %4883, %v2403_v62  }
0x121f   :  { %2439 = vperm.xlu2 %4880, %v2428_v4  }
0x1226   :  { %4884 = vset.pattern.permute.xlu1 %v5892_v46  ;;  %4887 = vset.pattern.permute.xlu0 %v5788_v2 }
0x1227   :  { %4882 = vset.pattern.permute.xlu2 %v5864_v10 }
0x122e   :  { %2451 = vperm.xlu1 %4884, %v2428_v4  }
0x122f   :  { %2445 = vperm.xlu2 %4882, %v2428_v4  }
0x1236   :  { %4885 = vset.pattern.permute.xlu1 %v5788_v2 }
0x1237   :  { %4886 = vset.pattern.permute.xlu2 %v5791_v3 }
0x1269   :  { %v2409_v36 = vpop.permute.xlu2 %2408 }
0x1279   :  { %v2440_v44 = vpop.permute.xlu2 %2439 }
0x1280   :  { %v2434_v53 = vpop.permute.xlu1 %2433  ;;  %v2415_v9 = vpop.permute.xlu0 %2414 }
0x1281   :  { %v2453_v30 = vsel %vm263_vm0, %v2409_v36, %v2434_v53  ;;  %v2454_v32 = vsel %vm263_vm0, %v2415_v9, %v2440_v44 }
0x1282   :  { %v2457_v29 = vmul.f32 %v2453_v30, %v6033_v48  ;;  %v2458_v28 = vmul.f32 %v2454_v32, %v6040_v58 }
0x1284   :  { %v2461_v42 = vadd.f32 %v2457_v29, %v6050_v33  ;;  %v2462_v16 = vadd.f32 %v2458_v28, %v6054_v15 }
0x1286   :  { %5206 = vtanh.f32 %v2461_v42 }
0x1287   :  { %5208 = vtanh.f32 %v2462_v16 }
0x1289   :  { %v2446_v51 = vpop.permute.xlu2 %2445 }
0x128c   :  { %v5207_v0 = vpop.eup %5206 }
0x128d   :  { %v5209_v50 = vpop.eup %5208  ;;  %v2469_v22 = vmul.f32 0.5, %v5207_v0 }
0x128e   :  { %v2470_v8 = vmul.f32 0.5, %v5209_v50 }
0x128f   :  { %v2473_v41 = vadd.f32 0.5, %v2469_v22 }
0x1290   :  { %v2421_v7 = vpop.permute.xlu1 %2420  ;;  %v2427_v63 = vpop.permute.xlu0 %2426  ;;  %v2474_v39 = vadd.f32 0.5, %v2470_v8 }
0x1291   :  { %v2455_v59 = vsel %vm263_vm0, %v2421_v7, %v2446_v51  ;;  %v2477_v24 = vmul.f32 %v2473_v41, %v6148_v49  ;;  %v2494_v13 = vmul.f32 %v2473_v41, %v6095_v23 }
0x1292   :  { %v2459_v20 = vmul.f32 %v2455_v59, %v6046_v45  ;;  %v2478_v40 = vmul.f32 %v2474_v39, %v6181_v26  ;;  %v2495_v61 = vmul.f32 %v2474_v39, %v6102_v60 }
0x1293   :  { %v2481_v36 = vsel %vm402_vm1, %v2477_v24, 0.0  ;;  %v2498_v44 = vsel %vm402_vm1, %v2494_v13, 0.0 }
0x1294   :  { %v2463_v1 = vadd.f32 %v2459_v20, %v6061_v37  ;;  %v2482_v53 = vsel %vm402_vm1, %v2478_v40, 0.0  ;;  %v2499_v9 = vsel %vm402_vm1, %v2495_v61, 0.0 }
0x1295   :  { %v2483_v51 = vadd.f32 %v2482_v53, %v2481_v36  ;;  %v2500_v7 = vadd.f32 %v2499_v9, %v2498_v44 }
0x1296   :  { %5210 = vtanh.f32 %v2463_v1 }
0x129c   :  { %v5211_v12 = vpop.eup %5210 }
0x129d   :  { %v2471_v35 = vmul.f32 0.5, %v5211_v12 }
0x129f   :  { %v2475_v56 = vadd.f32 0.5, %v2471_v35 }
0x12a0   :  { %v2452_v47 = vpop.permute.xlu1 %2451 }
0x12a1   :  { %v2456_v27 = vsel %vm263_vm0, %v2427_v63, %v2452_v47  ;;  %v2479_v17 = vmul.f32 %v2475_v56, %v6168_v52  ;;  %v2496_v62 = vmul.f32 %v2475_v56, %v6108_v11 }
0x12a2   :  { %v2460_v21 = vmul.f32 %v2456_v27, %v6065_v25 }
0x12a3   :  { %v2484_v32 = vsel %vm402_vm1, %v2479_v17, 0.0  ;;  %v2501_v29 = vsel %vm402_vm1, %v2496_v62, 0.0  ;;  %v2512_v62 = vmul.f32 %v6829_v57, %v6216_v38 }
0x12a4   :  { %v2464_v31 = vadd.f32 %v2460_v21, %v6073_v19  ;;  %v2485_v42 = vadd.f32 %v2484_v32, %v2483_v51  ;;  %v2502_v16 = vadd.f32 %v2501_v29, %v2500_v7 }
0x12a6   :  { %5212 = vtanh.f32 %v2464_v31 }
0x12ac   :  { %v5213_v4 = vpop.eup %5212 }
0x12ad   :  { %v2472_v30 = vmul.f32 0.5, %v5213_v4 }
0x12af   :  { %v2476_v28 = vadd.f32 0.5, %v2472_v30 }
0x12b1   :  { %v2480_v59 = vmul.f32 %v2476_v28, %v6177_v34  ;;  %v2497_v20 = vmul.f32 %v2476_v28, %v6139_v43 }
0x12b3   :  { %v2486_v1 = vsel %vm402_vm1, %v2480_v59, 0.0  ;;  %v2503_v0 = vsel %vm402_vm1, %v2497_v20, 0.0 }
0x12b4   :  { %v2487_v50 = vadd.f32 %v2486_v1, %v2485_v42  ;;  %v2504_v12 = vadd.f32 %v2503_v0, %v2502_v16 }
0x12b6   :  { %v2488_v22 = vrot.slane %v2487_v50, 4  ;;  %v2505_v63 = vrot.slane %v2504_v12, 4 }
0x12b8   :  { %v2489_v47 = vadd.f32 %v2488_v22, %v2487_v50  ;;  %v2506_v8 = vadd.f32 %v2505_v63, %v2504_v12 }
0x12ba   :  { %v2507_v27 = vrot.slane %v2506_v8, 2  ;;  %v2490_v21 = vrot.slane %v2489_v47, 2 }
0x12bc   :  { %v2508_v35 = vadd.f32 %v2507_v27, %v2506_v8  ;;  %v2491_v31 = vadd.f32 %v2490_v21, %v2489_v47 }
0x12be   :  { %v2509_v41 = vrot.slane %v2508_v35, 1  ;;  %v2492_v24 = vrot.slane %v2491_v31, 1 }
0x12c0   :  { %v2510_v39 = vadd.f32 %v2509_v41, %v2508_v35  ;;  %v2493_v13 = vadd.f32 %v2492_v24, %v2491_v31 }
0x12c2   :  { %v2514_v56 = vadd.f32 %v2510_v39, %v6776_v18  ;;  %v2511_v61 = vadd.f32 %v2493_v13, %v6779_v14 }
0x12c4   :  { %5214 = vrcp.f32 %v2514_v56  ;;  %v2513_v36 = vadd.f32 %v2512_v62, %v2511_v61 }
0x12ca   :  { %v5215_v40 = vpop.eup %5214 }
0x12cb   :  { %v2516_v17 = vmul.f32 %v5215_v40, %v2514_v56 }
0x12cd   :  { %v2517_v4 = vsub.f32 2.0, %v2516_v17 }
0x12cf   :  { %v2518_v44 = vmul.f32 %v5215_v40, %v2517_v4 }
0x12d1   :  { %v6875_v53 = vmul.f32 %v2518_v44, %v2513_v36 }
0x12d3   :  { %v2521_v9 = vrot.slane %v6875_v53, 7 }
0x12d5   :  { %2522 = vrot.lane.b32.xlu2 %v2521_v9, %s5632_s23 }
0x132f   :  { %v2523_v30 = vpop.permute.xlu2 %2522 }
0x1330   :  { %v2525_v32 = vsel %vm786_vm2, %v6875_v53, %v2523_v30 }
0x1331   :  { %v2526_v29 = vperm.slane %v2525_v32, 0  ;;  %v2551_v28 = vperm.slane %v2525_v32, 1 }
0x1333   :  { %2556 = vperm.xlu0 %4887, %v2551_v28   ;;  %2537 = vperm.xlu2 %4886, %v2526_v29  }
0x1334   :  { %2531 = vperm.xlu1 %4885, %v2526_v29  }
0x133b   :  { %4892 = vset.pattern.permute.xlu0 %v5892_v46  ;;  %4889 = vset.pattern.permute.xlu2 %v5864_v10 }
0x133c   :  { %4888 = vset.pattern.permute.xlu1 %v5791_v3 }
0x1343   :  { %2574 = vperm.xlu0 %4892, %v2551_v28   ;;  %2543 = vperm.xlu2 %4889, %v2526_v29  }
0x1344   :  { %2562 = vperm.xlu1 %4888, %v2551_v28  }
0x134b   :  { %4891 = vset.pattern.permute.xlu2 %v5892_v46  ;;  %4895 = vset.pattern.permute.xlu0 %v5791_v3 }
0x134c   :  { %4890 = vset.pattern.permute.xlu1 %v5864_v10 }
0x1353   :  { %2549 = vperm.xlu2 %4891, %v2526_v29  }
0x1354   :  { %2568 = vperm.xlu1 %4890, %v2551_v28  }
0x135b   :  { %4893 = vset.pattern.permute.xlu2 %v5788_v2 }
0x135c   :  { %4894 = vset.pattern.permute.xlu1 %v5791_v3 }
0x138d   :  { %v2538_v57 = vpop.permute.xlu2 %2537 }
0x139d   :  { %v2544_v59 = vpop.permute.xlu2 %2543 }
0x13a5   :  { %v2557_v7 = vpop.permute.xlu0 %2556 }
0x13a6   :  { %v2532_v51 = vpop.permute.xlu1 %2531 }
0x13a7   :  { %v2576_v20 = vsel %vm263_vm0, %v2532_v51, %v2557_v7 }
0x13a8   :  { %v2580_v50 = vmul.f32 %v2576_v20, %v6033_v48 }
0x13aa   :  { %v2584_v47 = vadd.f32 %v2580_v50, %v6050_v33 }
0x13ad   :  { %v2550_v12 = vpop.permute.xlu2 %2549 }
0x13b5   :  { %v2575_v1 = vpop.permute.xlu0 %2574 }
0x13b6   :  { %v2563_v42 = vpop.permute.xlu1 %2562  ;;  %v2579_v22 = vsel %vm263_vm0, %v2550_v12, %v2575_v1 }
0x13b7   :  { %v2577_v16 = vsel %vm263_vm0, %v2538_v57, %v2563_v42  ;;  %v2583_v8 = vmul.f32 %v2579_v22, %v6065_v25 }
0x13b8   :  { %v2581_v0 = vmul.f32 %v2577_v16, %v6040_v58 }
0x13b9   :  { %v2587_v27 = vadd.f32 %v2583_v8, %v6073_v19 }
0x13ba   :  { %v2585_v63 = vadd.f32 %v2581_v0, %v6054_v15 }
0x13bc   :  { %5216 = vtanh.f32 %v2585_v63 }
0x13bd   :  { %5218 = vtanh.f32 %v2584_v47 }
0x13be   :  { %5220 = vtanh.f32 %v2587_v27 }
0x13c2   :  { %v5217_v21 = vpop.eup %5216 }
0x13c3   :  { %v5219_v41 = vpop.eup %5218  ;;  %v2593_v56 = vmul.f32 0.5, %v5217_v21 }
0x13c4   :  { %v2592_v24 = vmul.f32 0.5, %v5219_v41  ;;  %v5221_v40 = vpop.eup %5220 }
0x13c5   :  { %v2597_v61 = vadd.f32 0.5, %v2593_v56  ;;  %v2595_v62 = vmul.f32 0.5, %v5221_v40 }
0x13c6   :  { %v2569_v35 = vpop.permute.xlu1 %2568  ;;  %v2596_v17 = vadd.f32 0.5, %v2592_v24 }
0x13c7   :  { %v2578_v31 = vsel %vm263_vm0, %v2544_v59, %v2569_v35  ;;  %v2601_v4 = vmul.f32 %v2597_v61, %v6181_v26  ;;  %v2618_v36 = vmul.f32 %v2597_v61, %v6102_v60  ;;  %v2599_v32 = vadd.f32 0.5, %v2595_v62 }
0x13c8   :  { %v2582_v39 = vmul.f32 %v2578_v31, %v6046_v45  ;;  %v2600_v9 = vmul.f32 %v2596_v17, %v6148_v49  ;;  %v2617_v30 = vmul.f32 %v2596_v17, %v6095_v23 }
0x13c9   :  { %v2605_v28 = vsel %vm402_vm1, %v2601_v4, 0.0  ;;  %v2622_v57 = vsel %vm402_vm1, %v2618_v36, 0.0  ;;  %v2603_v20 = vmul.f32 %v2599_v32, %v6177_v34  ;;  %v2620_v42 = vmul.f32 %v2599_v32, %v6139_v43 }
0x13ca   :  { %v2586_v13 = vadd.f32 %v2582_v39, %v6061_v37  ;;  %v2604_v7 = vsel %vm402_vm1, %v2600_v9, 0.0  ;;  %v2621_v59 = vsel %vm402_vm1, %v2617_v30, 0.0 }
0x13cb   :  { %v2606_v0 = vadd.f32 %v2605_v28, %v2604_v7  ;;  %v2623_v50 = vadd.f32 %v2622_v57, %v2621_v59  ;;  %v2609_v8 = vsel %vm402_vm1, %v2603_v20, 0.0  ;;  %v2626_v27 = vsel %vm402_vm1, %v2620_v42, 0.0 }
0x13cc   :  { %5222 = vtanh.f32 %v2586_v13 }
0x13d2   :  { %v5223_v44 = vpop.eup %5222 }
0x13d3   :  { %v2594_v29 = vmul.f32 0.5, %v5223_v44 }
0x13d5   :  { %v2598_v51 = vadd.f32 0.5, %v2594_v29  ;;  %v2635_v29 = vmul.f32 %v6875_v53, %v6216_v38 }
0x13d7   :  { %v2602_v16 = vmul.f32 %v2598_v51, %v6168_v52  ;;  %v2619_v1 = vmul.f32 %v2598_v51, %v6108_v11 }
0x13d9   :  { %v2607_v12 = vsel %vm402_vm1, %v2602_v16, 0.0  ;;  %v2624_v22 = vsel %vm402_vm1, %v2619_v1, 0.0 }
0x13da   :  { %v2608_v63 = vadd.f32 %v2607_v12, %v2606_v0  ;;  %v2625_v47 = vadd.f32 %v2624_v22, %v2623_v50 }
0x13dc   :  { %v2610_v21 = vadd.f32 %v2609_v8, %v2608_v63  ;;  %v2627_v35 = vadd.f32 %v2626_v27, %v2625_v47 }
0x13de   :  { %v2611_v41 = vrot.slane %v2610_v21, 4  ;;  %v2628_v31 = vrot.slane %v2627_v35, 4 }
0x13e0   :  { %v2612_v39 = vadd.f32 %v2611_v41, %v2610_v21  ;;  %v2629_v56 = vadd.f32 %v2628_v31, %v2627_v35 }
0x13e2   :  { %v2630_v24 = vrot.slane %v2629_v56, 2  ;;  %v2613_v13 = vrot.slane %v2612_v39, 2 }
0x13e4   :  { %v2631_v40 = vadd.f32 %v2630_v24, %v2629_v56  ;;  %v2614_v17 = vadd.f32 %v2613_v13, %v2612_v39 }
0x13e6   :  { %v2632_v61 = vrot.slane %v2631_v40, 1  ;;  %v2615_v36 = vrot.slane %v2614_v17, 1 }
0x13e8   :  { %v2633_v62 = vadd.f32 %v2632_v61, %v2631_v40  ;;  %v2616_v44 = vadd.f32 %v2615_v36, %v2614_v17 }
0x13ea   :  { %v2637_v4 = vadd.f32 %v2633_v62, %v6776_v18  ;;  %v2634_v30 = vadd.f32 %v2616_v44, %v6779_v14 }
0x13ec   :  { %5224 = vrcp.f32 %v2637_v4  ;;  %v2636_v57 = vadd.f32 %v2635_v29, %v2634_v30 }
0x13f2   :  { %v5225_v9 = vpop.eup %5224 }
0x13f3   :  { %v2639_v32 = vmul.f32 %v5225_v9, %v2637_v4 }
0x13f5   :  { %v2640_v28 = vsub.f32 2.0, %v2639_v32 }
0x13f7   :  { %v2641_v51 = vmul.f32 %v5225_v9, %v2640_v28 }
0x13f9   :  { %v6921_v7 = vmul.f32 %v2641_v51, %v2636_v57 }
0x13fb   :  { %v2644_v59 = vrot.slane %v6921_v7, 7 }
0x13fd   :  { %2645 = vrot.lane.b32.xlu1 %v2644_v59, %s5632_s23 }
0x146f   :  { %v2646_v18 = vpop.permute.xlu1 %2645 }
0x1470   :  { %v2648_v20 = vsel %vm786_vm2, %v6921_v7, %v2646_v18 }
0x1471   :  { %v2649_v42 = vperm.slane %v2648_v20, 0  ;;  %v2674_v16 = vperm.slane %v2648_v20, 1 }
0x1473   :  { %2685 = vperm.xlu0 %4895, %v2674_v16   ;;  %2660 = vperm.xlu1 %4894, %v2649_v42  }
0x1474   :  { %2654 = vperm.xlu2 %4893, %v2649_v42  }
0x147b   :  { %4896 = vset.pattern.permute.xlu1 %v5864_v10  ;;  %4902 = vset.pattern.permute.xlu0 %v5788_v2 }
0x147c   :  { %2679 = vperm.xlu2 %4893, %v2674_v16  }
0x1483   :  { %2666 = vperm.xlu1 %4896, %v2649_v42  }
0x1484   :  { %4897 = vset.pattern.permute.xlu2 %v5864_v10 }
0x148b   :  { %4898 = vset.pattern.permute.xlu1 %v5892_v46 }
0x148c   :  { %2691 = vperm.xlu2 %4897, %v2674_v16  }
0x1493   :  { %2672 = vperm.xlu1 %4898, %v2649_v42  }
0x1494   :  { %4899 = vset.pattern.permute.xlu2 %v5892_v46 }
0x149b   :  { %4900 = vset.pattern.permute.xlu1 %v5788_v2 }
0x149c   :  { %2697 = vperm.xlu2 %4899, %v2674_v16  }
0x14a4   :  { %4901 = vset.pattern.permute.xlu2 %v5791_v3 }
0x14ce   :  { %v2655_v14 = vpop.permute.xlu2 %2654 }
0x14d6   :  { %v2680_v53 = vpop.permute.xlu2 %2679 }
0x14d7   :  { %v2699_v12 = vsel %vm263_vm0, %v2655_v14, %v2680_v53 }
0x14d8   :  { %v2703_v8 = vmul.f32 %v2699_v12, %v6033_v48 }
0x14da   :  { %v2707_v41 = vadd.f32 %v2703_v8, %v6050_v33 }
0x14e5   :  { %v2661_v1 = vpop.permute.xlu1 %2660  ;;  %v2686_v0 = vpop.permute.xlu0 %2685 }
0x14e6   :  { %v2700_v50 = vsel %vm263_vm0, %v2661_v1, %v2686_v0  ;;  %v2692_v63 = vpop.permute.xlu2 %2691 }
0x14e7   :  { %v2704_v22 = vmul.f32 %v2700_v50, %v6040_v58 }
0x14e9   :  { %v2708_v35 = vadd.f32 %v2704_v22, %v6054_v15 }
0x14eb   :  { %5226 = vtanh.f32 %v2708_v35 }
0x14ec   :  { %5228 = vtanh.f32 %v2707_v41 }
0x14f1   :  { %v5227_v39 = vpop.eup %5226 }
0x14f2   :  { %v5229_v56 = vpop.eup %5228  ;;  %v2716_v61 = vmul.f32 0.5, %v5227_v39 }
0x14f3   :  { %v2715_v62 = vmul.f32 0.5, %v5229_v56 }
0x14f4   :  { %v2720_v9 = vadd.f32 0.5, %v2716_v61 }
0x14f5   :  { %v2667_v47 = vpop.permute.xlu1 %2666  ;;  %v2719_v30 = vadd.f32 0.5, %v2715_v62 }
0x14f6   :  { %v2701_v27 = vsel %vm263_vm0, %v2667_v47, %v2692_v63  ;;  %v2698_v13 = vpop.permute.xlu2 %2697  ;;  %v2724_v29 = vmul.f32 %v2720_v9, %v6181_v26  ;;  %v2741_v28 = vmul.f32 %v2720_v9, %v6102_v60 }
0x14f7   :  { %v2705_v21 = vmul.f32 %v2701_v27, %v6046_v45  ;;  %v2723_v57 = vmul.f32 %v2719_v30, %v6148_v49  ;;  %v2740_v51 = vmul.f32 %v2719_v30, %v6095_v23 }
0x14f8   :  { %v2728_v42 = vsel %vm402_vm1, %v2724_v29, 0.0  ;;  %v2745_v16 = vsel %vm402_vm1, %v2741_v28, 0.0 }
0x14f9   :  { %v2709_v31 = vadd.f32 %v2705_v21, %v6061_v37  ;;  %v2727_v53 = vsel %vm402_vm1, %v2723_v57, 0.0  ;;  %v2744_v1 = vsel %vm402_vm1, %v2740_v51, 0.0  ;;  %v2758_v51 = vmul.f32 %v6921_v7, %v6216_v38 }
0x14fa   :  { %v2729_v22 = vadd.f32 %v2728_v42, %v2727_v53  ;;  %v2746_v63 = vadd.f32 %v2745_v16, %v2744_v1 }
0x14fb   :  { %5230 = vtanh.f32 %v2709_v31 }
0x1501   :  { %v5231_v24 = vpop.eup %5230 }
0x1502   :  { %v2717_v36 = vmul.f32 0.5, %v5231_v24 }
0x1504   :  { %v2721_v32 = vadd.f32 0.5, %v2717_v36 }
0x1505   :  { %v2673_v40 = vpop.permute.xlu1 %2672 }
0x1506   :  { %v2702_v17 = vsel %vm263_vm0, %v2673_v40, %v2698_v13  ;;  %v2725_v59 = vmul.f32 %v2721_v32, %v6168_v52  ;;  %v2742_v18 = vmul.f32 %v2721_v32, %v6108_v11 }
0x1507   :  { %v2706_v4 = vmul.f32 %v2702_v17, %v6065_v25 }
0x1508   :  { %v2730_v0 = vsel %vm402_vm1, %v2725_v59, 0.0  ;;  %v2747_v50 = vsel %vm402_vm1, %v2742_v18, 0.0 }
0x1509   :  { %v2710_v44 = vadd.f32 %v2706_v4, %v6073_v19  ;;  %v2731_v27 = vadd.f32 %v2730_v0, %v2729_v22  ;;  %v2748_v21 = vadd.f32 %v2747_v50, %v2746_v63 }
0x150b   :  { %5232 = vtanh.f32 %v2710_v44 }
0x1511   :  { %v5233_v20 = vpop.eup %5232 }
0x1512   :  { %v2718_v14 = vmul.f32 0.5, %v5233_v20 }
0x1514   :  { %v2722_v12 = vadd.f32 0.5, %v2718_v14 }
0x1516   :  { %v2726_v47 = vmul.f32 %v2722_v12, %v6177_v34  ;;  %v2743_v8 = vmul.f32 %v2722_v12, %v6139_v43 }
0x1518   :  { %v2732_v35 = vsel %vm402_vm1, %v2726_v47, 0.0  ;;  %v2749_v41 = vsel %vm402_vm1, %v2743_v8, 0.0 }
0x1519   :  { %v2733_v31 = vadd.f32 %v2732_v35, %v2731_v27  ;;  %v2750_v39 = vadd.f32 %v2749_v41, %v2748_v21 }
0x151b   :  { %v2734_v56 = vrot.slane %v2733_v31, 4  ;;  %v2751_v24 = vrot.slane %v2750_v39, 4 }
0x151d   :  { %v2735_v13 = vadd.f32 %v2734_v56, %v2733_v31  ;;  %v2752_v40 = vadd.f32 %v2751_v24, %v2750_v39 }
0x151f   :  { %v2753_v61 = vrot.slane %v2752_v40, 2  ;;  %v2736_v17 = vrot.slane %v2735_v13, 2 }
0x1521   :  { %v2754_v62 = vadd.f32 %v2753_v61, %v2752_v40  ;;  %v2737_v36 = vadd.f32 %v2736_v17, %v2735_v13 }
0x1523   :  { %v2755_v4 = vrot.slane %v2754_v62, 1  ;;  %v2738_v30 = vrot.slane %v2737_v36, 1 }
0x1525   :  { %v2756_v44 = vadd.f32 %v2755_v4, %v2754_v62  ;;  %v2739_v32 = vadd.f32 %v2738_v30, %v2737_v36 }
0x1527   :  { %v2760_v9 = vadd.f32 %v2756_v44, %v6201_v6  ;;  %v2757_v28 = vadd.f32 %v2739_v32, %v6210_v5 }
0x1529   :  { %5234 = vrcp.f32 %v2760_v9  ;;  %v2759_v18 = vadd.f32 %v2758_v51, %v2757_v28 }
0x152f   :  { %v5235_v29 = vpop.eup %5234 }
0x1530   :  { %v2762_v57 = vmul.f32 %v5235_v29, %v2760_v9 }
0x1532   :  { %v2763_v59 = vsub.f32 2.0, %v2762_v57 }
0x1534   :  { %v2764_v20 = vmul.f32 %v5235_v29, %v2763_v59 }
0x1536   :  { %v6966_v42 = vmul.f32 %v2764_v20, %v2759_v18 }
0x1538   :  { %v2767_v16 = vrot.slane %v6966_v42, 7 }
0x153a   :  { %2768 = vrot.lane.b32.xlu0 %v2767_v16, %s5632_s23 }
0x15ac   :  { %v2769_v14 = vpop.permute.xlu0 %2768 }
0x15ad   :  { %v2771_v53 = vsel %vm786_vm2, %v6966_v42, %v2769_v14 }
0x15ae   :  { %v2772_v1 = vperm.slane %v2771_v53, 0  ;;  %v2797_v0 = vperm.slane %v2771_v53, 1 }
0x15b0   :  { %2802 = vperm.xlu0 %4902, %v2797_v0   ;;  %2783 = vperm.xlu2 %4901, %v2772_v1  }
0x15b1   :  { %2777 = vperm.xlu1 %4900, %v2772_v1  }
0x15b8   :  { %4907 = vset.pattern.permute.xlu0 %v5892_v46  ;;  %4904 = vset.pattern.permute.xlu2 %v5864_v10 }
0x15b9   :  { %4903 = vset.pattern.permute.xlu1 %v5791_v3 }
0x15c0   :  { %2820 = vperm.xlu0 %4907, %v2797_v0   ;;  %2789 = vperm.xlu2 %4904, %v2772_v1  }
0x15c1   :  { %2808 = vperm.xlu1 %4903, %v2797_v0  }
0x15c8   :  { %4906 = vset.pattern.permute.xlu2 %v5892_v46  ;;  %4910 = vset.pattern.permute.xlu0 %v5791_v3 }
0x15c9   :  { %4905 = vset.pattern.permute.xlu1 %v5864_v10 }
0x15d0   :  { %2795 = vperm.xlu2 %4906, %v2772_v1  }
0x15d1   :  { %2814 = vperm.xlu1 %4905, %v2797_v0  }
0x15d8   :  { %4908 = vset.pattern.permute.xlu2 %v5788_v2 }
0x15d9   :  { %4909 = vset.pattern.permute.xlu1 %v5791_v3 }
0x160a   :  { %v2784_v7 = vpop.permute.xlu2 %2783 }
0x161a   :  { %v2790_v22 = vpop.permute.xlu2 %2789 }
0x1622   :  { %v2803_v12 = vpop.permute.xlu0 %2802 }
0x1623   :  { %v2778_v50 = vpop.permute.xlu1 %2777 }
0x1624   :  { %v2822_v63 = vsel %vm263_vm0, %v2778_v50, %v2803_v12 }
0x1625   :  { %v2826_v35 = vmul.f32 %v2822_v63, %v6033_v48 }
0x1627   :  { %v2830_v56 = vadd.f32 %v2826_v35, %v6050_v33 }
0x162a   :  { %v2796_v41 = vpop.permute.xlu2 %2795 }
0x1632   :  { %v2821_v27 = vpop.permute.xlu0 %2820 }
0x1633   :  { %v2809_v47 = vpop.permute.xlu1 %2808  ;;  %v2825_v31 = vsel %vm263_vm0, %v2796_v41, %v2821_v27 }
0x1634   :  { %v2823_v8 = vsel %vm263_vm0, %v2784_v7, %v2809_v47  ;;  %v2829_v24 = vmul.f32 %v2825_v31, %v6065_v25 }
0x1635   :  { %v2827_v21 = vmul.f32 %v2823_v8, %v6040_v58 }
0x1636   :  { %v2833_v13 = vadd.f32 %v2829_v24, %v6073_v19 }
0x1637   :  { %v2831_v39 = vadd.f32 %v2827_v21, %v6054_v15 }
0x1639   :  { %5236 = vtanh.f32 %v2831_v39 }
0x163a   :  { %5238 = vtanh.f32 %v2830_v56 }
0x163b   :  { %5240 = vtanh.f32 %v2833_v13 }
0x163f   :  { %v5237_v40 = vpop.eup %5236 }
0x1640   :  { %v5239_v17 = vpop.eup %5238  ;;  %v2839_v36 = vmul.f32 0.5, %v5237_v40 }
0x1641   :  { %v2838_v44 = vmul.f32 0.5, %v5239_v17  ;;  %v5241_v30 = vpop.eup %5240 }
0x1642   :  { %v2843_v32 = vadd.f32 0.5, %v2839_v36  ;;  %v2841_v28 = vmul.f32 0.5, %v5241_v30 }
0x1643   :  { %v2815_v61 = vpop.permute.xlu1 %2814  ;;  %v2842_v29 = vadd.f32 0.5, %v2838_v44 }
0x1644   :  { %v2824_v62 = vsel %vm263_vm0, %v2790_v22, %v2815_v61  ;;  %v2847_v57 = vmul.f32 %v2843_v32, %v6181_v26  ;;  %v2864_v51 = vmul.f32 %v2843_v32, %v6102_v60  ;;  %v2845_v16 = vadd.f32 0.5, %v2841_v28 }
0x1645   :  { %v2828_v4 = vmul.f32 %v2824_v62, %v6046_v45  ;;  %v2846_v18 = vmul.f32 %v2842_v29, %v6148_v49  ;;  %v2863_v20 = vmul.f32 %v2842_v29, %v6095_v23 }
0x1646   :  { %v2851_v53 = vsel %vm402_vm1, %v2847_v57, 0.0  ;;  %v2868_v1 = vsel %vm402_vm1, %v2864_v51, 0.0  ;;  %v2849_v12 = vmul.f32 %v2845_v16, %v6177_v34  ;;  %v2866_v22 = vmul.f32 %v2845_v16, %v6139_v43 }
0x1647   :  { %v2832_v9 = vadd.f32 %v2828_v4, %v6061_v37  ;;  %v2850_v7 = vsel %vm402_vm1, %v2846_v18, 0.0  ;;  %v2867_v50 = vsel %vm402_vm1, %v2863_v20, 0.0  ;;  %v2881_v20 = vmul.f32 %v6966_v42, %v6216_v38 }
0x1648   :  { %v2852_v8 = vadd.f32 %v2851_v53, %v2850_v7  ;;  %v2869_v27 = vadd.f32 %v2868_v1, %v2867_v50  ;;  %v2855_v39 = vsel %vm402_vm1, %v2849_v12, 0.0  ;;  %v2872_v56 = vsel %vm402_vm1, %v2866_v22, 0.0 }
0x1649   :  { %5242 = vtanh.f32 %v2832_v9 }
0x164f   :  { %v5243_v59 = vpop.eup %5242 }
0x1650   :  { %v2840_v14 = vmul.f32 0.5, %v5243_v59 }
0x1652   :  { %v2844_v0 = vadd.f32 0.5, %v2840_v14 }
0x1654   :  { %v2848_v63 = vmul.f32 %v2844_v0, %v6168_v52  ;;  %v2865_v47 = vmul.f32 %v2844_v0, %v6108_v11 }
0x1656   :  { %v2853_v21 = vsel %vm402_vm1, %v2848_v63, 0.0  ;;  %v2870_v35 = vsel %vm402_vm1, %v2865_v47, 0.0 }
0x1657   :  { %v2854_v41 = vadd.f32 %v2853_v21, %v2852_v8  ;;  %v2871_v31 = vadd.f32 %v2870_v35, %v2869_v27 }
0x1659   :  { %v2856_v24 = vadd.f32 %v2855_v39, %v2854_v41  ;;  %v2873_v13 = vadd.f32 %v2872_v56, %v2871_v31 }
0x165b   :  { %v2857_v40 = vrot.slane %v2856_v24, 4  ;;  %v2874_v61 = vrot.slane %v2873_v13, 4 }
0x165d   :  { %v2858_v17 = vadd.f32 %v2857_v40, %v2856_v24  ;;  %v2875_v62 = vadd.f32 %v2874_v61, %v2873_v13 }
0x165f   :  { %v2876_v4 = vrot.slane %v2875_v62, 2  ;;  %v2859_v36 = vrot.slane %v2858_v17, 2 }
0x1661   :  { %v2877_v44 = vadd.f32 %v2876_v4, %v2875_v62  ;;  %v2860_v30 = vadd.f32 %v2859_v36, %v2858_v17 }
0x1663   :  { %v2878_v9 = vrot.slane %v2877_v44, 1  ;;  %v2861_v28 = vrot.slane %v2860_v30, 1 }
0x1665   :  { %v2879_v32 = vadd.f32 %v2878_v9, %v2877_v44  ;;  %v2862_v57 = vadd.f32 %v2861_v28, %v2860_v30 }
0x1667   :  { %v2883_v29 = vadd.f32 %v2879_v32, %v6201_v6  ;;  %v2880_v59 = vadd.f32 %v2862_v57, %v6210_v5 }
0x1669   :  { %5244 = vrcp.f32 %v2883_v29  ;;  %v2882_v14 = vadd.f32 %v2881_v20, %v2880_v59 }
0x166f   :  { %v5245_v51 = vpop.eup %5244 }
0x1670   :  { %v2885_v18 = vmul.f32 %v5245_v51, %v2883_v29 }
0x1672   :  { %v2886_v16 = vsub.f32 2.0, %v2885_v18 }
0x1674   :  { %v2887_v53 = vmul.f32 %v5245_v51, %v2886_v16 }
0x1676   :  { %v7012_v1 = vmul.f32 %v2887_v53, %v2882_v14 }
0x1678   :  { %v2890_v0 = vrot.slane %v7012_v1, 7 }
0x167a   :  { %2891 = vrot.lane.b32.xlu1 %v2890_v0, %s5632_s23 }
0x16ec   :  { %v2892_v7 = vpop.permute.xlu1 %2891 }
0x16ed   :  { %v2894_v50 = vsel %vm786_vm2, %v7012_v1, %v2892_v7 }
0x16ee   :  { %v2895_v12 = vperm.slane %v2894_v50, 0  ;;  %v2920_v22 = vperm.slane %v2894_v50, 1 }
0x16f0   :  { %2931 = vperm.xlu0 %4910, %v2920_v22   ;;  %2906 = vperm.xlu1 %4909, %v2895_v12  }
0x16f1   :  { %2900 = vperm.xlu2 %4908, %v2895_v12  }
0x16f8   :  { %4911 = vset.pattern.permute.xlu1 %v5864_v10  ;;  %4917 = vset.pattern.permute.xlu0 %v5788_v2 }
0x16f9   :  { %2925 = vperm.xlu2 %4908, %v2920_v22  }
0x1700   :  { %2912 = vperm.xlu1 %4911, %v2895_v12  }
0x1701   :  { %4912 = vset.pattern.permute.xlu2 %v5864_v10 }
0x1708   :  { %4913 = vset.pattern.permute.xlu1 %v5892_v46 }
0x1709   :  { %2937 = vperm.xlu2 %4912, %v2920_v22  }
0x1710   :  { %2918 = vperm.xlu1 %4913, %v2895_v12  }
0x1711   :  { %4914 = vset.pattern.permute.xlu2 %v5892_v46 }
0x1718   :  { %4915 = vset.pattern.permute.xlu1 %v5788_v2 }
0x1719   :  { %2943 = vperm.xlu2 %4914, %v2920_v22  }
0x1721   :  { %4916 = vset.pattern.permute.xlu2 %v5791_v3 }
0x174b   :  { %v2901_v42 = vpop.permute.xlu2 %2900 }
0x1753   :  { %v2926_v63 = vpop.permute.xlu2 %2925 }
0x1754   :  { %v2945_v21 = vsel %vm263_vm0, %v2901_v42, %v2926_v63 }
0x1755   :  { %v2949_v39 = vmul.f32 %v2945_v21, %v6033_v48 }
0x1757   :  { %v2953_v40 = vadd.f32 %v2949_v39, %v6050_v33 }
0x1762   :  { %v2907_v47 = vpop.permute.xlu1 %2906  ;;  %v2932_v8 = vpop.permute.xlu0 %2931 }
0x1763   :  { %v2946_v27 = vsel %vm263_vm0, %v2907_v47, %v2932_v8  ;;  %v2938_v41 = vpop.permute.xlu2 %2937 }
0x1764   :  { %v2950_v35 = vmul.f32 %v2946_v27, %v6040_v58 }
0x1766   :  { %v2954_v13 = vadd.f32 %v2950_v35, %v6054_v15 }
0x1768   :  { %5246 = vtanh.f32 %v2954_v13 }
0x1769   :  { %5248 = vtanh.f32 %v2953_v40 }
0x176e   :  { %v5247_v17 = vpop.eup %5246 }
0x176f   :  { %v5249_v62 = vpop.eup %5248  ;;  %v2962_v9 = vmul.f32 0.5, %v5247_v17 }
0x1770   :  { %v2961_v32 = vmul.f32 0.5, %v5249_v62 }
0x1771   :  { %v2966_v51 = vadd.f32 0.5, %v2962_v9 }
0x1772   :  { %v2913_v31 = vpop.permute.xlu1 %2912  ;;  %v2965_v59 = vadd.f32 0.5, %v2961_v32 }
0x1773   :  { %v2947_v56 = vsel %vm263_vm0, %v2913_v31, %v2938_v41  ;;  %v2944_v36 = vpop.permute.xlu2 %2943  ;;  %v2970_v20 = vmul.f32 %v2966_v51, %v6181_v26  ;;  %v2987_v16 = vmul.f32 %v2966_v51, %v6102_v60 }
0x1774   :  { %v2951_v24 = vmul.f32 %v2947_v56, %v6046_v45  ;;  %v2969_v14 = vmul.f32 %v2965_v59, %v6148_v49  ;;  %v2986_v53 = vmul.f32 %v2965_v59, %v6095_v23 }
0x1775   :  { %v2974_v12 = vsel %vm402_vm1, %v2970_v20, 0.0  ;;  %v2991_v22 = vsel %vm402_vm1, %v2987_v16, 0.0 }
0x1776   :  { %v2955_v61 = vadd.f32 %v2951_v24, %v6061_v37  ;;  %v2973_v63 = vsel %vm402_vm1, %v2969_v14, 0.0  ;;  %v2990_v47 = vsel %vm402_vm1, %v2986_v53, 0.0  ;;  %v3004_v53 = vmul.f32 %v7012_v1, %v6216_v38 }
0x1777   :  { %v2975_v35 = vadd.f32 %v2974_v12, %v2973_v63  ;;  %v2992_v41 = vadd.f32 %v2991_v22, %v2990_v47 }
0x1778   :  { %5250 = vtanh.f32 %v2955_v61 }
0x177e   :  { %v5251_v4 = vpop.eup %5250 }
0x177f   :  { %v2963_v28 = vmul.f32 0.5, %v5251_v4 }
0x1781   :  { %v2967_v18 = vadd.f32 0.5, %v2963_v28 }
0x1782   :  { %v2919_v44 = vpop.permute.xlu1 %2918 }
0x1783   :  { %v2948_v30 = vsel %vm263_vm0, %v2919_v44, %v2944_v36  ;;  %v2971_v0 = vmul.f32 %v2967_v18, %v6168_v52  ;;  %v2988_v7 = vmul.f32 %v2967_v18, %v6108_v11 }
0x1784   :  { %v2952_v29 = vmul.f32 %v2948_v30, %v6065_v25 }
0x1785   :  { %v2976_v8 = vsel %vm402_vm1, %v2971_v0, 0.0  ;;  %v2993_v27 = vsel %vm402_vm1, %v2988_v7, 0.0 }
0x1786   :  { %v2956_v57 = vadd.f32 %v2952_v29, %v6073_v19  ;;  %v2977_v56 = vadd.f32 %v2976_v8, %v2975_v35  ;;  %v2994_v24 = vadd.f32 %v2993_v27, %v2992_v41 }
0x1788   :  { %5252 = vtanh.f32 %v2956_v57 }
0x178e   :  { %v5253_v50 = vpop.eup %5252 }
0x178f   :  { %v2964_v42 = vmul.f32 0.5, %v5253_v50 }
0x1791   :  { %v2968_v21 = vadd.f32 0.5, %v2964_v42 }
0x1793   :  { %v2972_v31 = vmul.f32 %v2968_v21, %v6177_v34  ;;  %v2989_v39 = vmul.f32 %v2968_v21, %v6139_v43 }
0x1795   :  { %v2978_v13 = vsel %vm402_vm1, %v2972_v31, 0.0  ;;  %v2995_v40 = vsel %vm402_vm1, %v2989_v39, 0.0 }
0x1796   :  { %v2979_v61 = vadd.f32 %v2978_v13, %v2977_v56  ;;  %v2996_v17 = vadd.f32 %v2995_v40, %v2994_v24 }
0x1798   :  { %v2980_v62 = vrot.slane %v2979_v61, 4  ;;  %v2997_v4 = vrot.slane %v2996_v17, 4 }
0x179a   :  { %v2981_v36 = vadd.f32 %v2980_v62, %v2979_v61  ;;  %v2998_v44 = vadd.f32 %v2997_v4, %v2996_v17 }
0x179c   :  { %v2999_v9 = vrot.slane %v2998_v44, 2  ;;  %v2982_v30 = vrot.slane %v2981_v36, 2 }
0x179e   :  { %v3000_v32 = vadd.f32 %v2999_v9, %v2998_v44  ;;  %v2983_v28 = vadd.f32 %v2982_v30, %v2981_v36 }
0x17a0   :  { %v3001_v29 = vrot.slane %v3000_v32, 1  ;;  %v2984_v59 = vrot.slane %v2983_v28, 1 }
0x17a2   :  { %v3002_v57 = vadd.f32 %v3001_v29, %v3000_v32  ;;  %v2985_v18 = vadd.f32 %v2984_v59, %v2983_v28 }
0x17a4   :  { %v3006_v51 = vadd.f32 %v3002_v57, %v6201_v6  ;;  %v3003_v16 = vadd.f32 %v2985_v18, %v6210_v5 }
0x17a6   :  { %5254 = vrcp.f32 %v3006_v51  ;;  %v3005_v7 = vadd.f32 %v3004_v53, %v3003_v16 }
0x17ac   :  { %v5255_v20 = vpop.eup %5254 }
0x17ad   :  { %v3008_v14 = vmul.f32 %v5255_v20, %v3006_v51 }
0x17af   :  { %v3009_v0 = vsub.f32 2.0, %v3008_v14 }
0x17b1   :  { %v3010_v50 = vmul.f32 %v5255_v20, %v3009_v0 }
0x17b3   :  { %v7057_v12 = vmul.f32 %v3010_v50, %v3005_v7 }
0x17b5   :  { %v3013_v22 = vrot.slane %v7057_v12, 7 }
0x17b7   :  { %3014 = vrot.lane.b32.xlu0 %v3013_v22, %s5632_s23 }
0x1829   :  { %v3015_v42 = vpop.permute.xlu0 %3014 }
0x182a   :  { %v3017_v63 = vsel %vm786_vm2, %v7057_v12, %v3015_v42 }
0x182b   :  { %v3018_v47 = vperm.slane %v3017_v63, 0  ;;  %v3043_v8 = vperm.slane %v3017_v63, 1 }
0x182d   :  { %3048 = vperm.xlu0 %4917, %v3043_v8   ;;  %3029 = vperm.xlu2 %4916, %v3018_v47  }
0x182e   :  { %3023 = vperm.xlu1 %4915, %v3018_v47  }
0x1835   :  { %4922 = vset.pattern.permute.xlu0 %v5892_v46  ;;  %4919 = vset.pattern.permute.xlu2 %v5864_v10 }
0x1836   :  { %4918 = vset.pattern.permute.xlu1 %v5791_v3 }
0x183d   :  { %3066 = vperm.xlu0 %4922, %v3043_v8   ;;  %3035 = vperm.xlu2 %4919, %v3018_v47  }
0x183e   :  { %3054 = vperm.xlu1 %4918, %v3043_v8  }
0x1845   :  { %4921 = vset.pattern.permute.xlu2 %v5892_v46  ;;  %4925 = vset.pattern.permute.xlu0 %v5791_v3 }
0x1846   :  { %4920 = vset.pattern.permute.xlu1 %v5864_v10 }
0x184d   :  { %3041 = vperm.xlu2 %4921, %v3018_v47  }
0x184e   :  { %3060 = vperm.xlu1 %4920, %v3043_v8  }
0x1855   :  { %4923 = vset.pattern.permute.xlu2 %v5788_v2 }
0x1856   :  { %4924 = vset.pattern.permute.xlu1 %v5791_v3 }
0x1887   :  { %v3030_v1 = vpop.permute.xlu2 %3029 }
0x1897   :  { %v3036_v35 = vpop.permute.xlu2 %3035 }
0x189f   :  { %v3049_v21 = vpop.permute.xlu0 %3048 }
0x18a0   :  { %v3024_v27 = vpop.permute.xlu1 %3023 }
0x18a1   :  { %v3068_v41 = vsel %vm263_vm0, %v3024_v27, %v3049_v21 }
0x18a2   :  { %v3072_v13 = vmul.f32 %v3068_v41, %v6033_v48 }
0x18a4   :  { %v3076_v62 = vadd.f32 %v3072_v13, %v6050_v33 }
0x18a7   :  { %v3042_v40 = vpop.permute.xlu2 %3041 }
0x18af   :  { %v3067_v56 = vpop.permute.xlu0 %3066 }
0x18b0   :  { %v3055_v31 = vpop.permute.xlu1 %3054  ;;  %v3071_v61 = vsel %vm263_vm0, %v3042_v40, %v3067_v56 }
0x18b1   :  { %v3069_v39 = vsel %vm263_vm0, %v3030_v1, %v3055_v31  ;;  %v3075_v4 = vmul.f32 %v3071_v61, %v6065_v25 }
0x18b2   :  { %v3073_v24 = vmul.f32 %v3069_v39, %v6040_v58 }
0x18b3   :  { %v3079_v36 = vadd.f32 %v3075_v4, %v6073_v19 }
0x18b4   :  { %v3077_v17 = vadd.f32 %v3073_v24, %v6054_v15 }
0x18b6   :  { %5256 = vtanh.f32 %v3077_v17 }
0x18b7   :  { %5258 = vtanh.f32 %v3076_v62 }
0x18b8   :  { %5260 = vtanh.f32 %v3079_v36 }
0x18bc   :  { %v5257_v44 = vpop.eup %5256 }
0x18bd   :  { %v5259_v30 = vpop.eup %5258  ;;  %v3085_v28 = vmul.f32 0.5, %v5257_v44 }
0x18be   :  { %v3084_v57 = vmul.f32 0.5, %v5259_v30  ;;  %v5261_v59 = vpop.eup %5260 }
0x18bf   :  { %v3089_v18 = vadd.f32 0.5, %v3085_v28  ;;  %v3087_v16 = vmul.f32 0.5, %v5261_v59 }
0x18c0   :  { %v3061_v9 = vpop.permute.xlu1 %3060  ;;  %v3088_v20 = vadd.f32 0.5, %v3084_v57 }
0x18c1   :  { %v3070_v32 = vsel %vm263_vm0, %v3036_v35, %v3061_v9  ;;  %v3093_v14 = vmul.f32 %v3089_v18, %v6181_v26  ;;  %v3110_v53 = vmul.f32 %v3089_v18, %v6102_v60  ;;  %v3091_v22 = vadd.f32 0.5, %v3087_v16 }
0x18c2   :  { %v3074_v29 = vmul.f32 %v3070_v32, %v6046_v45  ;;  %v3092_v7 = vmul.f32 %v3088_v20, %v6148_v49  ;;  %v3109_v50 = vmul.f32 %v3088_v20, %v6095_v23 }
0x18c3   :  { %v3097_v63 = vsel %vm402_vm1, %v3093_v14, 0.0  ;;  %v3114_v47 = vsel %vm402_vm1, %v3110_v53, 0.0  ;;  %v3095_v21 = vmul.f32 %v3091_v22, %v6177_v34  ;;  %v3112_v35 = vmul.f32 %v3091_v22, %v6139_v43 }
0x18c4   :  { %v3078_v51 = vadd.f32 %v3074_v29, %v6061_v37  ;;  %v3096_v1 = vsel %vm402_vm1, %v3092_v7, 0.0  ;;  %v3113_v27 = vsel %vm402_vm1, %v3109_v50, 0.0  ;;  %v3127_v50 = vmul.f32 %v7057_v12, %v6216_v38 }
0x18c5   :  { %v3098_v39 = vadd.f32 %v3097_v63, %v3096_v1  ;;  %v3115_v56 = vadd.f32 %v3114_v47, %v3113_v27  ;;  %v3101_v17 = vsel %vm402_vm1, %v3095_v21, 0.0  ;;  %v3118_v62 = vsel %vm402_vm1, %v3112_v35, 0.0 }
0x18c6   :  { %5262 = vtanh.f32 %v3078_v51 }
0x18cc   :  { %v5263_v0 = vpop.eup %5262 }
0x18cd   :  { %v3086_v42 = vmul.f32 0.5, %v5263_v0 }
0x18cf   :  { %v3090_v8 = vadd.f32 0.5, %v3086_v42 }
0x18d1   :  { %v3094_v41 = vmul.f32 %v3090_v8, %v6168_v52  ;;  %v3111_v31 = vmul.f32 %v3090_v8, %v6108_v11 }
0x18d3   :  { %v3099_v24 = vsel %vm402_vm1, %v3094_v41, 0.0  ;;  %v3116_v13 = vsel %vm402_vm1, %v3111_v31, 0.0 }
0x18d4   :  { %v3100_v40 = vadd.f32 %v3099_v24, %v3098_v39  ;;  %v3117_v61 = vadd.f32 %v3116_v13, %v3115_v56 }
0x18d6   :  { %v3102_v4 = vadd.f32 %v3101_v17, %v3100_v40  ;;  %v3119_v36 = vadd.f32 %v3118_v62, %v3117_v61 }
0x18d8   :  { %v3103_v44 = vrot.slane %v3102_v4, 4  ;;  %v3120_v9 = vrot.slane %v3119_v36, 4 }
0x18da   :  { %v3104_v30 = vadd.f32 %v3103_v44, %v3102_v4  ;;  %v3121_v32 = vadd.f32 %v3120_v9, %v3119_v36 }
0x18dc   :  { %v3122_v29 = vrot.slane %v3121_v32, 2  ;;  %v3105_v28 = vrot.slane %v3104_v30, 2 }
0x18de   :  { %v3123_v57 = vadd.f32 %v3122_v29, %v3121_v32  ;;  %v3106_v59 = vadd.f32 %v3105_v28, %v3104_v30 }
0x18e0   :  { %v3124_v51 = vrot.slane %v3123_v57, 1  ;;  %v3107_v16 = vrot.slane %v3106_v59, 1 }
0x18e2   :  { %v3125_v18 = vadd.f32 %v3124_v51, %v3123_v57  ;;  %v3108_v14 = vadd.f32 %v3107_v16, %v3106_v59 }
0x18e4   :  { %v3129_v20 = vadd.f32 %v3125_v18, %v6201_v6  ;;  %v3126_v0 = vadd.f32 %v3108_v14, %v6210_v5 }
0x18e6   :  { %5264 = vrcp.f32 %v3129_v20  ;;  %v3128_v42 = vadd.f32 %v3127_v50, %v3126_v0 }
0x18ec   :  { %v5265_v53 = vpop.eup %5264 }
0x18ed   :  { %v3131_v7 = vmul.f32 %v5265_v53, %v3129_v20 }
0x18ef   :  { %v3132_v22 = vsub.f32 2.0, %v3131_v7 }
0x18f1   :  { %v3133_v63 = vmul.f32 %v5265_v53, %v3132_v22 }
0x18f3   :  { %v7103_v47 = vmul.f32 %v3133_v63, %v3128_v42 }
0x18f5   :  { %v3136_v8 = vrot.slane %v7103_v47, 7 }
0x18f7   :  { %3137 = vrot.lane.b32.xlu1 %v3136_v8, %s5632_s23 }
0x1969   :  { %v3138_v1 = vpop.permute.xlu1 %3137 }
0x196a   :  { %v3140_v27 = vsel %vm786_vm2, %v7103_v47, %v3138_v1 }
0x196b   :  { %v3141_v21 = vperm.slane %v3140_v27, 0  ;;  %v3166_v35 = vperm.slane %v3140_v27, 1 }
0x196d   :  { %3177 = vperm.xlu0 %4925, %v3166_v35   ;;  %3152 = vperm.xlu1 %4924, %v3141_v21  }
0x196e   :  { %3146 = vperm.xlu2 %4923, %v3141_v21  }
0x1975   :  { %3257 = vrot.lane.b32.xlu0 %v6201_v6, %s5631_s12  ;;  %4926 = vset.pattern.permute.xlu1 %v5864_v10 }
0x1976   :  { %3171 = vperm.xlu2 %4923, %v3166_v35   ;;  %4930 = vset.pattern.permute.xlu0 %v5788_v2 }
0x197d   :  { %3158 = vperm.xlu1 %4926, %v3141_v21  }
0x197e   :  { %4927 = vset.pattern.permute.xlu2 %v5864_v10 }
0x1985   :  { %4928 = vset.pattern.permute.xlu1 %v5892_v46 }
0x1986   :  { %3183 = vperm.xlu2 %4927, %v3166_v35  }
0x198d   :  { %3164 = vperm.xlu1 %4928, %v3141_v21  }
0x198e   :  { %4929 = vset.pattern.permute.xlu2 %v5892_v46 }
0x1995   :  { %3250 = vrot.lane.b32.xlu1 %v6210_v5, %s5631_s12 }
0x1996   :  { %3189 = vperm.xlu2 %4929, %v3166_v35   ;;  %4931 = vset.pattern.permute.xlu1 %v5791_v3 }
0x199e   :  { %4932 = vset.pattern.permute.xlu2 %v5788_v2 }
0x19c8   :  { %v3147_v6 = vpop.permute.xlu2 %3146 }
0x19d0   :  { %v3172_v12 = vpop.permute.xlu2 %3171 }
0x19d1   :  { %v3191_v56 = vsel %vm263_vm0, %v3147_v6, %v3172_v12 }
0x19d2   :  { %v3195_v61 = vmul.f32 %v3191_v56, %v6033_v48 }
0x19d4   :  { %v3199_v4 = vadd.f32 %v3195_v61, %v6050_v33 }
0x19df   :  { %v3153_v41 = vpop.permute.xlu1 %3152  ;;  %v3178_v31 = vpop.permute.xlu0 %3177 }
0x19e0   :  { %v3192_v39 = vsel %vm263_vm0, %v3153_v41, %v3178_v31  ;;  %v3184_v13 = vpop.permute.xlu2 %3183 }
0x19e1   :  { %v3196_v24 = vmul.f32 %v3192_v39, %v6040_v58 }
0x19e3   :  { %v3200_v62 = vadd.f32 %v3196_v24, %v6054_v15 }
0x19e5   :  { %5266 = vtanh.f32 %v3200_v62 }
0x19e6   :  { %5268 = vtanh.f32 %v3199_v4 }
0x19eb   :  { %v5267_v44 = vpop.eup %5266 }
0x19ec   :  { %v5269_v9 = vpop.eup %5268  ;;  %v3208_v28 = vmul.f32 0.5, %v5267_v44 }
0x19ed   :  { %v3207_v51 = vmul.f32 0.5, %v5269_v9 }
0x19ee   :  { %v3212_v16 = vadd.f32 0.5, %v3208_v28 }
0x19ef   :  { %v3159_v40 = vpop.permute.xlu1 %3158  ;;  %v3211_v14 = vadd.f32 0.5, %v3207_v51 }
0x19f0   :  { %v3193_v5 = vsel %vm263_vm0, %v3159_v40, %v3184_v13  ;;  %v3190_v32 = vpop.permute.xlu2 %3189  ;;  %v3216_v0 = vmul.f32 %v3212_v16, %v6181_v26  ;;  %v3233_v7 = vmul.f32 %v3212_v16, %v6102_v60 }
0x19f1   :  { %v3197_v17 = vmul.f32 %v3193_v5, %v6046_v45  ;;  %v3215_v50 = vmul.f32 %v3211_v14, %v6148_v49  ;;  %v3232_v22 = vmul.f32 %v3211_v14, %v6095_v23 }
0x19f2   :  { %v3220_v1 = vsel %vm402_vm1, %v3216_v0, 0.0  ;;  %v3237_v27 = vsel %vm402_vm1, %v3233_v7, 0.0 }
0x19f3   :  { %v3201_v36 = vadd.f32 %v3197_v17, %v6061_v37  ;;  %v3219_v35 = vsel %vm402_vm1, %v3215_v50, 0.0  ;;  %v3236_v6 = vsel %vm402_vm1, %v3232_v22, 0.0  ;;  %v3254_v22 = vmul.f32 %v7103_v47, %v6216_v38 }
0x19f4   :  { %v3221_v39 = vadd.f32 %v3220_v1, %v3219_v35  ;;  %v3238_v56 = vadd.f32 %v3237_v27, %v3236_v6 }
0x19f5   :  { %5270 = vtanh.f32 %v3201_v36 }
0x19fb   :  { %v5271_v30 = vpop.eup %5270 }
0x19fc   :  { %v3209_v18 = vmul.f32 0.5, %v5271_v30 }
0x19fe   :  { %v3213_v53 = vadd.f32 0.5, %v3209_v18  ;;  %v7148_v18 = vpop.permute.xlu0 %3257 }
0x19ff   :  { %v3165_v29 = vpop.permute.xlu1 %3164 }
0x1a00   :  { %v3194_v57 = vsel %vm263_vm0, %v3165_v29, %v3190_v32  ;;  %v3217_v42 = vmul.f32 %v3213_v53, %v6168_v52  ;;  %v3234_v63 = vmul.f32 %v3213_v53, %v6108_v11 }
0x1a01   :  { %v3198_v59 = vmul.f32 %v3194_v57, %v6065_v25 }
0x1a02   :  { %v3222_v12 = vsel %vm402_vm1, %v3217_v42, 0.0  ;;  %v3239_v41 = vsel %vm402_vm1, %v3234_v63, 0.0 }
0x1a03   :  { %v3202_v20 = vadd.f32 %v3198_v59, %v6073_v19  ;;  %v3223_v40 = vadd.f32 %v3222_v12, %v3221_v39  ;;  %v3240_v61 = vadd.f32 %v3239_v41, %v3238_v56 }
0x1a05   :  { %5272 = vtanh.f32 %v3202_v20 }
0x1a07   :  { %v7151_v0 = vpop.permute.xlu1 %3250 }
0x1a0b   :  { %v5273_v8 = vpop.eup %5272 }
0x1a0c   :  { %v3210_v21 = vmul.f32 0.5, %v5273_v8 }
0x1a0e   :  { %v3214_v31 = vadd.f32 0.5, %v3210_v21 }
0x1a10   :  { %v3218_v24 = vmul.f32 %v3214_v31, %v6177_v34  ;;  %v3235_v13 = vmul.f32 %v3214_v31, %v6139_v43 }
0x1a12   :  { %v3224_v5 = vsel %vm402_vm1, %v3218_v24, 0.0  ;;  %v3241_v17 = vsel %vm402_vm1, %v3235_v13, 0.0 }
0x1a13   :  { %v3225_v62 = vadd.f32 %v3224_v5, %v3223_v40  ;;  %v3242_v4 = vadd.f32 %v3241_v17, %v3240_v61 }
0x1a15   :  { %v3243_v36 = vrot.slane %v3242_v4, 4  ;;  %v3226_v44 = vrot.slane %v3225_v62, 4 }
0x1a17   :  { %v3244_v9 = vadd.f32 %v3243_v36, %v3242_v4  ;;  %v3227_v30 = vadd.f32 %v3226_v44, %v3225_v62 }
0x1a19   :  { %v3245_v32 = vrot.slane %v3244_v9, 2  ;;  %v3228_v29 = vrot.slane %v3227_v30, 2 }
0x1a1b   :  { %v3246_v28 = vadd.f32 %v3245_v32, %v3244_v9  ;;  %v3229_v51 = vadd.f32 %v3228_v29, %v3227_v30 }
0x1a1d   :  { %v3247_v57 = vrot.slane %v3246_v28, 1  ;;  %v3230_v16 = vrot.slane %v3229_v51, 1 }
0x1a1f   :  { %v3248_v59 = vadd.f32 %v3247_v57, %v3246_v28  ;;  %v3231_v14 = vadd.f32 %v3230_v16, %v3229_v51 }
0x1a21   :  { %v3260_v20 = vadd.f32 %v7148_v18, %v3248_v59  ;;  %v3253_v7 = vadd.f32 %v7151_v0, %v3231_v14 }
0x1a23   :  { %5274 = vrcp.f32 %v3260_v20  ;;  %v3255_v63 = vadd.f32 %v3254_v22, %v3253_v7 }
0x1a29   :  { %v5275_v53 = vpop.eup %5274 }
0x1a2a   :  { %v3262_v50 = vmul.f32 %v5275_v53, %v3260_v20 }
0x1a2c   :  { %v3263_v42 = vsub.f32 2.0, %v3262_v50 }
0x1a2e   :  { %v3264_v8 = vmul.f32 %v5275_v53, %v3263_v42 }
0x1a30   :  { %v7156_v1 = vmul.f32 %v3264_v8, %v3255_v63 }
0x1a32   :  { %v3267_v27 = vrot.slane %v7156_v1, 7 }
0x1a34   :  { %3268 = vrot.lane.b32.xlu2 %v3267_v27, %s5632_s23 }
0x1a8e   :  { %v3269_v21 = vpop.permute.xlu2 %3268 }
0x1a8f   :  { %v3271_v35 = vsel %vm786_vm2, %v7156_v1, %v3269_v21 }
0x1a90   :  { %v3272_v6 = vperm.slane %v3271_v35, 0  ;;  %v3297_v12 = vperm.slane %v3271_v35, 1 }
0x1a92   :  { %3302 = vperm.xlu2 %4932, %v3297_v12   ;;  %3283 = vperm.xlu1 %4931, %v3272_v6  }
0x1a93   :  { %3277 = vperm.xlu0 %4930, %v3272_v6  }
0x1a9a   :  { %4933 = vset.pattern.permute.xlu2 %v5864_v10  ;;  %3308 = vperm.xlu1 %4931, %v3297_v12  }
0x1a9b   :  { %4934 = vset.pattern.permute.xlu0 %v5864_v10 }
0x1aa2   :  { %3289 = vperm.xlu2 %4933, %v3272_v6   ;;  %4935 = vset.pattern.permute.xlu1 %v5892_v46 }
0x1aa3   :  { %3314 = vperm.xlu0 %4934, %v3297_v12  }
0x1aaa   :  { %4936 = vset.pattern.permute.xlu2 %v5892_v46  ;;  %3295 = vperm.xlu1 %4935, %v3272_v6  }
0x1aab   :  { %4938 = vset.pattern.permute.xlu0 %v5791_v3 }
0x1ab2   :  { %3320 = vperm.xlu2 %4936, %v3297_v12   ;;  %4939 = vset.pattern.permute.xlu1 %v5788_v2 }
0x1aba   :  { %4937 = vset.pattern.permute.xlu2 %v5788_v2 }
0x1aec   :  { %v3303_v31 = vpop.permute.xlu2 %3302 }
0x1afc   :  { %v3290_v17 = vpop.permute.xlu2 %3289 }
0x1b04   :  { %v3284_v47 = vpop.permute.xlu1 %3283 }
0x1b05   :  { %v3278_v41 = vpop.permute.xlu0 %3277 }
0x1b06   :  { %v3322_v39 = vsel %vm263_vm0, %v3278_v41, %v3303_v31 }
0x1b07   :  { %v3326_v24 = vmul.f32 %v3322_v39, %v6033_v48 }
0x1b09   :  { %v3330_v5 = vadd.f32 %v3326_v24, %v6050_v33 }
0x1b0c   :  { %v3309_v56 = vpop.permute.xlu1 %3308  ;;  %v3321_v32 = vpop.permute.xlu2 %3320 }
0x1b0d   :  { %v3323_v13 = vsel %vm263_vm0, %v3284_v47, %v3309_v56 }
0x1b0e   :  { %v3327_v40 = vmul.f32 %v3323_v13, %v6040_v58 }
0x1b10   :  { %v3331_v61 = vadd.f32 %v3327_v40, %v6054_v15 }
0x1b12   :  { %5276 = vtanh.f32 %v3331_v61 }
0x1b13   :  { %5278 = vtanh.f32 %v3330_v5 }
0x1b15   :  { %v3315_v62 = vpop.permute.xlu0 %3314 }
0x1b16   :  { %v3324_v4 = vsel %vm263_vm0, %v3290_v17, %v3315_v62 }
0x1b17   :  { %v3328_v36 = vmul.f32 %v3324_v4, %v6046_v45 }
0x1b18   :  { %v5277_v9 = vpop.eup %5276 }
0x1b19   :  { %v3332_v44 = vadd.f32 %v3328_v36, %v6061_v37  ;;  %v5279_v30 = vpop.eup %5278  ;;  %v3339_v28 = vmul.f32 0.5, %v5277_v9 }
0x1b1a   :  { %v3338_v51 = vmul.f32 0.5, %v5279_v30 }
0x1b1b   :  { %5280 = vtanh.f32 %v3332_v44  ;;  %v3343_v14 = vadd.f32 0.5, %v3339_v28 }
0x1b1c   :  { %v3296_v29 = vpop.permute.xlu1 %3295  ;;  %v3342_v53 = vadd.f32 0.5, %v3338_v51 }
0x1b1d   :  { %v3325_v57 = vsel %vm263_vm0, %v3296_v29, %v3321_v32  ;;  %v3347_v22 = vmul.f32 %v3343_v14, %v6181_v26  ;;  %v3364_v42 = vmul.f32 %v3343_v14, %v6102_v60 }
0x1b1e   :  { %v3329_v59 = vmul.f32 %v3325_v57, %v6065_v25  ;;  %v3346_v63 = vmul.f32 %v3342_v53, %v6148_v49  ;;  %v3363_v8 = vmul.f32 %v3342_v53, %v6095_v23 }
0x1b1f   :  { %v3351_v6 = vsel %vm402_vm1, %v3347_v22, 0.0  ;;  %v3368_v12 = vsel %vm402_vm1, %v3364_v42, 0.0 }
0x1b20   :  { %v3333_v20 = vadd.f32 %v3329_v59, %v6073_v19  ;;  %v3350_v41 = vsel %vm402_vm1, %v3346_v63, 0.0  ;;  %v3367_v31 = vsel %vm402_vm1, %v3363_v8, 0.0  ;;  %v3381_v8 = vmul.f32 %v7156_v1, %v6216_v38 }
0x1b21   :  { %v5281_v16 = vpop.eup %5280  ;;  %v3352_v13 = vadd.f32 %v3351_v6, %v3350_v41  ;;  %v3369_v40 = vadd.f32 %v3368_v12, %v3367_v31 }
0x1b22   :  { %v3340_v7 = vmul.f32 0.5, %v5281_v16  ;;  %5282 = vtanh.f32 %v3333_v20 }
0x1b24   :  { %v3344_v50 = vadd.f32 0.5, %v3340_v7 }
0x1b26   :  { %v3348_v27 = vmul.f32 %v3344_v50, %v6168_v52  ;;  %v3365_v21 = vmul.f32 %v3344_v50, %v6108_v11 }
0x1b28   :  { %v5283_v35 = vpop.eup %5282  ;;  %v3353_v39 = vsel %vm402_vm1, %v3348_v27, 0.0  ;;  %v3370_v56 = vsel %vm402_vm1, %v3365_v21, 0.0 }
0x1b29   :  { %v3341_v47 = vmul.f32 0.5, %v5283_v35  ;;  %v3354_v17 = vadd.f32 %v3353_v39, %v3352_v13  ;;  %v3371_v62 = vadd.f32 %v3370_v56, %v3369_v40 }
0x1b2b   :  { %v3345_v24 = vadd.f32 0.5, %v3341_v47 }
0x1b2d   :  { %v3349_v61 = vmul.f32 %v3345_v24, %v6177_v34  ;;  %v3366_v5 = vmul.f32 %v3345_v24, %v6139_v43 }
0x1b2f   :  { %v3355_v4 = vsel %vm402_vm1, %v3349_v61, 0.0  ;;  %v3372_v36 = vsel %vm402_vm1, %v3366_v5, 0.0 }
0x1b30   :  { %v3356_v44 = vadd.f32 %v3355_v4, %v3354_v17  ;;  %v3373_v9 = vadd.f32 %v3372_v36, %v3371_v62 }
0x1b32   :  { %v3357_v30 = vrot.slane %v3356_v44, 4  ;;  %v3374_v32 = vrot.slane %v3373_v9, 4 }
0x1b34   :  { %v3358_v29 = vadd.f32 %v3357_v30, %v3356_v44  ;;  %v3375_v28 = vadd.f32 %v3374_v32, %v3373_v9 }
0x1b36   :  { %v3376_v57 = vrot.slane %v3375_v28, 2  ;;  %v3359_v51 = vrot.slane %v3358_v29, 2 }
0x1b38   :  { %v3377_v59 = vadd.f32 %v3376_v57, %v3375_v28  ;;  %v3360_v16 = vadd.f32 %v3359_v51, %v3358_v29 }
0x1b3a   :  { %v3378_v20 = vrot.slane %v3377_v59, 1  ;;  %v3361_v7 = vrot.slane %v3360_v16, 1 }
0x1b3c   :  { %v3379_v14 = vadd.f32 %v3378_v20, %v3377_v59  ;;  %v3362_v50 = vadd.f32 %v3361_v7, %v3360_v16 }
0x1b3e   :  { %v3383_v53 = vadd.f32 %v3379_v14, %v7148_v18  ;;  %v3380_v42 = vadd.f32 %v3362_v50, %v7151_v0 }
0x1b40   :  { %5284 = vrcp.f32 %v3383_v53  ;;  %v3382_v21 = vadd.f32 %v3381_v8, %v3380_v42 }
0x1b46   :  { %v5285_v22 = vpop.eup %5284 }
0x1b47   :  { %v3385_v63 = vmul.f32 %v5285_v22, %v3383_v53 }
0x1b49   :  { %v3386_v27 = vsub.f32 2.0, %v3385_v63 }
0x1b4b   :  { %v3387_v35 = vmul.f32 %v5285_v22, %v3386_v27 }
0x1b4d   :  { %v7201_v6 = vmul.f32 %v3387_v35, %v3382_v21 }
0x1b4f   :  { %v3390_v12 = vrot.slane %v7201_v6, 7 }
0x1b51   :  { %3391 = vrot.lane.b32.xlu1 %v3390_v12, %s5632_s23 }
0x1bc3   :  { %v3392_v47 = vpop.permute.xlu1 %3391 }
0x1bc4   :  { %v3394_v41 = vsel %vm786_vm2, %v7201_v6, %v3392_v47 }
0x1bc5   :  { %v3395_v31 = vperm.slane %v3394_v41, 0  ;;  %v3420_v39 = vperm.slane %v3394_v41, 1 }
0x1bc7   :  { %3425 = vperm.xlu1 %4939, %v3420_v39   ;;  %3406 = vperm.xlu0 %4938, %v3395_v31  }
0x1bc8   :  { %3400 = vperm.xlu2 %4937, %v3395_v31  }
0x1bcf   :  { %4941 = vset.pattern.permute.xlu1 %v5864_v10  ;;  %4943 = vset.pattern.permute.xlu0 %v5892_v46 }
0x1bd0   :  { %4940 = vset.pattern.permute.xlu2 %v5791_v3 }
0x1bd7   :  { %3412 = vperm.xlu1 %4941, %v3395_v31   ;;  %3418 = vperm.xlu0 %4943, %v3395_v31  }
0x1bd8   :  { %3431 = vperm.xlu2 %4940, %v3420_v39  }
0x1bdf   :  { %4944 = vset.pattern.permute.xlu1 %v5892_v46  ;;  %4947 = vset.pattern.permute.xlu0 %v5788_v2 }
0x1be0   :  { %4942 = vset.pattern.permute.xlu2 %v5864_v10 }
0x1be7   :  { %3443 = vperm.xlu1 %4944, %v3420_v39  }
0x1be8   :  { %3437 = vperm.xlu2 %4942, %v3420_v39  }
0x1bef   :  { %4945 = vset.pattern.permute.xlu1 %v5788_v2 }
0x1bf0   :  { %4946 = vset.pattern.permute.xlu2 %v5791_v3 }
0x1c22   :  { %v3401_v1 = vpop.permute.xlu2 %3400 }
0x1c32   :  { %v3432_v56 = vpop.permute.xlu2 %3431 }
0x1c39   :  { %v3426_v24 = vpop.permute.xlu1 %3425  ;;  %v3407_v13 = vpop.permute.xlu0 %3406 }
0x1c3a   :  { %v3445_v40 = vsel %vm263_vm0, %v3401_v1, %v3426_v24  ;;  %v3446_v61 = vsel %vm263_vm0, %v3407_v13, %v3432_v56 }
0x1c3b   :  { %v3449_v5 = vmul.f32 %v3445_v40, %v6033_v48  ;;  %v3450_v17 = vmul.f32 %v3446_v61, %v6040_v58 }
0x1c3d   :  { %v3453_v9 = vadd.f32 %v3449_v5, %v6050_v33  ;;  %v3454_v30 = vadd.f32 %v3450_v17, %v6054_v15 }
0x1c3f   :  { %5286 = vtanh.f32 %v3453_v9 }
0x1c40   :  { %5288 = vtanh.f32 %v3454_v30 }
0x1c42   :  { %v3438_v62 = vpop.permute.xlu2 %3437 }
0x1c45   :  { %v5287_v29 = vpop.eup %5286 }
0x1c46   :  { %v5289_v28 = vpop.eup %5288  ;;  %v3461_v51 = vmul.f32 0.5, %v5287_v29 }
0x1c47   :  { %v3462_v16 = vmul.f32 0.5, %v5289_v28 }
0x1c48   :  { %v3465_v50 = vadd.f32 0.5, %v3461_v51 }
0x1c49   :  { %v3413_v4 = vpop.permute.xlu1 %3412  ;;  %v3419_v59 = vpop.permute.xlu0 %3418  ;;  %v3466_v42 = vadd.f32 0.5, %v3462_v16 }
0x1c4a   :  { %v3447_v36 = vsel %vm263_vm0, %v3413_v4, %v3438_v62  ;;  %v3469_v8 = vmul.f32 %v3465_v50, %v6148_v49  ;;  %v3486_v27 = vmul.f32 %v3465_v50, %v6095_v23 }
0x1c4b   :  { %v3451_v44 = vmul.f32 %v3447_v36, %v6046_v45  ;;  %v3470_v21 = vmul.f32 %v3466_v42, %v6181_v26  ;;  %v3487_v35 = vmul.f32 %v3466_v42, %v6102_v60 }
0x1c4c   :  { %v3473_v31 = vsel %vm402_vm1, %v3469_v8, 0.0  ;;  %v3490_v39 = vsel %vm402_vm1, %v3486_v27, 0.0 }
0x1c4d   :  { %v3455_v32 = vadd.f32 %v3451_v44, %v6061_v37  ;;  %v3474_v1 = vsel %vm402_vm1, %v3470_v21, 0.0  ;;  %v3491_v56 = vsel %vm402_vm1, %v3487_v35, 0.0  ;;  %v3504_v35 = vmul.f32 %v7201_v6, %v6216_v38 }
0x1c4e   :  { %v3475_v5 = vadd.f32 %v3474_v1, %v3473_v31  ;;  %v3492_v17 = vadd.f32 %v3491_v56, %v3490_v39 }
0x1c4f   :  { %5290 = vtanh.f32 %v3455_v32 }
0x1c55   :  { %v5291_v57 = vpop.eup %5290 }
0x1c56   :  { %v3463_v7 = vmul.f32 0.5, %v5291_v57 }
0x1c58   :  { %v3467_v63 = vadd.f32 0.5, %v3463_v7 }
0x1c59   :  { %v3444_v20 = vpop.permute.xlu1 %3443 }
0x1c5a   :  { %v3448_v14 = vsel %vm263_vm0, %v3419_v59, %v3444_v20  ;;  %v3471_v12 = vmul.f32 %v3467_v63, %v6168_v52  ;;  %v3488_v47 = vmul.f32 %v3467_v63, %v6108_v11 }
0x1c5b   :  { %v3452_v53 = vmul.f32 %v3448_v14, %v6065_v25 }
0x1c5c   :  { %v3476_v13 = vsel %vm402_vm1, %v3471_v12, 0.0  ;;  %v3493_v40 = vsel %vm402_vm1, %v3488_v47, 0.0 }
0x1c5d   :  { %v3456_v22 = vadd.f32 %v3452_v53, %v6073_v19  ;;  %v3477_v36 = vadd.f32 %v3476_v13, %v3475_v5  ;;  %v3494_v44 = vadd.f32 %v3493_v40, %v3492_v17 }
0x1c5f   :  { %5292 = vtanh.f32 %v3456_v22 }
0x1c65   :  { %v5293_v41 = vpop.eup %5292 }
0x1c66   :  { %v3464_v24 = vmul.f32 0.5, %v5293_v41 }
0x1c68   :  { %v3468_v61 = vadd.f32 0.5, %v3464_v24 }
0x1c6a   :  { %v3472_v62 = vmul.f32 %v3468_v61, %v6177_v34  ;;  %v3489_v4 = vmul.f32 %v3468_v61, %v6139_v43 }
0x1c6c   :  { %v3478_v9 = vsel %vm402_vm1, %v3472_v62, 0.0  ;;  %v3495_v30 = vsel %vm402_vm1, %v3489_v4, 0.0 }
0x1c6d   :  { %v3479_v32 = vadd.f32 %v3478_v9, %v3477_v36  ;;  %v3496_v29 = vadd.f32 %v3495_v30, %v3494_v44 }
0x1c6f   :  { %v3480_v28 = vrot.slane %v3479_v32, 4  ;;  %v3497_v57 = vrot.slane %v3496_v29, 4 }
0x1c71   :  { %v3481_v51 = vadd.f32 %v3480_v28, %v3479_v32  ;;  %v3498_v59 = vadd.f32 %v3497_v57, %v3496_v29 }
0x1c73   :  { %v3499_v20 = vrot.slane %v3498_v59, 2  ;;  %v3482_v16 = vrot.slane %v3481_v51, 2 }
0x1c75   :  { %v3500_v14 = vadd.f32 %v3499_v20, %v3498_v59  ;;  %v3483_v7 = vadd.f32 %v3482_v16, %v3481_v51 }
0x1c77   :  { %v3501_v53 = vrot.slane %v3500_v14, 1  ;;  %v3484_v42 = vrot.slane %v3483_v7, 1 }
0x1c79   :  { %v3502_v50 = vadd.f32 %v3501_v53, %v3500_v14  ;;  %v3485_v63 = vadd.f32 %v3484_v42, %v3483_v7 }
0x1c7b   :  { %v3506_v22 = vadd.f32 %v3502_v50, %v7148_v18  ;;  %v3503_v27 = vadd.f32 %v3485_v63, %v7151_v0 }
0x1c7d   :  { %5294 = vrcp.f32 %v3506_v22  ;;  %v3505_v47 = vadd.f32 %v3504_v35, %v3503_v27 }
0x1c83   :  { %v5295_v8 = vpop.eup %5294 }
0x1c84   :  { %v3508_v21 = vmul.f32 %v5295_v8, %v3506_v22 }
0x1c86   :  { %v3509_v12 = vsub.f32 2.0, %v3508_v21 }
0x1c88   :  { %v3510_v41 = vmul.f32 %v5295_v8, %v3509_v12 }
0x1c8a   :  { %v7247_v31 = vmul.f32 %v3510_v41, %v3505_v47 }
0x1c8c   :  { %v3513_v39 = vrot.slane %v7247_v31, 7 }
0x1c8e   :  { %3514 = vrot.lane.b32.xlu2 %v3513_v39, %s5632_s23 }
0x1ce8   :  { %v3515_v1 = vpop.permute.xlu2 %3514 }
0x1ce9   :  { %v3517_v56 = vsel %vm786_vm2, %v7247_v31, %v3515_v1 }
0x1cea   :  { %v3518_v24 = vperm.slane %v3517_v56, 0  ;;  %v3543_v13 = vperm.slane %v3517_v56, 1 }
0x1cec   :  { %3548 = vperm.xlu0 %4947, %v3543_v13   ;;  %3529 = vperm.xlu2 %4946, %v3518_v24  }
0x1ced   :  { %3523 = vperm.xlu1 %4945, %v3518_v24  }
0x1cf4   :  { %4952 = vset.pattern.permute.xlu0 %v5892_v46  ;;  %4949 = vset.pattern.permute.xlu2 %v5864_v10 }
0x1cf5   :  { %4948 = vset.pattern.permute.xlu1 %v5791_v3 }
0x1cfc   :  { %3566 = vperm.xlu0 %4952, %v3543_v13   ;;  %3535 = vperm.xlu2 %4949, %v3518_v24  }
0x1cfd   :  { %3554 = vperm.xlu1 %4948, %v3543_v13  }
0x1d04   :  { %4951 = vset.pattern.permute.xlu2 %v5892_v46  ;;  %4955 = vset.pattern.permute.xlu0 %v5791_v3 }
0x1d05   :  { %4950 = vset.pattern.permute.xlu1 %v5864_v10 }
0x1d0c   :  { %3541 = vperm.xlu2 %4951, %v3518_v24  }
0x1d0d   :  { %3560 = vperm.xlu1 %4950, %v3543_v13  }
0x1d14   :  { %4953 = vset.pattern.permute.xlu2 %v5788_v2 }
0x1d15   :  { %4954 = vset.pattern.permute.xlu1 %v5791_v3 }
0x1d46   :  { %v3530_v6 = vpop.permute.xlu2 %3529 }
0x1d56   :  { %v3536_v5 = vpop.permute.xlu2 %3535 }
0x1d5e   :  { %v3549_v61 = vpop.permute.xlu0 %3548 }
0x1d5f   :  { %v3524_v40 = vpop.permute.xlu1 %3523 }
0x1d60   :  { %v3568_v17 = vsel %vm263_vm0, %v3524_v40, %v3549_v61 }
0x1d61   :  { %v3572_v9 = vmul.f32 %v3568_v17, %v6033_v48 }
0x1d63   :  { %v3576_v28 = vadd.f32 %v3572_v9, %v6050_v33 }
0x1d66   :  { %v3542_v30 = vpop.permute.xlu2 %3541 }
0x1d6e   :  { %v3567_v36 = vpop.permute.xlu0 %3566 }
0x1d6f   :  { %v3555_v62 = vpop.permute.xlu1 %3554  ;;  %v3571_v32 = vsel %vm263_vm0, %v3542_v30, %v3567_v36 }
0x1d70   :  { %v3569_v4 = vsel %vm263_vm0, %v3530_v6, %v3555_v62  ;;  %v3575_v57 = vmul.f32 %v3571_v32, %v6065_v25 }
0x1d71   :  { %v3573_v44 = vmul.f32 %v3569_v4, %v6040_v58 }
0x1d72   :  { %v3579_v51 = vadd.f32 %v3575_v57, %v6073_v19 }
0x1d73   :  { %v3577_v29 = vadd.f32 %v3573_v44, %v6054_v15 }
0x1d75   :  { %5296 = vtanh.f32 %v3577_v29 }
0x1d76   :  { %5298 = vtanh.f32 %v3576_v28 }
0x1d77   :  { %5300 = vtanh.f32 %v3579_v51 }
0x1d7b   :  { %v5297_v59 = vpop.eup %5296 }
0x1d7c   :  { %v5299_v16 = vpop.eup %5298  ;;  %v3585_v7 = vmul.f32 0.5, %v5297_v59 }
0x1d7d   :  { %v3584_v50 = vmul.f32 0.5, %v5299_v16  ;;  %v5301_v42 = vpop.eup %5300 }
0x1d7e   :  { %v3589_v63 = vadd.f32 0.5, %v3585_v7  ;;  %v3587_v27 = vmul.f32 0.5, %v5301_v42 }
0x1d7f   :  { %v3561_v20 = vpop.permute.xlu1 %3560  ;;  %v3588_v8 = vadd.f32 0.5, %v3584_v50 }
0x1d80   :  { %v3570_v14 = vsel %vm263_vm0, %v3536_v5, %v3561_v20  ;;  %v3593_v21 = vmul.f32 %v3589_v63, %v6181_v26  ;;  %v3610_v35 = vmul.f32 %v3589_v63, %v6102_v60  ;;  %v3591_v39 = vadd.f32 0.5, %v3587_v27 }
0x1d81   :  { %v3574_v53 = vmul.f32 %v3570_v14, %v6046_v45  ;;  %v3592_v47 = vmul.f32 %v3588_v8, %v6148_v49  ;;  %v3609_v41 = vmul.f32 %v3588_v8, %v6095_v23 }
0x1d82   :  { %v3597_v56 = vsel %vm402_vm1, %v3593_v21, 0.0  ;;  %v3614_v24 = vsel %vm402_vm1, %v3610_v35, 0.0  ;;  %v3595_v61 = vmul.f32 %v3591_v39, %v6177_v34  ;;  %v3612_v5 = vmul.f32 %v3591_v39, %v6139_v43 }
0x1d83   :  { %v3578_v22 = vadd.f32 %v3574_v53, %v6061_v37  ;;  %v3596_v6 = vsel %vm402_vm1, %v3592_v47, 0.0  ;;  %v3613_v40 = vsel %vm402_vm1, %v3609_v41, 0.0  ;;  %v3627_v41 = vmul.f32 %v7247_v31, %v6216_v38 }
0x1d84   :  { %v3598_v4 = vadd.f32 %v3597_v56, %v3596_v6  ;;  %v3615_v36 = vadd.f32 %v3614_v24, %v3613_v40  ;;  %v3601_v29 = vsel %vm402_vm1, %v3595_v61, 0.0  ;;  %v3618_v28 = vsel %vm402_vm1, %v3612_v5, 0.0 }
0x1d85   :  { %5302 = vtanh.f32 %v3578_v22 }
0x1d8b   :  { %v5303_v12 = vpop.eup %5302 }
0x1d8c   :  { %v3586_v1 = vmul.f32 0.5, %v5303_v12 }
0x1d8e   :  { %v3590_v13 = vadd.f32 0.5, %v3586_v1 }
0x1d90   :  { %v3594_v17 = vmul.f32 %v3590_v13, %v6168_v52  ;;  %v3611_v62 = vmul.f32 %v3590_v13, %v6108_v11 }
0x1d92   :  { %v3599_v44 = vsel %vm402_vm1, %v3594_v17, 0.0  ;;  %v3616_v9 = vsel %vm402_vm1, %v3611_v62, 0.0 }
0x1d93   :  { %v3600_v30 = vadd.f32 %v3599_v44, %v3598_v4  ;;  %v3617_v32 = vadd.f32 %v3616_v9, %v3615_v36 }
0x1d95   :  { %v3602_v57 = vadd.f32 %v3601_v29, %v3600_v30  ;;  %v3619_v51 = vadd.f32 %v3618_v28, %v3617_v32 }
0x1d97   :  { %v3603_v59 = vrot.slane %v3602_v57, 4  ;;  %v3620_v20 = vrot.slane %v3619_v51, 4 }
0x1d99   :  { %v3604_v16 = vadd.f32 %v3603_v59, %v3602_v57  ;;  %v3621_v14 = vadd.f32 %v3620_v20, %v3619_v51 }
0x1d9b   :  { %v3622_v53 = vrot.slane %v3621_v14, 2  ;;  %v3605_v7 = vrot.slane %v3604_v16, 2 }
0x1d9d   :  { %v3623_v50 = vadd.f32 %v3622_v53, %v3621_v14  ;;  %v3606_v42 = vadd.f32 %v3605_v7, %v3604_v16 }
0x1d9f   :  { %v3624_v22 = vrot.slane %v3623_v50, 1  ;;  %v3607_v27 = vrot.slane %v3606_v42, 1 }
0x1da1   :  { %v3625_v63 = vadd.f32 %v3624_v22, %v3623_v50  ;;  %v3608_v21 = vadd.f32 %v3607_v27, %v3606_v42 }
0x1da3   :  { %v3629_v8 = vadd.f32 %v3625_v63, %v7148_v18  ;;  %v3626_v12 = vadd.f32 %v3608_v21, %v7151_v0 }
0x1da5   :  { %5304 = vrcp.f32 %v3629_v8  ;;  %v3628_v1 = vadd.f32 %v3627_v41, %v3626_v12 }
0x1dab   :  { %v5305_v35 = vpop.eup %5304 }
0x1dac   :  { %v3631_v47 = vmul.f32 %v5305_v35, %v3629_v8 }
0x1dae   :  { %v3632_v39 = vsub.f32 2.0, %v3631_v47 }
0x1db0   :  { %v3633_v56 = vmul.f32 %v5305_v35, %v3632_v39 }
0x1db2   :  { %v7293_v24 = vmul.f32 %v3633_v56, %v3628_v1 }
0x1db4   :  { %v3636_v13 = vrot.slane %v7293_v24, 7 }
0x1db6   :  { %3637 = vrot.lane.b32.xlu1 %v3636_v13, %s5632_s23 }
0x1e28   :  { %v3638_v18 = vpop.permute.xlu1 %3637 }
0x1e29   :  { %v3640_v6 = vsel %vm786_vm2, %v7293_v24, %v3638_v18 }
0x1e2a   :  { %v3641_v40 = vperm.slane %v3640_v6, 0  ;;  %v3666_v61 = vperm.slane %v3640_v6, 1 }
0x1e2c   :  { %3677 = vperm.xlu0 %4955, %v3666_v61   ;;  %3652 = vperm.xlu1 %4954, %v3641_v40  }
0x1e2d   :  { %3646 = vperm.xlu2 %4953, %v3641_v40  }
0x1e34   :  { %4956 = vset.pattern.permute.xlu1 %v5864_v10  ;;  %4962 = vset.pattern.permute.xlu0 %v5788_v2 }
0x1e35   :  { %3671 = vperm.xlu2 %4953, %v3666_v61  }
0x1e3c   :  { %3658 = vperm.xlu1 %4956, %v3641_v40  }
0x1e3d   :  { %4957 = vset.pattern.permute.xlu2 %v5864_v10 }
0x1e44   :  { %4958 = vset.pattern.permute.xlu1 %v5892_v46 }
0x1e45   :  { %3683 = vperm.xlu2 %4957, %v3666_v61  }
0x1e4c   :  { %3664 = vperm.xlu1 %4958, %v3641_v40  }
0x1e4d   :  { %4959 = vset.pattern.permute.xlu2 %v5892_v46 }
0x1e54   :  { %4960 = vset.pattern.permute.xlu1 %v5788_v2 }
0x1e55   :  { %3689 = vperm.xlu2 %4959, %v3666_v61  }
0x1e5d   :  { %4961 = vset.pattern.permute.xlu2 %v5791_v3 }
0x1e87   :  { %v3647_v0 = vpop.permute.xlu2 %3646 }
0x1e8f   :  { %v3672_v31 = vpop.permute.xlu2 %3671 }
0x1e90   :  { %v3691_v4 = vsel %vm263_vm0, %v3647_v0, %v3672_v31 }
0x1e91   :  { %v3695_v30 = vmul.f32 %v3691_v4, %v6033_v48 }
0x1e93   :  { %v3699_v57 = vadd.f32 %v3695_v30, %v6050_v33 }
0x1e9e   :  { %v3653_v5 = vpop.permute.xlu1 %3652  ;;  %v3678_v17 = vpop.permute.xlu0 %3677 }
0x1e9f   :  { %v3692_v62 = vsel %vm263_vm0, %v3653_v5, %v3678_v17  ;;  %v3684_v44 = vpop.permute.xlu2 %3683 }
0x1ea0   :  { %v3696_v36 = vmul.f32 %v3692_v62, %v6040_v58 }
0x1ea2   :  { %v3700_v28 = vadd.f32 %v3696_v36, %v6054_v15 }
0x1ea4   :  { %5306 = vtanh.f32 %v3700_v28 }
0x1ea5   :  { %5308 = vtanh.f32 %v3699_v57 }
0x1eaa   :  { %v5307_v59 = vpop.eup %5306 }
0x1eab   :  { %v5309_v20 = vpop.eup %5308  ;;  %v3708_v7 = vmul.f32 0.5, %v5307_v59 }
0x1eac   :  { %v3707_v22 = vmul.f32 0.5, %v5309_v20 }
0x1ead   :  { %v3712_v27 = vadd.f32 0.5, %v3708_v7 }
0x1eae   :  { %v3659_v9 = vpop.permute.xlu1 %3658  ;;  %v3711_v21 = vadd.f32 0.5, %v3707_v22 }
0x1eaf   :  { %v3693_v32 = vsel %vm263_vm0, %v3659_v9, %v3684_v44  ;;  %v3690_v14 = vpop.permute.xlu2 %3689  ;;  %v3716_v12 = vmul.f32 %v3712_v27, %v6181_v26  ;;  %v3733_v47 = vmul.f32 %v3712_v27, %v6102_v60 }
0x1eb0   :  { %v3697_v29 = vmul.f32 %v3693_v32, %v6046_v45  ;;  %v3715_v41 = vmul.f32 %v3711_v21, %v6148_v49  ;;  %v3732_v39 = vmul.f32 %v3711_v21, %v6095_v23 }
0x1eb1   :  { %v3720_v18 = vsel %vm402_vm1, %v3716_v12, 0.0  ;;  %v3737_v6 = vsel %vm402_vm1, %v3733_v47, 0.0  ;;  %v3750_v47 = vmul.f32 %v7293_v24, %v6216_v38 }
0x1eb2   :  { %v3701_v51 = vadd.f32 %v3697_v29, %v6061_v37  ;;  %v3719_v61 = vsel %vm402_vm1, %v3715_v41, 0.0  ;;  %v3736_v0 = vsel %vm402_vm1, %v3732_v39, 0.0 }
0x1eb3   :  { %v3721_v62 = vadd.f32 %v3720_v18, %v3719_v61  ;;  %v3738_v4 = vadd.f32 %v3737_v6, %v3736_v0 }
0x1eb4   :  { %5310 = vtanh.f32 %v3701_v51 }
0x1eba   :  { %v5311_v16 = vpop.eup %5310 }
0x1ebb   :  { %v3709_v63 = vmul.f32 0.5, %v5311_v16 }
0x1ebd   :  { %v3713_v35 = vadd.f32 0.5, %v3709_v63 }
0x1ebe   :  { %v3665_v53 = vpop.permute.xlu1 %3664 }
0x1ebf   :  { %v3694_v50 = vsel %vm263_vm0, %v3665_v53, %v3690_v14  ;;  %v3717_v1 = vmul.f32 %v3713_v35, %v6168_v52  ;;  %v3734_v56 = vmul.f32 %v3713_v35, %v6108_v11 }
0x1ec0   :  { %v3698_v42 = vmul.f32 %v3694_v50, %v6065_v25 }
0x1ec1   :  { %v3722_v31 = vsel %vm402_vm1, %v3717_v1, 0.0  ;;  %v3739_v5 = vsel %vm402_vm1, %v3734_v56, 0.0 }
0x1ec2   :  { %v3702_v8 = vadd.f32 %v3698_v42, %v6073_v19  ;;  %v3723_v9 = vadd.f32 %v3722_v31, %v3721_v62  ;;  %v3740_v30 = vadd.f32 %v3739_v5, %v3738_v4 }
0x1ec4   :  { %5312 = vtanh.f32 %v3702_v8 }
0x1eca   :  { %v5313_v13 = vpop.eup %5312 }
0x1ecb   :  { %v3710_v40 = vmul.f32 0.5, %v5313_v13 }
0x1ecd   :  { %v3714_v17 = vadd.f32 0.5, %v3710_v40 }
0x1ecf   :  { %v3718_v36 = vmul.f32 %v3714_v17, %v6177_v34  ;;  %v3735_v44 = vmul.f32 %v3714_v17, %v6139_v43 }
0x1ed1   :  { %v3724_v32 = vsel %vm402_vm1, %v3718_v36, 0.0  ;;  %v3741_v29 = vsel %vm402_vm1, %v3735_v44, 0.0 }
0x1ed2   :  { %v3725_v28 = vadd.f32 %v3724_v32, %v3723_v9  ;;  %v3742_v57 = vadd.f32 %v3741_v29, %v3740_v30 }
0x1ed4   :  { %v3726_v51 = vrot.slane %v3725_v28, 4  ;;  %v3743_v59 = vrot.slane %v3742_v57, 4 }
0x1ed6   :  { %v3727_v20 = vadd.f32 %v3726_v51, %v3725_v28  ;;  %v3744_v16 = vadd.f32 %v3743_v59, %v3742_v57 }
0x1ed8   :  { %v3745_v14 = vrot.slane %v3744_v16, 2  ;;  %v3728_v53 = vrot.slane %v3727_v20, 2 }
0x1eda   :  { %v3746_v7 = vadd.f32 %v3745_v14, %v3744_v16  ;;  %v3729_v22 = vadd.f32 %v3728_v53, %v3727_v20 }
0x1edc   :  { %v3747_v50 = vrot.slane %v3746_v7, 1  ;;  %v3730_v8 = vrot.slane %v3729_v22, 1 }
0x1ede   :  { %v3748_v42 = vadd.f32 %v3747_v50, %v3746_v7  ;;  %v3731_v27 = vadd.f32 %v3730_v8, %v3729_v22 }
0x1ee0   :  { %v3752_v63 = vadd.f32 %v3748_v42, %v6203_v55  ;;  %v3749_v35 = vadd.f32 %v3731_v27, %v6212_v54 }
0x1ee2   :  { %5314 = vrcp.f32 %v3752_v63  ;;  %v3751_v39 = vadd.f32 %v3750_v47, %v3749_v35 }
0x1ee8   :  { %v5315_v21 = vpop.eup %5314 }
0x1ee9   :  { %v3754_v12 = vmul.f32 %v5315_v21, %v3752_v63 }
0x1eeb   :  { %v3755_v41 = vsub.f32 2.0, %v3754_v12 }
0x1eed   :  { %v3756_v1 = vmul.f32 %v5315_v21, %v3755_v41 }
0x1eef   :  { %v7338_v56 = vmul.f32 %v3756_v1, %v3751_v39 }
0x1ef1   :  { %v3759_v13 = vrot.slane %v7338_v56, 7 }
0x1ef3   :  { %3760 = vrot.lane.b32.xlu0 %v3759_v13, %s5632_s23 }
0x1f65   :  { %v3761_v18 = vpop.permute.xlu0 %3760 }
0x1f66   :  { %v3763_v6 = vsel %vm786_vm2, %v7338_v56, %v3761_v18 }
0x1f67   :  { %v3764_v40 = vperm.slane %v3763_v6, 0  ;;  %v3789_v61 = vperm.slane %v3763_v6, 1 }
0x1f69   :  { %3794 = vperm.xlu0 %4962, %v3789_v61   ;;  %3775 = vperm.xlu2 %4961, %v3764_v40  }
0x1f6a   :  { %3769 = vperm.xlu1 %4960, %v3764_v40  }
0x1f71   :  { %4967 = vset.pattern.permute.xlu0 %v5892_v46  ;;  %4964 = vset.pattern.permute.xlu2 %v5864_v10 }
0x1f72   :  { %4963 = vset.pattern.permute.xlu1 %v5791_v3 }
0x1f79   :  { %3812 = vperm.xlu0 %4967, %v3789_v61   ;;  %3781 = vperm.xlu2 %4964, %v3764_v40  }
0x1f7a   :  { %3800 = vperm.xlu1 %4963, %v3789_v61  }
0x1f81   :  { %4966 = vset.pattern.permute.xlu2 %v5892_v46  ;;  %4970 = vset.pattern.permute.xlu0 %v5791_v3 }
0x1f82   :  { %4965 = vset.pattern.permute.xlu1 %v5864_v10 }
0x1f89   :  { %3787 = vperm.xlu2 %4966, %v3764_v40  }
0x1f8a   :  { %3806 = vperm.xlu1 %4965, %v3789_v61  }
0x1f91   :  { %4968 = vset.pattern.permute.xlu2 %v5788_v2 }
0x1f92   :  { %4969 = vset.pattern.permute.xlu1 %v5791_v3 }
0x1fc3   :  { %v3776_v24 = vpop.permute.xlu2 %3775 }
0x1fd3   :  { %v3782_v5 = vpop.permute.xlu2 %3781 }
0x1fdb   :  { %v3795_v31 = vpop.permute.xlu0 %3794 }
0x1fdc   :  { %v3770_v0 = vpop.permute.xlu1 %3769 }
0x1fdd   :  { %v3814_v17 = vsel %vm263_vm0, %v3770_v0, %v3795_v31 }
0x1fde   :  { %v3818_v9 = vmul.f32 %v3814_v17, %v6033_v48 }
0x1fe0   :  { %v3822_v28 = vadd.f32 %v3818_v9, %v6050_v33 }
0x1fe3   :  { %v3788_v30 = vpop.permute.xlu2 %3787 }
0x1feb   :  { %v3813_v36 = vpop.permute.xlu0 %3812 }
0x1fec   :  { %v3801_v62 = vpop.permute.xlu1 %3800  ;;  %v3817_v32 = vsel %vm263_vm0, %v3788_v30, %v3813_v36 }
0x1fed   :  { %v3815_v4 = vsel %vm263_vm0, %v3776_v24, %v3801_v62  ;;  %v3821_v57 = vmul.f32 %v3817_v32, %v6065_v25 }
0x1fee   :  { %v3819_v44 = vmul.f32 %v3815_v4, %v6040_v58 }
0x1fef   :  { %v3825_v51 = vadd.f32 %v3821_v57, %v6073_v19 }
0x1ff0   :  { %v3823_v29 = vadd.f32 %v3819_v44, %v6054_v15 }
0x1ff2   :  { %5316 = vtanh.f32 %v3823_v29 }
0x1ff3   :  { %5318 = vtanh.f32 %v3822_v28 }
0x1ff4   :  { %5320 = vtanh.f32 %v3825_v51 }
0x1ff8   :  { %v5317_v59 = vpop.eup %5316 }
0x1ff9   :  { %v5319_v16 = vpop.eup %5318  ;;  %v3831_v7 = vmul.f32 0.5, %v5317_v59 }
0x1ffa   :  { %v3830_v50 = vmul.f32 0.5, %v5319_v16  ;;  %v5321_v42 = vpop.eup %5320 }
0x1ffb   :  { %v3835_v63 = vadd.f32 0.5, %v3831_v7  ;;  %v3833_v27 = vmul.f32 0.5, %v5321_v42 }
0x1ffc   :  { %v3807_v20 = vpop.permute.xlu1 %3806  ;;  %v3834_v8 = vadd.f32 0.5, %v3830_v50 }
0x1ffd   :  { %v3816_v14 = vsel %vm263_vm0, %v3782_v5, %v3807_v20  ;;  %v3839_v21 = vmul.f32 %v3835_v63, %v6181_v26  ;;  %v3856_v35 = vmul.f32 %v3835_v63, %v6102_v60  ;;  %v3837_v39 = vadd.f32 0.5, %v3833_v27 }
0x1ffe   :  { %v3820_v53 = vmul.f32 %v3816_v14, %v6046_v45  ;;  %v3838_v47 = vmul.f32 %v3834_v8, %v6148_v49  ;;  %v3855_v41 = vmul.f32 %v3834_v8, %v6095_v23 }
0x1fff   :  { %v3843_v13 = vsel %vm402_vm1, %v3839_v21, 0.0  ;;  %v3860_v18 = vsel %vm402_vm1, %v3856_v35, 0.0  ;;  %v3841_v24 = vmul.f32 %v3837_v39, %v6177_v34  ;;  %v3858_v0 = vmul.f32 %v3837_v39, %v6139_v43 }
0x2000   :  { %v3824_v22 = vadd.f32 %v3820_v53, %v6061_v37  ;;  %v3842_v40 = vsel %vm402_vm1, %v3838_v47, 0.0  ;;  %v3859_v61 = vsel %vm402_vm1, %v3855_v41, 0.0 }
0x2001   :  { %v3844_v17 = vadd.f32 %v3843_v13, %v3842_v40  ;;  %v3861_v62 = vadd.f32 %v3860_v18, %v3859_v61  ;;  %v3847_v30 = vsel %vm402_vm1, %v3841_v24, 0.0  ;;  %v3864_v32 = vsel %vm402_vm1, %v3858_v0, 0.0 }
0x2002   :  { %5322 = vtanh.f32 %v3824_v22 }
0x2008   :  { %v5323_v12 = vpop.eup %5322 }
0x2009   :  { %v3832_v1 = vmul.f32 0.5, %v5323_v12  ;;  %v3873_v12 = vmul.f32 %v7338_v56, %v6216_v38 }
0x200b   :  { %v3836_v6 = vadd.f32 0.5, %v3832_v1 }
0x200d   :  { %v3840_v31 = vmul.f32 %v3836_v6, %v6168_v52  ;;  %v3857_v5 = vmul.f32 %v3836_v6, %v6108_v11 }
0x200f   :  { %v3845_v4 = vsel %vm402_vm1, %v3840_v31, 0.0  ;;  %v3862_v36 = vsel %vm402_vm1, %v3857_v5, 0.0 }
0x2010   :  { %v3846_v44 = vadd.f32 %v3845_v4, %v3844_v17  ;;  %v3863_v9 = vadd.f32 %v3862_v36, %v3861_v62 }
0x2012   :  { %v3848_v29 = vadd.f32 %v3847_v30, %v3846_v44  ;;  %v3865_v28 = vadd.f32 %v3864_v32, %v3863_v9 }
0x2014   :  { %v3849_v57 = vrot.slane %v3848_v29, 4  ;;  %v3866_v51 = vrot.slane %v3865_v28, 4 }
0x2016   :  { %v3850_v59 = vadd.f32 %v3849_v57, %v3848_v29  ;;  %v3867_v20 = vadd.f32 %v3866_v51, %v3865_v28 }
0x2018   :  { %v3868_v16 = vrot.slane %v3867_v20, 2  ;;  %v3851_v14 = vrot.slane %v3850_v59, 2 }
0x201a   :  { %v3869_v53 = vadd.f32 %v3868_v16, %v3867_v20  ;;  %v3852_v50 = vadd.f32 %v3851_v14, %v3850_v59 }
0x201c   :  { %v3870_v7 = vrot.slane %v3869_v53, 1  ;;  %v3853_v63 = vrot.slane %v3852_v50, 1 }
0x201e   :  { %v3871_v22 = vadd.f32 %v3870_v7, %v3869_v53  ;;  %v3854_v8 = vadd.f32 %v3853_v63, %v3852_v50 }
0x2020   :  { %v3875_v42 = vadd.f32 %v3871_v22, %v6203_v55  ;;  %v3872_v21 = vadd.f32 %v3854_v8, %v6212_v54 }
0x2022   :  { %5324 = vrcp.f32 %v3875_v42  ;;  %v3874_v41 = vadd.f32 %v3873_v12, %v3872_v21 }
0x2028   :  { %v5325_v27 = vpop.eup %5324 }
0x2029   :  { %v3877_v35 = vmul.f32 %v5325_v27, %v3875_v42 }
0x202b   :  { %v3878_v47 = vsub.f32 2.0, %v3877_v35 }
0x202d   :  { %v3879_v39 = vmul.f32 %v5325_v27, %v3878_v47 }
0x202f   :  { %v7384_v1 = vmul.f32 %v3879_v39, %v3874_v41 }
0x2031   :  { %v3882_v13 = vrot.slane %v7384_v1, 7 }
0x2033   :  { %3883 = vrot.lane.b32.xlu1 %v3882_v13, %s5632_s23 }
0x20a5   :  { %v3884_v18 = vpop.permute.xlu1 %3883 }
0x20a6   :  { %v3886_v6 = vsel %vm786_vm2, %v7384_v1, %v3884_v18 }
0x20a7   :  { %v3887_v40 = vperm.slane %v3886_v6, 0  ;;  %v3912_v61 = vperm.slane %v3886_v6, 1 }
0x20a9   :  { %3923 = vperm.xlu0 %4970, %v3912_v61   ;;  %3898 = vperm.xlu1 %4969, %v3887_v40  }
0x20aa   :  { %3892 = vperm.xlu2 %4968, %v3887_v40  }
0x20b1   :  { %4971 = vset.pattern.permute.xlu1 %v5864_v10  ;;  %4977 = vset.pattern.permute.xlu0 %v5788_v2 }
0x20b2   :  { %3917 = vperm.xlu2 %4968, %v3912_v61  }
0x20b9   :  { %3904 = vperm.xlu1 %4971, %v3887_v40  }
0x20ba   :  { %4972 = vset.pattern.permute.xlu2 %v5864_v10 }
0x20c1   :  { %4973 = vset.pattern.permute.xlu1 %v5892_v46 }
0x20c2   :  { %3929 = vperm.xlu2 %4972, %v3912_v61  }
0x20c9   :  { %3910 = vperm.xlu1 %4973, %v3887_v40  }
0x20ca   :  { %4974 = vset.pattern.permute.xlu2 %v5892_v46 }
0x20d1   :  { %4975 = vset.pattern.permute.xlu1 %v5788_v2 }
0x20d2   :  { %3935 = vperm.xlu2 %4974, %v3912_v61  }
0x20da   :  { %4976 = vset.pattern.permute.xlu2 %v5791_v3 }
0x2104   :  { %v3893_v56 = vpop.permute.xlu2 %3892 }
0x210c   :  { %v3918_v24 = vpop.permute.xlu2 %3917 }
0x210d   :  { %v3937_v17 = vsel %vm263_vm0, %v3893_v56, %v3918_v24 }
0x210e   :  { %v3941_v44 = vmul.f32 %v3937_v17, %v6033_v48 }
0x2110   :  { %v3945_v29 = vadd.f32 %v3941_v44, %v6050_v33 }
0x211b   :  { %v3899_v0 = vpop.permute.xlu1 %3898  ;;  %v3924_v31 = vpop.permute.xlu0 %3923 }
0x211c   :  { %v3938_v5 = vsel %vm263_vm0, %v3899_v0, %v3924_v31  ;;  %v3930_v4 = vpop.permute.xlu2 %3929 }
0x211d   :  { %v3942_v62 = vmul.f32 %v3938_v5, %v6040_v58 }
0x211f   :  { %v3946_v32 = vadd.f32 %v3942_v62, %v6054_v15 }
0x2121   :  { %5326 = vtanh.f32 %v3946_v32 }
0x2122   :  { %5328 = vtanh.f32 %v3945_v29 }
0x2127   :  { %v5327_v57 = vpop.eup %5326 }
0x2128   :  { %v5329_v51 = vpop.eup %5328  ;;  %v3954_v14 = vmul.f32 0.5, %v5327_v57 }
0x2129   :  { %v3953_v7 = vmul.f32 0.5, %v5329_v51 }
0x212a   :  { %v3958_v63 = vadd.f32 0.5, %v3954_v14 }
0x212b   :  { %v3905_v36 = vpop.permute.xlu1 %3904  ;;  %v3957_v8 = vadd.f32 0.5, %v3953_v7 }
0x212c   :  { %v3939_v9 = vsel %vm263_vm0, %v3905_v36, %v3930_v4  ;;  %v3936_v20 = vpop.permute.xlu2 %3935  ;;  %v3962_v21 = vmul.f32 %v3958_v63, %v6181_v26  ;;  %v3979_v35 = vmul.f32 %v3958_v63, %v6102_v60 }
0x212d   :  { %v3943_v30 = vmul.f32 %v3939_v9, %v6046_v45  ;;  %v3961_v12 = vmul.f32 %v3957_v8, %v6148_v49  ;;  %v3978_v47 = vmul.f32 %v3957_v8, %v6095_v23 }
0x212e   :  { %v3966_v18 = vsel %vm402_vm1, %v3962_v21, 0.0  ;;  %v3983_v6 = vsel %vm402_vm1, %v3979_v35, 0.0  ;;  %v3996_v35 = vmul.f32 %v7384_v1, %v6216_v38 }
0x212f   :  { %v3947_v28 = vadd.f32 %v3943_v30, %v6061_v37  ;;  %v3965_v61 = vsel %vm402_vm1, %v3961_v12, 0.0  ;;  %v3982_v56 = vsel %vm402_vm1, %v3978_v47, 0.0 }
0x2130   :  { %v3967_v5 = vadd.f32 %v3966_v18, %v3965_v61  ;;  %v3984_v17 = vadd.f32 %v3983_v6, %v3982_v56 }
0x2131   :  { %5330 = vtanh.f32 %v3947_v28 }
0x2137   :  { %v5331_v59 = vpop.eup %5330 }
0x2138   :  { %v3955_v22 = vmul.f32 0.5, %v5331_v59 }
0x213a   :  { %v3959_v27 = vadd.f32 0.5, %v3955_v22 }
0x213b   :  { %v3911_v16 = vpop.permute.xlu1 %3910 }
0x213c   :  { %v3940_v53 = vsel %vm263_vm0, %v3911_v16, %v3936_v20  ;;  %v3963_v41 = vmul.f32 %v3959_v27, %v6168_v52  ;;  %v3980_v39 = vmul.f32 %v3959_v27, %v6108_v11 }
0x213d   :  { %v3944_v50 = vmul.f32 %v3940_v53, %v6065_v25 }
0x213e   :  { %v3968_v24 = vsel %vm402_vm1, %v3963_v41, 0.0  ;;  %v3985_v0 = vsel %vm402_vm1, %v3980_v39, 0.0 }
0x213f   :  { %v3948_v42 = vadd.f32 %v3944_v50, %v6073_v19  ;;  %v3969_v36 = vadd.f32 %v3968_v24, %v3967_v5  ;;  %v3986_v44 = vadd.f32 %v3985_v0, %v3984_v17 }
0x2141   :  { %5332 = vtanh.f32 %v3948_v42 }
0x2147   :  { %v5333_v13 = vpop.eup %5332 }
0x2148   :  { %v3956_v40 = vmul.f32 0.5, %v5333_v13 }
0x214a   :  { %v3960_v31 = vadd.f32 0.5, %v3956_v40 }
0x214c   :  { %v3964_v62 = vmul.f32 %v3960_v31, %v6177_v34  ;;  %v3981_v4 = vmul.f32 %v3960_v31, %v6139_v43 }
0x214e   :  { %v3970_v9 = vsel %vm402_vm1, %v3964_v62, 0.0  ;;  %v3987_v30 = vsel %vm402_vm1, %v3981_v4, 0.0 }
0x214f   :  { %v3971_v32 = vadd.f32 %v3970_v9, %v3969_v36  ;;  %v3988_v29 = vadd.f32 %v3987_v30, %v3986_v44 }
0x2151   :  { %v3972_v28 = vrot.slane %v3971_v32, 4  ;;  %v3989_v57 = vrot.slane %v3988_v29, 4 }
0x2153   :  { %v3973_v51 = vadd.f32 %v3972_v28, %v3971_v32  ;;  %v3990_v59 = vadd.f32 %v3989_v57, %v3988_v29 }
0x2155   :  { %v3991_v20 = vrot.slane %v3990_v59, 2  ;;  %v3974_v16 = vrot.slane %v3973_v51, 2 }
0x2157   :  { %v3992_v14 = vadd.f32 %v3991_v20, %v3990_v59  ;;  %v3975_v7 = vadd.f32 %v3974_v16, %v3973_v51 }
0x2159   :  { %v3993_v53 = vrot.slane %v3992_v14, 1  ;;  %v3976_v42 = vrot.slane %v3975_v7, 1 }
0x215b   :  { %v3994_v50 = vadd.f32 %v3993_v53, %v3992_v14  ;;  %v3977_v63 = vadd.f32 %v3976_v42, %v3975_v7 }
0x215d   :  { %v3998_v22 = vadd.f32 %v3994_v50, %v6203_v55  ;;  %v3995_v27 = vadd.f32 %v3977_v63, %v6212_v54 }
0x215f   :  { %5334 = vrcp.f32 %v3998_v22  ;;  %v3997_v47 = vadd.f32 %v3996_v35, %v3995_v27 }
0x2165   :  { %v5335_v8 = vpop.eup %5334 }
0x2166   :  { %v4000_v21 = vmul.f32 %v5335_v8, %v3998_v22 }
0x2168   :  { %v4001_v12 = vsub.f32 2.0, %v4000_v21 }
0x216a   :  { %v4002_v41 = vmul.f32 %v5335_v8, %v4001_v12 }
0x216c   :  { %v7429_v39 = vmul.f32 %v4002_v41, %v3997_v47 }
0x216e   :  { %v4005_v13 = vrot.slane %v7429_v39, 7 }
0x2170   :  { %4006 = vrot.lane.b32.xlu0 %v4005_v13, %s5632_s23 }
0x21e2   :  { %v4007_v18 = vpop.permute.xlu0 %4006 }
0x21e3   :  { %v4009_v6 = vsel %vm786_vm2, %v7429_v39, %v4007_v18 }
0x21e4   :  { %v4010_v40 = vperm.slane %v4009_v6, 0  ;;  %v4035_v61 = vperm.slane %v4009_v6, 1 }
0x21e6   :  { %4040 = vperm.xlu0 %4977, %v4035_v61   ;;  %4021 = vperm.xlu2 %4976, %v4010_v40  }
0x21e7   :  { %4015 = vperm.xlu1 %4975, %v4010_v40  }
0x21ee   :  { %4982 = vset.pattern.permute.xlu0 %v5892_v46  ;;  %4979 = vset.pattern.permute.xlu2 %v5864_v10 }
0x21ef   :  { %4978 = vset.pattern.permute.xlu1 %v5791_v3 }
0x21f6   :  { %4058 = vperm.xlu0 %4982, %v4035_v61   ;;  %4027 = vperm.xlu2 %4979, %v4010_v40  }
0x21f7   :  { %4046 = vperm.xlu1 %4978, %v4035_v61  }
0x21fe   :  { %4981 = vset.pattern.permute.xlu2 %v5892_v46  ;;  %4985 = vset.pattern.permute.xlu0 %v5791_v3 }
0x21ff   :  { %4980 = vset.pattern.permute.xlu1 %v5864_v10 }
0x2206   :  { %4033 = vperm.xlu2 %4981, %v4010_v40  }
0x2207   :  { %4052 = vperm.xlu1 %4980, %v4035_v61  }
0x220e   :  { %4983 = vset.pattern.permute.xlu2 %v5788_v2 }
0x220f   :  { %4984 = vset.pattern.permute.xlu1 %v5791_v3 }
0x2240   :  { %v4022_v1 = vpop.permute.xlu2 %4021 }
0x2250   :  { %v4028_v0 = vpop.permute.xlu2 %4027 }
0x2258   :  { %v4041_v24 = vpop.permute.xlu0 %4040 }
0x2259   :  { %v4016_v56 = vpop.permute.xlu1 %4015 }
0x225a   :  { %v4060_v31 = vsel %vm263_vm0, %v4016_v56, %v4041_v24 }
0x225b   :  { %v4064_v36 = vmul.f32 %v4060_v31, %v6033_v48 }
0x225d   :  { %v4068_v32 = vadd.f32 %v4064_v36, %v6050_v33 }
0x2260   :  { %v4034_v44 = vpop.permute.xlu2 %4033 }
0x2268   :  { %v4059_v62 = vpop.permute.xlu0 %4058 }
0x2269   :  { %v4047_v5 = vpop.permute.xlu1 %4046  ;;  %v4063_v9 = vsel %vm263_vm0, %v4034_v44, %v4059_v62 }
0x226a   :  { %v4061_v17 = vsel %vm263_vm0, %v4022_v1, %v4047_v5  ;;  %v4067_v29 = vmul.f32 %v4063_v9, %v6065_v25 }
0x226b   :  { %v4065_v4 = vmul.f32 %v4061_v17, %v6040_v58 }
0x226c   :  { %v4071_v28 = vadd.f32 %v4067_v29, %v6073_v19 }
0x226d   :  { %v4069_v30 = vadd.f32 %v4065_v4, %v6054_v15 }
0x226f   :  { %5336 = vtanh.f32 %v4069_v30 }
0x2270   :  { %5338 = vtanh.f32 %v4068_v32 }
0x2271   :  { %5340 = vtanh.f32 %v4071_v28 }
0x2275   :  { %v5337_v57 = vpop.eup %5336 }
0x2276   :  { %v5339_v59 = vpop.eup %5338  ;;  %v4077_v14 = vmul.f32 0.5, %v5337_v57 }
0x2277   :  { %v4076_v53 = vmul.f32 0.5, %v5339_v59  ;;  %v5341_v50 = vpop.eup %5340 }
0x2278   :  { %v4081_v22 = vadd.f32 0.5, %v4077_v14  ;;  %v4079_v63 = vmul.f32 0.5, %v5341_v50 }
0x2279   :  { %v4053_v51 = vpop.permute.xlu1 %4052  ;;  %v4080_v42 = vadd.f32 0.5, %v4076_v53 }
0x227a   :  { %v4062_v20 = vsel %vm263_vm0, %v4028_v0, %v4053_v51  ;;  %v4085_v8 = vmul.f32 %v4081_v22, %v6181_v26  ;;  %v4102_v27 = vmul.f32 %v4081_v22, %v6102_v60  ;;  %v4083_v47 = vadd.f32 0.5, %v4079_v63 }
0x227b   :  { %v4066_v16 = vmul.f32 %v4062_v20, %v6046_v45  ;;  %v4084_v35 = vmul.f32 %v4080_v42, %v6148_v49  ;;  %v4101_v12 = vmul.f32 %v4080_v42, %v6095_v23 }
0x227c   :  { %v4089_v13 = vsel %vm402_vm1, %v4085_v8, 0.0  ;;  %v4106_v18 = vsel %vm402_vm1, %v4102_v27, 0.0  ;;  %v4087_v1 = vmul.f32 %v4083_v47, %v6177_v34  ;;  %v4104_v56 = vmul.f32 %v4083_v47, %v6139_v43 }
0x227d   :  { %v4070_v7 = vadd.f32 %v4066_v16, %v6061_v37  ;;  %v4088_v40 = vsel %vm402_vm1, %v4084_v35, 0.0  ;;  %v4105_v61 = vsel %vm402_vm1, %v4101_v12, 0.0 }
0x227e   :  { %v4090_v31 = vadd.f32 %v4089_v13, %v4088_v40  ;;  %v4107_v5 = vadd.f32 %v4106_v18, %v4105_v61  ;;  %v4093_v44 = vsel %vm402_vm1, %v4087_v1, 0.0  ;;  %v4110_v9 = vsel %vm402_vm1, %v4104_v56, 0.0 }
0x227f   :  { %5342 = vtanh.f32 %v4070_v7 }
0x2285   :  { %v5343_v21 = vpop.eup %5342 }
0x2286   :  { %v4078_v41 = vmul.f32 0.5, %v5343_v21  ;;  %v4119_v21 = vmul.f32 %v7429_v39, %v6216_v38 }
0x2288   :  { %v4082_v6 = vadd.f32 0.5, %v4078_v41 }
0x228a   :  { %v4086_v24 = vmul.f32 %v4082_v6, %v6168_v52  ;;  %v4103_v0 = vmul.f32 %v4082_v6, %v6108_v11 }
0x228c   :  { %v4091_v17 = vsel %vm402_vm1, %v4086_v24, 0.0  ;;  %v4108_v62 = vsel %vm402_vm1, %v4103_v0, 0.0 }
0x228d   :  { %v4092_v4 = vadd.f32 %v4091_v17, %v4090_v31  ;;  %v4109_v36 = vadd.f32 %v4108_v62, %v4107_v5 }
0x228f   :  { %v4094_v30 = vadd.f32 %v4093_v44, %v4092_v4  ;;  %v4111_v32 = vadd.f32 %v4110_v9, %v4109_v36 }
0x2291   :  { %v4095_v29 = vrot.slane %v4094_v30, 4  ;;  %v4112_v28 = vrot.slane %v4111_v32, 4 }
0x2293   :  { %v4096_v57 = vadd.f32 %v4095_v29, %v4094_v30  ;;  %v4113_v51 = vadd.f32 %v4112_v28, %v4111_v32 }
0x2295   :  { %v4114_v59 = vrot.slane %v4113_v51, 2  ;;  %v4097_v20 = vrot.slane %v4096_v57, 2 }
0x2297   :  { %v4115_v16 = vadd.f32 %v4114_v59, %v4113_v51  ;;  %v4098_v53 = vadd.f32 %v4097_v20, %v4096_v57 }
0x2299   :  { %v4116_v14 = vrot.slane %v4115_v16, 1  ;;  %v4099_v22 = vrot.slane %v4098_v53, 1 }
0x229b   :  { %v4117_v7 = vadd.f32 %v4116_v14, %v4115_v16  ;;  %v4100_v42 = vadd.f32 %v4099_v22, %v4098_v53 }
0x229d   :  { %v4121_v50 = vadd.f32 %v4117_v7, %v6203_v55  ;;  %v4118_v8 = vadd.f32 %v4100_v42, %v6212_v54 }
0x229f   :  { %5344 = vrcp.f32 %v4121_v50  ;;  %v4120_v12 = vadd.f32 %v4119_v21, %v4118_v8 }
0x22a5   :  { %v5345_v63 = vpop.eup %5344 }
0x22a6   :  { %v4123_v27 = vmul.f32 %v5345_v63, %v4121_v50 }
0x22a8   :  { %v4124_v35 = vsub.f32 2.0, %v4123_v27 }
0x22aa   :  { %v4125_v47 = vmul.f32 %v5345_v63, %v4124_v35 }
0x22ac   :  { %v7475_v41 = vmul.f32 %v4125_v47, %v4120_v12 }
0x22ae   :  { %v4128_v13 = vrot.slane %v7475_v41, 7 }
0x22b0   :  { %4129 = vrot.lane.b32.xlu1 %v4128_v13, %s5632_s23 }
0x2322   :  { %v4130_v18 = vpop.permute.xlu1 %4129 }
0x2323   :  { %v4132_v6 = vsel %vm786_vm2, %v7475_v41, %v4130_v18 }
0x2324   :  { %v4133_v40 = vperm.slane %v4132_v6, 0  ;;  %v4158_v61 = vperm.slane %v4132_v6, 1 }
0x2326   :  { %4169 = vperm.xlu0 %4985, %v4158_v61   ;;  %4144 = vperm.xlu1 %4984, %v4133_v40  }
0x2327   :  { %4138 = vperm.xlu2 %4983, %v4133_v40  }
0x232e   :  { %4249 = vrot.lane.b32.xlu0 %v6203_v55, %s5631_s12  ;;  %4986 = vset.pattern.permute.xlu1 %v5864_v10 }
0x232f   :  { %4163 = vperm.xlu2 %4983, %v4158_v61   ;;  %4990 = vset.pattern.permute.xlu0 %v5788_v2 }
0x2336   :  { %4150 = vperm.xlu1 %4986, %v4133_v40  }
0x2337   :  { %4987 = vset.pattern.permute.xlu2 %v5864_v10 }
0x233e   :  { %4988 = vset.pattern.permute.xlu1 %v5892_v46 }
0x233f   :  { %4175 = vperm.xlu2 %4987, %v4158_v61  }
0x2346   :  { %4156 = vperm.xlu1 %4988, %v4133_v40  }
0x2347   :  { %4989 = vset.pattern.permute.xlu2 %v5892_v46 }
0x234e   :  { %4242 = vrot.lane.b32.xlu1 %v6212_v54, %s5631_s12 }
0x234f   :  { %4181 = vperm.xlu2 %4989, %v4158_v61   ;;  %4991 = vset.pattern.permute.xlu1 %v5791_v3 }
0x2357   :  { %4992 = vset.pattern.permute.xlu2 %v5788_v2 }
0x2381   :  { %v4139_v55 = vpop.permute.xlu2 %4138 }
0x2389   :  { %v4164_v39 = vpop.permute.xlu2 %4163 }
0x238a   :  { %v4183_v0 = vsel %vm263_vm0, %v4139_v55, %v4164_v39 }
0x238b   :  { %v4187_v62 = vmul.f32 %v4183_v0, %v6033_v48 }
0x238d   :  { %v4191_v44 = vadd.f32 %v4187_v62, %v6050_v33 }
0x2398   :  { %v4145_v1 = vpop.permute.xlu1 %4144  ;;  %v4170_v56 = vpop.permute.xlu0 %4169 }
0x2399   :  { %v4184_v24 = vsel %vm263_vm0, %v4145_v1, %v4170_v56  ;;  %v4176_v5 = vpop.permute.xlu2 %4175 }
0x239a   :  { %v4188_v31 = vmul.f32 %v4184_v24, %v6040_v58 }
0x239c   :  { %v4192_v36 = vadd.f32 %v4188_v31, %v6054_v15 }
0x239e   :  { %5346 = vtanh.f32 %v4192_v36 }
0x239f   :  { %5348 = vtanh.f32 %v4191_v44 }
0x23a4   :  { %v5347_v30 = vpop.eup %5346 }
0x23a5   :  { %v5349_v32 = vpop.eup %5348  ;;  %v4200_v51 = vmul.f32 0.5, %v5347_v30 }
0x23a6   :  { %v4199_v20 = vmul.f32 0.5, %v5349_v32 }
0x23a7   :  { %v4204_v7 = vadd.f32 0.5, %v4200_v51 }
0x23a8   :  { %v4151_v17 = vpop.permute.xlu1 %4150  ;;  %v4203_v50 = vadd.f32 0.5, %v4199_v20  ;;  %v7520_v20 = vpop.permute.xlu0 %4249 }
0x23a9   :  { %v4185_v54 = vsel %vm263_vm0, %v4151_v17, %v4176_v5  ;;  %v4182_v28 = vpop.permute.xlu2 %4181  ;;  %v4208_v42 = vmul.f32 %v4204_v7, %v6181_v26  ;;  %v4225_v63 = vmul.f32 %v4204_v7, %v6102_v60 }
0x23aa   :  { %v4189_v4 = vmul.f32 %v4185_v54, %v6046_v45  ;;  %v4207_v8 = vmul.f32 %v4203_v50, %v6148_v49  ;;  %v4224_v27 = vmul.f32 %v4203_v50, %v6095_v23 }
0x23ab   :  { %v4212_v47 = vsel %vm402_vm1, %v4208_v42, 0.0  ;;  %v4229_v13 = vsel %vm402_vm1, %v4225_v63, 0.0  ;;  %v4246_v63 = vmul.f32 %v7475_v41, %v6216_v38 }
0x23ac   :  { %v4193_v9 = vadd.f32 %v4189_v4, %v6061_v37  ;;  %v4211_v6 = vsel %vm402_vm1, %v4207_v8, 0.0  ;;  %v4228_v40 = vsel %vm402_vm1, %v4224_v27, 0.0 }
0x23ad   :  { %v4213_v1 = vadd.f32 %v4212_v47, %v4211_v6  ;;  %v4230_v56 = vadd.f32 %v4229_v13, %v4228_v40 }
0x23ae   :  { %5350 = vtanh.f32 %v4193_v9 }
0x23b4   :  { %v5351_v29 = vpop.eup %5350 }
0x23b5   :  { %v4201_v14 = vmul.f32 0.5, %v5351_v29 }
0x23b7   :  { %v4205_v22 = vadd.f32 0.5, %v4201_v14 }
0x23b8   :  { %v4157_v57 = vpop.permute.xlu1 %4156 }
0x23b9   :  { %v4186_v59 = vsel %vm263_vm0, %v4157_v57, %v4182_v28  ;;  %v4209_v21 = vmul.f32 %v4205_v22, %v6168_v52  ;;  %v4226_v35 = vmul.f32 %v4205_v22, %v6108_v11 }
0x23ba   :  { %v4190_v16 = vmul.f32 %v4186_v59, %v6065_v25 }
0x23bb   :  { %v4214_v61 = vsel %vm402_vm1, %v4209_v21, 0.0  ;;  %v4231_v55 = vsel %vm402_vm1, %v4226_v35, 0.0 }
0x23bc   :  { %v4194_v53 = vadd.f32 %v4190_v16, %v6073_v19  ;;  %v4215_v31 = vadd.f32 %v4214_v61, %v4213_v1  ;;  %v4232_v5 = vadd.f32 %v4231_v55, %v4230_v56 }
0x23be   :  { %5352 = vtanh.f32 %v4194_v53 }
0x23c0   :  { %v7523_v50 = vpop.permute.xlu1 %4242 }
0x23c4   :  { %v5353_v12 = vpop.eup %5352 }
0x23c5   :  { %v4202_v18 = vmul.f32 0.5, %v5353_v12 }
0x23c7   :  { %v4206_v39 = vadd.f32 0.5, %v4202_v18 }
0x23c9   :  { %v4210_v24 = vmul.f32 %v4206_v39, %v6177_v34  ;;  %v4227_v0 = vmul.f32 %v4206_v39, %v6139_v43 }
0x23cb   :  { %v4216_v17 = vsel %vm402_vm1, %v4210_v24, 0.0  ;;  %v4233_v62 = vsel %vm402_vm1, %v4227_v0, 0.0 }
0x23cc   :  { %v4217_v54 = vadd.f32 %v4216_v17, %v4215_v31  ;;  %v4234_v4 = vadd.f32 %v4233_v62, %v4232_v5 }
0x23ce   :  { %v4235_v36 = vrot.slane %v4234_v4, 4  ;;  %v4218_v44 = vrot.slane %v4217_v54, 4 }
0x23d0   :  { %v4236_v9 = vadd.f32 %v4235_v36, %v4234_v4  ;;  %v4219_v30 = vadd.f32 %v4218_v44, %v4217_v54 }
0x23d2   :  { %v4237_v32 = vrot.slane %v4236_v9, 2  ;;  %v4220_v29 = vrot.slane %v4219_v30, 2 }
0x23d4   :  { %v4238_v28 = vadd.f32 %v4237_v32, %v4236_v9  ;;  %v4221_v51 = vadd.f32 %v4220_v29, %v4219_v30 }
0x23d6   :  { %v4239_v57 = vrot.slane %v4238_v28, 1  ;;  %v4222_v14 = vrot.slane %v4221_v51, 1 }
0x23d8   :  { %v4240_v59 = vadd.f32 %v4239_v57, %v4238_v28  ;;  %v4223_v53 = vadd.f32 %v4222_v14, %v4221_v51 }
0x23da   :  { %v4252_v16 = vadd.f32 %v7520_v20, %v4240_v59  ;;  %v4245_v22 = vadd.f32 %v7523_v50, %v4223_v53 }
0x23dc   :  { %5354 = vrcp.f32 %v4252_v16  ;;  %v4247_v27 = vadd.f32 %v4246_v63, %v4245_v22 }
0x23e2   :  { %v5355_v7 = vpop.eup %5354 }
0x23e3   :  { %v4254_v42 = vmul.f32 %v5355_v7, %v4252_v16 }
0x23e5   :  { %v4255_v8 = vsub.f32 2.0, %v4254_v42 }
0x23e7   :  { %v4256_v21 = vmul.f32 %v5355_v7, %v4255_v8 }
0x23e9   :  { %v7528_v35 = vmul.f32 %v4256_v21, %v4247_v27 }
0x23eb   :  { %v4259_v12 = vrot.slane %v7528_v35, 7 }
0x23ed   :  { %4260 = vrot.lane.b32.xlu2 %v4259_v12, %s5632_s23 }
0x2447   :  { %v4261_v47 = vpop.permute.xlu2 %4260 }
0x2448   :  { %v4263_v13 = vsel %vm786_vm2, %v7528_v35, %v4261_v47 }
0x2449   :  { %v4264_v18 = vperm.slane %v4263_v13, 0  ;;  %v4289_v6 = vperm.slane %v4263_v13, 1 }
0x244b   :  { %4294 = vperm.xlu2 %4992, %v4289_v6   ;;  %4275 = vperm.xlu1 %4991, %v4264_v18  }
0x244c   :  { %4269 = vperm.xlu0 %4990, %v4264_v18  }
0x2453   :  { %4993 = vset.pattern.permute.xlu2 %v5864_v10  ;;  %4300 = vperm.xlu1 %4991, %v4289_v6  }
0x2454   :  { %4994 = vset.pattern.permute.xlu0 %v5864_v10 }
0x245b   :  { %4281 = vperm.xlu2 %4993, %v4264_v18   ;;  %4995 = vset.pattern.permute.xlu1 %v5892_v46 }
0x245c   :  { %4306 = vperm.xlu0 %4994, %v4289_v6  }
0x2463   :  { %4996 = vset.pattern.permute.xlu2 %v5892_v46  ;;  %4287 = vperm.xlu1 %4995, %v4264_v18  }
0x2464   :  { %4998 = vset.pattern.permute.xlu0 %v5791_v3 }
0x246b   :  { %4312 = vperm.xlu2 %4996, %v4289_v6   ;;  %4999 = vset.pattern.permute.xlu1 %v5788_v2 }
0x2473   :  { %4997 = vset.pattern.permute.xlu2 %v5788_v2 }
0x24a5   :  { %v4295_v61 = vpop.permute.xlu2 %4294 }
0x24b5   :  { %v4282_v5 = vpop.permute.xlu2 %4281 }
0x24bd   :  { %v4276_v41 = vpop.permute.xlu1 %4275 }
0x24be   :  { %v4270_v40 = vpop.permute.xlu0 %4269 }
0x24bf   :  { %v4314_v55 = vsel %vm263_vm0, %v4270_v40, %v4295_v61 }
0x24c0   :  { %v4318_v1 = vmul.f32 %v4314_v55, %v6033_v48 }
0x24c2   :  { %v4322_v31 = vadd.f32 %v4318_v1, %v6050_v33 }
0x24c5   :  { %v4301_v39 = vpop.permute.xlu1 %4300  ;;  %v4313_v9 = vpop.permute.xlu2 %4312 }
0x24c6   :  { %v4315_v56 = vsel %vm263_vm0, %v4276_v41, %v4301_v39 }
0x24c7   :  { %v4319_v24 = vmul.f32 %v4315_v56, %v6040_v58 }
0x24c9   :  { %v4323_v0 = vadd.f32 %v4319_v24, %v6054_v15 }
0x24cb   :  { %5356 = vtanh.f32 %v4323_v0 }
0x24cc   :  { %5358 = vtanh.f32 %v4322_v31 }
0x24ce   :  { %v4307_v17 = vpop.permute.xlu0 %4306 }
0x24cf   :  { %v4316_v62 = vsel %vm263_vm0, %v4282_v5, %v4307_v17 }
0x24d0   :  { %v4320_v54 = vmul.f32 %v4316_v62, %v6046_v45 }
0x24d1   :  { %v5357_v36 = vpop.eup %5356 }
0x24d2   :  { %v4324_v4 = vadd.f32 %v4320_v54, %v6061_v37  ;;  %v5359_v44 = vpop.eup %5358  ;;  %v4331_v32 = vmul.f32 0.5, %v5357_v36 }
0x24d3   :  { %v4330_v28 = vmul.f32 0.5, %v5359_v44 }
0x24d4   :  { %5360 = vtanh.f32 %v4324_v4  ;;  %v4335_v16 = vadd.f32 0.5, %v4331_v32 }
0x24d5   :  { %v4288_v30 = vpop.permute.xlu1 %4287  ;;  %v4334_v14 = vadd.f32 0.5, %v4330_v28 }
0x24d6   :  { %v4317_v29 = vsel %vm263_vm0, %v4288_v30, %v4313_v9  ;;  %v4339_v22 = vmul.f32 %v4335_v16, %v6181_v26  ;;  %v4356_v42 = vmul.f32 %v4335_v16, %v6102_v60 }
0x24d7   :  { %v4321_v57 = vmul.f32 %v4317_v29, %v6065_v25  ;;  %v4338_v63 = vmul.f32 %v4334_v14, %v6148_v49  ;;  %v4355_v8 = vmul.f32 %v4334_v14, %v6095_v23 }
0x24d8   :  { %v4343_v47 = vsel %vm402_vm1, %v4339_v22, 0.0  ;;  %v4360_v13 = vsel %vm402_vm1, %v4356_v42, 0.0  ;;  %v4373_v42 = vmul.f32 %v7528_v35, %v6216_v38 }
0x24d9   :  { %v4325_v51 = vadd.f32 %v4321_v57, %v6073_v19  ;;  %v4342_v6 = vsel %vm402_vm1, %v4338_v63, 0.0  ;;  %v4359_v41 = vsel %vm402_vm1, %v4355_v8, 0.0 }
0x24da   :  { %v5361_v59 = vpop.eup %5360  ;;  %v4344_v39 = vadd.f32 %v4343_v47, %v4342_v6  ;;  %v4361_v1 = vadd.f32 %v4360_v13, %v4359_v41 }
0x24db   :  { %v4332_v53 = vmul.f32 0.5, %v5361_v59  ;;  %5362 = vtanh.f32 %v4325_v51 }
0x24dd   :  { %v4336_v7 = vadd.f32 0.5, %v4332_v53 }
0x24df   :  { %v4340_v27 = vmul.f32 %v4336_v7, %v6168_v52  ;;  %v4357_v21 = vmul.f32 %v4336_v7, %v6108_v11 }
0x24e1   :  { %v5363_v12 = vpop.eup %5362  ;;  %v4345_v40 = vsel %vm402_vm1, %v4340_v27, 0.0  ;;  %v4362_v61 = vsel %vm402_vm1, %v4357_v21, 0.0 }
0x24e2   :  { %v4333_v18 = vmul.f32 0.5, %v5363_v12  ;;  %v4346_v0 = vadd.f32 %v4345_v40, %v4344_v39  ;;  %v4363_v31 = vadd.f32 %v4362_v61, %v4361_v1 }
0x24e4   :  { %v4337_v55 = vadd.f32 0.5, %v4333_v18 }
0x24e6   :  { %v4341_v56 = vmul.f32 %v4337_v55, %v6177_v34  ;;  %v4358_v24 = vmul.f32 %v4337_v55, %v6139_v43 }
0x24e8   :  { %v4347_v5 = vsel %vm402_vm1, %v4341_v56, 0.0  ;;  %v4364_v17 = vsel %vm402_vm1, %v4358_v24, 0.0 }
0x24e9   :  { %v4348_v62 = vadd.f32 %v4347_v5, %v4346_v0  ;;  %v4365_v54 = vadd.f32 %v4364_v17, %v4363_v31 }
0x24eb   :  { %v4349_v4 = vrot.slane %v4348_v62, 4  ;;  %v4366_v36 = vrot.slane %v4365_v54, 4 }
0x24ed   :  { %v4350_v44 = vadd.f32 %v4349_v4, %v4348_v62  ;;  %v4367_v9 = vadd.f32 %v4366_v36, %v4365_v54 }
0x24ef   :  { %v4368_v30 = vrot.slane %v4367_v9, 2  ;;  %v4351_v32 = vrot.slane %v4350_v44, 2 }
0x24f1   :  { %v4369_v29 = vadd.f32 %v4368_v30, %v4367_v9  ;;  %v4352_v57 = vadd.f32 %v4351_v32, %v4350_v44 }
0x24f3   :  { %v4370_v28 = vrot.slane %v4369_v29, 1  ;;  %v4353_v16 = vrot.slane %v4352_v57, 1 }
0x24f5   :  { %v4371_v51 = vadd.f32 %v4370_v28, %v4369_v29  ;;  %v4354_v14 = vadd.f32 %v4353_v16, %v4352_v57 }
0x24f7   :  { %v4375_v59 = vadd.f32 %v4371_v51, %v7520_v20  ;;  %v4372_v7 = vadd.f32 %v4354_v14, %v7523_v50 }
0x24f9   :  { %5364 = vrcp.f32 %v4375_v59  ;;  %v4374_v8 = vadd.f32 %v4373_v42, %v4372_v7 }
0x24ff   :  { %v5365_v53 = vpop.eup %5364 }
0x2500   :  { %v4377_v22 = vmul.f32 %v5365_v53, %v4375_v59 }
0x2502   :  { %v4378_v63 = vsub.f32 2.0, %v4377_v22 }
0x2504   :  { %v4379_v27 = vmul.f32 %v5365_v53, %v4378_v63 }
0x2506   :  { %v7573_v21 = vmul.f32 %v4379_v27, %v4374_v8 }
0x2508   :  { %v4382_v12 = vrot.slane %v7573_v21, 7 }
0x250a   :  { %4383 = vrot.lane.b32.xlu1 %v4382_v12, %s5632_s23 }
0x257c   :  { %v4384_v47 = vpop.permute.xlu1 %4383 }
0x257d   :  { %v4386_v13 = vsel %vm786_vm2, %v7573_v21, %v4384_v47 }
0x257e   :  { %v4387_v18 = vperm.slane %v4386_v13, 0  ;;  %v4412_v6 = vperm.slane %v4386_v13, 1 }
0x2580   :  { %4417 = vperm.xlu1 %4999, %v4412_v6   ;;  %4398 = vperm.xlu0 %4998, %v4387_v18  }
0x2581   :  { %4392 = vperm.xlu2 %4997, %v4387_v18  }
0x2588   :  { %5001 = vset.pattern.permute.xlu1 %v5864_v10  ;;  %5003 = vset.pattern.permute.xlu0 %v5892_v46 }
0x2589   :  { %5000 = vset.pattern.permute.xlu2 %v5791_v3 }
0x2590   :  { %4404 = vperm.xlu1 %5001, %v4387_v18   ;;  %4410 = vperm.xlu0 %5003, %v4387_v18  }
0x2591   :  { %4423 = vperm.xlu2 %5000, %v4412_v6  }
0x2598   :  { %5004 = vset.pattern.permute.xlu1 %v5892_v46  ;;  %5007 = vset.pattern.permute.xlu0 %v5788_v2 }
0x2599   :  { %5002 = vset.pattern.permute.xlu2 %v5864_v10 }
0x25a0   :  { %4435 = vperm.xlu1 %5004, %v4412_v6  }
0x25a1   :  { %4429 = vperm.xlu2 %5002, %v4412_v6  }
0x25a8   :  { %5005 = vset.pattern.permute.xlu1 %v5788_v2 }
0x25a9   :  { %5006 = vset.pattern.permute.xlu2 %v5791_v3 }
0x25db   :  { %v4393_v35 = vpop.permute.xlu2 %4392 }
0x25eb   :  { %v4424_v41 = vpop.permute.xlu2 %4423 }
0x25f2   :  { %v4418_v40 = vpop.permute.xlu1 %4417  ;;  %v4399_v61 = vpop.permute.xlu0 %4398 }
0x25f3   :  { %v4437_v55 = vsel %vm263_vm0, %v4393_v35, %v4418_v40  ;;  %v4438_v39 = vsel %vm263_vm0, %v4399_v61, %v4424_v41 }
0x25f4   :  { %v4441_v1 = vmul.f32 %v4437_v55, %v6033_v48  ;;  %v4442_v56 = vmul.f32 %v4438_v39, %v6040_v58 }
0x25f6   :  { %v4445_v5 = vadd.f32 %v4441_v1, %v6050_v33  ;;  %v4446_v17 = vadd.f32 %v4442_v56, %v6054_v15 }
0x25f8   :  { %5366 = vtanh.f32 %v4445_v5 }
0x25f9   :  { %5368 = vtanh.f32 %v4446_v17 }
0x25fb   :  { %v4430_v24 = vpop.permute.xlu2 %4429 }
0x25fe   :  { %v5367_v54 = vpop.eup %5366 }
0x25ff   :  { %v5369_v4 = vpop.eup %5368  ;;  %v4453_v44 = vmul.f32 0.5, %v5367_v54 }
0x2600   :  { %v4454_v32 = vmul.f32 0.5, %v5369_v4 }
0x2601   :  { %v4457_v51 = vadd.f32 0.5, %v4453_v44 }
0x2602   :  { %v4405_v0 = vpop.permute.xlu1 %4404  ;;  %v4411_v9 = vpop.permute.xlu0 %4410  ;;  %v4458_v16 = vadd.f32 0.5, %v4454_v32 }
0x2603   :  { %v4439_v31 = vsel %vm263_vm0, %v4405_v0, %v4430_v24  ;;  %v4461_v53 = vmul.f32 %v4457_v51, %v6148_v49  ;;  %v4478_v7 = vmul.f32 %v4457_v51, %v6095_v23 }
0x2604   :  { %v4443_v2 = vmul.f32 %v4439_v31, %v6046_v45  ;;  %v4462_v22 = vmul.f32 %v4458_v16, %v6181_v26  ;;  %v4479_v42 = vmul.f32 %v4458_v16, %v6102_v60 }
0x2605   :  { %v4465_v12 = vsel %vm402_vm1, %v4461_v53, 0.0  ;;  %v4482_v47 = vsel %vm402_vm1, %v4478_v7, 0.0  ;;  %v4496_v53 = vmul.f32 %v7573_v21, %v6216_v38 }
0x2606   :  { %v4447_v62 = vadd.f32 %v4443_v2, %v6061_v37  ;;  %v4466_v13 = vsel %vm402_vm1, %v4462_v22, 0.0  ;;  %v4483_v18 = vsel %vm402_vm1, %v4479_v42, 0.0 }
0x2607   :  { %v4467_v61 = vadd.f32 %v4466_v13, %v4465_v12  ;;  %v4484_v55 = vadd.f32 %v4483_v18, %v4482_v47 }
0x2608   :  { %5370 = vtanh.f32 %v4447_v62 }
0x260e   :  { %v5371_v36 = vpop.eup %5370 }
0x260f   :  { %v4455_v57 = vmul.f32 0.5, %v5371_v36 }
0x2611   :  { %v4459_v14 = vadd.f32 0.5, %v4455_v57 }
0x2612   :  { %v4436_v30 = vpop.permute.xlu1 %4435 }
0x2613   :  { %v4440_v29 = vsel %vm263_vm0, %v4411_v9, %v4436_v30  ;;  %v4463_v63 = vmul.f32 %v4459_v14, %v6168_v52  ;;  %v4480_v8 = vmul.f32 %v4459_v14, %v6108_v11 }
0x2614   :  { %v4444_v28 = vmul.f32 %v4440_v29, %v6065_v25 }
0x2615   :  { %v4468_v35 = vsel %vm402_vm1, %v4463_v63, 0.0  ;;  %v4485_v41 = vsel %vm402_vm1, %v4480_v8, 0.0 }
0x2616   :  { %v4448_v59 = vadd.f32 %v4444_v28, %v6073_v19  ;;  %v4469_v56 = vadd.f32 %v4468_v35, %v4467_v61  ;;  %v4486_v24 = vadd.f32 %v4485_v41, %v4484_v55 }
0x2618   :  { %5372 = vtanh.f32 %v4448_v59 }
0x261e   :  { %v5373_v27 = vpop.eup %5372 }
0x261f   :  { %v4456_v6 = vmul.f32 0.5, %v5373_v27 }
0x2621   :  { %v4460_v40 = vadd.f32 0.5, %v4456_v6 }
0x2623   :  { %v4464_v39 = vmul.f32 %v4460_v40, %v6177_v34  ;;  %v4481_v1 = vmul.f32 %v4460_v40, %v6139_v43 }
0x2625   :  { %v4470_v0 = vsel %vm402_vm1, %v4464_v39, 0.0  ;;  %v4487_v31 = vsel %vm402_vm1, %v4481_v1, 0.0 }
0x2626   :  { %v4471_v2 = vadd.f32 %v4470_v0, %v4469_v56  ;;  %v4488_v5 = vadd.f32 %v4487_v31, %v4486_v24 }
0x2628   :  { %v4472_v17 = vrot.slane %v4471_v2, 4  ;;  %v4489_v62 = vrot.slane %v4488_v5, 4 }
0x262a   :  { %v4473_v54 = vadd.f32 %v4472_v17, %v4471_v2  ;;  %v4490_v4 = vadd.f32 %v4489_v62, %v4488_v5 }
0x262c   :  { %v4491_v36 = vrot.slane %v4490_v4, 2  ;;  %v4474_v44 = vrot.slane %v4473_v54, 2 }
0x262e   :  { %v4492_v9 = vadd.f32 %v4491_v36, %v4490_v4  ;;  %v4475_v32 = vadd.f32 %v4474_v44, %v4473_v54 }
0x2630   :  { %v4493_v30 = vrot.slane %v4492_v9, 1  ;;  %v4476_v57 = vrot.slane %v4475_v32, 1 }
0x2632   :  { %v4494_v29 = vadd.f32 %v4493_v30, %v4492_v9  ;;  %v4477_v51 = vadd.f32 %v4476_v57, %v4475_v32 }
0x2634   :  { %v4498_v28 = vadd.f32 %v4494_v29, %v7520_v20  ;;  %v4495_v16 = vadd.f32 %v4477_v51, %v7523_v50 }
0x2636   :  { %5374 = vrcp.f32 %v4498_v28  ;;  %v4497_v22 = vadd.f32 %v4496_v53, %v4495_v16 }
0x263c   :  { %v5375_v59 = vpop.eup %5374 }
0x263d   :  { %v4500_v14 = vmul.f32 %v5375_v59, %v4498_v28 }
0x263f   :  { %v4501_v7 = vsub.f32 2.0, %v4500_v14 }
0x2641   :  { %v4502_v42 = vmul.f32 %v5375_v59, %v4501_v7 }
0x2643   :  { %v7619_v63 = vmul.f32 %v4502_v42, %v4497_v22 }
0x2645   :  { %v4505_v8 = vrot.slane %v7619_v63, 7 }
0x2647   :  { %4506 = vrot.lane.b32.xlu2 %v4505_v8, %s5632_s23 }
0x26a1   :  { %v4507_v27 = vpop.permute.xlu2 %4506 }
0x26a2   :  { %v4509_v12 = vsel %vm786_vm2, %v7619_v63, %v4507_v27 }
0x26a3   :  { %v4510_v47 = vperm.slane %v4509_v12, 0  ;;  %v4535_v13 = vperm.slane %v4509_v12, 1 }
0x26a5   :  { %4540 = vperm.xlu0 %5007, %v4535_v13   ;;  %4521 = vperm.xlu2 %5006, %v4510_v47  }
0x26a6   :  { %4515 = vperm.xlu1 %5005, %v4510_v47  }
0x26ad   :  { %5012 = vset.pattern.permute.xlu0 %v5892_v46  ;;  %5009 = vset.pattern.permute.xlu2 %v5864_v10 }
0x26ae   :  { %5008 = vset.pattern.permute.xlu1 %v5791_v3 }
0x26b5   :  { %4558 = vperm.xlu0 %5012, %v4535_v13   ;;  %4527 = vperm.xlu2 %5009, %v4510_v47  }
0x26b6   :  { %4546 = vperm.xlu1 %5008, %v4535_v13  }
0x26bd   :  { %5011 = vset.pattern.permute.xlu2 %v5892_v46 }
0x26be   :  { %5010 = vset.pattern.permute.xlu1 %v5864_v10 }
0x26c5   :  { %4533 = vperm.xlu2 %5011, %v4510_v47  }
0x26c6   :  { %4552 = vperm.xlu1 %5010, %v4535_v13  }
0x26ff   :  { %v4522_v21 = vpop.permute.xlu2 %4521 }
0x270f   :  { %v4528_v35 = vpop.permute.xlu2 %4527 }
0x2717   :  { %v4541_v6 = vpop.permute.xlu0 %4540 }
0x2718   :  { %v4516_v18 = vpop.permute.xlu1 %4515 }
0x2719   :  { %v4560_v41 = vsel %vm263_vm0, %v4516_v18, %v4541_v6 }
0x271a   :  { %v4564_v39 = vmul.f32 %v4560_v41, %v6033_v48 }
0x271c   :  { %v4568_v56 = vadd.f32 %v4564_v39, %v6050_v33 }
0x271f   :  { %v4534_v1 = vpop.permute.xlu2 %4533 }
0x2727   :  { %v4559_v55 = vpop.permute.xlu0 %4558 }
0x2728   :  { %v4547_v40 = vpop.permute.xlu1 %4546  ;;  %v4563_v46 = vsel %vm263_vm0, %v4534_v1, %v4559_v55  ;;  %v4619_v1 = vmul.f32 %v7619_v63, %v6216_v38 }
0x2729   :  { %v4561_v61 = vsel %vm263_vm0, %v4522_v21, %v4547_v40  ;;  %v4567_v24 = vmul.f32 %v4563_v46, %v6065_v25 }
0x272a   :  { %v4565_v3 = vmul.f32 %v4561_v61, %v6040_v58 }
0x272b   :  { %v4571_v0 = vadd.f32 %v4567_v24, %v6073_v19 }
0x272c   :  { %v4569_v10 = vadd.f32 %v4565_v3, %v6054_v15 }
0x272e   :  { %5376 = vtanh.f32 %v4569_v10 }
0x272f   :  { %5378 = vtanh.f32 %v4568_v56 }
0x2730   :  { %5380 = vtanh.f32 %v4571_v0 }
0x2734   :  { %v5377_v31 = vpop.eup %5376 }
0x2735   :  { %v5379_v5 = vpop.eup %5378  ;;  %v4577_v17 = vmul.f32 0.5, %v5377_v31 }
0x2736   :  { %v4576_v62 = vmul.f32 0.5, %v5379_v5  ;;  %v5381_v54 = vpop.eup %5380 }
0x2737   :  { %v4581_v33 = vadd.f32 0.5, %v4577_v17  ;;  %v4579_v4 = vmul.f32 0.5, %v5381_v54 }
0x2738   :  { %v4553_v2 = vpop.permute.xlu1 %4552  ;;  %v4580_v25 = vadd.f32 0.5, %v4576_v62 }
0x2739   :  { %v4562_v58 = vsel %vm263_vm0, %v4528_v35, %v4553_v2  ;;  %v4585_v36 = vmul.f32 %v4581_v33, %v6181_v26  ;;  %v4602_v19 = vmul.f32 %v4581_v33, %v6102_v60  ;;  %v4583_v32 = vadd.f32 0.5, %v4579_v4 }
0x273a   :  { %v4566_v48 = vmul.f32 %v4562_v58, %v6046_v45  ;;  %v4584_v9 = vmul.f32 %v4580_v25, %v6148_v49  ;;  %v4601_v30 = vmul.f32 %v4580_v25, %v6095_v23  ;;  %v5633_v58 = vmov 32.0  }
0x273b   :  { %v4589_v29 = vsel %vm402_vm1, %v4585_v36, 0.0  ;;  %v4587_v26 = vmul.f32 %v4583_v32, %v6177_v34  ;;  %v4604_v60 = vmul.f32 %v4583_v32, %v6139_v43  ;;  %v4684_v32 = vld [vmem:[%s7715_s18 + $0x8] sm:$0xff] }
0x273c   :  { %v4570_v15 = vadd.f32 %v4566_v48, %v6061_v37  ;;  %v4606_v37 = vsel %vm402_vm1, %v4602_v19, 0.0  ;;  %v4588_v57 = vsel %vm402_vm1, %v4584_v9, 0.0  ;;  %v4605_v51 = vsel %vm402_vm1, %v4601_v30, 0.0  ;;  %v4686_v9 = vld [vmem:[%s7715_s18 + $0x18] sm:$0xff]  ;;  %v4685_v30 = vld [vmem:[%s7715_s18 + $0x10] sm:$0xff] }
0x273d   :  { %v4590_v23 = vadd.f32 %v4589_v29, %v4588_v57  ;;  %v4607_v16 = vadd.f32 %v4606_v37, %v4605_v51  ;;  %v4593_v42 = vsel %vm402_vm1, %v4587_v26, 0.0  ;;  %v4610_v8 = vsel %vm402_vm1, %v4604_v60, 0.0  ;;  %4706 = vmatpush.msra.mxu0 %v4686_v9 }
0x273e   :  { %5382 = vtanh.f32 %v4570_v15 }
0x273f   :  { %4707 = vmatpush.msra.mxu0 %v4685_v30 }
0x2741   :  { %4708 = vmatpush.msra.mxu0 %v4684_v32 }
0x2744   :  { %v5383_v44 = vpop.eup %5382 }
0x2745   :  { %v4578_v45 = vmul.f32 0.5, %v5383_v44 }
0x2747   :  { %v4582_v28 = vadd.f32 0.5, %v4578_v45  ;;  %v4683_v45 = vld [vmem:[%s7715_s18] sm:$0xff] }
0x2748   :  { %4709 = vmatpush.msra.mxu0 %v4683_v45 }
0x2749   :  { %v4586_v59 = vmul.f32 %v4582_v28, %v6168_v52  ;;  %v4603_v49 = vmul.f32 %v4582_v28, %v6108_v11 }
0x274b   :  { %v4591_v14 = vsel %vm402_vm1, %v4586_v59, 0.0  ;;  %v4608_v53 = vsel %vm402_vm1, %v4603_v49, 0.0 }
0x274c   :  { %v4592_v7 = vadd.f32 %v4591_v14, %v4590_v23  ;;  %v4609_v22 = vadd.f32 %v4608_v53, %v4607_v16  ;;  %v5015_v23 = vld [vmem:[%s7713_s16] ss:$0 sm:$0xff]  ;;  %s4723_s16 = sshll.u32 %s7717_s20, 4  ;;  %s4724_s16 = int_to_ptr.hbm [resolvable:$true] %s4723_s16 }
0x274d   :  { %v5016_v53 = vld [vmem:[%s7714_s17] ss:$0 sm:$0xff] }
0x274e   :  { %v4594_v27 = vadd.f32 %v4593_v42, %v4592_v7  ;;  %v4611_v34 = vadd.f32 %v4610_v8, %v4609_v22  ;;  %v5017_v42 = vld [vmem:[%s7716_s19] ss:$0 sm:$0xff] }
0x2750   :  { %v4595_v12 = vrot.slane %v4594_v27, 4  ;;  %v4612_v43 = vrot.slane %v4611_v34, 4 }
0x2752   :  { %v4596_v47 = vadd.f32 %v4595_v12, %v4594_v27  ;;  %v4613_v52 = vadd.f32 %v4612_v43, %v4611_v34 }
0x2754   :  { %v4614_v13 = vrot.slane %v4613_v52, 2  ;;  %v4597_v11 = vrot.slane %v4596_v47, 2 }
0x2756   :  { %v4615_v21 = vadd.f32 %v4614_v13, %v4613_v52  ;;  %v4598_v6 = vadd.f32 %v4597_v11, %v4596_v47 }
0x2758   :  { %v4616_v18 = vrot.slane %v4615_v21, 1  ;;  %v4599_v40 = vrot.slane %v4598_v6, 1 }
0x275a   :  { %v4617_v35 = vadd.f32 %v4616_v18, %v4615_v21  ;;  %v4600_v61 = vadd.f32 %v4599_v40, %v4598_v6 }
0x275c   :  { %v4621_v41 = vadd.f32 %v4617_v35, %v7520_v20  ;;  %v4618_v3 = vadd.f32 %v4600_v61, %v7523_v50  ;;  %v5013_v20 = vld [vmem:[%s7711_s14] ss:$0 sm:$0xff] }
0x275d   :  { %v5014_v50 = vld [vmem:[%s7712_s15] ss:$0 sm:$0xff] }
0x275e   :  { %5384 = vrcp.f32 %v4621_v41  ;;  %v4620_v10 = vadd.f32 %v4619_v1, %v4618_v3 }
0x275f   :  { %5386 = vrcp.f32 %v5633_v58 }
0x2764   :  { %v5385_v55 = vpop.eup %5384 }
0x2765   :  { %v4623_v39 = vmul.f32 %v5385_v55, %v4621_v41  ;;  %v5387_v48 = vpop.eup %5386 }
0x2766   :  { %v4648_v17 = vmul.f32 32.0, %v5387_v48  ;;  %vm4652_vm4 = vweird.f32 %v5387_v48 }
0x2767   :  { %v4624_v46 = vsub.f32 2.0, %v4623_v39 }
0x2768   :  { %v4649_v62 = vsub.f32 1.0, %v4648_v17 }
0x2769   :  { %v4625_v56 = vmul.f32 %v5385_v55, %v4624_v46 }
0x276a   :  { %v4650_v15 = vmul.f32 %v5387_v48, %v4649_v62 }
0x276b   :  { %v4626_v24 = vmul.f32 %v4625_v56, %v4620_v10 }
0x276c   :  { %v4651_v54 = vadd.f32 %v5387_v48, %v4650_v15 }
0x276d   :  { %v4628_v0 = vrot.slane %v4626_v24, 7 }
0x276e   :  { %v4653_v33 = vsel %vm4652_vm4, %v5387_v48, %v4651_v54 }
0x276f   :  { %4629 = vrot.lane.b32.xlu1 %v4628_v0, %s5632_s23 }
0x27e1   :  { %v4630_v31 = vpop.permute.xlu1 %4629 }
0x27e2   :  { %v4632_v2 = vsel %vm786_vm2, %v4626_v24, %v4630_v31 }
0x27e3   :  { %v4637_v5 = vmul.f32 %v5013_v20, %v4632_v2 }
0x27e5   :  { %v4642_v38 = vadd.f32 %v5014_v50, %v4637_v5 }
0x27e7   :  { %v4644_v63 = vsel %vm4643_vm3, %v4642_v38, 0.0 }
0x27e8   :  { %4645 = vadd.xlane.f32.xlu2 %v4644_v63 }
0x285b   :  { %v4646_v25 = vpop.xlane.xlu2 %4645 }
0x285c   :  { %v4654_v4 = vmul.f32 %v4653_v33, %v4646_v25 }
0x285e   :  { %v4655_v36 = vsub.f32 %v4642_v38, %v4654_v4 }
0x2860   :  { %v4656_v19 = vmul.f32 %v4655_v36, %v4655_v36 }
0x2862   :  { %v4657_v44 = vsel %vm4643_vm3, %v4656_v19, 0.0 }
0x2863   :  { %4658 = vadd.xlane.f32.xlu1 %v4657_v44 }
0x28d6   :  { %v4659_v29 = vpop.xlane.xlu1 %4658 }
0x28d7   :  { %v4660_v37 = vmul.f32 %v4659_v29, %v4653_v33 }
0x28d9   :  { %v4661_v28 = vadd.f32 1e-05, %v4660_v37 }
0x28db   :  { %5388 = vrsqrt.f32 %v4661_v28  ;;  %vm4668_vm6 = vweird.f32 %v4661_v28 }
0x28e1   :  { %v5389_v57 = vpop.eup %5388 }
0x28e2   :  { %v4663_v51 = vmul.f32 %v5389_v57, %v4661_v28  ;;  %vm4669_vm5 = vweird.f32 %v5389_v57 }
0x28e3   :  { %vm4670_vm7 = vmor %vm4668_vm6, %vm4669_vm5 }
0x28e4   :  { %v4664_v26 = vmul.f32 %v5389_v57, %v4663_v51 }
0x28e6   :  { %v4665_v60 = vmul.f32 0.5, %v4664_v26 }
0x28e8   :  { %v4666_v59 = vsub.f32 1.5, %v4665_v60 }
0x28ea   :  { %v4667_v49 = vmul.f32 %v5389_v57, %v4666_v59 }
0x28ec   :  { %v4671_v16 = vsel %vm4670_vm7, %v5389_v57, %v4667_v49 }
0x28ed   :  { %v4672_v14 = vmul.f32 %v4671_v16, %v4655_v36 }
0x28ef   :  { %v4677_v7 = vmul.f32 %v5015_v23, %v4672_v14 }
0x28f1   :  { %v4682_v22 = vadd.f32 %v5016_v53, %v4677_v7 }
0x28f3   :  { %4737 = vmatmul.msk.f32.vlgmr.msra.gmra.mxu0 %vm263_vm0, %v4682_v22 }
0x2970   :  { %v4711_v8 = vpop.f32.mrf.mxu0 }
0x2971   :  { %v4712_v27 = vadd.f32 %v5017_v42, %v4711_v8 }
0x2973   :  { %4715 = vst.msk [vmem:[#allocation16] sm:$0x3] %vm4714_vm8, %v4712_v27 }
0x2974   :  { %4726 = dma.vmem_to_hbm [thread:$0]  %s4722_s27, 32, %s4724_s16, [#allocation4]  }
0x2975   :  { %5616 = dma.done.wait [#allocation4], 32  }
0x2976   :  { %5617 = vsyncadd [#allocation4], 4294967264 }
0x2977   :  { %4731 = vsyncpa [#allocation3], 1 }
0x2978   :  { %4732 = vsyncpa [#allocation6], 1 }
0x2979   :  { %4733 = vsyncpa [#allocation9], 1 }
0x297a   :  { %4734 = vsyncpa [#allocation12], 1 }
0x297b   :  { %4735 = vsyncpa [#allocation15], 1 }
0x297c   :  { %4736 = vsyncpa [#allocation4], 1 }

</bundles_post_ra>
